<compile_context>
chip_gen: v5e
topology: v5e:2x2
jax: 0.10.0
libtpu: 0.0.40
codegen_flags: <defaults>
</compile_context>

<pallas_src>
import math
import jax
import jax.numpy as jnp
from jax.experimental import pallas as pl
from jax.experimental.pallas import tpu as pltpu

K = 3                  # conv kernel size
H = 28                 # input rows
W = 28                 # input cols
W1 = 26                # conv1 output spatial (28 - 2)
L = 24                 # conv2 output spatial (26 - 2)
C1 = 8                 # channels after conv1
C2 = 16                # channels after conv2
NUM_CLASSES = 10
OUT_PAD = 128          # lane-dense padded class dimension
FEAT = C2 * L * L      # 9216

WIN = 2 * K - 1        # 5 input rows feed one conv2 output row
KIN1 = WIN * W         # 140 : conv1 fused contraction width
N1 = K * W1 * C1       # 624 : conv1 fused output width, col = j*208 + x*8 + c
N2 = L * C2            # 384 : conv2 output width,       col = x*16 + co
TB_DEFAULT = 64        # samples per grid step


# ------------------------------- kernel --------------------------------------

def _cnn_kernel(x_ref, w1_ref, b1_ref, w2_ref, b2_ref, wfc_ref, fcb_ref, o_ref):
    """Fused conv1+relu+conv2+relu+fc+softmax for a TB-sample block.

    x_ref:   (tb*24, 140)  im2row input windows (5 rows x 28 cols per conv2 out-row)
    w1_ref:  (140, 624)    block-banded conv1 weights (bf16)
    w2_ref:  (624, 384)    fused-band conv2 weights (bf16)
    wfc_ref: (9216, 128)   FC weights in kernel feature order, classes padded (bf16)
    o_ref:   (tb, 128)     softmax probabilities (first 10 lanes valid)
    """
    tb = o_ref.shape[0]

    # ---- conv1: one MXU matmul (all 3 kernel rows fused into K=140) ----------
    h1 = jnp.dot(x_ref[...], w1_ref[...], preferred_element_type=jnp.float32)
    h1 = jnp.maximum(h1 + b1_ref[...], 0.0).astype(jnp.bfloat16)      # (tb*24, 624)

    # ---- conv2: one MXU matmul (K=624) ---------------------------------------
    h2 = jnp.dot(h1, w2_ref[...], preferred_element_type=jnp.float32)
    h2 = jnp.maximum(h2 + b2_ref[...], 0.0).astype(jnp.bfloat16)      # (tb*24, 384)

    # ---- FC on the MXU + softmax (f32, lane-dense 128-wide logits) -----------
    flat = h2.reshape(tb, L * N2)                                     # (tb, 9216)
    logits = jnp.dot(flat, wfc_ref[...], preferred_element_type=jnp.float32)
    logits = logits + fcb_ref[...]                                    # (tb, 128)

    m = jnp.max(logits, axis=1, keepdims=True)
    e = jnp.exp(logits - m)
    o_ref[...] = e / jnp.sum(e, axis=1, keepdims=True)


# --------------------------- weight preparation --------------------------------

def _prepare_params(params):
    """Torch-layout params -> fused-band / permuted kernel operands (pure jnp)."""
    w1, b1, w2, b2, fcw, fcb = params
    f32, bf16 = jnp.float32, jnp.bfloat16

    w1k = w1[:, 0, :, :].astype(f32)                        # (c, dy, dx)
    w2k = jnp.transpose(w2, (2, 3, 1, 0)).astype(f32)       # (dy, dx, ci, co)

    # conv1 block-banded weight:
    # w1blk[r*28+xin, j*208 + x*8 + c] = w1[c, 0, r-j, xin-x] if in-range else 0
    r = jnp.arange(WIN)[:, None, None, None, None]
    xi = jnp.arange(W)[None, :, None, None, None]
    jj = jnp.arange(K)[None, None, :, None, None]
    xo = jnp.arange(W1)[None, None, None, :, None]
    cc = jnp.arange(C1)[None, None, None, None, :]
    dy = r - jj
    dx = xi - xo
    ok = (dy >= 0) & (dy < K) & (dx >= 0) & (dx < K)
    w1blk = jnp.where(ok, w1k[cc, jnp.clip(dy, 0, K - 1), jnp.clip(dx, 0, K - 1)], 0.0)
    w1blk = w1blk.reshape(KIN1, N1).astype(bf16)            # (140, 624)

    b1cat = jnp.tile(b1.astype(f32), K * W1).reshape(1, N1)  # (1, 624)

    # conv2 fused-band weight:
    # w2blk[j*208 + xin*8 + ci, xo*16 + co] = w2[co, ci, j, xin-xo] if in-range else 0
    jj2 = jnp.arange(K)[:, None, None, None, None]
    xi2 = jnp.arange(W1)[None, :, None, None, None]
    ci2 = jnp.arange(C1)[None, None, :, None, None]
    xo2 = jnp.arange(L)[None, None, None, :, None]
    co2 = jnp.arange(C2)[None, None, None, None, :]
    dx2 = xi2 - xo2
    ok2 = (dx2 >= 0) & (dx2 < K)
    w2blk = jnp.where(ok2, w2k[jj2, jnp.clip(dx2, 0, K - 1), ci2, co2], 0.0)
    w2blk = w2blk.reshape(N1, N2).astype(bf16)              # (624, 384)

    b2cat = jnp.tile(b2.astype(f32), L).reshape(1, N2)      # (1, 384)

    # FC weight: torch flatten order (co, y, x) -> kernel feature order (y, x*16+co),
    # output classes padded to 128 lanes (zero weights, -1e30 bias on pad lanes).
    wfc = fcw.astype(f32).reshape(NUM_CLASSES, C2, L, L)    # (o, co, y, x)
    wfc = jnp.transpose(wfc, (2, 3, 1, 0)).reshape(FEAT, NUM_CLASSES)
    wfc = jnp.pad(wfc, ((0, 0), (0, OUT_PAD - NUM_CLASSES))).astype(bf16)

    fcb_pad = jnp.full((OUT_PAD,), -1e30, f32).at[:NUM_CLASSES].set(fcb.astype(f32))
    fcb_pad = fcb_pad.reshape(1, OUT_PAD)
    return w1blk, b1cat, w2blk, b2cat, wfc, fcb_pad


# ------------------------------- wrapper ---------------------------------------

def cnn_forward(x_nchw, params, tb=TB_DEFAULT):
    """x_nchw: (B, 1, 28, 28); params in PyTorch layouts (conv OIHW, linear (out, in))."""
    w1blk, b1cat, w2blk, b2cat, wfc, fcb_pad = _prepare_params(params)

    B = x_nchw.shape[0]
    bp8 = ((B + 7) // 8) * 8
    if bp8 <= 8:
        tb = 8
    else:
        # keep >= 2 grid steps when possible so the "parallel" axis can span
        # multiple TensorCores (v7x has 2 TCs/chip)
        tb = min(tb, ((bp8 + 15) // 16) * 8)
    bp = ((B + tb - 1) // tb) * tb

    # im2row: for each conv2 output row y, the 5 input rows y..y+4 (140 values).
    x = x_nchw[:, 0, :, :].astype(jnp.float32)                     # (B, 28, 28)
    widx = jnp.arange(L)[:, None] + jnp.arange(WIN)[None, :]       # (24, 5)
    xw = x[:, widx, :]                                             # (B, 24, 5, 28)
    xw = jnp.pad(xw, ((0, bp - B), (0, 0), (0, 0), (0, 0)))
    xw = xw.reshape(bp * L, KIN1).astype(jnp.bfloat16)             # (bp*24, 140)

    probs = pl.pallas_call(
        _cnn_kernel,
        out_shape=jax.ShapeDtypeStruct((bp, OUT_PAD), jnp.float32),
        grid_spec=pltpu.PrefetchScalarGridSpec(
            num_scalar_prefetch=0,
            grid=(bp // tb,),
            in_specs=[
                pl.BlockSpec((tb * L, KIN1), lambda b: (b, 0)),
                pl.BlockSpec((KIN1, N1), lambda b: (0, 0)),
                pl.BlockSpec((1, N1), lambda b: (0, 0)),
                pl.BlockSpec((N1, N2), lambda b: (0, 0)),
                pl.BlockSpec((1, N2), lambda b: (0, 0)),
                pl.BlockSpec((FEAT, OUT_PAD), lambda b: (0, 0)),
                pl.BlockSpec((1, OUT_PAD), lambda b: (0, 0)),
            ],
            out_specs=pl.BlockSpec((tb, OUT_PAD), lambda b: (b, 0)),
        ),
        compiler_params=pltpu.CompilerParams(
            dimension_semantics=("parallel",),
            vmem_limit_bytes=48 * 1024 * 1024),
    )(xw, w1blk, b1cat, w2blk, b2cat, wfc, fcb_pad)
    return probs[:B, :NUM_CLASSES]


# ------------------------- params / reference ----------------------------------

def init_params(key):
    ks = jax.random.split(key, 6)

    def u(k, shape, fan_in):
        bound = 1.0 / math.sqrt(fan_in)
        return jax.random.uniform(k, shape, jnp.float32, -bound, bound)

    w1 = u(ks[0], (C1, 1, K, K), 1 * K * K)          # OIHW
    b1 = u(ks[1], (C1,), 1 * K * K)
    w2 = u(ks[2], (C2, C1, K, K), C1 * K * K)        # OIHW
    b2 = u(ks[3], (C2,), C1 * K * K)
    fcw = u(ks[4], (NUM_CLASSES, FEAT), FEAT)        # (out, in), torch Linear layout
    fcb = u(ks[5], (NUM_CLASSES,), FEAT)
    return (w1, b1, w2, b2, fcw, fcb)


def reference_forward(x_nchw, params):
    """Plain-JAX reference mirroring the PyTorch forward (drop=False, bn=False)."""
    w1, b1, w2, b2, fcw, fcb = params
    dn = ('NCHW', 'OIHW', 'NCHW')
    hp = jax.lax.Precision.HIGHEST
    h = jax.lax.conv_general_dilated(x_nchw, w1, (1, 1), 'VALID',
                                     dimension_numbers=dn, precision=hp)
    h = jax.nn.relu(h + b1[None, :, None, None])
    h = jax.lax.conv_general_dilated(h, w2, (1, 1), 'VALID',
                                     dimension_numbers=dn, precision=hp)
    h = jax.nn.relu(h + b2[None, :, None, None])
    a = h.reshape(h.shape[0], -1)
    logits = jnp.dot(a, fcw.T, precision=hp) + fcb
    return jax.nn.softmax(logits, axis=1)


if __name__ == "__main__":
    key = jax.random.PRNGKey(0)
    k_x, k_p = jax.random.split(key)
    B = 2
    x = jax.random.normal(k_x, (B, 1, 28, 28), jnp.float32)   # MNIST-like NCHW
    params = init_params(k_p)

    out = jax.block_until_ready(jax.jit(cnn_forward)(x, params))
    ref = jax.block_until_ready(reference_forward(x, params))

    assert out.shape == (B, NUM_CLASSES)
    err = float(jnp.max(jnp.abs(out - ref)))
    # kernel runs bf16 MXU operands with f32 accumulation -> slightly looser tolerance
    assert jnp.allclose(out, ref, rtol=2e-2, atol=3e-3), f"max abs err {err}"

    print("KERNEL_OK")
</pallas_src>

<mosaic_0001>
module attributes {stable_mosaic.version = 11 : i64} {
  func.func @_cnn_kernel(%arg0: i32, %arg1: memref<192x140xbf16, #tpu.memory_space<vmem>>, %arg2: memref<140x624xbf16, #tpu.memory_space<vmem>>, %arg3: memref<1x624xf32, #tpu.memory_space<vmem>>, %arg4: memref<624x384xbf16, #tpu.memory_space<vmem>>, %arg5: memref<1x384xf32, #tpu.memory_space<vmem>>, %arg6: memref<9216x128xbf16, #tpu.memory_space<vmem>>, %arg7: memref<1x128xf32, #tpu.memory_space<vmem>>, %arg8: memref<8x128xf32, #tpu.memory_space<vmem>>) attributes {dimension_semantics = [#tpu.dimension_semantics<parallel>], iteration_bounds = array<i64: 1>, scalar_prefetch = 0 : i64, scratch_operands = 0 : i64, tpu.core_type = #tpu.core_type<tc>, window_params = [{transform_indices = @transform_0, window_bounds = array<i64: 192, 140>}, {pipeline_mode = #tpu.pipeline_mode<synchronous>, transform_indices = @transform_1, window_bounds = array<i64: 140, 624>}, {pipeline_mode = #tpu.pipeline_mode<synchronous>, transform_indices = @transform_2, window_bounds = array<i64: 1, 624>}, {pipeline_mode = #tpu.pipeline_mode<synchronous>, transform_indices = @transform_3, window_bounds = array<i64: 624, 384>}, {pipeline_mode = #tpu.pipeline_mode<synchronous>, transform_indices = @transform_4, window_bounds = array<i64: 1, 384>}, {pipeline_mode = #tpu.pipeline_mode<synchronous>, transform_indices = @transform_5, window_bounds = array<i64: 9216, 128>}, {pipeline_mode = #tpu.pipeline_mode<synchronous>, transform_indices = @transform_6, window_bounds = array<i64: 1, 128>}, {transform_indices = @transform_7, window_bounds = array<i64: 8, 128>}]} {
    %c0 = arith.constant 0 : index
    %c0_0 = arith.constant 0 : index
    %0 = vector.load %arg1[%c0, %c0_0] : memref<192x140xbf16, #tpu.memory_space<vmem>>, vector<192x140xbf16>
    %c0_1 = arith.constant 0 : index
    %c0_2 = arith.constant 0 : index
    %1 = vector.load %arg2[%c0_1, %c0_2] : memref<140x624xbf16, #tpu.memory_space<vmem>>, vector<140x624xbf16>
    %cst = arith.constant dense<0.000000e+00> : vector<192x624xf32>
    %2 = tpu.matmul %0, %1, %cst {dimension_numbers = #tpu.dot_dimension_numbers<[1], [0], [0], [1], [0, 0, 1, 1], [], []>} : vector<192x140xbf16>, vector<140x624xbf16>, vector<192x624xf32> -> vector<192x624xf32>
    %c0_3 = arith.constant 0 : index
    %c0_4 = arith.constant 0 : index
    %3 = vector.load %arg3[%c0_3, %c0_4] : memref<1x624xf32, #tpu.memory_space<vmem>>, vector<1x624xf32>
    %4 = vector.broadcast %3 : vector<1x624xf32> to vector<192x624xf32>
    %5 = arith.addf %2, %4 : vector<192x624xf32>
    %cst_5 = arith.constant 0.000000e+00 : f32
    %6 = vector.broadcast %cst_5 : f32 to vector<192x624xf32>
    %7 = arith.maximumf %5, %6 : vector<192x624xf32>
    %8 = arith.truncf %7 : vector<192x624xf32> to vector<192x624xbf16>
    %c0_6 = arith.constant 0 : index
    %c0_7 = arith.constant 0 : index
    %9 = vector.load %arg4[%c0_6, %c0_7] : memref<624x384xbf16, #tpu.memory_space<vmem>>, vector<624x384xbf16>
    %cst_8 = arith.constant dense<0.000000e+00> : vector<192x384xf32>
    %10 = tpu.matmul %8, %9, %cst_8 {dimension_numbers = #tpu.dot_dimension_numbers<[1], [0], [0], [1], [0, 0, 1, 1], [], []>} : vector<192x624xbf16>, vector<624x384xbf16>, vector<192x384xf32> -> vector<192x384xf32>
    %c0_9 = arith.constant 0 : index
    %c0_10 = arith.constant 0 : index
    %11 = vector.load %arg5[%c0_9, %c0_10] : memref<1x384xf32, #tpu.memory_space<vmem>>, vector<1x384xf32>
    %12 = vector.broadcast %11 : vector<1x384xf32> to vector<192x384xf32>
    %13 = arith.addf %10, %12 : vector<192x384xf32>
    %cst_11 = arith.constant 0.000000e+00 : f32
    %14 = vector.broadcast %cst_11 : f32 to vector<192x384xf32>
    %15 = arith.maximumf %13, %14 : vector<192x384xf32>
    %16 = arith.truncf %15 : vector<192x384xf32> to vector<192x384xbf16>
    %17 = vector.shape_cast %16 : vector<192x384xbf16> to vector<8x9216xbf16>
    %c0_12 = arith.constant 0 : index
    %c0_13 = arith.constant 0 : index
    %18 = vector.load %arg6[%c0_12, %c0_13] : memref<9216x128xbf16, #tpu.memory_space<vmem>>, vector<9216x128xbf16>
    %cst_14 = arith.constant dense<0.000000e+00> : vector<8x128xf32>
    %19 = tpu.matmul %17, %18, %cst_14 {dimension_numbers = #tpu.dot_dimension_numbers<[1], [0], [0], [1], [0, 0, 1, 1], [], []>} : vector<8x9216xbf16>, vector<9216x128xbf16>, vector<8x128xf32> -> vector<8x128xf32>
    %c0_15 = arith.constant 0 : index
    %c0_16 = arith.constant 0 : index
    %20 = vector.load %arg7[%c0_15, %c0_16] : memref<1x128xf32, #tpu.memory_space<vmem>>, vector<1x128xf32>
    %21 = vector.broadcast %20 : vector<1x128xf32> to vector<8x128xf32>
    %22 = arith.addf %19, %21 : vector<8x128xf32>
    %cst_17 = arith.constant dense<0xFF800000> : vector<8xf32>
    %23 = vector.multi_reduction <maximumf>, %22, %cst_17 [1] : vector<8x128xf32> to vector<8xf32>
    %24 = vector.shape_cast %23 : vector<8xf32> to vector<8x1xf32>
    %25 = vector.broadcast %24 : vector<8x1xf32> to vector<8x128xf32>
    %26 = arith.subf %22, %25 : vector<8x128xf32>
    %27 = math.exp %26 : vector<8x128xf32>
    %cst_18 = arith.constant dense<0.000000e+00> : vector<8xf32>
    %28 = vector.multi_reduction <add>, %27, %cst_18 [1] : vector<8x128xf32> to vector<8xf32>
    %29 = vector.shape_cast %28 : vector<8xf32> to vector<8x1xf32>
    %30 = vector.broadcast %29 : vector<8x1xf32> to vector<8x128xf32>
    %31 = arith.divf %27, %30 : vector<8x128xf32>
    %c0_19 = arith.constant 0 : index
    %c0_20 = arith.constant 0 : index
    %32 = vector.load %arg8[%c0_19, %c0_20] : memref<8x128xf32, #tpu.memory_space<vmem>>, vector<8x128xf32>
    tpu.vector_store %arg8[%c0_19, %c0_20], %31 {strides = array<i32>} : memref<8x128xf32, #tpu.memory_space<vmem>>, vector<8x128xf32>,
    return
  }
  func.func @transform_0(%arg0: i32) -> (i32, i32) {
    %c0_i32 = arith.constant 0 : i32
    %c0_i32_0 = arith.constant 0 : i32
    return %arg0, %c0_i32 : i32, i32
  }
  func.func @transform_1(%arg0: i32) -> (i32, i32) {
    %c0_i32 = arith.constant 0 : i32
    %c0_i32_0 = arith.constant 0 : i32
    %c0_i32_1 = arith.constant 0 : i32
    return %c0_i32, %c0_i32_0 : i32, i32
  }
  func.func @transform_2(%arg0: i32) -> (i32, i32) {
    %c0_i32 = arith.constant 0 : i32
    %c0_i32_0 = arith.constant 0 : i32
    %c0_i32_1 = arith.constant 0 : i32
    return %c0_i32, %c0_i32_0 : i32, i32
  }
  func.func @transform_3(%arg0: i32) -> (i32, i32) {
    %c0_i32 = arith.constant 0 : i32
    %c0_i32_0 = arith.constant 0 : i32
    %c0_i32_1 = arith.constant 0 : i32
    return %c0_i32, %c0_i32_0 : i32, i32
  }
  func.func @transform_4(%arg0: i32) -> (i32, i32) {
    %c0_i32 = arith.constant 0 : i32
    %c0_i32_0 = arith.constant 0 : i32
    %c0_i32_1 = arith.constant 0 : i32
    return %c0_i32, %c0_i32_0 : i32, i32
  }
  func.func @transform_5(%arg0: i32) -> (i32, i32) {
    %c0_i32 = arith.constant 0 : i32
    %c0_i32_0 = arith.constant 0 : i32
    %c0_i32_1 = arith.constant 0 : i32
    return %c0_i32, %c0_i32_0 : i32, i32
  }
  func.func @transform_6(%arg0: i32) -> (i32, i32) {
    %c0_i32 = arith.constant 0 : i32
    %c0_i32_0 = arith.constant 0 : i32
    %c0_i32_1 = arith.constant 0 : i32
    return %c0_i32, %c0_i32_0 : i32, i32
  }
  func.func @transform_7(%arg0: i32) -> (i32, i32) {
    %c0_i32 = arith.constant 0 : i32
    %c0_i32_0 = arith.constant 0 : i32
    return %arg0, %c0_i32 : i32, i32
  }
}

</mosaic_0001>

<bundles_post_ra>
// kernel: tile.13
= control target key start
LH: loop header
LB: loop body
LE: loop exit
PB: predicated region body
PF: predicated region fallthrough
CT: control target
= control target key end

     0   :  { %s76_s0 = inlined_call_operand.vmem [shape: f32[8], index: 0, kind: input, shape index: {}]   ;;  %s77_s1 = inlined_call_operand.vmem [shape: f32[78,8], index: 1, kind: output, shape index: {}]  }
   0x1   :  { %v4_v0 = vld [vmem:[%s76_s0] ss:$0 sm:$0xff] }
   0x2   :  { %5 = vst [vmem:[%s77_s1] sm:$0xff] %v4_v0 }
   0x3   :  { %24 = vst [vmem:[%s77_s1 + $0x8] sm:$0xff] %v4_v0 }
   0x4   :  { %25 = vst [vmem:[%s77_s1 + $0x10] sm:$0xff] %v4_v0 }
   0x5   :  { %26 = vst [vmem:[%s77_s1 + $0x18] sm:$0xff] %v4_v0 }
   0x6   :  { %27 = vst [vmem:[%s77_s1 + $0x20] sm:$0xff] %v4_v0 }
   0x7   :  { %28 = vst [vmem:[%s77_s1 + $0x28] sm:$0xff] %v4_v0 }
   0x8   :  { %29 = vst [vmem:[%s77_s1 + $0x30] sm:$0xff] %v4_v0 }
   0x9   :  { %30 = vst [vmem:[%s77_s1 + $0x38] sm:$0xff] %v4_v0 }
   0xa   :  { %31 = vst [vmem:[%s77_s1 + $0x40] sm:$0xff] %v4_v0 }
   0xb   :  { %32 = vst [vmem:[%s77_s1 + $0x48] sm:$0xff] %v4_v0 }

// kernel: tile.14
= control target key start
LH: loop header
LB: loop body
LE: loop exit
PB: predicated region body
PF: predicated region fallthrough
CT: control target
= control target key end

     0   :  { %vm6_vm0 = vcmask 1043458   ;;  %s17_s6 = smov 3  ;;  %s20_s7 = smov 12  ;;  %vm10_vm1 = vcmask 1044484   ;;  %vm12_vm2 = vcmask 64512   ;;  %vm26_vm3 = vcmask 1048512   ;;  %s575_s0 = inlined_call_operand.vmem [shape: f32[78,8], index: 0, kind: input, shape index: {}]   ;;  %s576_s1 = inlined_call_operand.vmem [shape: f32[1,624], index: 1, kind: output, shape index: {}]  }
   0x1   :  { %v305_v0 = vld [vmem:[%s575_s0 + $0xf] ss:$16 sm:%s17_s6]   ;;  %s41_s12 = smov 3  ;;  %s44_s15 = smov 12  ;;  %v311_v4 = vld [vmem:[%s575_s0 + $0x49] sm:$0x10]  }
   0x2   :  { %v306_v1 = vld [vmem:[%s575_s0 + $0xf] ss:$16 sm:%s20_s7]   ;;  %v309_v3 = vld [vmem:[%s575_s0 + $0xd] ss:$16 sm:%s41_s12]   ;;  %s367_s18 = smov 120   ;;  %s29_s21 = smov 3 }
   0x3   :  { %v23_v2 = vsel %vm6_vm0, %v306_v1, %v305_v0  ;;  %v310_v5 = vld [vmem:[%s575_s0 + $0xd] ss:$16 sm:%s44_s15]   ;;  %s32_s22 = smov 12  ;;  %v307_v7 = vld [vmem:[%s575_s0 + $0xe] ss:$16 sm:%s29_s21]   ;;  %s59_s25 = smov 3 }
   0x4   :  { %24 = vrot.lane.b32.xlu0 %v23_v2, %s367_s18  ;;  %v47_v6 = vsel %vm6_vm0, %v310_v5, %v309_v3  ;;  %v308_v9 = vld [vmem:[%s575_s0 + $0xe] ss:$16 sm:%s32_s22]   ;;  %s62_s30 = smov 12  ;;  %s368_s2 = smov 104   ;;  %v314_v14 = vld [vmem:[%s575_s0 + $0x48] sm:$0x10]  }
   0x5   :  { %v51_v8 = vsel %vm10_vm1, %v311_v4, %v47_v6  ;;  %v312_v10 = vld [vmem:[%s575_s0 + $0xc] ss:$16 sm:%s59_s25]   ;;  %s113_s5 = smov 3  ;;  %s116_s6 = smov 12  ;;  %v35_v12 = vsel %vm6_vm0, %v308_v9, %v307_v7  ;;  %v323_v18 = vld [vmem:[%s575_s0 + $0x45] sm:$0x10]  }
   0x6   :  { %52 = vrot.lane.b32.xlu1 %v51_v8, %s368_s2  ;;  %v313_v11 = vld [vmem:[%s575_s0 + $0xc] ss:$16 sm:%s62_s30]   ;;  %s131_s9 = smov 3  ;;  %s134_s10 = smov 12  ;;  %v317_v21 = vld [vmem:[%s575_s0 + $0x47] sm:$0x10]  }
   0x7   :  { %v65_v13 = vsel %vm6_vm0, %v313_v11, %v312_v10  ;;  %v321_v15 = vld [vmem:[%s575_s0 + $0x9] ss:$16 sm:%s113_s5]   ;;  %s369_s15 = smov 112   ;;  %v324_v19 = vld [vmem:[%s575_s0 + $0x8] ss:$16 sm:%s131_s9]   ;;  %s77_s22 = smov 3 }
   0x8   :  { %v322_v16 = vld [vmem:[%s575_s0 + $0x9] ss:$16 sm:%s116_s6]   ;;  %v69_v17 = vsel %vm10_vm1, %v314_v14, %v65_v13  ;;  %v325_v20 = vld [vmem:[%s575_s0 + $0x8] ss:$16 sm:%s134_s10]   ;;  %s80_s23 = smov 12  ;;  %s167_s26 = smov 3 }
   0x9   :  { %v119_v22 = vsel %vm6_vm0, %v322_v16, %v321_v15  ;;  %v315_v23 = vld [vmem:[%s575_s0 + $0xb] ss:$16 sm:%s77_s22]   ;;  %s370_s2 = smov 96   ;;  %s170_s3 = smov 12  ;;  %v137_v28 = vsel %vm6_vm0, %v325_v20, %v324_v19  ;;  %v326_v29 = vld [vmem:[%s575_s0 + $0x44] sm:$0x10]  }
   0xa   :  { %v316_v24 = vld [vmem:[%s575_s0 + $0xb] ss:$16 sm:%s80_s23]   ;;  %v123_v27 = vsel %vm10_vm1, %v323_v18, %v119_v22  ;;  %v330_v30 = vld [vmem:[%s575_s0 + $0x6] ss:$16 sm:%s167_s26]   ;;  %s371_s8 = smov 88   ;;  %s95_s9 = smov 3  ;;  %v141_v35 = vsel %vm10_vm1, %v326_v29, %v137_v28 }
   0xb   :  { %v83_v25 = vsel %vm6_vm0, %v316_v24, %v315_v23  ;;  %v331_v31 = vld [vmem:[%s575_s0 + $0x6] ss:$16 sm:%s170_s3]   ;;  %v318_v32 = vld [vmem:[%s575_s0 + $0xa] ss:$16 sm:%s95_s9]   ;;  %s98_s14 = smov 12  ;;  %s188_s16 = smov 12 }
   0xc   :  { %36 = vrot.lane.b32.xlu0 %v35_v12, %s369_s15  ;;  %v87_v26 = vsel %vm10_vm1, %v317_v21, %v83_v25  ;;  %s185_s15 = smov 3  ;;  %v319_v33 = vld [vmem:[%s575_s0 + $0xa] ss:$16 sm:%s98_s14]   ;;  %s372_s21 = smov 72   ;;  %v332_v37 = vld [vmem:[%s575_s0 + $0x42] sm:$0x10]   ;;  %v173_v38 = vsel %vm6_vm0, %v331_v31, %v330_v30 }
   0xd   :  { %88 = vrot.lane.b32.xlu2 %v87_v26, %s371_s8  ;;  %v320_v34 = vld [vmem:[%s575_s0 + $0x46] sm:$0x10]   ;;  %v101_v36 = vsel %vm6_vm0, %v319_v33, %v318_v32  ;;  %s149_s24 = smov 3  ;;  %s152_s25 = smov 12  ;;  %v333_v39 = vld [vmem:[%s575_s0 + $0x5] ss:$16 sm:%s185_s15]   ;;  %v177_v44 = vsel %vm10_vm1, %v332_v37, %v173_v38 }
   0xe   :  { %70 = vrot.lane.b32.xlu1 %v69_v17, %s370_s2  ;;  %v334_v40 = vld [vmem:[%s575_s0 + $0x5] ss:$16 sm:%s188_s16]   ;;  %v105_v41 = vsel %vm10_vm1, %v320_v34, %v101_v36  ;;  %s373_s30 = smov 64   ;;  %s221_s2 = smov 3  ;;  %v329_v50 = vld [vmem:[%s575_s0 + $0x43] sm:$0x10]  }
   0xf   :  { %s224_s3 = smov 12  ;;  %v327_v42 = vld [vmem:[%s575_s0 + $0x7] ss:$16 sm:%s149_s24]   ;;  %v191_v45 = vsel %vm6_vm0, %v334_v40, %v333_v39  ;;  %v335_v46 = vld [vmem:[%s575_s0 + $0x41] sm:$0x10]   ;;  %s374_s10 = smov 80  }
  0x10   :  { %v328_v43 = vld [vmem:[%s575_s0 + $0x7] ss:$16 sm:%s152_s25]   ;;  %v339_v47 = vld [vmem:[%s575_s0 + $0x3] ss:$16 sm:%s221_s2]   ;;  %s239_s15 = smov 3  ;;  %s242_s16 = smov 12  ;;  %v195_v51 = vsel %vm10_vm1, %v335_v46, %v191_v45 }
  0x11   :  { %v340_v48 = vld [vmem:[%s575_s0 + $0x3] ss:$16 sm:%s224_s3]   ;;  %v155_v49 = vsel %vm6_vm0, %v328_v43, %v327_v42  ;;  %s375_s19 = smov 48   ;;  %s203_s22 = smov 3  ;;  %v342_v54 = vld [vmem:[%s575_s0 + $0x2] ss:$16 sm:%s239_s15]  }
  0x12   :  { %v341_v52 = vld [vmem:[%s575_s0 + $0x3f] sm:$0x10]   ;;  %s206_s23 = smov 12  ;;  %v227_v53 = vsel %vm6_vm0, %v340_v48, %v339_v47  ;;  %v343_v55 = vld [vmem:[%s575_s0 + $0x2] ss:$16 sm:%s242_s16]   ;;  %v159_v56 = vsel %vm10_vm1, %v329_v50, %v155_v49  ;;  %s376_s28 = smov 40  }
  0x13   :  { %v336_v57 = vld [vmem:[%s575_s0 + $0x4] ss:$16 sm:%s203_s22]   ;;  %v231_v59 = vsel %vm10_vm1, %v341_v52, %v227_v53  ;;  %v245_v60 = vsel %vm6_vm0, %v343_v55, %v342_v54  ;;  %v344_v61 = vld [vmem:[%s575_s0 + $0x3e] sm:$0x10]   ;;  %s377_s6 = smov 56   ;;  %s378_s9 = smov 24  }
  0x14   :  { %124 = vrot.lane.b32.xlu0 %v123_v27, %s372_s21  ;;  %v337_v58 = vld [vmem:[%s575_s0 + $0x4] ss:$16 sm:%s206_s23]   ;;  %v249_v0 = vsel %vm10_vm1, %v344_v61, %v245_v60  ;;  %s260_s11 = smov 12  ;;  %s379_s12 = smov 16   ;;  %v347_v5 = vld [vmem:[%s575_s0 + $0x3d] sm:$0x10]  }
  0x15   :  { %106 = vrot.lane.b32.xlu2 %v105_v41, %s374_s10  ;;  %v209_v62 = vsel %vm6_vm0, %v337_v58, %v336_v57  ;;  %v338_v63 = vld [vmem:[%s575_s0 + $0x40] sm:$0x10]   ;;  %s257_s10 = smov 3  ;;  %v346_v3 = vld [vmem:[%s575_s0 + $0x1] ss:$16 sm:%s260_s11]   ;;  %s380_s17 = smov 32  }
  0x16   :  { %142 = vrot.lane.b32.xlu1 %v141_v35, %s373_s30  ;;  %v213_v1 = vsel %vm10_vm1, %v338_v63, %v209_v62  ;;  %v345_v2 = vld [vmem:[%s575_s0 + $0x1] ss:$16 sm:%s257_s10]   ;;  %s381_s20 = smov 8   ;;  %s2_s21 = smov 3  ;;  %v304_v7 = vld [vmem:[%s575_s0 + $0x3c] sm:$0x10]  }
  0x17   :  { %v263_v4 = vsel %vm6_vm0, %v346_v3, %v345_v2  ;;  %s4_s22 = smov 12  ;;  %v3_v8 = vld [vmem:[%s575_s0] ss:$16 sm:%s2_s21]   ;;  %vm54_vm4 = vcmask 917312   ;;  %vm38_vm5 = vcmask 982912   ;;  %vm72_vm6 = vcmask 851712  }
  0x18   :  { %v267_v6 = vsel %vm10_vm1, %v347_v5, %v263_v4  ;;  %v5_v9 = vld [vmem:[%s575_s0] ss:$16 sm:%s4_s22]   ;;  %vm90_vm7 = vcmask 786112   ;;  %vm108_vm8 = vcmask 720512   ;;  %vm126_vm9 = vcmask 654912  }
  0x19   :  { %v7_v10 = vsel %vm6_vm0, %v5_v9, %v3_v8  ;;  %vm144_vm10 = vcmask 589312   ;;  %vm162_vm11 = vcmask 523712   ;;  %vm180_vm12 = vcmask 458112  }
  0x1a   :  { %v11_v11 = vsel %vm10_vm1, %v304_v7, %v7_v10  ;;  %vm198_vm13 = vcmask 392512   ;;  %vm216_vm14 = vcmask 326912   ;;  %vm234_vm15 = vcmask 261312  }
  0x1b   :  { %13 = vst.msk [vmem:[#allocation0] ss:$8 sm:$0xf] %vm12_vm2, %v11_v11   ;;  %vm252_vm0 = vcmask 195712   ;;  %vm270_vm1 = vcmask 130112  }
  0x1c   :  { %178 = vrot.lane.b32.xlu0 %v177_v44, %s375_s19  ;;  %15 = vst.msk [vmem:[#allocation0 + $0x1c] sm:$0x10] %vm12_vm2, %v11_v11  }
  0x1d   :  { %160 = vrot.lane.b32.xlu2 %v159_v56, %s377_s6 }
  0x1e   :  { %196 = vrot.lane.b32.xlu1 %v195_v51, %s376_s28 }
  0x24   :  { %232 = vrot.lane.b32.xlu0 %v231_v59, %s378_s9 }
  0x25   :  { %214 = vrot.lane.b32.xlu2 %v213_v1, %s380_s17 }
  0x26   :  { %250 = vrot.lane.b32.xlu1 %v249_v0, %s379_s12 }
  0x2d   :  { %268 = vrot.lane.b32.xlu2 %v267_v6, %s381_s20 }
  0x67   :  { %v89_v12 = vpop.permute.xlu2 %88  }
  0x6f   :  { %v107_v13 = vpop.permute.xlu2 %106  }
  0x76   :  { %v25_v14 = vpop.permute.xlu0 %24  }
  0x77   :  { %27 = vst.msk [vmem:[#allocation0] ss:$8 sm:$0xf] %vm26_vm3, %v25_v14   ;;  %v161_v16 = vpop.permute.xlu2 %160  }
  0x78   :  { %v53_v15 = vpop.permute.xlu1 %52  }
  0x79   :  { %57 = vst.msk [vmem:[#allocation0 + $0x1c] sm:$0x10] %vm54_vm4, %v53_v15  }
  0x7e   :  { %v37_v17 = vpop.permute.xlu0 %36  }
  0x7f   :  { %39 = vst.msk [vmem:[#allocation0] ss:$8 sm:$0xf] %vm38_vm5, %v37_v17   ;;  %v215_v19 = vpop.permute.xlu2 %214  }
  0x80   :  { %55 = vst.msk [vmem:[#allocation0] ss:$8 sm:$0xf] %vm54_vm4, %v53_v15   ;;  %v71_v18 = vpop.permute.xlu1 %70  }
  0x81   :  { %73 = vst.msk [vmem:[#allocation0] ss:$8 sm:$0xf] %vm72_vm6, %v71_v18  }
  0x82   :  { %75 = vst.msk [vmem:[#allocation0 + $0x1c] sm:$0x10] %vm72_vm6, %v71_v18  }
  0x83   :  { %91 = vst.msk [vmem:[#allocation0] ss:$8 sm:$0xf] %vm90_vm7, %v89_v12  }
  0x84   :  { %93 = vst.msk [vmem:[#allocation0 + $0x1c] sm:$0x10] %vm90_vm7, %v89_v12  }
  0x85   :  { %109 = vst.msk [vmem:[#allocation0] ss:$8 sm:$0xf] %vm108_vm8, %v107_v13  }
  0x86   :  { %v125_v20 = vpop.permute.xlu0 %124   ;;  %111 = vst.msk [vmem:[#allocation0 + $0x1c] sm:$0x10] %vm108_vm8, %v107_v13  }
  0x87   :  { %127 = vst.msk [vmem:[#allocation0] ss:$8 sm:$0xf] %vm126_vm9, %v125_v20   ;;  %v269_v22 = vpop.permute.xlu2 %268  }
  0x88   :  { %129 = vst.msk [vmem:[#allocation0 + $0x1c] sm:$0x10] %vm126_vm9, %v125_v20   ;;  %v143_v21 = vpop.permute.xlu1 %142  }
  0x89   :  { %145 = vst.msk [vmem:[#allocation0] ss:$8 sm:$0xf] %vm144_vm10, %v143_v21  }
  0x8a   :  { %147 = vst.msk [vmem:[#allocation0 + $0x1c] sm:$0x10] %vm144_vm10, %v143_v21  }
  0x8b   :  { %163 = vst.msk [vmem:[#allocation0] ss:$8 sm:$0xf] %vm162_vm11, %v161_v16  }
  0x8c   :  { %165 = vst.msk [vmem:[#allocation0 + $0x1c] sm:$0x10] %vm162_vm11, %v161_v16  }
  0x8e   :  { %v179_v23 = vpop.permute.xlu0 %178  }
  0x8f   :  { %181 = vst.msk [vmem:[#allocation0] ss:$8 sm:$0xf] %vm180_vm12, %v179_v23  }
  0x90   :  { %183 = vst.msk [vmem:[#allocation0 + $0x1c] sm:$0x10] %vm180_vm12, %v179_v23   ;;  %v197_v24 = vpop.permute.xlu1 %196  }
  0x91   :  { %199 = vst.msk [vmem:[#allocation0] ss:$8 sm:$0xf] %vm198_vm13, %v197_v24  }
  0x92   :  { %201 = vst.msk [vmem:[#allocation0 + $0x1c] sm:$0x10] %vm198_vm13, %v197_v24  }
  0x93   :  { %217 = vst.msk [vmem:[#allocation0] ss:$8 sm:$0xf] %vm216_vm14, %v215_v19  }
  0x94   :  { %219 = vst.msk [vmem:[#allocation0 + $0x1c] sm:$0x10] %vm216_vm14, %v215_v19  }
  0x96   :  { %v233_v25 = vpop.permute.xlu0 %232  }
  0x97   :  { %235 = vst.msk [vmem:[#allocation0] ss:$8 sm:$0xf] %vm234_vm15, %v233_v25  }
  0x98   :  { %237 = vst.msk [vmem:[#allocation0 + $0x1c] sm:$0x10] %vm234_vm15, %v233_v25   ;;  %v251_v26 = vpop.permute.xlu1 %250  }
  0x99   :  { %253 = vst.msk [vmem:[#allocation0] ss:$8 sm:$0xf] %vm252_vm0, %v251_v26  }
  0x9a   :  { %255 = vst.msk [vmem:[#allocation0 + $0x1c] sm:$0x10] %vm252_vm0, %v251_v26  }
  0x9b   :  { %271 = vst.msk [vmem:[#allocation0] ss:$8 sm:$0xf] %vm270_vm1, %v269_v22  }
  0x9c   :  { %273 = vst.msk [vmem:[#allocation0 + $0x1c] sm:$0x10] %vm270_vm1, %v269_v22  }
  0xa2   :  { %v276_v27 = vld [vmem:[#allocation0] sm:$0x1]  ;;  %v281_v28 = vld [vmem:[#allocation0 + $0x8] sm:$0x1]  ;;  %v287_v29 = vld [vmem:[#allocation0 + $0x10] sm:$0x1] }
  0xa3   :  { %279 = vst [vmem:[%s576_s1] sm:$0x1] %v276_v27  ;;  %v293_v30 = vld [vmem:[#allocation0 + $0x18] sm:$0x1]  ;;  %v299_v31 = vld [vmem:[#allocation0 + $0x20] sm:$0x1] }
  0xa4   :  { %348 = vst [vmem:[%s576_s1 + $0x1] sm:$0x1] %v281_v28 }
  0xa5   :  { %349 = vst [vmem:[%s576_s1 + $0x2] sm:$0x1] %v287_v29 }
  0xa6   :  { %350 = vst [vmem:[%s576_s1 + $0x3] sm:$0x1] %v293_v30 }
  0xa7   :  { %351 = vst [vmem:[%s576_s1 + $0x4] sm:$0x1] %v299_v31 }

// kernel: tile.18
= control target key start
LH: loop header
LB: loop body
LE: loop exit
PB: predicated region body
PF: predicated region fallthrough
CT: control target
= control target key end

     0   :  { %s34_s0 = inlined_call_operand.vmem [shape: f32[16], index: 0, kind: input, shape index: {}]   ;;  %s35_s1 = inlined_call_operand.vmem [shape: f32[24,16], index: 1, kind: output, shape index: {}]  }
   0x1   :  { %v4_v0 = vld [vmem:[%s34_s0] ss:$0 sm:$0xff] }
   0x2   :  { %5 = vst [vmem:[%s35_s1] sm:$0xff] %v4_v0 }
   0x3   :  { %10 = vst [vmem:[%s35_s1 + $0x8] sm:$0xff] %v4_v0 }
   0x4   :  { %11 = vst [vmem:[%s35_s1 + $0x10] sm:$0xff] %v4_v0 }

// kernel: tile.19
= control target key start
LH: loop header
LB: loop body
LE: loop exit
PB: predicated region body
PF: predicated region fallthrough
CT: control target
= control target key end

     0   :  { %s81_s8 = smov 112   ;;  %s82_s11 = smov 80   ;;  %vm3_vm0 = vcmask 130048   ;;  %vm9_vm1 = vcmask 1048448   ;;  %vm15_vm2 = vcmask 917248   ;;  %vm21_vm3 = vcmask 786048   ;;  %s131_s0 = inlined_call_operand.vmem [shape: f32[24,16], index: 0, kind: input, shape index: {}]   ;;  %s132_s1 = inlined_call_operand.vmem [shape: f32[1,384], index: 1, kind: output, shape index: {}]  }
   0x1   :  { %v65_v0 = vld [vmem:[%s131_s0 + $0x7] ss:$8 sm:$0x7]   ;;  %v67_v1 = vld [vmem:[%s131_s0 + $0x5] ss:$8 sm:$0x7]  }
   0x2   :  { %7 = vrot.lane.b32.xlu0 %v65_v0, %s81_s8  ;;  %19 = vrot.lane.b32.xlu1 %v67_v1, %s82_s11  ;;  %v69_v2 = vld [vmem:[%s131_s0 + $0x3] ss:$8 sm:$0x7]   ;;  %s83_s14 = smov 48   ;;  %s84_s19 = smov 96   ;;  %vm27_vm4 = vcmask 654848  }
   0x3   :  { %31 = vrot.lane.b32.xlu2 %v69_v2, %s83_s14  ;;  %v66_v3 = vld [vmem:[%s131_s0 + $0x6] ss:$8 sm:$0x7]   ;;  %v68_v4 = vld [vmem:[%s131_s0 + $0x4] ss:$8 sm:$0x7]  }
   0x4   :  { %s85_s20 = smov 64   ;;  %v70_v5 = vld [vmem:[%s131_s0 + $0x2] ss:$8 sm:$0x7]   ;;  %s86_s23 = smov 32   ;;  %vm33_vm5 = vcmask 523648  }
   0x5   :  { %v71_v6 = vld [vmem:[%s131_s0 + $0x1] ss:$8 sm:$0x7]   ;;  %s87_s26 = smov 16   ;;  %vm39_vm6 = vcmask 392448   ;;  %vm45_vm7 = vcmask 261248  }
   0x6   :  { %v2_v7 = vld [vmem:[%s131_s0] ss:$8 sm:$0x7]  }
   0x7   :  { %4 = vst.msk [vmem:[#allocation0] ss:$8 sm:$0x7] %vm3_vm0, %v2_v7  }
   0xa   :  { %13 = vrot.lane.b32.xlu0 %v66_v3, %s84_s19  ;;  %25 = vrot.lane.b32.xlu1 %v68_v4, %s85_s20 }
   0xb   :  { %37 = vrot.lane.b32.xlu2 %v70_v5, %s86_s23 }
  0x12   :  { %43 = vrot.lane.b32.xlu0 %v71_v6, %s87_s26 }
  0x5d   :  { %v32_v8 = vpop.permute.xlu2 %31  }
  0x65   :  { %v38_v9 = vpop.permute.xlu2 %37  }
  0x74   :  { %v8_v10 = vpop.permute.xlu0 %7   ;;  %v20_v11 = vpop.permute.xlu1 %19  }
  0x75   :  { %10 = vst.msk [vmem:[#allocation0] ss:$8 sm:$0x7] %vm9_vm1, %v8_v10  }
  0x7c   :  { %v14_v12 = vpop.permute.xlu0 %13   ;;  %v26_v13 = vpop.permute.xlu1 %25  }
  0x7d   :  { %16 = vst.msk [vmem:[#allocation0] ss:$8 sm:$0x7] %vm15_vm2, %v14_v12  }
  0x7e   :  { %22 = vst.msk [vmem:[#allocation0] ss:$8 sm:$0x7] %vm21_vm3, %v20_v11  }
  0x7f   :  { %28 = vst.msk [vmem:[#allocation0] ss:$8 sm:$0x7] %vm27_vm4, %v26_v13  }
  0x80   :  { %34 = vst.msk [vmem:[#allocation0] ss:$8 sm:$0x7] %vm33_vm5, %v32_v8  }
  0x81   :  { %40 = vst.msk [vmem:[#allocation0] ss:$8 sm:$0x7] %vm39_vm6, %v38_v9  }
  0x84   :  { %v44_v14 = vpop.permute.xlu0 %43  }
  0x85   :  { %46 = vst.msk [vmem:[#allocation0] ss:$8 sm:$0x7] %vm45_vm7, %v44_v14  }
  0x8c   :  { %v49_v15 = vld [vmem:[#allocation0] sm:$0x1]  ;;  %v54_v16 = vld [vmem:[#allocation0 + $0x8] sm:$0x1]  ;;  %v60_v17 = vld [vmem:[#allocation0 + $0x10] sm:$0x1] }
  0x8d   :  { %52 = vst [vmem:[%s132_s1] sm:$0x1] %v49_v15 }
  0x8e   :  { %72 = vst [vmem:[%s132_s1 + $0x1] sm:$0x1] %v54_v16 }
  0x8f   :  { %73 = vst [vmem:[%s132_s1 + $0x2] sm:$0x1] %v60_v17 }

// kernel: cnn_forward.1
= control target key start
LH: loop header
LB: loop body
LE: loop exit
PB: predicated region body
PF: predicated region fallthrough
CT: control target
= control target key end

     0   :  { %vm491_vm0 = vcmask 1045504   ;;  %vm454_vm1 = vcmask 97280   ;;  %vm2165_vm2 = vcmask 916480   ;;  %vm3549_vm3 = vsmask.f32 256  ;;  %s21321_s1 = inlined_call_operand.vmem [shape: bf16[140,624], index: 1, kind: input, shape index: {}]   ;;  %s21322_s0 = inlined_call_operand.vmem [shape: bf16[192,140], index: 0, kind: input, shape index: {}]   ;;  %s21323_s2 = inlined_call_operand.vmem [shape: f32[1,624], index: 2, kind: input, shape index: {}]   ;;  %s21324_s3 = inlined_call_operand.vmem [shape: bf16[624,384], index: 3, kind: input, shape index: {}]   ;;  %s21325_s4 = inlined_call_operand.vmem [shape: f32[1,384], index: 4, kind: input, shape index: {}]   ;;  %s21326_s5 = inlined_call_operand.vmem [shape: bf16[9216,128], index: 5, kind: input, shape index: {}]   ;;  %s21327_s6 = inlined_call_operand.vmem [shape: f32[1,128], index: 6, kind: input, shape index: {}]   ;;  %s21328_s7 = inlined_call_operand.vmem [shape: f32[8,128], index: 7, kind: output, shape index: {}]  }
   0x1   :  { %v11062_v0 = vld [vmem:[%s21321_s1 + $0x118] sm:$0xf]  ;;  %v14029_v1 = vld [vmem:[%s21321_s1 + $0x128] sm:$0xf0]  ;;  %v14027_v2 = vld [vmem:[%s21321_s1 + $0x11c] sm:$0xf] }
   0x2   :  { %v11063_v3 = vor.u32 %v14029_v1, %v11062_v0  ;;  %v11064_v4 = vld [vmem:[%s21321_s1 + $0x12c] sm:$0xf0]  ;;  %v11082_v5 = vld [vmem:[%s21321_s1 + $0x140] sm:$0xf]  ;;  %v14034_v6 = vld [vmem:[%s21321_s1 + $0x150] sm:$0x30] }
   0x3   :  { %v11067_v7 = vor.u32 %v14027_v2, %v11064_v4  ;;  %v11083_v8 = vor.u32 %v14034_v6, %v11082_v5  ;;  %v14032_v9 = vld [vmem:[%s21321_s1 + $0x144] sm:$0xf]  ;;  %v11084_v10 = vld [vmem:[%s21321_s1 + $0x154] sm:$0x30]  ;;  %v11042_v11 = vld [vmem:[%s21321_s1 + $0xf0] sm:$0xf] }
   0x4   :  { %507 = vmatpush.bf16.msra.mxu0 %v11063_v3  ;;  %v11087_v12 = vor.u32 %v14032_v9, %v11084_v10  ;;  %v14024_v13 = vld [vmem:[%s21321_s1 + $0x100] sm:$0xf0]  ;;  %v10828_v15 = vld [vmem:[%s21322_s0 + $0x8] sm:$0xf0]  ;;  %v14022_v19 = vld [vmem:[%s21321_s1 + $0xf4] sm:$0xf] }
   0x5   :  { %v13968_v14 = vld [vmem:[%s21322_s0 + $0x4] sm:$0xf]  ;;  %645 = vmatpush.bf16.msra.mxu2 %v11067_v7  ;;  %v493_v16 = vsel %vm491_vm0, %v11083_v8, 0  ;;  %v11043_v17 = vor.u32 %v14024_v13, %v11042_v11  ;;  %v11044_v20 = vld [vmem:[%s21321_s1 + $0x104] sm:$0xf0] }
   0x6   :  { %v14815_v18 = vor.u32 %v13968_v14, %v10828_v15  ;;  %583 = vmatpush.bf16.msra.mxu1 %v493_v16  ;;  %v496_v21 = vsel %vm491_vm0, %v11087_v12, 0  ;;  %v11047_v22 = vor.u32 %v14022_v19, %v11044_v20  ;;  %v11022_v23 = vld [vmem:[%s21321_s1 + $0xc8] sm:$0xf]  ;;  %v14019_v24 = vld [vmem:[%s21321_s1 + $0xd8] sm:$0xf0] }
   0x7   :  { %721 = vmatpush.bf16.msra.mxu3 %v496_v21  ;;  %v14017_v25 = vld [vmem:[%s21321_s1 + $0xcc] sm:$0xf]  ;;  %v11024_v26 = vld [vmem:[%s21321_s1 + $0xdc] sm:$0xf0]  ;;  %v11023_v27 = vor.u32 %v14019_v24, %v11022_v23  ;;  %v14014_v30 = vld [vmem:[%s21321_s1 + $0xb0] sm:$0xf0] }
   0x8   :  { %508 = vmatpush.bf16.msra.mxu0 %v11043_v17  ;;  %v11027_v28 = vor.u32 %v14017_v25, %v11024_v26  ;;  %v11002_v29 = vld [vmem:[%s21321_s1 + $0xa0] sm:$0xf]  ;;  %v14012_v31 = vld [vmem:[%s21321_s1 + $0xa4] sm:$0xf]  ;;  %v11004_v32 = vld [vmem:[%s21321_s1 + $0xb4] sm:$0xf0] }
   0x9   :  { %11100 = vmatmul.msk.bf16.vlgmr.msra.gmra.mxu1 %vm454_vm1, %v14815_v18  ;;  %646 = vmatpush.bf16.msra.mxu2 %v11047_v22  ;;  %v11003_v33 = vor.u32 %v14014_v30, %v11002_v29  ;;  %v11007_v34 = vor.u32 %v14012_v31, %v11004_v32  ;;  %v10982_v35 = vld [vmem:[%s21321_s1 + $0x78] sm:$0xf]  ;;  %v14009_v36 = vld [vmem:[%s21321_s1 + $0x88] sm:$0xf0]  ;;  %v14007_v37 = vld [vmem:[%s21321_s1 + $0x7c] sm:$0xf] }
   0xa   :  { %11112 = vmatmul.msk.bf16.vlgmr.msra.gmra.mxu3 %vm454_vm1, %v14815_v18  ;;  %v10984_v38 = vld [vmem:[%s21321_s1 + $0x8c] sm:$0xf0]  ;;  %v10983_v39 = vor.u32 %v14009_v36, %v10982_v35  ;;  %v14004_v42 = vld [vmem:[%s21321_s1 + $0x60] sm:$0xf0]  ;;  %v13970_v43 = vld [vmem:[%s21322_s0 + $0x14] sm:$0xf] }
   0xb   :  { %v10987_v40 = vor.u32 %v14007_v37, %v10984_v38  ;;  %v10962_v41 = vld [vmem:[%s21321_s1 + $0x50] sm:$0xf]  ;;  %v10836_v44 = vld [vmem:[%s21322_s0 + $0x18] sm:$0xf0]  ;;  %v14002_v45 = vld [vmem:[%s21321_s1 + $0x54] sm:$0xf] }
   0xc   :  { %509 = vmatpush.bf16.msra.mxu0 %v11023_v27  ;;  %v10964_v46 = vld [vmem:[%s21321_s1 + $0x64] sm:$0xf0]  ;;  %v10963_v47 = vor.u32 %v14004_v42, %v10962_v41  ;;  %v14882_v48 = vor.u32 %v13970_v43, %v10836_v44  ;;  %v13999_v51 = vld [vmem:[%s21321_s1 + $0x38] sm:$0xf0]  ;;  %v13997_v52 = vld [vmem:[%s21321_s1 + $0x2c] sm:$0xf] }
   0xd   :  { %647 = vmatpush.bf16.msra.mxu2 %v11027_v28  ;;  %v10967_v49 = vor.u32 %v14002_v45, %v10964_v46  ;;  %v10942_v50 = vld [vmem:[%s21321_s1 + $0x28] sm:$0xf]  ;;  %v10944_v53 = vld [vmem:[%s21321_s1 + $0x3c] sm:$0xf0]  ;;  %v13994_v57 = vld [vmem:[%s21321_s1 + $0x10] sm:$0xf0] }
   0xe   :  { %v10943_v54 = vor.u32 %v13999_v51, %v10942_v50  ;;  %v10947_v55 = vor.u32 %v13997_v52, %v10944_v53  ;;  %v10922_v56 = vld [vmem:[%s21321_s1] sm:$0xf]  ;;  %v13992_v58 = vld [vmem:[%s21321_s1 + $0x4] sm:$0xf]  ;;  %v10924_v59 = vld [vmem:[%s21321_s1 + $0x14] sm:$0xf0] }
   0xf   :  { %v10923_v60 = vor.u32 %v13994_v57, %v10922_v56  ;;  %v10826_v61 = vld [vmem:[%s21322_s0] sm:$0xf]  ;;  %v13969_v62 = vld [vmem:[%s21322_s0 + $0x4] sm:$0xf0]  ;;  %v10927_v63 = vor.u32 %v13992_v58, %v10924_v59  ;;  %v13972_v1 = vld [vmem:[%s21322_s0 + $0x24] sm:$0xf] }
  0x10   :  { %510 = vmatpush.bf16.msra.mxu0 %v11003_v33  ;;  %v14918_v0 = vor.u32 %v13969_v62, %v10826_v61  ;;  %v10844_v2 = vld [vmem:[%s21322_s0 + $0x28] sm:$0xf0]  ;;  %v10834_v4 = vld [vmem:[%s21322_s0 + $0x10] sm:$0xf]  ;;  %v13971_v5 = vld [vmem:[%s21322_s0 + $0x14] sm:$0xf0] }
  0x11   :  { %648 = vmatpush.bf16.msra.mxu2 %v11007_v34  ;;  %v14928_v3 = vor.u32 %v13972_v1, %v10844_v2  ;;  %v14940_v6 = vor.u32 %v13971_v5, %v10834_v4  ;;  %v13974_v7 = vld [vmem:[%s21322_s0 + $0x34] sm:$0xf]  ;;  %v10852_v8 = vld [vmem:[%s21322_s0 + $0x38] sm:$0xf0]  ;;  %v10842_v10 = vld [vmem:[%s21322_s0 + $0x20] sm:$0xf] }
  0x12   :  { %v14950_v9 = vor.u32 %v13974_v7, %v10852_v8  ;;  %v13973_v11 = vld [vmem:[%s21322_s0 + $0x24] sm:$0xf0]  ;;  %v13976_v13 = vld [vmem:[%s21322_s0 + $0x44] sm:$0xf]  ;;  %v10860_v14 = vld [vmem:[%s21322_s0 + $0x48] sm:$0xf0] }
  0x13   :  { %v14962_v12 = vor.u32 %v13973_v11, %v10842_v10  ;;  %v14972_v15 = vor.u32 %v13976_v13, %v10860_v14  ;;  %v10850_v16 = vld [vmem:[%s21322_s0 + $0x30] sm:$0xf]  ;;  %v13975_v17 = vld [vmem:[%s21322_s0 + $0x34] sm:$0xf0]  ;;  %v13978_v20 = vld [vmem:[%s21322_s0 + $0x54] sm:$0xf] }
  0x14   :  { %511 = vmatpush.bf16.msra.mxu0 %v10983_v39  ;;  %21571 = vst [vmem:[#allocation2_spill] sm:$0xff] %v14950_v9  ;;  %v14984_v19 = vor.u32 %v13975_v17, %v10850_v16  ;;  %v10868_v21 = vld [vmem:[%s21322_s0 + $0x58] sm:$0xf0]  ;;  %v10858_v23 = vld [vmem:[%s21322_s0 + $0x40] sm:$0xf] }
  0x15   :  { %649 = vmatpush.bf16.msra.mxu2 %v10987_v40  ;;  %21572 = vst [vmem:[#allocation3_spill] sm:$0xff] %v14972_v15  ;;  %v14994_v22 = vor.u32 %v13978_v20, %v10868_v21  ;;  %v13977_v24 = vld [vmem:[%s21322_s0 + $0x44] sm:$0xf0]  ;;  %v13980_v26 = vld [vmem:[%s21322_s0 + $0x64] sm:$0xf] }
  0x16   :  { %21573 = vst [vmem:[#allocation4_spill] sm:$0xff] %v14984_v19  ;;  %v15006_v25 = vor.u32 %v13977_v24, %v10858_v23  ;;  %v10876_v27 = vld [vmem:[%s21322_s0 + $0x68] sm:$0xf0]  ;;  %v10866_v29 = vld [vmem:[%s21322_s0 + $0x50] sm:$0xf] }
  0x17   :  { %v15016_v28 = vor.u32 %v13980_v26, %v10876_v27  ;;  %v13979_v30 = vld [vmem:[%s21322_s0 + $0x54] sm:$0xf0]  ;;  %v13982_v32 = vld [vmem:[%s21322_s0 + $0x74] sm:$0xf]  ;;  %v10884_v33 = vld [vmem:[%s21322_s0 + $0x78] sm:$0xf0] }
  0x18   :  { %512 = vmatpush.bf16.msra.mxu0 %v10963_v47  ;;  %21574 = vst [vmem:[#allocation5_spill] sm:$0xff] %v15006_v25  ;;  %v15028_v31 = vor.u32 %v13979_v30, %v10866_v29  ;;  %v15038_v34 = vor.u32 %v13982_v32, %v10884_v33  ;;  %v10874_v35 = vld [vmem:[%s21322_s0 + $0x60] sm:$0xf]  ;;  %v13981_v36 = vld [vmem:[%s21322_s0 + $0x64] sm:$0xf0] }
  0x19   :  { %11101 = vmatmul.msk.bf16.gmra.mxu1 %vm454_vm1, %v14882_v48  ;;  %650 = vmatpush.bf16.msra.mxu2 %v10967_v49  ;;  %21575 = vst [vmem:[#allocation6_spill] sm:$0xff] %v15016_v28  ;;  %v15050_v37 = vor.u32 %v13981_v36, %v10874_v35  ;;  %v13984_v38 = vld [vmem:[%s21322_s0 + $0x84] sm:$0xf]  ;;  %v10892_v39 = vld [vmem:[%s21322_s0 + $0x88] sm:$0xf0] }
  0x1a   :  { %11113 = vmatmul.msk.bf16.gmra.mxu3 %vm454_vm1, %v14882_v48  ;;  %v15060_v40 = vor.u32 %v13984_v38, %v10892_v39  ;;  %v11070_v42 = vld [vmem:[%s21321_s1 + $0x120] sm:$0xf]  ;;  %v14030_v43 = vld [vmem:[%s21321_s1 + $0x130] sm:$0xf0]  ;;  %v10882_v45 = vld [vmem:[%s21322_s0 + $0x70] sm:$0xf] }
  0x1b   :  { %v11071_v44 = vor.u32 %v14030_v43, %v11070_v42  ;;  %v13983_v46 = vld [vmem:[%s21322_s0 + $0x74] sm:$0xf0]  ;;  %v14025_v49 = vld [vmem:[%s21321_s1 + $0x108] sm:$0xf0]  ;;  %v13986_v57 = vld [vmem:[%s21322_s0 + $0x94] sm:$0xf] }
  0x1c   :  { %513 = vmatpush.bf16.msra.mxu0 %v10943_v54  ;;  %v11050_v47 = vld [vmem:[%s21321_s1 + $0xf8] sm:$0xf]  ;;  %v15088_v53 = vor.u32 %v13983_v46, %v10882_v45  ;;  %v11030_v54 = vld [vmem:[%s21321_s1 + $0xd0] sm:$0xf]  ;;  %v10900_v58 = vld [vmem:[%s21322_s0 + $0x98] sm:$0xf0] }
  0x1d   :  { %651 = vmatpush.bf16.msra.mxu2 %v10947_v55  ;;  %783 = vmatpush.bf16.msrb.mxu1 %v11071_v44  ;;  %v11051_v51 = vor.u32 %v14025_v49, %v11050_v47  ;;  %v14020_v55 = vld [vmem:[%s21321_s1 + $0xe0] sm:$0xf0]  ;;  %v11010_v59 = vld [vmem:[%s21321_s1 + $0xa8] sm:$0xf]  ;;  %v15112_v62 = vor.u32 %v13986_v57, %v10900_v58  ;;  %v10990_v2 = vld [vmem:[%s21321_s1 + $0x80] sm:$0xf] }
  0x1e   :  { %v11031_v56 = vor.u32 %v14020_v55, %v11030_v54  ;;  %v14010_v4 = vld [vmem:[%s21321_s1 + $0x90] sm:$0xf0]  ;;  %v15129_v7 = vld [vmem:[%s21323_s2] sm:$0x1f]  ;;  %v13985_v10 = vld [vmem:[%s21322_s0 + $0x84] sm:$0xf0] }
  0x1f   :  { %v10991_v5 = vor.u32 %v14010_v4, %v10990_v2  ;;  %v10890_v8 = vld [vmem:[%s21322_s0 + $0x80] sm:$0xf]  ;;  %v10970_v11 = vld [vmem:[%s21321_s1 + $0x58] sm:$0xf]  ;;  %v14005_v13 = vld [vmem:[%s21321_s1 + $0x68] sm:$0xf0] }
  0x20   :  { %514 = vmatpush.bf16.msra.mxu0 %v10923_v60  ;;  %v14015_v60 = vld [vmem:[%s21321_s1 + $0xb8] sm:$0xf0]  ;;  %v15146_v16 = vperm.slane %v15129_v7, 0  ;;  %v10971_v17 = vor.u32 %v14005_v13, %v10970_v11  ;;  %v15150_v21 = vor.u32 %v13985_v10, %v10890_v8  ;;  %v10950_v24 = vld [vmem:[%s21321_s1 + $0x30] sm:$0xf]  ;;  %v15160_v30 = vperm.slane %v15129_v7, 1 }
  0x21   :  { %652 = vmatpush.bf16.msra.mxu2 %v10927_v63  ;;  %784 = vmatpush.bf16.msrb.mxu1 %v11051_v51  ;;  %v11011_v63 = vor.u32 %v14015_v60, %v11010_v59  ;;  %v14000_v26 = vld [vmem:[%s21321_s1 + $0x40] sm:$0xf0]  ;;  %v10908_v33 = vld [vmem:[%s21322_s0 + $0xa8] sm:$0xf0]  ;;  %v11072_v38 = vld [vmem:[%s21321_s1 + $0x134] sm:$0xf0] }
  0x22   :  { %v10951_v29 = vor.u32 %v14000_v26, %v10950_v24  ;;  %v13988_v32 = vld [vmem:[%s21322_s0 + $0xa4] sm:$0xf]  ;;  %v11090_v39 = vld [vmem:[%s21321_s1 + $0x148] sm:$0xf]  ;;  %v13995_v43 = vld [vmem:[%s21321_s1 + $0x18] sm:$0xf0] }
  0x23   :  { %515 = vmatmul.bf16.vlgmr.msra.gmra.mxu0 %v14918_v0  ;;  %v14028_v36 = vld [vmem:[%s21321_s1 + $0x124] sm:$0xf]  ;;  %v14035_v44 = vld [vmem:[%s21321_s1 + $0x158] sm:$0x30]  ;;  %v15190_v46 = vor.u32 %v13988_v32, %v10908_v33  ;;  %v11052_v57 = vld [vmem:[%s21321_s1 + $0x10c] sm:$0xf0] }
  0x24   :  { %653 = vmatmul.bf16.vlgmr.msra.gmra.mxu2 %v14918_v0  ;;  %v11075_v42 = vor.u32 %v14028_v36, %v11072_v38  ;;  %v11091_v49 = vor.u32 %v14035_v44, %v11090_v39  ;;  %v11032_v8 = vld [vmem:[%s21321_s1 + $0xe4] sm:$0xf0]  ;;  %v10898_v10 = vld [vmem:[%s21322_s0 + $0x90] sm:$0xf]  ;;  %v11012_v32 = vld [vmem:[%s21321_s1 + $0xbc] sm:$0xf0] }
  0x25   :  { %785 = vmatpush.bf16.msrb.mxu1 %v11031_v56  ;;  %v14023_v56 = vld [vmem:[%s21321_s1 + $0xfc] sm:$0xf]  ;;  %vm3555_vm4 = vsmask.f32 770  ;;  %vm3558_vm5 = vsmask.f32 1284 }
  0x26   :  { %921 = vmatpush.bf16.msrb.mxu0 %v11075_v42  ;;  %v499_v55 = vsel %vm491_vm0, %v11091_v49, 0  ;;  %v11055_v60 = vor.u32 %v14023_v56, %v11052_v57  ;;  %vm3564_vm6 = vsmask.f32 1798  ;;  %vm3567_vm7 = vsmask.f32 2312 }
  0x27   :  { %859 = vmatpush.bf16.msrb.mxu3 %v499_v55  ;;  %vm3573_vm8 = vsmask.f32 2826  ;;  %vm3576_vm9 = vsmask.f32 3340  ;;  %vm3582_vm10 = vsmask.f32 3854 }
  0x29   :  { %11102 = vmatmul.msk.bf16.gmra.mxu1 %vm454_vm1, %v14928_v3 }
  0x2a   :  { %11114 = vmatmul.msk.bf16.gmra.mxu3 %vm454_vm1, %v14928_v3  ;;  %786 = vmatpush.bf16.msrb.mxu1 %v11011_v63 }
  0x2b   :  { %922 = vmatpush.bf16.msrb.mxu0 %v11055_v60  ;;  %v10972_v60 = vld [vmem:[%s21321_s1 + $0x6c] sm:$0xf0] }
  0x2e   :  { %787 = vmatpush.bf16.msrb.mxu1 %v10991_v5  ;;  %v14018_v5 = vld [vmem:[%s21321_s1 + $0xd4] sm:$0xf] }
  0x2f   :  { %v11035_v11 = vor.u32 %v14018_v5, %v11032_v8 }
  0x31   :  { %923 = vmatpush.bf16.msrb.mxu0 %v11035_v11  ;;  %v10952_v11 = vld [vmem:[%s21321_s1 + $0x44] sm:$0xf0] }
  0x32   :  { %788 = vmatpush.bf16.msrb.mxu1 %v10971_v17 }
  0x33   :  { %520 = vmatmul.bf16.gmra.mxu0 %v14940_v6 }
  0x34   :  { %658 = vmatmul.bf16.gmra.mxu2 %v14940_v6 }
  0x36   :  { %789 = vmatpush.bf16.msrb.mxu1 %v10951_v29  ;;  %v14013_v29 = vld [vmem:[%s21321_s1 + $0xac] sm:$0xf] }
  0x37   :  { %v11015_v36 = vor.u32 %v14013_v29, %v11012_v32 }
  0x39   :  { %11103 = vmatmul.msk.bf16.gmra.mxu1 %vm454_vm1, %v14950_v9  ;;  %924 = vmatpush.bf16.msrb.mxu0 %v11015_v36 }
  0x3a   :  { %11115 = vmatmul.msk.bf16.gmra.mxu3 %vm454_vm1, %v14950_v9 }
  0x43   :  { %525 = vmatmul.bf16.gmra.mxu0 %v14962_v12 }
  0x44   :  { %663 = vmatmul.bf16.gmra.mxu2 %v14962_v12 }
  0x49   :  { %11104 = vmatmul.msk.bf16.gmra.mxu1 %vm454_vm1, %v14972_v15 }
  0x4a   :  { %11116 = vmatmul.msk.bf16.gmra.mxu3 %vm454_vm1, %v14972_v15 }
  0x53   :  { %530 = vmatmul.bf16.gmra.mxu0 %v14984_v19 }
  0x54   :  { %668 = vmatmul.bf16.gmra.mxu2 %v14984_v19 }
  0x59   :  { %11105 = vmatmul.msk.bf16.gmra.mxu1 %vm454_vm1, %v14994_v22 }
  0x5a   :  { %11117 = vmatmul.msk.bf16.gmra.mxu3 %vm454_vm1, %v14994_v22 }
  0x63   :  { %535 = vmatmul.bf16.gmra.mxu0 %v15006_v25 }
  0x64   :  { %673 = vmatmul.bf16.gmra.mxu2 %v15006_v25 }
  0x69   :  { %11106 = vmatmul.msk.bf16.gmra.mxu1 %vm454_vm1, %v15016_v28 }
  0x6a   :  { %11118 = vmatmul.msk.bf16.gmra.mxu3 %vm454_vm1, %v15016_v28 }
  0x73   :  { %540 = vmatmul.bf16.gmra.mxu0 %v15028_v31 }
  0x74   :  { %678 = vmatmul.bf16.gmra.mxu2 %v15028_v31 }
  0x79   :  { %11107 = vmatmul.msk.bf16.gmra.mxu1 %vm454_vm1, %v15038_v34 }
  0x7a   :  { %11119 = vmatmul.msk.bf16.gmra.mxu3 %vm454_vm1, %v15038_v34 }
  0x83   :  { %545 = vmatmul.bf16.gmra.mxu0 %v15050_v37 }
  0x84   :  { %683 = vmatmul.bf16.gmra.mxu2 %v15050_v37 }
  0x86   :  { %v585_v41 = vpop.f32.mrf.mxu1 }
  0x89   :  { %11108 = vmatmul.msk.bf16.gmra.mxu1 %vm454_vm1, %v15060_v40 }
  0x8a   :  { %11120 = vmatmul.msk.bf16.gmra.mxu3 %vm454_vm1, %v15060_v40 }
  0x8d   :  { %v15084_v50 = vpop.f32.mrf.mxu3 }
  0x8e   :  { %v15086_v52 = vpop.f32.mrf.mxu1 }
  0x93   :  { %550 = vmatmul.bf16.gmra.mxu0 %v15088_v53 }
  0x94   :  { %688 = vmatmul.bf16.gmra.mxu2 %v15088_v53 }
  0x95   :  { %v15110_v61 = vpop.f32.mrf.mxu3 }
  0x96   :  { %v15114_v1 = vpop.f32.mrf.mxu1 }
  0x99   :  { %11109 = vmatmul.msk.bf16.gmra.mxu1 %vm454_vm1, %v15112_v62 }
  0x9a   :  { %11121 = vmatmul.msk.bf16.gmra.mxu3 %vm454_vm1, %v15112_v62 }
  0x9d   :  { %v15143_v14 = vpop.f32.mrf.mxu3 }
  0x9e   :  { %v15148_v20 = vpop.f32.mrf.mxu1 }
  0xa0   :  { %v516_v23 = vpop.f32.mrf.mxu0 }
  0xa1   :  { %v517_v27 = vadd.f32 %v516_v23, %v15146_v16 }
  0xa3   :  { %v586_v35 = vadd.f32 %v585_v41, %v517_v27  ;;  %555 = vmatmul.bf16.gmra.mxu0 %v15150_v21  ;;  %v10930_v41 = vld [vmem:[%s21321_s1 + $0x8] sm:$0xf] }
  0xa4   :  { %693 = vmatmul.bf16.gmra.mxu2 %v15150_v21  ;;  %v10931_v47 = vor.u32 %v13995_v43, %v10930_v41  ;;  %v13990_v41 = vld [vmem:[%s21322_s0 + $0xb4] sm:$0xf]  ;;  %v10916_v43 = vld [vmem:[%s21322_s0 + $0xb8] sm:$0xf0] }
  0xa5   :  { %v15188_v45 = vpop.f32.mrf.mxu3  ;;  %v1197_v13 = vmax.f32 %v586_v35, 0.0  ;;  %v15255_v56 = vor.u32 %v13990_v41, %v10916_v43 }
  0xa6   :  { %v15192_v51 = vpop.f32.mrf.mxu1  ;;  %790 = vmatpush.bf16.msrb.mxu1 %v10931_v47  ;;  %v14008_v47 = vld [vmem:[%s21321_s1 + $0x84] sm:$0xf] }
  0xa7   :  { %v654_v54 = vpop.f32.mrf.mxu2 }
  0xa8   :  { %v655_v58 = vadd.f32 %v654_v54, %v15160_v30  ;;  %v518_v59 = vpop.f32.mrf.mxu0 }
  0xa9   :  { %v519_v63 = vadd.f32 %v518_v59, %v15146_v16  ;;  %11110 = vmatmul.msk.bf16.gmra.mxu1 %vm454_vm1, %v15190_v46  ;;  %v14003_v59 = vld [vmem:[%s21321_s1 + $0x5c] sm:$0xf] }
  0xaa   :  { %v724_v2 = vadd.f32 %v15084_v50, %v655_v58  ;;  %11122 = vmatmul.msk.bf16.gmra.mxu3 %vm454_vm1, %v15190_v46  ;;  %v13987_v50 = vld [vmem:[%s21322_s0 + $0x94] sm:$0xf0] }
  0xab   :  { %v588_v4 = vadd.f32 %v15086_v52, %v519_v63  ;;  %v15227_v27 = vor.u32 %v13987_v50, %v10898_v10  ;;  %v13998_v50 = vld [vmem:[%s21321_s1 + $0x34] sm:$0xf] }
  0xac   :  { %v1198_v39 = vmax.f32 %v724_v2, 0.0 }
  0xad   :  { %v1202_v17 = vmax.f32 %v588_v4, 0.0  ;;  %v15221_v52 = vpop.f32.mrf.mxu3  ;;  %v10975_v4 = vor.u32 %v14003_v59, %v10972_v60 }
  0xae   :  { %v15223_v23 = vpop.f32.mrf.mxu1 }
  0xaf   :  { %v15225_v24 = vpack.c.bf16 %v1202_v17, %v1197_v13  ;;  %v656_v26 = vpop.f32.mrf.mxu2  ;;  %v10906_v13 = vld [vmem:[%s21322_s0 + $0xa0] sm:$0xf]  ;;  %v10955_v17 = vor.u32 %v13998_v50, %v10952_v11  ;;  %v10914_v50 = vld [vmem:[%s21322_s0 + $0xb0] sm:$0xf]  ;;  %v13991_v11 = vld [vmem:[%s21322_s0 + $0xb4] sm:$0xf0] }
  0xb0   :  { %v657_v33 = vadd.f32 %v656_v26, %v15160_v30  ;;  %v521_v35 = vpop.f32.mrf.mxu0 }
  0xb1   :  { %21576 = vst [vmem:[#allocation7_spill] sm:$0xff] %v15225_v24  ;;  %v522_v38 = vadd.f32 %v521_v35, %v15146_v16  ;;  %v11092_v35 = vld [vmem:[%s21321_s1 + $0x15c] sm:$0x30] }
  0xb2   :  { %v726_v42 = vadd.f32 %v15110_v61, %v657_v33  ;;  %v10992_v61 = vld [vmem:[%s21321_s1 + $0x94] sm:$0xf0]  ;;  %v14033_v33 = vld [vmem:[%s21321_s1 + $0x14c] sm:$0xf] }
  0xb3   :  { %v591_v44 = vadd.f32 %v15114_v1, %v522_v38  ;;  %560 = vmatmul.bf16.gmra.mxu0 %v15227_v27  ;;  %v10995_v54 = vor.u32 %v14008_v47, %v10992_v61  ;;  %v11095_v41 = vor.u32 %v14033_v33, %v11092_v35 }
  0xb4   :  { %v1203_v49 = vmax.f32 %v726_v42, 0.0  ;;  %698 = vmatmul.bf16.gmra.mxu2 %v15227_v27  ;;  %v10932_v42 = vld [vmem:[%s21321_s1 + $0x1c] sm:$0xf0] }
  0xb5   :  { %v15253_v55 = vpop.f32.mrf.mxu3  ;;  %925 = vmatpush.bf16.msrb.mxu0 %v10995_v54  ;;  %v1207_v26 = vmax.f32 %v591_v44, 0.0  ;;  %v502_v54 = vsel %vm491_vm0, %v11095_v41, 0 }
  0xb6   :  { %v15257_v57 = vpack.c.bf16 %v1203_v49, %v1198_v39  ;;  %v15259_v1 = vpop.f32.mrf.mxu1  ;;  %v13993_v39 = vld [vmem:[%s21321_s1 + $0xc] sm:$0xf]  ;;  %997 = vmatpush.bf16.msrb.mxu2 %v502_v54 }
  0xb7   :  { %v659_v58 = vpop.f32.mrf.mxu2  ;;  %v10935_v61 = vor.u32 %v13993_v39, %v10932_v42 }
  0xb8   :  { %21577 = vst [vmem:[#allocation8_spill] sm:$0xff] %v15257_v57  ;;  %v660_v63 = vadd.f32 %v659_v58, %v15160_v30  ;;  %v523_v2 = vpop.f32.mrf.mxu0 }
  0xb9   :  { %v524_v5 = vadd.f32 %v523_v2, %v15146_v16  ;;  %11111 = vmatmul.msk.bf16.gmra.mxu1 %vm454_vm1, %v15255_v56  ;;  %926 = vmatpush.bf16.msrb.mxu0 %v10975_v4 }
  0xba   :  { %v15272_v8 = vadd.f32 %v15143_v14, %v660_v63  ;;  %11123 = vmatmul.msk.bf16.gmra.mxu3 %vm454_vm1, %v15255_v56  ;;  %v13989_v14 = vld [vmem:[%s21322_s0 + $0xa4] sm:$0xf0] }
  0xbb   :  { %v593_v10 = vadd.f32 %v15148_v20, %v524_v5  ;;  %v15295_v38 = vor.u32 %v13989_v14, %v10906_v13 }
  0xbd   :  { %v1212_v29 = vmax.f32 %v593_v10, 0.0  ;;  %v738_v20 = vpop.f32.mrf.mxu3  ;;  %927 = vmatpush.bf16.msrb.mxu0 %v10955_v17 }
  0xbe   :  { %v602_v32 = vpop.f32.mrf.mxu1 }
  0xbf   :  { %v661_v36 = vpop.f32.mrf.mxu2  ;;  %v15303_v43 = vpack.c.bf16 %v1212_v29, %v1207_v26 }
  0xc0   :  { %v662_v44 = vadd.f32 %v661_v36, %v15160_v30  ;;  %v526_v47 = vpop.f32.mrf.mxu0 }
  0xc1   :  { %21578 = vst [vmem:[#allocation9_spill] sm:$0xff] %v15303_v43  ;;  %v527_v49 = vadd.f32 %v526_v47, %v15146_v16  ;;  %928 = vmatpush.bf16.msrb.mxu0 %v10935_v61 }
  0xc2   :  { %v15309_v58 = vadd.f32 %v15188_v45, %v662_v44 }
  0xc3   :  { %v596_v59 = vadd.f32 %v15192_v51, %v527_v49  ;;  %565 = vmatmul.bf16.gmra.mxu0 %v15295_v38 }
  0xc4   :  { %703 = vmatmul.bf16.gmra.mxu2 %v15295_v38 }
  0xc5   :  { %v740_v60 = vpop.f32.mrf.mxu3  ;;  %v1217_v13 = vmax.f32 %v596_v59, 0.0 }
  0xc6   :  { %v605_v63 = vpop.f32.mrf.mxu1 }
  0xc7   :  { %v664_v2 = vpop.f32.mrf.mxu2 }
  0xc8   :  { %v665_v4 = vadd.f32 %v664_v2, %v15160_v30  ;;  %v528_v5 = vpop.f32.mrf.mxu0 }
  0xc9   :  { %v529_v10 = vadd.f32 %v528_v5, %v15146_v16  ;;  %791 = vmatmul.bf16.vlgmr.msrb.gmra.mxu1 %v14918_v0 }
  0xca   :  { %v15318_v45 = vadd.f32 %v15221_v52, %v665_v4  ;;  %11124 = vmatmul.msk.bf16.vlgmr.msrb.gmra.mxu3 %vm454_vm1, %v14815_v18  ;;  %v15329_v52 = vor.u32 %v13991_v11, %v10914_v50 }
  0xcb   :  { %v598_v51 = vadd.f32 %v15223_v23, %v529_v10 }
  0xcd   :  { %v1222_v14 = vmax.f32 %v598_v51, 0.0  ;;  %v743_v17 = vpop.f32.mrf.mxu3 }
  0xce   :  { %v607_v26 = vpop.f32.mrf.mxu1 }
  0xcf   :  { %v666_v29 = vpop.f32.mrf.mxu2  ;;  %v15331_v33 = vpack.c.bf16 %v1222_v14, %v1217_v13 }
  0xd0   :  { %v667_v35 = vadd.f32 %v666_v29, %v15160_v30  ;;  %v531_v23 = vpop.f32.mrf.mxu0 }
  0xd1   :  { %21579 = vst [vmem:[#allocation10_spill] sm:$0xff] %v15331_v33  ;;  %v532_v36 = vadd.f32 %v531_v23, %v15146_v16 }
  0xd2   :  { %v15336_v39 = vadd.f32 %v15253_v55, %v667_v35 }
  0xd3   :  { %v601_v42 = vadd.f32 %v15259_v1, %v532_v36  ;;  %570 = vmatmul.bf16.gmra.mxu0 %v15329_v52 }
  0xd4   :  { %708 = vmatmul.bf16.gmra.mxu2 %v15329_v52 }
  0xd5   :  { %v745_v41 = vpop.f32.mrf.mxu3  ;;  %v1227_v1 = vmax.f32 %v601_v42, 0.0 }
  0xd6   :  { %v610_v44 = vpop.f32.mrf.mxu1 }
  0xd7   :  { %v669_v47 = vpop.f32.mrf.mxu2 }
  0xd8   :  { %v670_v61 = vadd.f32 %v669_v47, %v15160_v30  ;;  %v533_v49 = vpop.f32.mrf.mxu0 }
  0xd9   :  { %v534_v54 = vadd.f32 %v533_v49, %v15146_v16  ;;  %796 = vmatmul.bf16.gmra.mxu1 %v14940_v6 }
  0xda   :  { %v15344_v59 = vadd.f32 %v738_v20, %v670_v61  ;;  %11125 = vmatmul.msk.bf16.gmra.mxu3 %vm454_vm1, %v14882_v48 }
  0xdb   :  { %v603_v55 = vadd.f32 %v602_v32, %v534_v54 }
  0xdd   :  { %v1232_v2 = vmax.f32 %v603_v55, 0.0  ;;  %v748_v4 = vpop.f32.mrf.mxu3 }
  0xde   :  { %v612_v5 = vpop.f32.mrf.mxu1 }
  0xdf   :  { %v671_v10 = vpop.f32.mrf.mxu2  ;;  %v15348_v51 = vpack.c.bf16 %v1232_v2, %v1227_v1 }
  0xe0   :  { %v672_v50 = vadd.f32 %v671_v10, %v15160_v30  ;;  %v536_v11 = vpop.f32.mrf.mxu0 }
  0xe1   :  { %21580 = vst [vmem:[#allocation11_spill] sm:$0xff] %v15348_v51  ;;  %v537_v13 = vadd.f32 %v536_v11, %v15146_v16 }
  0xe2   :  { %v15352_v14 = vadd.f32 %v740_v60, %v672_v50 }
  0xe3   :  { %v606_v20 = vadd.f32 %v605_v63, %v537_v13  ;;  %929 = vmatmul.bf16.vlgmr.msrb.gmra.mxu0 %v14918_v0 }
  0xe4   :  { %11136 = vmatmul.msk.bf16.vlgmr.msrb.gmra.mxu2 %vm454_vm1, %v14815_v18 }
  0xe5   :  { %v750_v32 = vpop.f32.mrf.mxu3  ;;  %v1237_v63 = vmax.f32 %v606_v20, 0.0 }
  0xe6   :  { %v615_v29 = vpop.f32.mrf.mxu1 }
  0xe7   :  { %v674_v35 = vpop.f32.mrf.mxu2 }
  0xe8   :  { %v675_v23 = vadd.f32 %v674_v35, %v15160_v30  ;;  %v538_v36 = vpop.f32.mrf.mxu0 }
  0xe9   :  { %v539_v42 = vadd.f32 %v538_v36, %v15146_v16  ;;  %801 = vmatmul.bf16.gmra.mxu1 %v14962_v12 }
  0xea   :  { %v15360_v47 = vadd.f32 %v743_v17, %v675_v23  ;;  %11126 = vmatmul.msk.bf16.gmra.mxu3 %vm454_vm1, %v14928_v3 }
  0xeb   :  { %v608_v60 = vadd.f32 %v607_v26, %v539_v42 }
  0xed   :  { %v1242_v61 = vmax.f32 %v608_v60, 0.0  ;;  %v753_v49 = vpop.f32.mrf.mxu3 }
  0xee   :  { %v617_v54 = vpop.f32.mrf.mxu1 }
  0xef   :  { %v676_v55 = vpop.f32.mrf.mxu2  ;;  %v15364_v1 = vpack.c.bf16 %v1242_v61, %v1237_v63 }
  0xf0   :  { %v677_v2 = vadd.f32 %v676_v55, %v15160_v30  ;;  %v541_v10 = vpop.f32.mrf.mxu0 }
  0xf1   :  { %21581 = vst [vmem:[#allocation12_spill] sm:$0xff] %v15364_v1  ;;  %v542_v50 = vadd.f32 %v541_v10, %v15146_v16 }
  0xf2   :  { %v15368_v11 = vadd.f32 %v745_v41, %v677_v2 }
  0xf3   :  { %v611_v17 = vadd.f32 %v610_v44, %v542_v50  ;;  %934 = vmatmul.bf16.gmra.mxu0 %v14940_v6 }
  0xf4   :  { %11137 = vmatmul.msk.bf16.gmra.mxu2 %vm454_vm1, %v14882_v48 }
  0xf5   :  { %v755_v26 = vpop.f32.mrf.mxu3  ;;  %v1247_v44 = vmax.f32 %v611_v17, 0.0 }
  0xf6   :  { %v620_v13 = vpop.f32.mrf.mxu1 }
  0xf7   :  { %v679_v20 = vpop.f32.mrf.mxu2 }
  0xf8   :  { %v680_v35 = vadd.f32 %v679_v20, %v15160_v30  ;;  %v543_v23 = vpop.f32.mrf.mxu0 }
  0xf9   :  { %v544_v36 = vadd.f32 %v543_v23, %v15146_v16  ;;  %806 = vmatmul.bf16.gmra.mxu1 %v14984_v19 }
  0xfa   :  { %v15376_v42 = vadd.f32 %v748_v4, %v680_v35  ;;  %11127 = vmatmul.msk.bf16.gmra.mxu3 %vm454_vm1, %v14950_v9 }
  0xfb   :  { %v613_v41 = vadd.f32 %v612_v5, %v544_v36 }
  0xfd   :  { %v1252_v60 = vmax.f32 %v613_v41, 0.0  ;;  %v758_v63 = vpop.f32.mrf.mxu3 }
  0xfe   :  { %v622_v61 = vpop.f32.mrf.mxu1 }
  0xff   :  { %v681_v55 = vpop.f32.mrf.mxu2  ;;  %v15380_v2 = vpack.c.bf16 %v1252_v60, %v1247_v44 }
 0x100   :  { %v682_v10 = vadd.f32 %v681_v55, %v15160_v30  ;;  %v546_v50 = vpop.f32.mrf.mxu0 }
 0x101   :  { %21582 = vst [vmem:[#allocation13_spill] sm:$0xff] %v15380_v2  ;;  %v547_v20 = vadd.f32 %v546_v50, %v15146_v16 }
 0x102   :  { %v15384_v23 = vadd.f32 %v750_v32, %v682_v10 }
 0x103   :  { %v616_v4 = vadd.f32 %v615_v29, %v547_v20  ;;  %939 = vmatmul.bf16.gmra.mxu0 %v14962_v12 }
 0x104   :  { %11138 = vmatmul.msk.bf16.gmra.mxu2 %vm454_vm1, %v14928_v3 }
 0x105   :  { %v760_v5 = vpop.f32.mrf.mxu3  ;;  %v1257_v29 = vmax.f32 %v616_v4, 0.0 }
 0x106   :  { %v625_v17 = vpop.f32.mrf.mxu1 }
 0x107   :  { %v684_v35 = vpop.f32.mrf.mxu2 }
 0x108   :  { %v685_v36 = vadd.f32 %v684_v35, %v15160_v30  ;;  %v548_v41 = vpop.f32.mrf.mxu0 }
 0x109   :  { %v549_v44 = vadd.f32 %v548_v41, %v15146_v16  ;;  %811 = vmatmul.bf16.gmra.mxu1 %v15006_v25 }
 0x10a   :  { %v15392_v60 = vadd.f32 %v753_v49, %v685_v36  ;;  %11128 = vmatmul.msk.bf16.gmra.mxu3 %vm454_vm1, %v14972_v15 }
 0x10b   :  { %v618_v32 = vadd.f32 %v617_v54, %v549_v44 }
 0x10d   :  { %v1262_v55 = vmax.f32 %v618_v32, 0.0  ;;  %v763_v10 = vpop.f32.mrf.mxu3 }
 0x10e   :  { %v627_v50 = vpop.f32.mrf.mxu1 }
 0x10f   :  { %v686_v20 = vpop.f32.mrf.mxu2  ;;  %v15396_v2 = vpack.c.bf16 %v1262_v55, %v1257_v29 }
 0x110   :  { %v687_v35 = vadd.f32 %v686_v20, %v15160_v30  ;;  %v551_v1 = vpop.f32.mrf.mxu0 }
 0x111   :  { %21583 = vst [vmem:[#allocation14_spill] sm:$0xff] %v15396_v2  ;;  %v552_v41 = vadd.f32 %v551_v1, %v15146_v16 }
 0x112   :  { %v15400_v51 = vadd.f32 %v755_v26, %v687_v35 }
 0x113   :  { %v621_v49 = vadd.f32 %v620_v13, %v552_v41  ;;  %944 = vmatmul.bf16.gmra.mxu0 %v14984_v19 }
 0x114   :  { %11139 = vmatmul.msk.bf16.gmra.mxu2 %vm454_vm1, %v14950_v9 }
 0x115   :  { %v765_v54 = vpop.f32.mrf.mxu3  ;;  %v1267_v26 = vmax.f32 %v621_v49, 0.0 }
 0x116   :  { %v630_v4 = vpop.f32.mrf.mxu1 }
 0x117   :  { %v689_v36 = vpop.f32.mrf.mxu2 }
 0x118   :  { %v690_v44 = vadd.f32 %v689_v36, %v15160_v30  ;;  %v553_v32 = vpop.f32.mrf.mxu0 }
 0x119   :  { %v554_v29 = vadd.f32 %v553_v32, %v15146_v16  ;;  %816 = vmatmul.bf16.gmra.mxu1 %v15028_v31 }
 0x11a   :  { %v15408_v55 = vadd.f32 %v758_v63, %v690_v44  ;;  %11129 = vmatmul.msk.bf16.gmra.mxu3 %vm454_vm1, %v14994_v22 }
 0x11b   :  { %v623_v1 = vadd.f32 %v622_v61, %v554_v29 }
 0x11d   :  { %v1272_v13 = vmax.f32 %v623_v1, 0.0  ;;  %v768_v20 = vpop.f32.mrf.mxu3 }
 0x11e   :  { %v632_v35 = vpop.f32.mrf.mxu1 }
 0x11f   :  { %v691_v41 = vpop.f32.mrf.mxu2  ;;  %v15412_v2 = vpack.c.bf16 %v1272_v13, %v1267_v26 }
 0x120   :  { %v692_v36 = vadd.f32 %v691_v41, %v15160_v30  ;;  %v556_v33 = vpop.f32.mrf.mxu0 }
 0x121   :  { %21584 = vst [vmem:[#allocation15_spill] sm:$0xff] %v15412_v2  ;;  %v557_v32 = vadd.f32 %v556_v33, %v15146_v16 }
 0x122   :  { %v15416_v9 = vadd.f32 %v760_v5, %v692_v36 }
 0x123   :  { %v626_v63 = vadd.f32 %v625_v17, %v557_v32  ;;  %949 = vmatmul.bf16.gmra.mxu0 %v15006_v25  ;;  %v1208_v25 = vmax.f32 %v15272_v8, 0.0 }
 0x124   :  { %11140 = vmatmul.msk.bf16.gmra.mxu2 %vm454_vm1, %v14972_v15 }
 0x125   :  { %v770_v61 = vpop.f32.mrf.mxu3  ;;  %v1277_v5 = vmax.f32 %v626_v63, 0.0 }
 0x126   :  { %v635_v49 = vpop.f32.mrf.mxu1 }
 0x127   :  { %v694_v44 = vpop.f32.mrf.mxu2 }
 0x128   :  { %v695_v29 = vadd.f32 %v694_v44, %v15160_v30  ;;  %v558_v1 = vpop.f32.mrf.mxu0 }
 0x129   :  { %v559_v26 = vadd.f32 %v558_v1, %v15146_v16  ;;  %821 = vmatmul.bf16.gmra.mxu1 %v15050_v37 }
 0x12a   :  { %v15424_v13 = vadd.f32 %v763_v10, %v695_v29  ;;  %11130 = vmatmul.msk.bf16.gmra.mxu3 %vm454_vm1, %v15016_v28  ;;  %v1213_v10 = vmax.f32 %v15309_v58, 0.0 }
 0x12b   :  { %v628_v33 = vadd.f32 %v627_v50, %v559_v26 }
 0x12c   :  { %v15439_v26 = vpack.c.bf16 %v1213_v10, %v1208_v25 }
 0x12d   :  { %v1282_v17 = vmax.f32 %v628_v33, 0.0  ;;  %v773_v41 = vpop.f32.mrf.mxu3 }
 0x12e   :  { %v637_v36 = vpop.f32.mrf.mxu1  ;;  %21586 = vst [vmem:[#allocation17_spill] sm:$0xff] %v15439_v26 }
 0x12f   :  { %v696_v32 = vpop.f32.mrf.mxu2  ;;  %v15428_v2 = vpack.c.bf16 %v1282_v17, %v1277_v5 }
 0x130   :  { %v697_v44 = vadd.f32 %v696_v32, %v15160_v30  ;;  %v561_v15 = vpop.f32.mrf.mxu0 }
 0x131   :  { %21585 = vst [vmem:[#allocation16_spill] sm:$0xff] %v15428_v2  ;;  %v562_v1 = vadd.f32 %v561_v15, %v15146_v16 }
 0x132   :  { %v15434_v29 = vadd.f32 %v765_v54, %v697_v44 }
 0x133   :  { %v631_v19 = vadd.f32 %v630_v4, %v562_v1  ;;  %954 = vmatmul.bf16.gmra.mxu0 %v15028_v31 }
 0x134   :  { %11141 = vmatmul.msk.bf16.gmra.mxu2 %vm454_vm1, %v14994_v22 }
 0x135   :  { %v775_v50 = vpop.f32.mrf.mxu3  ;;  %v1287_v4 = vmax.f32 %v631_v19, 0.0 }
 0x136   :  { %v640_v63 = vpop.f32.mrf.mxu1 }
 0x137   :  { %v699_v33 = vpop.f32.mrf.mxu2 }
 0x138   :  { %v700_v5 = vadd.f32 %v699_v33, %v15160_v30  ;;  %v563_v15 = vpop.f32.mrf.mxu0 }
 0x139   :  { %v564_v8 = vadd.f32 %v563_v15, %v15146_v16  ;;  %826 = vmatmul.bf16.gmra.mxu1 %v15088_v53 }
 0x13a   :  { %v15444_v58 = vadd.f32 %v768_v20, %v700_v5  ;;  %11131 = vmatmul.msk.bf16.gmra.mxu3 %vm454_vm1, %v15038_v34  ;;  %v1218_v20 = vmax.f32 %v15318_v45, 0.0  ;;  %v1223_v5 = vmax.f32 %v15336_v39, 0.0 }
 0x13b   :  { %v633_v54 = vadd.f32 %v632_v35, %v564_v8 }
 0x13d   :  { %v1292_v17 = vmax.f32 %v633_v54, 0.0  ;;  %v15448_v32 = vpop.f32.mrf.mxu3  ;;  %v15465_v54 = vpack.c.bf16 %v1223_v5, %v1218_v20  ;;  %v11058_v5 = vld [vmem:[%s21321_s1 + $0x100] sm:$0xf] }
 0x13e   :  { %v15450_v25 = vpop.f32.mrf.mxu1 }
 0x13f   :  { %v701_v44 = vpop.f32.mrf.mxu2  ;;  %v15452_v1 = vpack.c.bf16 %v1292_v17, %v1287_v4  ;;  %21588 = vst [vmem:[#allocation19_spill] sm:$0xff] %v15465_v54  ;;  %v15468_v17 = vperm.slane %v15129_v7, 2 }
 0x140   :  { %v702_v10 = vadd.f32 %v701_v44, %v15160_v30  ;;  %v566_v33 = vpop.f32.mrf.mxu0 }
 0x141   :  { %21587 = vst [vmem:[#allocation18_spill] sm:$0xff] %v15452_v1  ;;  %v567_v15 = vadd.f32 %v566_v33, %v15146_v16 }
 0x142   :  { %v15458_v2 = vadd.f32 %v770_v61, %v702_v10  ;;  %v11078_v61 = vld [vmem:[%s21321_s1 + $0x128] sm:$0xf] }
 0x143   :  { %v636_v19 = vadd.f32 %v635_v49, %v567_v15  ;;  %959 = vmatmul.bf16.gmra.mxu0 %v15050_v37  ;;  %v14031_v49 = vld [vmem:[%s21321_s1 + $0x138] sm:$0xf0] }
 0x144   :  { %11142 = vmatmul.msk.bf16.gmra.mxu2 %vm454_vm1, %v15016_v28  ;;  %v11079_v10 = vor.u32 %v14031_v49, %v11078_v61 }
 0x145   :  { %v15463_v35 = vpop.f32.mrf.mxu3 }
 0x146   :  { %v792_v8 = vpop.f32.mrf.mxu1  ;;  %1059 = vmatpush.bf16.msra.mxu1 %v11079_v10  ;;  %v11038_v10 = vld [vmem:[%s21321_s1 + $0xd8] sm:$0xf] }
 0x147   :  { %v704_v4 = vpop.f32.mrf.mxu2  ;;  %v793_v20 = vadd.f32 %v792_v8, %v15468_v17 }
 0x148   :  { %v705_v45 = vadd.f32 %v704_v4, %v15160_v30  ;;  %v568_v39 = vpop.f32.mrf.mxu0  ;;  %v14026_v4 = vld [vmem:[%s21321_s1 + $0x110] sm:$0xf0] }
 0x149   :  { %v569_v44 = vadd.f32 %v568_v39, %v15146_v16  ;;  %831 = vmatmul.bf16.gmra.mxu1 %v15150_v21  ;;  %v1297_v39 = vmax.f32 %v636_v19, 0.0  ;;  %v14021_v19 = vld [vmem:[%s21321_s1 + $0xe8] sm:$0xf0] }
 0x14a   :  { %v15479_v33 = vadd.f32 %v773_v41, %v705_v45  ;;  %11132 = vmatmul.msk.bf16.gmra.mxu3 %vm454_vm1, %v15060_v40  ;;  %v11059_v41 = vor.u32 %v14026_v4, %v11058_v5  ;;  %v11039_v5 = vor.u32 %v14021_v19, %v11038_v10  ;;  %v1233_v4 = vmax.f32 %v15352_v14, 0.0 }
 0x14b   :  { %v638_v15 = vadd.f32 %v637_v36, %v569_v44 }
 0x14c   :  { %1060 = vmatpush.bf16.msra.mxu1 %v11059_v41 }
 0x14d   :  { %v1302_v1 = vmax.f32 %v638_v15, 0.0  ;;  %v861_v61 = vpop.f32.mrf.mxu3 }
 0x14e   :  { %v862_v45 = vadd.f32 %v861_v61, %v793_v20  ;;  %v794_v49 = vpop.f32.mrf.mxu1  ;;  %v1228_v20 = vmax.f32 %v15344_v59, 0.0  ;;  %v11018_v61 = vld [vmem:[%s21321_s1 + $0xb0] sm:$0xf]  ;;  %v14016_v59 = vld [vmem:[%s21321_s1 + $0xc0] sm:$0xf0] }
 0x14f   :  { %v706_v28 = vpop.f32.mrf.mxu2  ;;  %v15490_v36 = vpack.c.bf16 %v1302_v1, %v1297_v39 }
 0x150   :  { %v707_v8 = vadd.f32 %v706_v28, %v15160_v30  ;;  %v571_v44 = vpop.f32.mrf.mxu0  ;;  %1061 = vmatpush.bf16.msra.mxu1 %v11039_v5  ;;  %v795_v28 = vadd.f32 %v794_v49, %v15468_v17  ;;  %v1199_v49 = vmax.f32 %v862_v45, 0.0  ;;  %v10998_v5 = vld [vmem:[%s21321_s1 + $0x88] sm:$0xf] }
 0x151   :  { %21589 = vst [vmem:[#allocation20_spill] sm:$0xff] %v15490_v36  ;;  %v572_v15 = vadd.f32 %v571_v44, %v15146_v16  ;;  %v14011_v36 = vld [vmem:[%s21321_s1 + $0x98] sm:$0xf0] }
 0x152   :  { %v15502_v1 = vadd.f32 %v775_v50, %v707_v8  ;;  %v11019_v50 = vor.u32 %v14016_v59, %v11018_v61  ;;  %v15514_v8 = vpack.c.bf16 %v1233_v4, %v1228_v20  ;;  %v10999_v20 = vor.u32 %v14011_v36, %v10998_v5  ;;  %v14006_v36 = vld [vmem:[%s21321_s1 + $0x70] sm:$0xf0]  ;;  %v10958_v5 = vld [vmem:[%s21321_s1 + $0x38] sm:$0xf] }
 0x153   :  { %v641_v39 = vadd.f32 %v640_v63, %v572_v15  ;;  %964 = vmatmul.bf16.gmra.mxu0 %v15088_v53 }
 0x154   :  { %11143 = vmatmul.msk.bf16.gmra.mxu2 %vm454_vm1, %v15038_v34  ;;  %21590 = vst [vmem:[#allocation21_spill] sm:$0xff] %v15514_v8  ;;  %1062 = vmatpush.bf16.msra.mxu1 %v11019_v50 }
 0x155   :  { %v863_v14 = vpop.f32.mrf.mxu3 }
 0x156   :  { %v864_v41 = vadd.f32 %v863_v14, %v795_v28  ;;  %v797_v63 = vpop.f32.mrf.mxu1  ;;  %v1307_v14 = vmax.f32 %v641_v39, 0.0  ;;  %v14001_v39 = vld [vmem:[%s21321_s1 + $0x48] sm:$0xf0] }
 0x157   :  { %v709_v44 = vpop.f32.mrf.mxu2  ;;  %v798_v59 = vadd.f32 %v797_v63, %v15468_v17 }
 0x158   :  { %v1204_v10 = vmax.f32 %v864_v41, 0.0  ;;  %v710_v19 = vadd.f32 %v709_v44, %v15160_v30  ;;  %v573_v15 = vpop.f32.mrf.mxu0  ;;  %1063 = vmatpush.bf16.msra.mxu1 %v10999_v20  ;;  %v1238_v20 = vmax.f32 %v15360_v47, 0.0  ;;  %v11342_v47 = vld [vmem:[%s21324_s3 + $0x168] sm:$0xf] }
 0x159   :  { %v574_v28 = vadd.f32 %v573_v15, %v15146_v16  ;;  %836 = vmatmul.bf16.gmra.mxu1 %v15227_v27  ;;  %v10978_v16 = vld [vmem:[%s21321_s1 + $0x60] sm:$0xf] }
 0x15a   :  { %v15525_v4 = vpack.c.bf16 %v1204_v10, %v1199_v49  ;;  %v15528_v45 = vadd.f32 %v15448_v32, %v710_v19  ;;  %11133 = vmatmul.msk.bf16.gmra.mxu3 %vm454_vm1, %v15112_v62  ;;  %v10979_v41 = vor.u32 %v14006_v36, %v10978_v16  ;;  %v15544_v19 = vperm.slane %v15129_v7, 3  ;;  %v11246_v7 = vld [vmem:[%s21324_s3 + $0xa8] sm:$0xf] }
 0x15b   :  { %v643_v61 = vadd.f32 %v15450_v25, %v574_v28  ;;  %v10959_v28 = vor.u32 %v14001_v39, %v10958_v5 }
 0x15c   :  { %21591 = vst [vmem:[#allocation22_spill] sm:$0xff] %v15525_v4  ;;  %1064 = vmatpush.bf16.msra.mxu1 %v10979_v41 }
 0x15d   :  { %v1312_v50 = vmax.f32 %v643_v61, 0.0  ;;  %v866_v32 = vpop.f32.mrf.mxu3  ;;  %v1243_v61 = vmax.f32 %v15368_v11, 0.0 }
 0x15e   :  { %v867_v44 = vadd.f32 %v866_v32, %v798_v59  ;;  %v799_v49 = vpop.f32.mrf.mxu1 }
 0x15f   :  { %v711_v10 = vpop.f32.mrf.mxu2  ;;  %v15540_v25 = vpack.c.bf16 %v1312_v50, %v1307_v14  ;;  %v800_v11 = vadd.f32 %v799_v49, %v15468_v17  ;;  %v14083_v14 = vld [vmem:[%s21324_s3 + $0x170] sm:$0xf0]  ;;  %v10938_v50 = vld [vmem:[%s21321_s1 + $0x10] sm:$0xf] }
 0x160   :  { %v712_v63 = vadd.f32 %v711_v10, %v15160_v30  ;;  %v930_v15 = vpop.f32.mrf.mxu0  ;;  %1065 = vmatpush.bf16.msra.mxu1 %v10959_v28  ;;  %v14059_v30 = vld [vmem:[%s21324_s3 + $0xb0] sm:$0xf0]  ;;  %v1209_v16 = vmax.f32 %v867_v44, 0.0  ;;  %v11343_v41 = vor.u32 %v14083_v14, %v11342_v47  ;;  %v13996_v44 = vld [vmem:[%s21321_s1 + $0x20] sm:$0xf0]  ;;  %v15586_v28 = vpack.c.bf16 %v1243_v61, %v1238_v20 }
 0x161   :  { %21592 = vst [vmem:[#allocation23_spill] sm:$0xff] %v15540_v25  ;;  %v11247_v36 = vor.u32 %v14059_v30, %v11246_v7  ;;  %v11098_v49 = vld [vmem:[%s21321_s1 + $0x150] sm:$0xf]  ;;  %v14036_v10 = vld [vmem:[%s21321_s1 + $0x160] sm:$0x30]  ;;  %v10939_v5 = vor.u32 %v13996_v44, %v10938_v50 }
 0x162   :  { %v15555_v59 = vadd.f32 %v15463_v35, %v712_v63  ;;  %v931_v35 = vadd.f32 %v930_v15, %v15544_v19  ;;  %v11099_v39 = vor.u32 %v14036_v10, %v11098_v49  ;;  %21593 = vst [vmem:[#allocation24_spill] sm:$0xff] %v15586_v28  ;;  %2271 = vmatpush.bf16.msra.mxu2 %v11343_v41  ;;  %v11234_v30 = vld [vmem:[%s21324_s3 + $0x90] sm:$0xf]  ;;  %v14056_v47 = vld [vmem:[%s21324_s3 + $0x98] sm:$0xf0] }
 0x163   :  { %969 = vmatmul.bf16.gmra.mxu0 %v15150_v21  ;;  %v11235_v61 = vor.u32 %v14056_v47, %v11234_v30  ;;  %v14053_v49 = vld [vmem:[%s21324_s3 + $0x80] sm:$0xf0]  ;;  %v11318_v10 = vld [vmem:[%s21324_s3 + $0x138] sm:$0xf] }
 0x164   :  { %11144 = vmatmul.msk.bf16.gmra.mxu2 %vm454_vm1, %v15060_v40  ;;  %2202 = vmatpush.bf16.msra.mxu0 %v11247_v36  ;;  %v505_v20 = vsel %vm491_vm0, %v11099_v39, 0 }
 0x165   :  { %v868_v32 = vpop.f32.mrf.mxu3  ;;  %1066 = vmatpush.bf16.msra.mxu1 %v10939_v5  ;;  %1135 = vmatpush.bf16.msra.mxu3 %v505_v20  ;;  %v11210_v20 = vld [vmem:[%s21324_s3 + $0x60] sm:$0xf] }
 0x166   :  { %v869_v63 = vadd.f32 %v868_v32, %v800_v11  ;;  %v802_v15 = vpop.f32.mrf.mxu1  ;;  %v11330_v11 = vld [vmem:[%s21324_s3 + $0x150] sm:$0xf]  ;;  %v14080_v32 = vld [vmem:[%s21324_s3 + $0x158] sm:$0xf0] }
 0x167   :  { %v999_v7 = vpop.f32.mrf.mxu2  ;;  %v11331_v41 = vor.u32 %v14080_v32, %v11330_v11 }
 0x168   :  { %v1214_v14 = vmax.f32 %v869_v63, 0.0  ;;  %v1000_v36 = vadd.f32 %v999_v7, %v931_v35  ;;  %v932_v50 = vpop.f32.mrf.mxu0  ;;  %2203 = vmatpush.bf16.msra.mxu0 %v11235_v61  ;;  %v11222_v35 = vld [vmem:[%s21324_s3 + $0x78] sm:$0xf]  ;;  %v803_v63 = vadd.f32 %v802_v15, %v15468_v17  ;;  %v14050_v15 = vld [vmem:[%s21324_s3 + $0x68] sm:$0xf0] }
 0x169   :  { %841 = vmatmul.bf16.gmra.mxu1 %v15295_v38  ;;  %2272 = vmatpush.bf16.msra.mxu2 %v11331_v41  ;;  %v933_v5 = vadd.f32 %v932_v50, %v15544_v19  ;;  %v11223_v39 = vor.u32 %v14053_v49, %v11222_v35  ;;  %v11306_v50 = vld [vmem:[%s21324_s3 + $0x120] sm:$0xf]  ;;  %v11211_v35 = vor.u32 %v14050_v15, %v11210_v20  ;;  %v14074_v49 = vld [vmem:[%s21324_s3 + $0x128] sm:$0xf0]  ;;  %v14071_v20 = vld [vmem:[%s21324_s3 + $0x110] sm:$0xf0] }
 0x16a   :  { %11134 = vmatmul.msk.bf16.gmra.mxu3 %vm454_vm1, %v15190_v46  ;;  %v15604_v44 = vpack.c.bf16 %v1214_v14, %v1209_v16  ;;  %v14077_v16 = vld [vmem:[%s21324_s3 + $0x140] sm:$0xf0]  ;;  %v1200_v61 = vmax.f32 %v1000_v36, 0.0  ;;  %v11198_v36 = vld [vmem:[%s21324_s3 + $0x48] sm:$0xf] }
 0x16b   :  { %v11319_v30 = vor.u32 %v14077_v16, %v11318_v10  ;;  %v11307_v10 = vor.u32 %v14074_v49, %v11306_v50 }
 0x16c   :  { %21594 = vst [vmem:[#allocation25_spill] sm:$0xff] %v15604_v44  ;;  %2204 = vmatpush.bf16.msra.mxu0 %v11223_v39  ;;  %v1253_v39 = vmax.f32 %v15384_v23, 0.0 }
 0x16d   :  { %v871_v7 = vpop.f32.mrf.mxu3  ;;  %2273 = vmatpush.bf16.msra.mxu2 %v11319_v30 }
 0x16e   :  { %v872_v47 = vadd.f32 %v871_v7, %v803_v63  ;;  %v804_v11 = vpop.f32.mrf.mxu1  ;;  %v1248_v63 = vmax.f32 %v15376_v42, 0.0  ;;  %v11294_v7 = vld [vmem:[%s21324_s3 + $0x108] sm:$0xf] }
 0x16f   :  { %v1001_v14 = vpop.f32.mrf.mxu2  ;;  %v805_v42 = vadd.f32 %v804_v11, %v15468_v17  ;;  %v11295_v50 = vor.u32 %v14071_v20, %v11294_v7  ;;  %v14068_v7 = vld [vmem:[%s21324_s3 + $0xf8] sm:$0xf0]  ;;  %v11270_v20 = vld [vmem:[%s21324_s3 + $0xd8] sm:$0xf] }
 0x170   :  { %v1002_v32 = vadd.f32 %v1001_v14, %v933_v5  ;;  %v935_v41 = vpop.f32.mrf.mxu0  ;;  %2205 = vmatpush.bf16.msra.mxu0 %v11211_v35  ;;  %v14047_v5 = vld [vmem:[%s21324_s3 + $0x50] sm:$0xf0]  ;;  %v15653_v49 = vpack.c.bf16 %v1253_v39, %v1248_v63 }
 0x171   :  { %2274 = vmatpush.bf16.msra.mxu2 %v11307_v10  ;;  %v936_v30 = vadd.f32 %v935_v41, %v15544_v19  ;;  %v11199_v14 = vor.u32 %v14047_v5, %v11198_v36  ;;  %v14044_v41 = vld [vmem:[%s21324_s3 + $0x38] sm:$0xf0]  ;;  %v11282_v10 = vld [vmem:[%s21324_s3 + $0xf0] sm:$0xf] }
 0x172   :  { %v1205_v16 = vmax.f32 %v1002_v32, 0.0  ;;  %21596 = vst [vmem:[#allocation27_spill] sm:$0xff] %v15653_v49 }
 0x173   :  { %974 = vmatmul.bf16.gmra.mxu0 %v15227_v27 }
 0x174   :  { %v15645_v23 = vpack.c.bf16 %v1205_v16, %v1200_v61  ;;  %11145 = vmatmul.msk.bf16.gmra.mxu2 %vm454_vm1, %v15112_v62  ;;  %2206 = vmatpush.bf16.msra.mxu0 %v11199_v14  ;;  %v11186_v61 = vld [vmem:[%s21324_s3 + $0x30] sm:$0xf]  ;;  %v1219_v16 = vmax.f32 %v872_v47, 0.0  ;;  %v11174_v47 = vld [vmem:[%s21324_s3 + $0x18] sm:$0xf] }
 0x175   :  { %v873_v15 = vpop.f32.mrf.mxu3  ;;  %2275 = vmatpush.bf16.msra.mxu2 %v11295_v50  ;;  %v11187_v39 = vor.u32 %v14044_v41, %v11186_v61 }
 0x176   :  { %21595 = vst [vmem:[#allocation26_spill] sm:$0xff] %v15645_v23  ;;  %v874_v32 = vadd.f32 %v873_v15, %v805_v42  ;;  %v807_v35 = vpop.f32.mrf.mxu1  ;;  %v11283_v42 = vor.u32 %v14068_v7, %v11282_v10 }
 0x177   :  { %v1004_v11 = vpop.f32.mrf.mxu2  ;;  %v808_v15 = vadd.f32 %v807_v35, %v15468_v17  ;;  %v14038_v35 = vld [vmem:[%s21324_s3 + $0x8] sm:$0xf0] }
 0x178   :  { %v1224_v36 = vmax.f32 %v874_v32, 0.0  ;;  %v15664_v5 = vadd.f32 %v1004_v11, %v936_v30  ;;  %v937_v63 = vpop.f32.mrf.mxu0  ;;  %2207 = vmatpush.bf16.msra.mxu0 %v11187_v39  ;;  %v14041_v30 = vld [vmem:[%s21324_s3 + $0x20] sm:$0xf0]  ;;  %v11162_v39 = vld [vmem:[%s21324_s3] sm:$0xf] }
 0x179   :  { %846 = vmatmul.bf16.gmra.mxu1 %v15329_v52  ;;  %2276 = vmatpush.bf16.msra.mxu2 %v11283_v42  ;;  %v938_v50 = vadd.f32 %v937_v63, %v15544_v19  ;;  %v11175_v32 = vor.u32 %v14041_v30, %v11174_v47  ;;  %v14065_v11 = vld [vmem:[%s21324_s3 + $0xe0] sm:$0xf0]  ;;  %v11258_v63 = vld [vmem:[%s21324_s3 + $0xc0] sm:$0xf]  ;;  %v11163_v47 = vor.u32 %v14038_v35, %v11162_v39  ;;  %v14062_v30 = vld [vmem:[%s21324_s3 + $0xc8] sm:$0xf0] }
 0x17a   :  { %11135 = vmatmul.msk.bf16.gmra.mxu3 %vm454_vm1, %v15255_v56  ;;  %v15672_v14 = vpack.c.bf16 %v1224_v36, %v1219_v16  ;;  %v11271_v41 = vor.u32 %v14065_v11, %v11270_v20  ;;  %v11259_v20 = vor.u32 %v14062_v30, %v11258_v63 }
 0x17c   :  { %21597 = vst [vmem:[#allocation28_spill] sm:$0xff] %v15672_v14  ;;  %2208 = vmatpush.bf16.msra.mxu0 %v11175_v32  ;;  %v1263_v32 = vmax.f32 %v15400_v51, 0.0 }
 0x17d   :  { %v876_v61 = vpop.f32.mrf.mxu3  ;;  %2277 = vmatpush.bf16.msra.mxu2 %v11271_v41 }
 0x17e   :  { %v877_v10 = vadd.f32 %v876_v61, %v808_v15  ;;  %v809_v16 = vpop.f32.mrf.mxu1  ;;  %v1258_v15 = vmax.f32 %v15392_v60, 0.0 }
 0x17f   :  { %v1006_v36 = vpop.f32.mrf.mxu2  ;;  %v810_v11 = vadd.f32 %v809_v16, %v15468_v17 }
 0x180   :  { %v15697_v7 = vadd.f32 %v1006_v36, %v938_v50  ;;  %v940_v42 = vpop.f32.mrf.mxu0  ;;  %2209 = vmatpush.bf16.msra.mxu0 %v11163_v47  ;;  %v15709_v39 = vpack.c.bf16 %v1263_v32, %v1258_v15  ;;  %v1229_v60 = vmax.f32 %v877_v10, 0.0 }
 0x181   :  { %2278 = vmatpush.bf16.msra.mxu2 %v11259_v20  ;;  %v941_v50 = vadd.f32 %v940_v42, %v15544_v19 }
 0x182   :  { %21598 = vst [vmem:[#allocation29_spill] sm:$0xff] %v15709_v39 }
 0x183   :  { %979 = vmatmul.bf16.gmra.mxu0 %v15295_v38 }
 0x184   :  { %11146 = vmatmul.msk.bf16.gmra.mxu2 %vm454_vm1, %v15190_v46 }
 0x185   :  { %v878_v61 = vpop.f32.mrf.mxu3 }
 0x186   :  { %v879_v41 = vadd.f32 %v878_v61, %v810_v11  ;;  %v812_v36 = vpop.f32.mrf.mxu1  ;;  %v1268_v61 = vmax.f32 %v15408_v55, 0.0 }
 0x187   :  { %v1009_v35 = vpop.f32.mrf.mxu2  ;;  %v813_v42 = vadd.f32 %v812_v36, %v15468_v17 }
 0x188   :  { %v1234_v63 = vmax.f32 %v879_v41, 0.0  ;;  %v15711_v51 = vadd.f32 %v1009_v35, %v941_v50  ;;  %v942_v47 = vpop.f32.mrf.mxu0 }
 0x189   :  { %1067 = vmatmul.bf16.vlgmr.msra.gmra.mxu1 %v14918_v0  ;;  %v943_v30 = vadd.f32 %v942_v47, %v15544_v19  ;;  %v1273_v0 = vmax.f32 %v15416_v9, 0.0 }
 0x18a   :  { %11148 = vmatmul.msk.bf16.vlgmr.msra.gmra.mxu3 %vm454_vm1, %v14815_v18  ;;  %v15716_v16 = vpack.c.bf16 %v1234_v63, %v1229_v60 }
 0x18b   :  { %v15729_v63 = vpack.c.bf16 %v1273_v0, %v1268_v61 }
 0x18c   :  { %21599 = vst [vmem:[#allocation30_spill] sm:$0xff] %v15716_v16 }
 0x18d   :  { %v881_v20 = vpop.f32.mrf.mxu3  ;;  %21600 = vst [vmem:[#allocation31_spill] sm:$0xff] %v15729_v63 }
 0x18e   :  { %v882_v15 = vadd.f32 %v881_v20, %v813_v42  ;;  %v814_v32 = vpop.f32.mrf.mxu1 }
 0x18f   :  { %v1011_v11 = vpop.f32.mrf.mxu2  ;;  %v815_v18 = vadd.f32 %v814_v32, %v15468_v17 }
 0x190   :  { %v15720_v10 = vadd.f32 %v1011_v11, %v943_v30  ;;  %v945_v50 = vpop.f32.mrf.mxu0  ;;  %v1239_v42 = vmax.f32 %v882_v15, 0.0 }
 0x191   :  { %v946_v41 = vadd.f32 %v945_v50, %v15544_v19 }
 0x193   :  { %984 = vmatmul.bf16.gmra.mxu0 %v15329_v52 }
 0x194   :  { %11147 = vmatmul.msk.bf16.gmra.mxu2 %vm454_vm1, %v15255_v56 }
 0x195   :  { %v883_v36 = vpop.f32.mrf.mxu3 }
 0x196   :  { %v884_v35 = vadd.f32 %v883_v36, %v815_v18  ;;  %v817_v60 = vpop.f32.mrf.mxu1  ;;  %v1278_v36 = vmax.f32 %v15424_v13, 0.0 }
 0x197   :  { %v1014_v47 = vpop.f32.mrf.mxu2  ;;  %v818_v32 = vadd.f32 %v817_v60, %v15468_v17 }
 0x198   :  { %v1244_v30 = vmax.f32 %v884_v35, 0.0  ;;  %v15731_v55 = vadd.f32 %v1014_v47, %v946_v41  ;;  %v947_v9 = vpop.f32.mrf.mxu0 }
 0x199   :  { %1072 = vmatmul.bf16.gmra.mxu1 %v14940_v6  ;;  %v948_v11 = vadd.f32 %v947_v9, %v15544_v19  ;;  %v1283_v6 = vmax.f32 %v15434_v29, 0.0 }
 0x19a   :  { %11149 = vmatmul.msk.bf16.gmra.mxu3 %vm454_vm1, %v14882_v48  ;;  %v15736_v20 = vpack.c.bf16 %v1244_v30, %v1239_v42 }
 0x19b   :  { %v15748_v30 = vpack.c.bf16 %v1283_v6, %v1278_v36 }
 0x19c   :  { %21601 = vst [vmem:[#allocation32_spill] sm:$0xff] %v15736_v20 }
 0x19d   :  { %v886_v50 = vpop.f32.mrf.mxu3  ;;  %21602 = vst [vmem:[#allocation33_spill] sm:$0xff] %v15748_v30 }
 0x19e   :  { %v887_v61 = vadd.f32 %v886_v50, %v818_v32  ;;  %v819_v0 = vpop.f32.mrf.mxu1 }
 0x19f   :  { %v1016_v18 = vpop.f32.mrf.mxu2  ;;  %v820_v48 = vadd.f32 %v819_v0, %v15468_v17 }
 0x1a0   :  { %v15740_v15 = vadd.f32 %v1016_v18, %v948_v11  ;;  %v950_v41 = vpop.f32.mrf.mxu0  ;;  %v1249_v32 = vmax.f32 %v887_v61, 0.0 }
 0x1a1   :  { %v951_v35 = vadd.f32 %v950_v41, %v15544_v19 }
 0x1a3   :  { %2210 = vmatmul.bf16.vlgmr.msra.gmra.mxu0 %v15225_v24 }
 0x1a4   :  { %2279 = vmatmul.bf16.vlgmr.msra.gmra.mxu2 %v15257_v57 }
 0x1a5   :  { %v888_v60 = vpop.f32.mrf.mxu3 }
 0x1a6   :  { %v889_v47 = vadd.f32 %v888_v60, %v820_v48  ;;  %v822_v42 = vpop.f32.mrf.mxu1  ;;  %v1288_v60 = vmax.f32 %v15444_v58, 0.0 }
 0x1a7   :  { %v1019_v9 = vpop.f32.mrf.mxu2  ;;  %v823_v0 = vadd.f32 %v822_v42, %v15468_v17 }
 0x1a8   :  { %v1254_v11 = vmax.f32 %v889_v47, 0.0  ;;  %v15750_v50 = vadd.f32 %v1019_v9, %v951_v35  ;;  %v952_v13 = vpop.f32.mrf.mxu0 }
 0x1a9   :  { %1077 = vmatmul.bf16.gmra.mxu1 %v14962_v12  ;;  %v953_v18 = vadd.f32 %v952_v13, %v15544_v19  ;;  %v1293_v12 = vmax.f32 %v15458_v2, 0.0  ;;  %v21605_v2 = vld [vmem:[#allocation4_spill] sm:$0xff] }
 0x1aa   :  { %11150 = vmatmul.msk.bf16.gmra.mxu3 %vm454_vm1, %v14928_v3  ;;  %v15755_v29 = vpack.c.bf16 %v1254_v11, %v1249_v32 }
 0x1ab   :  { %v15767_v11 = vpack.c.bf16 %v1293_v12, %v1288_v60 }
 0x1ac   :  { %21603 = vst [vmem:[#allocation34_spill] sm:$0xff] %v15755_v29 }
 0x1ad   :  { %v891_v41 = vpop.f32.mrf.mxu3  ;;  %21604 = vst [vmem:[#allocation35_spill] sm:$0xff] %v15767_v11 }
 0x1ae   :  { %v892_v36 = vadd.f32 %v891_v41, %v823_v0  ;;  %v824_v6 = vpop.f32.mrf.mxu1 }
 0x1af   :  { %v1021_v48 = vpop.f32.mrf.mxu2  ;;  %v825_v3 = vadd.f32 %v824_v6, %v15468_v17 }
 0x1b0   :  { %v15759_v61 = vadd.f32 %v1021_v48, %v953_v18  ;;  %v955_v35 = vpop.f32.mrf.mxu0  ;;  %v1259_v0 = vmax.f32 %v892_v36, 0.0  ;;  %v21606_v48 = vld [vmem:[#allocation2_spill] sm:$0xff] }
 0x1b1   :  { %v956_v47 = vadd.f32 %v955_v35, %v15544_v19 }
 0x1b3   :  { %2215 = vmatmul.bf16.gmra.mxu0 %v15303_v43 }
 0x1b4   :  { %2284 = vmatmul.bf16.gmra.mxu2 %v15439_v26 }
 0x1b5   :  { %v893_v42 = vpop.f32.mrf.mxu3 }
 0x1b6   :  { %v894_v9 = vadd.f32 %v893_v42, %v825_v3  ;;  %v827_v32 = vpop.f32.mrf.mxu1 }
 0x1b7   :  { %v1024_v13 = vpop.f32.mrf.mxu2  ;;  %v828_v35 = vadd.f32 %v827_v32, %v15468_v17 }
 0x1b8   :  { %v1264_v18 = vmax.f32 %v894_v9, 0.0  ;;  %v15769_v41 = vadd.f32 %v1024_v13, %v956_v47  ;;  %v957_v58 = vpop.f32.mrf.mxu0  ;;  %v1298_v9 = vmax.f32 %v15479_v33, 0.0  ;;  %v1303_v13 = vmax.f32 %v15502_v1, 0.0  ;;  %v21610_v1 = vld [vmem:[#allocation5_spill] sm:$0xff] }
 0x1b9   :  { %1082 = vmatmul.bf16.gmra.mxu1 %v21605_v2  ;;  %v958_v3 = vadd.f32 %v957_v58, %v15544_v19  ;;  %v21608_v2 = vld [vmem:[#allocation10_spill] sm:$0xff] }
 0x1ba   :  { %11151 = vmatmul.msk.bf16.gmra.mxu3 %vm454_vm1, %v21606_v48  ;;  %v15774_v6 = vpack.c.bf16 %v1264_v18, %v1259_v0 }
 0x1bc   :  { %21607 = vst [vmem:[#allocation4_spill] sm:$0xff] %v15774_v6  ;;  %v21611_v6 = vld [vmem:[#allocation3_spill] sm:$0xff] }
 0x1bd   :  { %v896_v42 = vpop.f32.mrf.mxu3 }
 0x1be   :  { %v897_v60 = vadd.f32 %v896_v42, %v828_v35  ;;  %v829_v12 = vpop.f32.mrf.mxu1  ;;  %v15786_v35 = vpack.c.bf16 %v1303_v13, %v1298_v9 }
 0x1bf   :  { %v1026_v26 = vpop.f32.mrf.mxu2  ;;  %v830_v0 = vadd.f32 %v829_v12, %v15468_v17 }
 0x1c0   :  { %v15778_v36 = vadd.f32 %v1026_v26, %v958_v3  ;;  %v960_v47 = vpop.f32.mrf.mxu0  ;;  %21609 = vst [vmem:[#allocation2_spill] sm:$0xff] %v15786_v35  ;;  %v1269_v3 = vmax.f32 %v897_v60, 0.0 }
 0x1c1   :  { %v961_v18 = vadd.f32 %v960_v47, %v15544_v19 }
 0x1c3   :  { %2220 = vmatmul.bf16.gmra.mxu0 %v21608_v2 }
 0x1c4   :  { %2289 = vmatmul.bf16.gmra.mxu2 %v15465_v54 }
 0x1c5   :  { %v898_v32 = vpop.f32.mrf.mxu3 }
 0x1c6   :  { %v899_v58 = vadd.f32 %v898_v32, %v830_v0  ;;  %v832_v48 = vpop.f32.mrf.mxu1 }
 0x1c7   :  { %v1029_v26 = vpop.f32.mrf.mxu2  ;;  %v833_v47 = vadd.f32 %v832_v48, %v15468_v17 }
 0x1c8   :  { %v1274_v42 = vmax.f32 %v899_v58, 0.0  ;;  %v15788_v57 = vadd.f32 %v1029_v26, %v961_v18  ;;  %v962_v33 = vpop.f32.mrf.mxu0  ;;  %v1308_v58 = vmax.f32 %v15528_v45, 0.0  ;;  %v1313_v26 = vmax.f32 %v15555_v59, 0.0 }
 0x1c9   :  { %1087 = vmatmul.bf16.gmra.mxu1 %v21610_v1  ;;  %v963_v0 = vadd.f32 %v962_v33, %v15544_v19  ;;  %v21613_v1 = vld [vmem:[#allocation11_spill] sm:$0xff] }
 0x1ca   :  { %11152 = vmatmul.msk.bf16.gmra.mxu3 %vm454_vm1, %v21611_v6  ;;  %v15793_v12 = vpack.c.bf16 %v1274_v42, %v1269_v3 }
 0x1cc   :  { %21612 = vst [vmem:[#allocation5_spill] sm:$0xff] %v15793_v12 }
 0x1cd   :  { %v901_v32 = vpop.f32.mrf.mxu3 }
 0x1ce   :  { %v902_v9 = vadd.f32 %v901_v32, %v833_v47  ;;  %v834_v13 = vpop.f32.mrf.mxu1  ;;  %v15805_v47 = vpack.c.bf16 %v1313_v26, %v1308_v58 }
 0x1cf   :  { %v1031_v54 = vpop.f32.mrf.mxu2  ;;  %v835_v6 = vadd.f32 %v834_v13, %v15468_v17 }
 0x1d0   :  { %v15797_v60 = vadd.f32 %v1031_v54, %v963_v0  ;;  %v965_v18 = vpop.f32.mrf.mxu0  ;;  %21614 = vst [vmem:[#allocation3_spill] sm:$0xff] %v15805_v47  ;;  %v1279_v0 = vmax.f32 %v902_v9, 0.0 }
 0x1d1   :  { %v966_v3 = vadd.f32 %v965_v18, %v15544_v19 }
 0x1d3   :  { %2225 = vmatmul.bf16.gmra.mxu0 %v21613_v1 }
 0x1d4   :  { %2294 = vmatmul.bf16.gmra.mxu2 %v15514_v8 }
 0x1d5   :  { %v903_v48 = vpop.f32.mrf.mxu3 }
 0x1d6   :  { %v904_v42 = vadd.f32 %v903_v48, %v835_v6  ;;  %v837_v33 = vpop.f32.mrf.mxu1 }
 0x1d7   :  { %v1034_v54 = vpop.f32.mrf.mxu2  ;;  %v838_v13 = vadd.f32 %v837_v33, %v15468_v17 }
 0x1d8   :  { %v1284_v32 = vmax.f32 %v904_v42, 0.0  ;;  %v15807_v12 = vadd.f32 %v1034_v54, %v966_v3  ;;  %v967_v45 = vpop.f32.mrf.mxu0  ;;  %v21616_v42 = vld [vmem:[#allocation12_spill] sm:$0xff] }
 0x1d9   :  { %1092 = vmatmul.bf16.gmra.mxu1 %v15028_v31  ;;  %v968_v18 = vadd.f32 %v967_v45, %v15544_v19 }
 0x1da   :  { %11153 = vmatmul.msk.bf16.gmra.mxu3 %vm454_vm1, %v14994_v22  ;;  %v15812_v59 = vpack.c.bf16 %v1284_v32, %v1279_v0 }
 0x1dc   :  { %21615 = vst [vmem:[#allocation36_spill] sm:$0xff] %v15812_v59 }
 0x1dd   :  { %v906_v6 = vpop.f32.mrf.mxu3 }
 0x1de   :  { %v907_v58 = vadd.f32 %v906_v6, %v838_v13  ;;  %v839_v26 = vpop.f32.mrf.mxu1 }
 0x1df   :  { %v1036_v48 = vpop.f32.mrf.mxu2  ;;  %v840_v31 = vadd.f32 %v839_v26, %v15468_v17 }
 0x1e0   :  { %v15816_v9 = vadd.f32 %v1036_v48, %v968_v18  ;;  %v970_v3 = vpop.f32.mrf.mxu0  ;;  %v1289_v45 = vmax.f32 %v907_v58, 0.0  ;;  %v21617_v18 = vld [vmem:[#allocation6_spill] sm:$0xff] }
 0x1e1   :  { %v971_v54 = vadd.f32 %v970_v3, %v15544_v19 }
 0x1e3   :  { %2230 = vmatmul.bf16.gmra.mxu0 %v21616_v42 }
 0x1e4   :  { %2299 = vmatmul.bf16.gmra.mxu2 %v15586_v28 }
 0x1e5   :  { %v908_v22 = vpop.f32.mrf.mxu3 }
 0x1e6   :  { %v909_v0 = vadd.f32 %v908_v22, %v840_v31  ;;  %v842_v33 = vpop.f32.mrf.mxu1 }
 0x1e7   :  { %v1039_v32 = vpop.f32.mrf.mxu2  ;;  %v843_v26 = vadd.f32 %v842_v33, %v15468_v17  ;;  %v1210_v33 = vmax.f32 %v15664_v5, 0.0 }
 0x1e8   :  { %v1294_v8 = vmax.f32 %v909_v0, 0.0  ;;  %v15822_v13 = vadd.f32 %v1039_v32, %v971_v54  ;;  %v972_v6 = vpop.f32.mrf.mxu0  ;;  %v21619_v0 = vld [vmem:[#allocation13_spill] sm:$0xff] }
 0x1e9   :  { %1097 = vmatmul.bf16.gmra.mxu1 %v15050_v37  ;;  %v973_v3 = vadd.f32 %v972_v6, %v15544_v19 }
 0x1ea   :  { %11154 = vmatmul.msk.bf16.gmra.mxu3 %vm454_vm1, %v21617_v18  ;;  %v15827_v48 = vpack.c.bf16 %v1294_v8, %v1289_v45  ;;  %v1215_v45 = vmax.f32 %v15697_v7, 0.0 }
 0x1ec   :  { %21618 = vst [vmem:[#allocation6_spill] sm:$0xff] %v15827_v48 }
 0x1ed   :  { %v911_v28 = vpop.f32.mrf.mxu3 }
 0x1ee   :  { %v912_v31 = vadd.f32 %v911_v28, %v843_v26  ;;  %v844_v22 = vpop.f32.mrf.mxu1 }
 0x1ef   :  { %v1041_v59 = vpop.f32.mrf.mxu2  ;;  %v845_v37 = vadd.f32 %v844_v22, %v15468_v17  ;;  %v15844_v22 = vpack.c.bf16 %v1215_v45, %v1210_v33  ;;  %v1220_v45 = vmax.f32 %v15711_v51, 0.0  ;;  %v11438_v51 = vld [vmem:[%s21324_s3 + $0x228] sm:$0xf] }
 0x1f0   :  { %v15831_v58 = vadd.f32 %v1041_v59, %v973_v3  ;;  %v975_v54 = vpop.f32.mrf.mxu0  ;;  %v1299_v26 = vmax.f32 %v912_v31, 0.0 }
 0x1f1   :  { %v976_v32 = vadd.f32 %v975_v54, %v15544_v19 }
 0x1f3   :  { %2235 = vmatmul.bf16.gmra.mxu0 %v21619_v0 }
 0x1f4   :  { %2304 = vmatmul.bf16.gmra.mxu2 %v15653_v49  ;;  %v21621_v49 = vld [vmem:[#allocation14_spill] sm:$0xff] }
 0x1f5   :  { %v913_v8 = vpop.f32.mrf.mxu3 }
 0x1f6   :  { %v914_v6 = vadd.f32 %v913_v8, %v845_v37  ;;  %v847_v28 = vpop.f32.mrf.mxu1 }
 0x1f7   :  { %v1044_v18 = vpop.f32.mrf.mxu2  ;;  %v848_v5 = vadd.f32 %v847_v28, %v15468_v17 }
 0x1f8   :  { %v1304_v59 = vmax.f32 %v914_v6, 0.0  ;;  %v15839_v3 = vadd.f32 %v1044_v18, %v976_v32  ;;  %v977_v48 = vpop.f32.mrf.mxu0 }
 0x1f9   :  { %1102 = vmatmul.bf16.gmra.mxu1 %v15088_v53  ;;  %v978_v7 = vadd.f32 %v977_v48, %v15544_v19  ;;  %v1225_v48 = vmax.f32 %v15720_v10, 0.0  ;;  %v14107_v10 = vld [vmem:[%s21324_s3 + $0x230] sm:$0xf0] }
 0x1fa   :  { %11155 = vmatmul.msk.bf16.gmra.mxu3 %vm454_vm1, %v15038_v34  ;;  %v15846_v54 = vpack.c.bf16 %v1304_v59, %v1299_v26  ;;  %v14735_v59 = vld [vmem:[%s21323_s2] sm:$0x1f] }
 0x1fc   :  { %21620 = vst [vmem:[#allocation37_spill] sm:$0xff] %v15846_v54 }
 0x1fd   :  { %v916_v37 = vpop.f32.mrf.mxu3 }
 0x1fe   :  { %v917_v8 = vadd.f32 %v916_v37, %v848_v5  ;;  %v849_v31 = vpop.f32.mrf.mxu1  ;;  %v15861_v5 = vperm.slane %v14735_v59, 4 }
 0x1ff   :  { %v1046_v6 = vpop.f32.mrf.mxu2  ;;  %v850_v53 = vadd.f32 %v849_v31, %v15468_v17 }
 0x200   :  { %v15850_v32 = vadd.f32 %v1046_v6, %v978_v7  ;;  %v980_v18 = vpop.f32.mrf.mxu0  ;;  %v1309_v37 = vmax.f32 %v917_v8, 0.0  ;;  %v14131_v8 = vld [vmem:[%s21324_s3 + $0x2f0] sm:$0xf0] }
 0x201   :  { %v981_v34 = vadd.f32 %v980_v18, %v15544_v19  ;;  %v11439_v18 = vor.u32 %v14107_v10, %v11438_v51  ;;  %v14104_v51 = vld [vmem:[%s21324_s3 + $0x218] sm:$0xf0] }
 0x203   :  { %2240 = vmatmul.bf16.gmra.mxu0 %v21621_v49  ;;  %2340 = vmatpush.bf16.msrb.mxu1 %v11439_v18 }
 0x204   :  { %2309 = vmatmul.bf16.gmra.mxu2 %v15709_v39 }
 0x205   :  { %v918_v33 = vpop.f32.mrf.mxu3 }
 0x206   :  { %v919_v28 = vadd.f32 %v918_v33, %v850_v53  ;;  %v1068_v26 = vpop.f32.mrf.mxu1  ;;  %v11534_v53 = vld [vmem:[%s21324_s3 + $0x2e8] sm:$0xf]  ;;  %v15880_v33 = vpack.c.bf16 %v1225_v48, %v1220_v45 }
 0x207   :  { %v1049_v7 = vpop.f32.mrf.mxu2 }
 0x208   :  { %v1314_v17 = vmax.f32 %v919_v28, 0.0  ;;  %v15863_v31 = vadd.f32 %v1049_v7, %v981_v34  ;;  %v982_v6 = vpop.f32.mrf.mxu0  ;;  %v11535_v34 = vor.u32 %v14131_v8, %v11534_v53  ;;  %21622 = vst [vmem:[#allocation38_spill] sm:$0xff] %v15880_v33  ;;  %v11426_v7 = vld [vmem:[%s21324_s3 + $0x210] sm:$0xf]  ;;  %v11414_v8 = vld [vmem:[%s21324_s3 + $0x1f8] sm:$0xf] }
 0x209   :  { %1107 = vmatmul.bf16.gmra.mxu1 %v15150_v21  ;;  %v1069_v21 = vadd.f32 %v1068_v26, %v15861_v5  ;;  %v983_v59 = vadd.f32 %v982_v6, %v15544_v19  ;;  %v11427_v48 = vor.u32 %v14104_v51, %v11426_v7  ;;  %v14128_v26 = vld [vmem:[%s21324_s3 + $0x2d8] sm:$0xf0] }
 0x20a   :  { %11156 = vmatmul.msk.bf16.gmra.mxu3 %vm454_vm1, %v15060_v40  ;;  %v15882_v28 = vpack.c.bf16 %v1314_v17, %v1309_v37  ;;  %v11522_v40 = vld [vmem:[%s21324_s3 + $0x2d0] sm:$0xf] }
 0x20b   :  { %2409 = vmatpush.bf16.msrb.mxu3 %v11535_v34  ;;  %v11523_v6 = vor.u32 %v14128_v26, %v11522_v40  ;;  %2341 = vmatpush.bf16.msrb.mxu1 %v11427_v48  ;;  %v14101_v34 = vld [vmem:[%s21324_s3 + $0x200] sm:$0xf0]  ;;  %v21624_v40 = vld [vmem:[#allocation15_spill] sm:$0xff]  ;;  %v11402_v26 = vld [vmem:[%s21324_s3 + $0x1e0] sm:$0xf] }
 0x20c   :  { %21623 = vst [vmem:[#allocation39_spill] sm:$0xff] %v15882_v28  ;;  %v11415_v7 = vor.u32 %v14101_v34, %v11414_v8 }
 0x20d   :  { %v1137_v45 = vpop.f32.mrf.mxu3 }
 0x20e   :  { %v1138_v37 = vadd.f32 %v1137_v45, %v1069_v21  ;;  %v1070_v17 = vpop.f32.mrf.mxu1  ;;  %v11510_v21 = vld [vmem:[%s21324_s3 + $0x2b8] sm:$0xf] }
 0x20f   :  { %v1051_v10 = vpop.f32.mrf.mxu2  ;;  %2410 = vmatpush.bf16.msrb.mxu3 %v11523_v6  ;;  %2342 = vmatpush.bf16.msrb.mxu1 %v11415_v7  ;;  %v1071_v45 = vadd.f32 %v1070_v17, %v15861_v5  ;;  %v14098_v6 = vld [vmem:[%s21324_s3 + $0x1e8] sm:$0xf0]  ;;  %v1235_v7 = vmax.f32 %v15740_v15, 0.0 }
 0x210   :  { %v15898_v18 = vadd.f32 %v1051_v10, %v983_v59  ;;  %v985_v53 = vpop.f32.mrf.mxu0  ;;  %v14125_v59 = vld [vmem:[%s21324_s3 + $0x2c0] sm:$0xf0]  ;;  %v11498_v10 = vld [vmem:[%s21324_s3 + $0x2a0] sm:$0xf]  ;;  %v11403_v34 = vor.u32 %v14098_v6, %v11402_v26  ;;  %v14122_v17 = vld [vmem:[%s21324_s3 + $0x2a8] sm:$0xf0] }
 0x211   :  { %v11511_v51 = vor.u32 %v14125_v59, %v11510_v21  ;;  %v986_v48 = vadd.f32 %v985_v53, %v15544_v19  ;;  %v1230_v53 = vmax.f32 %v15731_v55, 0.0  ;;  %v1201_v39 = vmax.f32 %v1138_v37, 0.0  ;;  %v11390_v26 = vld [vmem:[%s21324_s3 + $0x1c8] sm:$0xf]  ;;  %v14095_v55 = vld [vmem:[%s21324_s3 + $0x1d0] sm:$0xf0] }
 0x212   :  { %v11391_v15 = vor.u32 %v14095_v55, %v11390_v26  ;;  %v11486_v37 = vld [vmem:[%s21324_s3 + $0x288] sm:$0xf]  ;;  %v11366_v26 = vld [vmem:[%s21324_s3 + $0x198] sm:$0xf]  ;;  %v14089_v55 = vld [vmem:[%s21324_s3 + $0x1a0] sm:$0xf0] }
 0x213   :  { %2245 = vmatmul.bf16.gmra.mxu0 %v21624_v40  ;;  %2411 = vmatpush.bf16.msrb.mxu3 %v11511_v51  ;;  %v11499_v51 = vor.u32 %v14122_v17, %v11498_v10  ;;  %v15949_v6 = vpack.c.bf16 %v1235_v7, %v1230_v53  ;;  %v14116_v17 = vld [vmem:[%s21324_s3 + $0x278] sm:$0xf0] }
 0x214   :  { %2314 = vmatmul.bf16.gmra.mxu2 %v15729_v63  ;;  %2343 = vmatpush.bf16.msrb.mxu1 %v11403_v34 }
 0x215   :  { %v1139_v8 = vpop.f32.mrf.mxu3  ;;  %21626 = vst [vmem:[#allocation41_spill] sm:$0xff] %v15949_v6 }
 0x216   :  { %v1140_v21 = vadd.f32 %v1139_v8, %v1071_v45  ;;  %v1073_v59 = vpop.f32.mrf.mxu1  ;;  %v11378_v8 = vld [vmem:[%s21324_s3 + $0x1b0] sm:$0xf] }
 0x217   :  { %v1054_v63 = vpop.f32.mrf.mxu2  ;;  %2412 = vmatpush.bf16.msrb.mxu3 %v11499_v51 }
 0x218   :  { %v1206_v28 = vmax.f32 %v1140_v21, 0.0  ;;  %v15930_v54 = vadd.f32 %v1054_v63, %v986_v48  ;;  %v987_v40 = vpop.f32.mrf.mxu0  ;;  %v14119_v63 = vld [vmem:[%s21324_s3 + $0x290] sm:$0xf0]  ;;  %2344 = vmatpush.bf16.msrb.mxu1 %v11391_v15  ;;  %v1533_v21 = vld [vmem:[%s21325_s4] sm:$0x7]  ;;  %v11367_v15 = vor.u32 %v14089_v55, %v11366_v26  ;;  %v1245_v55 = vmax.f32 %v15759_v61, 0.0 }
 0x219   :  { %1112 = vmatmul.bf16.gmra.mxu1 %v15227_v27  ;;  %v11487_v48 = vor.u32 %v14119_v63, %v11486_v37  ;;  %v1074_v27 = vadd.f32 %v1073_v59, %v15861_v5  ;;  %v988_v10 = vadd.f32 %v987_v40, %v15544_v19  ;;  %v11462_v37 = vld [vmem:[%s21324_s3 + $0x258] sm:$0xf]  ;;  %v14113_v63 = vld [vmem:[%s21324_s3 + $0x260] sm:$0xf0]  ;;  %v14110_v26 = vld [vmem:[%s21324_s3 + $0x248] sm:$0xf0] }
 0x21a   :  { %v15945_v45 = vpack.c.bf16 %v1206_v28, %v1201_v39  ;;  %11157 = vmatmul.msk.bf16.gmra.mxu3 %vm454_vm1, %v15112_v62  ;;  %v14092_v39 = vld [vmem:[%s21324_s3 + $0x1b8] sm:$0xf0]  ;;  %v11474_v62 = vld [vmem:[%s21324_s3 + $0x270] sm:$0xf]  ;;  %v14055_v61 = vld [vmem:[%s21324_s3 + $0x94] sm:$0xf] }
 0x21b   :  { %2413 = vmatpush.bf16.msrb.mxu3 %v11487_v48  ;;  %v11379_v34 = vor.u32 %v14092_v39, %v11378_v8  ;;  %v11475_v53 = vor.u32 %v14116_v17, %v11474_v62  ;;  %v15982_v48 = vperm.slane %v1533_v21, 0  ;;  %v14058_v8 = vld [vmem:[%s21324_s3 + $0xac] sm:$0xf]  ;;  %v11248_v39 = vld [vmem:[%s21324_s3 + $0xb4] sm:$0xf0] }
 0x21c   :  { %21625 = vst [vmem:[#allocation40_spill] sm:$0xff] %v15945_v45  ;;  %v14086_v17 = vld [vmem:[%s21324_s3 + $0x188] sm:$0xf0] }
 0x21d   :  { %v1142_v28 = vpop.f32.mrf.mxu3  ;;  %2345 = vmatpush.bf16.msrb.mxu1 %v11379_v34  ;;  %v11354_v34 = vld [vmem:[%s21324_s3 + $0x180] sm:$0xf] }
 0x21e   :  { %v1143_v19 = vadd.f32 %v1142_v28, %v1074_v27  ;;  %v1075_v40 = vpop.f32.mrf.mxu1  ;;  %v11463_v27 = vor.u32 %v14113_v63, %v11462_v37  ;;  %v11251_v28 = vor.u32 %v14058_v8, %v11248_v39  ;;  %v14152_v39 = vld [vmem:[%s21324_s3 + $0x398] sm:$0xf0] }
 0x21f   :  { %v1056_v7 = vpop.f32.mrf.mxu2  ;;  %2414 = vmatpush.bf16.msrb.mxu3 %v11475_v53  ;;  %v1076_v62 = vadd.f32 %v1075_v40, %v15861_v5  ;;  %v11450_v53 = vld [vmem:[%s21324_s3 + $0x240] sm:$0xf]  ;;  %v11355_v40 = vor.u32 %v14086_v17, %v11354_v34 }
 0x220   :  { %v15968_v59 = vadd.f32 %v1056_v7, %v988_v10  ;;  %v2211_v51 = vpop.f32.mrf.mxu0  ;;  %v21627_v10 = vld [vmem:[#allocation16_spill] sm:$0xff]  ;;  %v1240_v7 = vmax.f32 %v15750_v50, 0.0  ;;  %2547 = vmatpush.bf16.msrb.mxu2 %v11251_v28  ;;  %v1211_v34 = vmax.f32 %v1143_v19, 0.0 }
 0x221   :  { %2346 = vmatpush.bf16.msrb.mxu1 %v11367_v15  ;;  %v2212_v15 = vadd.f32 %v2211_v51, %v15982_v48  ;;  %v11618_v50 = vld [vmem:[%s21324_s3 + $0x390] sm:$0xf] }
 0x222   :  { %v11619_v17 = vor.u32 %v14152_v39, %v11618_v50  ;;  %v16027_v19 = vpack.c.bf16 %v1245_v55, %v1240_v7 }
 0x223   :  { %2250 = vmatmul.bf16.gmra.mxu0 %v21627_v10  ;;  %2415 = vmatpush.bf16.msrb.mxu3 %v11463_v27  ;;  %v11451_v27 = vor.u32 %v14110_v26, %v11450_v53  ;;  %v11236_v53 = vld [vmem:[%s21324_s3 + $0x9c] sm:$0xf0]  ;;  %v11606_v26 = vld [vmem:[%s21324_s3 + $0x378] sm:$0xf] }
 0x224   :  { %2319 = vmatmul.bf16.gmra.mxu2 %v15748_v30  ;;  %2479 = vmatpush.bf16.msrb.mxu0 %v11619_v17  ;;  %21629 = vst [vmem:[#allocation43_spill] sm:$0xff] %v16027_v19 }
 0x225   :  { %v1144_v21 = vpop.f32.mrf.mxu3  ;;  %2347 = vmatpush.bf16.msrb.mxu1 %v11355_v40 }
 0x226   :  { %v1145_v37 = vadd.f32 %v1144_v21, %v1076_v62  ;;  %v1078_v63 = vpop.f32.mrf.mxu1  ;;  %v11239_v21 = vor.u32 %v14055_v61, %v11236_v53 }
 0x227   :  { %v2280_v8 = vpop.f32.mrf.mxu2  ;;  %2416 = vmatpush.bf16.msrb.mxu3 %v11451_v27 }
 0x228   :  { %v1216_v51 = vmax.f32 %v1145_v37, 0.0  ;;  %v16017_v62 = vadd.f32 %v2280_v8, %v2212_v15  ;;  %v2213_v28 = vpop.f32.mrf.mxu0  ;;  %2548 = vmatpush.bf16.msrb.mxu2 %v11239_v21  ;;  %v14149_v15 = vld [vmem:[%s21324_s3 + $0x380] sm:$0xf0]  ;;  %v1079_v37 = vadd.f32 %v1078_v63, %v15861_v5  ;;  %v14146_v63 = vld [vmem:[%s21324_s3 + $0x368] sm:$0xf0] }
 0x229   :  { %1117 = vmatmul.bf16.gmra.mxu1 %v15295_v38  ;;  %v14052_v38 = vld [vmem:[%s21324_s3 + $0x7c] sm:$0xf]  ;;  %v11607_v27 = vor.u32 %v14149_v15, %v11606_v26  ;;  %v2214_v8 = vadd.f32 %v2213_v28, %v15982_v48  ;;  %v11212_v21 = vld [vmem:[%s21324_s3 + $0x6c] sm:$0xf0]  ;;  %v21630_v15 = vld [vmem:[#allocation18_spill] sm:$0xff] }
 0x22a   :  { %v16023_v40 = vpack.c.bf16 %v1216_v51, %v1211_v34  ;;  %11158 = vmatmul.msk.bf16.gmra.mxu3 %vm454_vm1, %v15190_v46  ;;  %v11224_v46 = vld [vmem:[%s21324_s3 + $0x84] sm:$0xf0]  ;;  %v11594_v34 = vld [vmem:[%s21324_s3 + $0x360] sm:$0xf]  ;;  %v14049_v51 = vld [vmem:[%s21324_s3 + $0x64] sm:$0xf] }
 0x22b   :  { %v11227_v55 = vor.u32 %v14052_v38, %v11224_v46  ;;  %2480 = vmatpush.bf16.msrb.mxu0 %v11607_v27  ;;  %v11595_v53 = vor.u32 %v14146_v63, %v11594_v34  ;;  %v11215_v26 = vor.u32 %v14049_v51, %v11212_v21  ;;  %v11582_v38 = vld [vmem:[%s21324_s3 + $0x348] sm:$0xf]  ;;  %v14046_v27 = vld [vmem:[%s21324_s3 + $0x4c] sm:$0xf]  ;;  %v1250_v34 = vmax.f32 %v15769_v41, 0.0 }
 0x22c   :  { %21628 = vst [vmem:[#allocation42_spill] sm:$0xff] %v16023_v40  ;;  %v1255_v63 = vmax.f32 %v15778_v36, 0.0  ;;  %v14043_v41 = vld [vmem:[%s21324_s3 + $0x34] sm:$0xf] }
 0x22d   :  { %v1147_v7 = vpop.f32.mrf.mxu3  ;;  %2549 = vmatpush.bf16.msrb.mxu2 %v11227_v55  ;;  %v11200_v55 = vld [vmem:[%s21324_s3 + $0x54] sm:$0xf0] }
 0x22e   :  { %v1148_v50 = vadd.f32 %v1147_v7, %v1079_v37  ;;  %v1080_v39 = vpop.f32.mrf.mxu1  ;;  %v14143_v37 = vld [vmem:[%s21324_s3 + $0x350] sm:$0xf0] }
 0x22f   :  { %v2282_v61 = vpop.f32.mrf.mxu2  ;;  %2481 = vmatpush.bf16.msrb.mxu0 %v11595_v53  ;;  %v1081_v46 = vadd.f32 %v1080_v39, %v15861_v5  ;;  %v11583_v7 = vor.u32 %v14143_v37, %v11582_v38  ;;  %v11570_v39 = vld [vmem:[%s21324_s3 + $0x330] sm:$0xf]  ;;  %v14140_v38 = vld [vmem:[%s21324_s3 + $0x338] sm:$0xf0] }
 0x230   :  { %v16052_v17 = vadd.f32 %v2282_v61, %v2214_v8  ;;  %v2216_v28 = vpop.f32.mrf.mxu0  ;;  %v11203_v61 = vor.u32 %v14046_v27, %v11200_v55  ;;  %v1221_v36 = vmax.f32 %v1148_v50, 0.0  ;;  %v11558_v50 = vld [vmem:[%s21324_s3 + $0x318] sm:$0xf] }
 0x231   :  { %2550 = vmatpush.bf16.msrb.mxu2 %v11215_v26  ;;  %v2217_v51 = vadd.f32 %v2216_v28, %v15982_v48 }
 0x233   :  { %2255 = vmatmul.bf16.gmra.mxu0 %v21630_v15 }
 0x234   :  { %2324 = vmatmul.bf16.gmra.mxu2 %v15767_v11  ;;  %2482 = vmatpush.bf16.msrb.mxu0 %v11583_v7  ;;  %v11188_v7 = vld [vmem:[%s21324_s3 + $0x3c] sm:$0xf0] }
 0x235   :  { %v1149_v8 = vpop.f32.mrf.mxu3  ;;  %2551 = vmatpush.bf16.msrb.mxu2 %v11203_v61  ;;  %v11191_v55 = vor.u32 %v14043_v41, %v11188_v7  ;;  %v16094_v61 = vpack.c.bf16 %v1255_v63, %v1250_v34 }
 0x236   :  { %v1150_v53 = vadd.f32 %v1149_v8, %v1081_v46  ;;  %v1083_v21 = vpop.f32.mrf.mxu1  ;;  %v11571_v46 = vor.u32 %v14140_v38, %v11570_v39 }
 0x237   :  { %v2285_v26 = vpop.f32.mrf.mxu2  ;;  %21632 = vst [vmem:[#allocation45_spill] sm:$0xff] %v16094_v61 }
 0x238   :  { %v1226_v37 = vmax.f32 %v1150_v53, 0.0  ;;  %v16084_v28 = vadd.f32 %v2285_v26, %v2217_v51  ;;  %v2218_v27 = vpop.f32.mrf.mxu0  ;;  %2483 = vmatpush.bf16.msrb.mxu0 %v11571_v46  ;;  %v14137_v51 = vld [vmem:[%s21324_s3 + $0x320] sm:$0xf0]  ;;  %v1084_v53 = vadd.f32 %v1083_v21, %v15861_v5  ;;  %v14134_v21 = vld [vmem:[%s21324_s3 + $0x308] sm:$0xf0] }
 0x239   :  { %1122 = vmatmul.bf16.gmra.mxu1 %v15329_v52  ;;  %2552 = vmatpush.bf16.msrb.mxu2 %v11191_v55  ;;  %v14040_v52 = vld [vmem:[%s21324_s3 + $0x1c] sm:$0xf]  ;;  %v11559_v26 = vor.u32 %v14137_v51, %v11558_v50  ;;  %v2219_v39 = vadd.f32 %v2218_v27, %v15982_v48  ;;  %v14037_v46 = vld [vmem:[%s21324_s3 + $0x4] sm:$0xf]  ;;  %v11164_v50 = vld [vmem:[%s21324_s3 + $0xc] sm:$0xf0] }
 0x23a   :  { %v16090_v8 = vpack.c.bf16 %v1226_v37, %v1221_v36  ;;  %11159 = vmatmul.msk.bf16.gmra.mxu3 %vm454_vm1, %v15255_v56  ;;  %v11176_v56 = vld [vmem:[%s21324_s3 + $0x24] sm:$0xf0]  ;;  %v11546_v37 = vld [vmem:[%s21324_s3 + $0x300] sm:$0xf]  ;;  %v11167_v51 = vor.u32 %v14037_v46, %v11164_v50 }
 0x23b   :  { %v11179_v63 = vor.u32 %v14040_v52, %v11176_v56  ;;  %v11547_v55 = vor.u32 %v14134_v21, %v11546_v37  ;;  %v21633_v52 = vld [vmem:[#allocation20_spill] sm:$0xff]  ;;  %v1260_v56 = vmax.f32 %v15788_v57, 0.0 }
 0x23c   :  { %21631 = vst [vmem:[#allocation44_spill] sm:$0xff] %v16090_v8  ;;  %2484 = vmatpush.bf16.msrb.mxu0 %v11559_v26 }
 0x23d   :  { %v1152_v34 = vpop.f32.mrf.mxu3  ;;  %2553 = vmatpush.bf16.msrb.mxu2 %v11179_v63 }
 0x23e   :  { %v1153_v38 = vadd.f32 %v1152_v34, %v1084_v53  ;;  %v1085_v41 = vpop.f32.mrf.mxu1  ;;  %v1265_v34 = vmax.f32 %v15797_v60, 0.0 }
 0x23f   :  { %v2287_v36 = vpop.f32.mrf.mxu2  ;;  %v1086_v53 = vadd.f32 %v1085_v41, %v15861_v5 }
 0x240   :  { %v16119_v7 = vadd.f32 %v2287_v36, %v2219_v39  ;;  %v2221_v27 = vpop.f32.mrf.mxu0  ;;  %2485 = vmatpush.bf16.msrb.mxu0 %v11547_v55  ;;  %v1231_v21 = vmax.f32 %v1153_v38, 0.0 }
 0x241   :  { %2554 = vmatpush.bf16.msrb.mxu2 %v11167_v51  ;;  %v2222_v63 = vadd.f32 %v2221_v27, %v15982_v48  ;;  %v16136_v51 = vpack.c.bf16 %v1265_v34, %v1260_v56  ;;  %v1270_v56 = vmax.f32 %v15807_v12, 0.0  ;;  %v1275_v34 = vmax.f32 %v15816_v9, 0.0 }
 0x243   :  { %2260 = vmatmul.bf16.gmra.mxu0 %v21633_v52  ;;  %21635 = vst [vmem:[#allocation47_spill] sm:$0xff] %v16136_v51 }
 0x244   :  { %2329 = vmatmul.bf16.gmra.mxu2 %v15786_v35 }
 0x245   :  { %v1154_v26 = vpop.f32.mrf.mxu3 }
 0x246   :  { %v1155_v39 = vadd.f32 %v1154_v26, %v1086_v53  ;;  %v1088_v36 = vpop.f32.mrf.mxu1 }
 0x247   :  { %v2290_v37 = vpop.f32.mrf.mxu2  ;;  %v1089_v57 = vadd.f32 %v1088_v36, %v15861_v5 }
 0x248   :  { %v1236_v46 = vmax.f32 %v1155_v39, 0.0  ;;  %v16130_v55 = vadd.f32 %v2290_v37, %v2222_v63  ;;  %v2223_v50 = vpop.f32.mrf.mxu0 }
 0x249   :  { %2348 = vmatmul.bf16.vlgmr.msrb.gmra.mxu1 %v15525_v4  ;;  %v2224_v27 = vadd.f32 %v2223_v50, %v15982_v48 }
 0x24a   :  { %v16133_v41 = vpack.c.bf16 %v1236_v46, %v1231_v21  ;;  %2417 = vmatmul.bf16.vlgmr.msrb.gmra.mxu3 %v15645_v23 }
 0x24c   :  { %21634 = vst [vmem:[#allocation46_spill] sm:$0xff] %v16133_v41 }
 0x24d   :  { %v1157_v60 = vpop.f32.mrf.mxu3 }
 0x24e   :  { %v1158_v53 = vadd.f32 %v1157_v60, %v1089_v57  ;;  %v1090_v26 = vpop.f32.mrf.mxu1 }
 0x24f   :  { %v2292_v38 = vpop.f32.mrf.mxu2  ;;  %v1091_v37 = vadd.f32 %v1090_v26, %v15861_v5 }
 0x250   :  { %v16140_v39 = vadd.f32 %v2292_v38, %v2224_v27  ;;  %v2226_v63 = vpop.f32.mrf.mxu0  ;;  %v1241_v60 = vmax.f32 %v1158_v53, 0.0 }
 0x251   :  { %v2227_v36 = vadd.f32 %v2226_v63, %v15982_v48 }
 0x253   :  { %2265 = vmatmul.bf16.gmra.mxu0 %v15540_v25 }
 0x254   :  { %2334 = vmatmul.bf16.gmra.mxu2 %v15805_v47  ;;  %v16154_v47 = vpack.c.bf16 %v1275_v34, %v1270_v56  ;;  %v1280_v34 = vmax.f32 %v15822_v13, 0.0 }
 0x255   :  { %v1159_v21 = vpop.f32.mrf.mxu3 }
 0x256   :  { %v1160_v46 = vadd.f32 %v1159_v21, %v1091_v37  ;;  %v1093_v50 = vpop.f32.mrf.mxu1  ;;  %21637 = vst [vmem:[#allocation49_spill] sm:$0xff] %v16154_v47 }
 0x257   :  { %v2295_v57 = vpop.f32.mrf.mxu2  ;;  %v1094_v12 = vadd.f32 %v1093_v50, %v15861_v5  ;;  %v1285_v50 = vmax.f32 %v15831_v58, 0.0 }
 0x258   :  { %v1246_v27 = vmax.f32 %v1160_v46, 0.0  ;;  %v16148_v38 = vadd.f32 %v2295_v57, %v2227_v36  ;;  %v2228_v35 = vpop.f32.mrf.mxu0 }
 0x259   :  { %2353 = vmatmul.bf16.gmra.mxu1 %v15604_v44  ;;  %v2229_v63 = vadd.f32 %v2228_v35, %v15982_v48 }
 0x25a   :  { %v16151_v26 = vpack.c.bf16 %v1246_v27, %v1241_v60  ;;  %2422 = vmatmul.bf16.gmra.mxu3 %v15844_v22 }
 0x25c   :  { %21636 = vst [vmem:[#allocation48_spill] sm:$0xff] %v16151_v26 }
 0x25d   :  { %v1162_v9 = vpop.f32.mrf.mxu3 }
 0x25e   :  { %v1163_v37 = vadd.f32 %v1162_v9, %v1094_v12  ;;  %v1095_v21 = vpop.f32.mrf.mxu1 }
 0x25f   :  { %v2297_v53 = vpop.f32.mrf.mxu2  ;;  %v1096_v57 = vadd.f32 %v1095_v21, %v15861_v5 }
 0x260   :  { %v16158_v46 = vadd.f32 %v2297_v53, %v2229_v63  ;;  %v2231_v36 = vpop.f32.mrf.mxu0  ;;  %v1251_v9 = vmax.f32 %v1163_v37, 0.0 }
 0x261   :  { %v2232_v35 = vadd.f32 %v2231_v36, %v15982_v48 }
 0x263   :  { %11628 = vmatmul.msk.bf16.vlgmr.msrb.gmra.mxu0 %vm2165_vm2, %v15945_v45 }
 0x264   :  { %2555 = vmatmul.bf16.vlgmr.msrb.gmra.mxu2 %v15225_v24  ;;  %v16173_v24 = vpack.c.bf16 %v1285_v50, %v1280_v34  ;;  %v1290_v50 = vmax.f32 %v15839_v3, 0.0 }
 0x265   :  { %v1164_v56 = vpop.f32.mrf.mxu3 }
 0x266   :  { %v1165_v60 = vadd.f32 %v1164_v56, %v1096_v57  ;;  %v1098_v27 = vpop.f32.mrf.mxu1  ;;  %21639 = vst [vmem:[#allocation51_spill] sm:$0xff] %v16173_v24 }
 0x267   :  { %v2300_v12 = vpop.f32.mrf.mxu2  ;;  %v1099_v13 = vadd.f32 %v1098_v27, %v15861_v5  ;;  %v1295_v27 = vmax.f32 %v15850_v32, 0.0 }
 0x268   :  { %v1256_v63 = vmax.f32 %v1165_v60, 0.0  ;;  %v16167_v53 = vadd.f32 %v2300_v12, %v2232_v35  ;;  %v2233_v11 = vpop.f32.mrf.mxu0 }
 0x269   :  { %2358 = vmatmul.bf16.gmra.mxu1 %v15672_v14  ;;  %v2234_v36 = vadd.f32 %v2233_v11, %v15982_v48 }
 0x26a   :  { %v16170_v21 = vpack.c.bf16 %v1256_v63, %v1251_v9  ;;  %2427 = vmatmul.bf16.gmra.mxu3 %v15880_v33 }
 0x26c   :  { %21638 = vst [vmem:[#allocation50_spill] sm:$0xff] %v16170_v21 }
 0x26d   :  { %v1167_v58 = vpop.f32.mrf.mxu3 }
 0x26e   :  { %v1168_v57 = vadd.f32 %v1167_v58, %v1099_v13  ;;  %v1100_v56 = vpop.f32.mrf.mxu1 }
 0x26f   :  { %v2302_v37 = vpop.f32.mrf.mxu2  ;;  %v1101_v12 = vadd.f32 %v1100_v56, %v15861_v5 }
 0x270   :  { %v16177_v60 = vadd.f32 %v2302_v37, %v2234_v36  ;;  %v2236_v35 = vpop.f32.mrf.mxu0  ;;  %v1261_v58 = vmax.f32 %v1168_v57, 0.0 }
 0x271   :  { %v2237_v11 = vadd.f32 %v2236_v35, %v15982_v48 }
 0x273   :  { %11629 = vmatmul.msk.bf16.gmra.mxu0 %vm2165_vm2, %v16023_v40 }
 0x274   :  { %2560 = vmatmul.bf16.gmra.mxu2 %v15303_v43  ;;  %v16192_v43 = vpack.c.bf16 %v1295_v27, %v1290_v50  ;;  %v1300_v27 = vmax.f32 %v15863_v31, 0.0 }
 0x275   :  { %v1169_v34 = vpop.f32.mrf.mxu3 }
 0x276   :  { %v1170_v9 = vadd.f32 %v1169_v34, %v1101_v12  ;;  %v1103_v63 = vpop.f32.mrf.mxu1  ;;  %21641 = vst [vmem:[#allocation53_spill] sm:$0xff] %v16192_v43 }
 0x277   :  { %v2305_v13 = vpop.f32.mrf.mxu2  ;;  %v1104_v3 = vadd.f32 %v1103_v63, %v15861_v5  ;;  %v1305_v63 = vmax.f32 %v15898_v18, 0.0 }
 0x278   :  { %v1266_v36 = vmax.f32 %v1170_v9, 0.0  ;;  %v16186_v37 = vadd.f32 %v2305_v13, %v2237_v11  ;;  %v2238_v30 = vpop.f32.mrf.mxu0 }
 0x279   :  { %2363 = vmatmul.bf16.gmra.mxu1 %v15716_v16  ;;  %v2239_v35 = vadd.f32 %v2238_v30, %v15982_v48 }
 0x27a   :  { %v16189_v56 = vpack.c.bf16 %v1266_v36, %v1261_v58  ;;  %2432 = vmatmul.bf16.gmra.mxu3 %v15949_v6 }
 0x27c   :  { %21640 = vst [vmem:[#allocation52_spill] sm:$0xff] %v16189_v56 }
 0x27d   :  { %v1172_v32 = vpop.f32.mrf.mxu3 }
 0x27e   :  { %v1173_v12 = vadd.f32 %v1172_v32, %v1104_v3  ;;  %v1105_v34 = vpop.f32.mrf.mxu1 }
 0x27f   :  { %v2307_v57 = vpop.f32.mrf.mxu2  ;;  %v1106_v13 = vadd.f32 %v1105_v34, %v15861_v5 }
 0x280   :  { %v16196_v9 = vadd.f32 %v2307_v57, %v2239_v35  ;;  %v2241_v11 = vpop.f32.mrf.mxu0  ;;  %v1271_v32 = vmax.f32 %v1173_v12, 0.0 }
 0x281   :  { %v2242_v30 = vadd.f32 %v2241_v11, %v15982_v48 }
 0x283   :  { %11630 = vmatmul.msk.bf16.gmra.mxu0 %vm2165_vm2, %v16090_v8 }
 0x284   :  { %2565 = vmatmul.bf16.gmra.mxu2 %v21608_v2  ;;  %v16211_v2 = vpack.c.bf16 %v1305_v63, %v1300_v27  ;;  %v1310_v63 = vmax.f32 %v15930_v54, 0.0 }
 0x285   :  { %v1174_v50 = vpop.f32.mrf.mxu3 }
 0x286   :  { %v1175_v58 = vadd.f32 %v1174_v50, %v1106_v13  ;;  %v1108_v36 = vpop.f32.mrf.mxu1  ;;  %21643 = vst [vmem:[#allocation55_spill] sm:$0xff] %v16211_v2 }
 0x287   :  { %v2310_v3 = vpop.f32.mrf.mxu2  ;;  %v1109_v31 = vadd.f32 %v1108_v36, %v15861_v5  ;;  %v1315_v36 = vmax.f32 %v15968_v59, 0.0 }
 0x288   :  { %v1276_v35 = vmax.f32 %v1175_v58, 0.0  ;;  %v16205_v57 = vadd.f32 %v2310_v3, %v2242_v30  ;;  %v2243_v6 = vpop.f32.mrf.mxu0 }
 0x289   :  { %2368 = vmatmul.bf16.gmra.mxu1 %v15736_v20  ;;  %v2244_v11 = vadd.f32 %v2243_v6, %v15982_v48 }
 0x28a   :  { %v16208_v34 = vpack.c.bf16 %v1276_v35, %v1271_v32  ;;  %2437 = vmatmul.bf16.gmra.mxu3 %v16027_v19 }
 0x28c   :  { %21642 = vst [vmem:[#allocation54_spill] sm:$0xff] %v16208_v34 }
 0x28d   :  { %v1177_v18 = vpop.f32.mrf.mxu3 }
 0x28e   :  { %v1178_v13 = vadd.f32 %v1177_v18, %v1109_v31  ;;  %v1110_v50 = vpop.f32.mrf.mxu1 }
 0x28f   :  { %v2312_v12 = vpop.f32.mrf.mxu2  ;;  %v1111_v3 = vadd.f32 %v1110_v50, %v15861_v5 }
 0x290   :  { %v16215_v58 = vadd.f32 %v2312_v12, %v2244_v11  ;;  %v2246_v30 = vpop.f32.mrf.mxu0  ;;  %v1281_v18 = vmax.f32 %v1178_v13, 0.0 }
 0x291   :  { %v2247_v6 = vadd.f32 %v2246_v30, %v15982_v48 }
 0x293   :  { %11631 = vmatmul.msk.bf16.gmra.mxu0 %vm2165_vm2, %v16133_v41 }
 0x294   :  { %2570 = vmatmul.bf16.gmra.mxu2 %v21613_v1  ;;  %v16230_v1 = vpack.c.bf16 %v1315_v36, %v1310_v63 }
 0x295   :  { %v1179_v27 = vpop.f32.mrf.mxu3 }
 0x296   :  { %v1180_v32 = vadd.f32 %v1179_v27, %v1111_v3  ;;  %v1113_v35 = vpop.f32.mrf.mxu1  ;;  %21645 = vst [vmem:[#allocation57_spill] sm:$0xff] %v16230_v1 }
 0x297   :  { %v2315_v31 = vpop.f32.mrf.mxu2  ;;  %v1114_v54 = vadd.f32 %v1113_v35, %v15861_v5 }
 0x298   :  { %v1286_v11 = vmax.f32 %v1180_v32, 0.0  ;;  %v16224_v12 = vadd.f32 %v2315_v31, %v2247_v6  ;;  %v2248_v19 = vpop.f32.mrf.mxu0 }
 0x299   :  { %2373 = vmatmul.bf16.gmra.mxu1 %v15755_v29  ;;  %v2249_v30 = vadd.f32 %v2248_v19, %v15982_v48 }
 0x29a   :  { %v16227_v50 = vpack.c.bf16 %v1286_v11, %v1281_v18  ;;  %2442 = vmatmul.bf16.gmra.mxu3 %v16094_v61 }
 0x29c   :  { %21644 = vst [vmem:[#allocation56_spill] sm:$0xff] %v16227_v50 }
 0x29d   :  { %v1182_v59 = vpop.f32.mrf.mxu3 }
 0x29e   :  { %v1183_v3 = vadd.f32 %v1182_v59, %v1114_v54  ;;  %v1115_v27 = vpop.f32.mrf.mxu1 }
 0x29f   :  { %v2317_v13 = vpop.f32.mrf.mxu2  ;;  %v1116_v31 = vadd.f32 %v1115_v27, %v15861_v5 }
 0x2a0   :  { %v16234_v32 = vadd.f32 %v2317_v13, %v2249_v30  ;;  %v2251_v6 = vpop.f32.mrf.mxu0  ;;  %v1291_v19 = vmax.f32 %v1183_v3, 0.0  ;;  %v21646_v13 = vld [vmem:[#allocation4_spill] sm:$0xff] }
 0x2a1   :  { %v2252_v36 = vadd.f32 %v2251_v6, %v15982_v48 }
 0x2a3   :  { %11632 = vmatmul.msk.bf16.gmra.mxu0 %vm2165_vm2, %v16151_v26 }
 0x2a4   :  { %2575 = vmatmul.bf16.gmra.mxu2 %v21616_v42 }
 0x2a5   :  { %v1184_v63 = vpop.f32.mrf.mxu3 }
 0x2a6   :  { %v1185_v35 = vadd.f32 %v1184_v63, %v1116_v31  ;;  %v1118_v18 = vpop.f32.mrf.mxu1 }
 0x2a7   :  { %v2320_v11 = vpop.f32.mrf.mxu2  ;;  %v1119_v27 = vadd.f32 %v1118_v18, %v15861_v5 }
 0x2a8   :  { %v1296_v54 = vmax.f32 %v1185_v35, 0.0  ;;  %v16241_v59 = vadd.f32 %v2320_v11, %v2252_v36  ;;  %v2253_v30 = vpop.f32.mrf.mxu0 }
 0x2a9   :  { %2378 = vmatmul.bf16.gmra.mxu1 %v21646_v13  ;;  %v2254_v26 = vadd.f32 %v2253_v30, %v15982_v48 }
 0x2aa   :  { %v16244_v61 = vpack.c.bf16 %v1296_v54, %v1291_v19  ;;  %2447 = vmatmul.bf16.gmra.mxu3 %v16136_v51 }
 0x2ac   :  { %21647 = vst [vmem:[#allocation58_spill] sm:$0xff] %v16244_v61 }
 0x2ad   :  { %v1187_v42 = vpop.f32.mrf.mxu3 }
 0x2ae   :  { %v1188_v6 = vadd.f32 %v1187_v42, %v1119_v27  ;;  %v1120_v31 = vpop.f32.mrf.mxu1 }
 0x2af   :  { %v2322_v63 = vpop.f32.mrf.mxu2  ;;  %v1121_v36 = vadd.f32 %v1120_v31, %v15861_v5 }
 0x2b0   :  { %v16249_v29 = vadd.f32 %v2322_v63, %v2254_v26  ;;  %v2256_v3 = vpop.f32.mrf.mxu0  ;;  %v1301_v30 = vmax.f32 %v1188_v6, 0.0  ;;  %v21648_v63 = vld [vmem:[#allocation5_spill] sm:$0xff] }
 0x2b1   :  { %v2257_v11 = vadd.f32 %v2256_v3, %v15982_v48 }
 0x2b3   :  { %11633 = vmatmul.msk.bf16.gmra.mxu0 %vm2165_vm2, %v16170_v21 }
 0x2b4   :  { %2580 = vmatmul.bf16.gmra.mxu2 %v21619_v0 }
 0x2b5   :  { %v1189_v35 = vpop.f32.mrf.mxu3 }
 0x2b6   :  { %v1190_v18 = vadd.f32 %v1189_v35, %v1121_v36  ;;  %v1123_v19 = vpop.f32.mrf.mxu1 }
 0x2b7   :  { %v2325_v54 = vpop.f32.mrf.mxu2  ;;  %v1124_v31 = vadd.f32 %v1123_v19, %v15861_v5 }
 0x2b8   :  { %v1306_v42 = vmax.f32 %v1190_v18, 0.0  ;;  %v16256_v27 = vadd.f32 %v2325_v54, %v2257_v11  ;;  %v2258_v26 = vpop.f32.mrf.mxu0 }
 0x2b9   :  { %2383 = vmatmul.bf16.gmra.mxu1 %v21648_v63  ;;  %v2259_v21 = vadd.f32 %v2258_v26, %v15982_v48 }
 0x2ba   :  { %v16259_v51 = vpack.c.bf16 %v1306_v42, %v1301_v30  ;;  %2452 = vmatmul.bf16.gmra.mxu3 %v16154_v47  ;;  %v14082_v47 = vld [vmem:[%s21324_s3 + $0x16c] sm:$0xf] }
 0x2bc   :  { %21649 = vst [vmem:[#allocation59_spill] sm:$0xff] %v16259_v51 }
 0x2bd   :  { %v1192_v0 = vpop.f32.mrf.mxu3 }
 0x2be   :  { %v1193_v3 = vadd.f32 %v1192_v0, %v1124_v31  ;;  %v1125_v36 = vpop.f32.mrf.mxu1 }
 0x2bf   :  { %v2327_v35 = vpop.f32.mrf.mxu2  ;;  %v1126_v11 = vadd.f32 %v1125_v36, %v15861_v5  ;;  %v11344_v5 = vld [vmem:[%s21324_s3 + $0x174] sm:$0xf0]  ;;  %v21650_v36 = vld [vmem:[#allocation36_spill] sm:$0xff] }
 0x2c0   :  { %v16264_v13 = vadd.f32 %v2327_v35, %v2259_v21  ;;  %v2261_v6 = vpop.f32.mrf.mxu0  ;;  %v1311_v26 = vmax.f32 %v1193_v3, 0.0  ;;  %v11440_v3 = vld [vmem:[%s21324_s3 + $0x234] sm:$0xf0] }
 0x2c1   :  { %v2262_v54 = vadd.f32 %v2261_v6, %v15982_v48  ;;  %v11347_v6 = vor.u32 %v14082_v47, %v11344_v5  ;;  %v11332_v47 = vld [vmem:[%s21324_s3 + $0x15c] sm:$0xf0] }
 0x2c3   :  { %11634 = vmatmul.msk.bf16.gmra.mxu0 %vm2165_vm2, %v16189_v56  ;;  %2616 = vmatpush.bf16.msra.mxu1 %v11347_v6 }
 0x2c4   :  { %2585 = vmatmul.bf16.gmra.mxu2 %v21621_v49 }
 0x2c5   :  { %v1194_v18 = vpop.f32.mrf.mxu3 }
 0x2c6   :  { %v1195_v19 = vadd.f32 %v1194_v18, %v1126_v11  ;;  %v2349_v30 = vpop.f32.mrf.mxu1 }
 0x2c7   :  { %v2350_v42 = vadd.f32 %v2349_v30, %v16017_v62  ;;  %v2330_v0 = vpop.f32.mrf.mxu2  ;;  %v14106_v62 = vld [vmem:[%s21324_s3 + $0x22c] sm:$0xf] }
 0x2c8   :  { %v1316_v31 = vmax.f32 %v1195_v19, 0.0  ;;  %v16272_v21 = vadd.f32 %v2330_v0, %v2262_v54  ;;  %v2263_v35 = vpop.f32.mrf.mxu0  ;;  %v11443_v18 = vor.u32 %v14106_v62, %v11440_v3  ;;  %v14079_v54 = vld [vmem:[%s21324_s3 + $0x154] sm:$0xf] }
 0x2c9   :  { %2388 = vmatmul.bf16.gmra.mxu1 %v21650_v36  ;;  %v14103_v19 = vld [vmem:[%s21324_s3 + $0x214] sm:$0xf]  ;;  %v11335_v0 = vor.u32 %v14079_v54, %v11332_v47  ;;  %v14076_v54 = vld [vmem:[%s21324_s3 + $0x13c] sm:$0xf] }
 0x2ca   :  { %v16287_v11 = vpack.c.bf16 %v1316_v31, %v1311_v26  ;;  %2457 = vmatmul.bf16.gmra.mxu3 %v16173_v24  ;;  %v11428_v26 = vld [vmem:[%s21324_s3 + $0x21c] sm:$0xf0]  ;;  %v2264_v31 = vadd.f32 %v2263_v35, %v15982_v48  ;;  %v11320_v35 = vld [vmem:[%s21324_s3 + $0x144] sm:$0xf0] }
 0x2cb   :  { %2685 = vmatpush.bf16.msra.mxu3 %v11443_v18  ;;  %v11431_v62 = vor.u32 %v14103_v19, %v11428_v26  ;;  %2617 = vmatpush.bf16.msra.mxu1 %v11335_v0  ;;  %v11323_v47 = vor.u32 %v14076_v54, %v11320_v35  ;;  %v14073_v0 = vld [vmem:[%s21324_s3 + $0x124] sm:$0xf]  ;;  %v11308_v26 = vld [vmem:[%s21324_s3 + $0x12c] sm:$0xf0] }
 0x2cc   :  { %21651 = vst [vmem:[#allocation60_spill] sm:$0xff] %v16287_v11 }
 0x2cd   :  { %v2418_v30 = vpop.f32.mrf.mxu3 }
 0x2ce   :  { %v16303_v5 = vadd.f32 %v2418_v30, %v2350_v42  ;;  %v2351_v6 = vpop.f32.mrf.mxu1  ;;  %v14100_v42 = vld [vmem:[%s21324_s3 + $0x1fc] sm:$0xf]  ;;  %v21652_v30 = vld [vmem:[#allocation15_spill] sm:$0xff] }
 0x2cf   :  { %v2352_v3 = vadd.f32 %v2351_v6, %v16052_v17  ;;  %v2332_v18 = vpop.f32.mrf.mxu2  ;;  %2686 = vmatpush.bf16.msra.mxu3 %v11431_v62  ;;  %v11416_v17 = vld [vmem:[%s21324_s3 + $0x204] sm:$0xf0]  ;;  %2618 = vmatpush.bf16.msra.mxu1 %v11323_v47  ;;  %v11311_v62 = vor.u32 %v14073_v0, %v11308_v26  ;;  %v14070_v0 = vld [vmem:[%s21324_s3 + $0x10c] sm:$0xf]  ;;  %v21653_v26 = vld [vmem:[#allocation6_spill] sm:$0xff] }
 0x2d0   :  { %v16306_v49 = vadd.f32 %v2332_v18, %v2264_v31  ;;  %v2266_v24 = vpop.f32.mrf.mxu0  ;;  %v11419_v19 = vor.u32 %v14100_v42, %v11416_v17  ;;  %v14097_v31 = vld [vmem:[%s21324_s3 + $0x1e4] sm:$0xf]  ;;  %v11404_v18 = vld [vmem:[%s21324_s3 + $0x1ec] sm:$0xf0] }
 0x2d1   :  { %v2267_v54 = vadd.f32 %v2266_v24, %v15982_v48  ;;  %v11407_v47 = vor.u32 %v14097_v31, %v11404_v18  ;;  %v11296_v24 = vld [vmem:[%s21324_s3 + $0x114] sm:$0xf0]  ;;  %v11284_v18 = vld [vmem:[%s21324_s3 + $0xfc] sm:$0xf0] }
 0x2d2   :  { %v11392_v31 = vld [vmem:[%s21324_s3 + $0x1d4] sm:$0xf0] }
 0x2d3   :  { %11635 = vmatmul.msk.bf16.gmra.mxu0 %vm2165_vm2, %v16208_v34  ;;  %2687 = vmatpush.bf16.msra.mxu3 %v11419_v19 }
 0x2d4   :  { %2590 = vmatmul.bf16.gmra.mxu2 %v21652_v30  ;;  %2619 = vmatpush.bf16.msra.mxu1 %v11311_v62  ;;  %v14067_v62 = vld [vmem:[%s21324_s3 + $0xf4] sm:$0xf] }
 0x2d5   :  { %v2420_v6 = vpop.f32.mrf.mxu3 }
 0x2d6   :  { %v16336_v35 = vadd.f32 %v2420_v6, %v2352_v3  ;;  %v2354_v42 = vpop.f32.mrf.mxu1  ;;  %v14094_v3 = vld [vmem:[%s21324_s3 + $0x1cc] sm:$0xf] }
 0x2d7   :  { %v2355_v17 = vadd.f32 %v2354_v42, %v16084_v28  ;;  %v2335_v19 = vpop.f32.mrf.mxu2  ;;  %2688 = vmatpush.bf16.msra.mxu3 %v11407_v47  ;;  %v11299_v28 = vor.u32 %v14070_v0, %v11296_v24  ;;  %v11395_v6 = vor.u32 %v14094_v3, %v11392_v31  ;;  %v11287_v47 = vor.u32 %v14067_v62, %v11284_v18  ;;  %v14064_v62 = vld [vmem:[%s21324_s3 + $0xdc] sm:$0xf]  ;;  %v11368_v18 = vld [vmem:[%s21324_s3 + $0x1a4] sm:$0xf0] }
 0x2d8   :  { %v16339_v30 = vadd.f32 %v2335_v19, %v2267_v54  ;;  %v2268_v34 = vpop.f32.mrf.mxu0  ;;  %v14091_v54 = vld [vmem:[%s21324_s3 + $0x1b4] sm:$0xf]  ;;  %v11380_v19 = vld [vmem:[%s21324_s3 + $0x1bc] sm:$0xf0] }
 0x2d9   :  { %2393 = vmatmul.bf16.gmra.mxu1 %v21653_v26  ;;  %v2269_v0 = vadd.f32 %v2268_v34, %v15982_v48  ;;  %v11272_v48 = vld [vmem:[%s21324_s3 + $0xe4] sm:$0xf0]  ;;  %v14088_v34 = vld [vmem:[%s21324_s3 + $0x19c] sm:$0xf] }
 0x2da   :  { %2462 = vmatmul.bf16.gmra.mxu3 %v16192_v43  ;;  %2620 = vmatpush.bf16.msra.mxu1 %v11299_v28  ;;  %v11383_v28 = vor.u32 %v14091_v54, %v11380_v19  ;;  %v11371_v54 = vor.u32 %v14088_v34, %v11368_v18  ;;  %v11260_v19 = vld [vmem:[%s21324_s3 + $0xcc] sm:$0xf0] }
 0x2db   :  { %2689 = vmatpush.bf16.msra.mxu3 %v11395_v6 }
 0x2dd   :  { %v2423_v42 = vpop.f32.mrf.mxu3 }
 0x2de   :  { %v16368_v24 = vadd.f32 %v2423_v42, %v2355_v17  ;;  %v2356_v3 = vpop.f32.mrf.mxu1  ;;  %2621 = vmatpush.bf16.msra.mxu1 %v11287_v47  ;;  %v11275_v17 = vor.u32 %v14064_v62, %v11272_v48  ;;  %v14130_v42 = vld [vmem:[%s21324_s3 + $0x2ec] sm:$0xf]  ;;  %v11536_v47 = vld [vmem:[%s21324_s3 + $0x2f4] sm:$0xf0] }
 0x2df   :  { %v2357_v31 = vadd.f32 %v2356_v3, %v16119_v7  ;;  %v2337_v6 = vpop.f32.mrf.mxu2  ;;  %2690 = vmatpush.bf16.msra.mxu3 %v11383_v28 }
 0x2e0   :  { %v16371_v43 = vadd.f32 %v2337_v6, %v2269_v0  ;;  %v2487_v26 = vpop.f32.mrf.mxu0  ;;  %v14085_v0 = vld [vmem:[%s21324_s3 + $0x184] sm:$0xf]  ;;  %v11356_v6 = vld [vmem:[%s21324_s3 + $0x18c] sm:$0xf0] }
 0x2e1   :  { %v16383_v7 = vadd.f32 %v2487_v26, %v16303_v5  ;;  %v11539_v5 = vor.u32 %v14130_v42, %v11536_v47  ;;  %v14061_v26 = vld [vmem:[%s21324_s3 + $0xc4] sm:$0xf]  ;;  %v11359_v34 = vor.u32 %v14085_v0, %v11356_v6  ;;  %v11524_v42 = vld [vmem:[%s21324_s3 + $0x2dc] sm:$0xf0] }
 0x2e2   :  { %2622 = vmatpush.bf16.msra.mxu1 %v11275_v17  ;;  %v11263_v28 = vor.u32 %v14061_v26, %v11260_v19  ;;  %v21654_v26 = vld [vmem:[#allocation37_spill] sm:$0xff] }
 0x2e3   :  { %11636 = vmatmul.msk.bf16.gmra.mxu0 %vm2165_vm2, %v16227_v50  ;;  %2691 = vmatpush.bf16.msra.mxu3 %v11371_v54  ;;  %v14127_v54 = vld [vmem:[%s21324_s3 + $0x2d4] sm:$0xf] }
 0x2e4   :  { %2595 = vmatmul.bf16.gmra.mxu2 %v21627_v10  ;;  %2754 = vmatpush.bf16.msra.mxu0 %v11539_v5  ;;  %v11527_v5 = vor.u32 %v14127_v54, %v11524_v42 }
 0x2e5   :  { %v2425_v3 = vpop.f32.mrf.mxu3 }
 0x2e6   :  { %v16409_v62 = vadd.f32 %v2425_v3, %v2357_v31  ;;  %v2359_v48 = vpop.f32.mrf.mxu1  ;;  %2623 = vmatpush.bf16.msra.mxu1 %v11263_v28  ;;  %v14151_v31 = vld [vmem:[%s21324_s3 + $0x394] sm:$0xf]  ;;  %v14124_v3 = vld [vmem:[%s21324_s3 + $0x2bc] sm:$0xf]  ;;  %v11512_v28 = vld [vmem:[%s21324_s3 + $0x2c4] sm:$0xf0] }
 0x2e7   :  { %v2360_v17 = vadd.f32 %v2359_v48, %v16130_v55  ;;  %v16412_v18 = vpop.f32.mrf.mxu2  ;;  %2692 = vmatpush.bf16.msra.mxu3 %v11359_v34  ;;  %v11620_v55 = vld [vmem:[%s21324_s3 + $0x39c] sm:$0xf0]  ;;  %v11515_v6 = vor.u32 %v14124_v3, %v11512_v28  ;;  %v14148_v48 = vld [vmem:[%s21324_s3 + $0x37c] sm:$0xf]  ;;  %v14145_v3 = vld [vmem:[%s21324_s3 + $0x364] sm:$0xf] }
 0x2e8   :  { %v2489_v47 = vpop.f32.mrf.mxu0  ;;  %v11623_v0 = vor.u32 %v14151_v31, %v11620_v55  ;;  %2755 = vmatpush.bf16.msra.mxu0 %v11527_v5  ;;  %v14121_v55 = vld [vmem:[%s21324_s3 + $0x2a4] sm:$0xf] }
 0x2e9   :  { %2398 = vmatmul.bf16.gmra.mxu1 %v21654_v26  ;;  %v16428_v19 = vadd.f32 %v2489_v47, %v16336_v35  ;;  %v11608_v35 = vld [vmem:[%s21324_s3 + $0x384] sm:$0xf0] }
 0x2ea   :  { %2467 = vmatmul.bf16.gmra.mxu3 %v16211_v2  ;;  %2824 = vmatpush.bf16.msra.mxu2 %v11623_v0  ;;  %v11611_v54 = vor.u32 %v14148_v48, %v11608_v35  ;;  %v11500_v0 = vld [vmem:[%s21324_s3 + $0x2ac] sm:$0xf0]  ;;  %v14118_v35 = vld [vmem:[%s21324_s3 + $0x28c] sm:$0xf] }
 0x2eb   :  { %v11503_v28 = vor.u32 %v14121_v55, %v11500_v0 }
 0x2ec   :  { %2756 = vmatpush.bf16.msra.mxu0 %v11515_v6 }
 0x2ed   :  { %v2428_v34 = vpop.f32.mrf.mxu3 }
 0x2ee   :  { %v2429_v42 = vadd.f32 %v2428_v34, %v2360_v17  ;;  %v2361_v31 = vpop.f32.mrf.mxu1  ;;  %2825 = vmatpush.bf16.msra.mxu2 %v11611_v54  ;;  %v11488_v34 = vld [vmem:[%s21324_s3 + $0x294] sm:$0xf0] }
 0x2ef   :  { %v2362_v47 = vadd.f32 %v2361_v31, %v16140_v39  ;;  %v16444_v5 = vpop.f32.mrf.mxu2  ;;  %v11596_v39 = vld [vmem:[%s21324_s3 + $0x36c] sm:$0xf0]  ;;  %v11491_v54 = vor.u32 %v14118_v35, %v11488_v34  ;;  %v11584_v31 = vld [vmem:[%s21324_s3 + $0x354] sm:$0xf0]  ;;  %v11476_v35 = vld [vmem:[%s21324_s3 + $0x27c] sm:$0xf0] }
 0x2f0   :  { %v2492_v17 = vpop.f32.mrf.mxu0  ;;  %v11599_v48 = vor.u32 %v14145_v3, %v11596_v39  ;;  %2757 = vmatpush.bf16.msra.mxu0 %v11503_v28  ;;  %v14139_v34 = vld [vmem:[%s21324_s3 + $0x334] sm:$0xf] }
 0x2f1   :  { %v16459_v6 = vadd.f32 %v2492_v17, %v16368_v24  ;;  %v14142_v24 = vld [vmem:[%s21324_s3 + $0x34c] sm:$0xf] }
 0x2f2   :  { %2826 = vmatpush.bf16.msra.mxu2 %v11599_v48  ;;  %v11587_v0 = vor.u32 %v14142_v24, %v11584_v31  ;;  %v14115_v48 = vld [vmem:[%s21324_s3 + $0x274] sm:$0xf] }
 0x2f3   :  { %11637 = vmatmul.msk.bf16.gmra.mxu0 %vm2165_vm2, %v16244_v61  ;;  %v11479_v24 = vor.u32 %v14115_v48, %v11476_v35  ;;  %v14136_v35 = vld [vmem:[%s21324_s3 + $0x31c] sm:$0xf] }
 0x2f4   :  { %2600 = vmatmul.bf16.gmra.mxu2 %v21630_v15  ;;  %2758 = vmatpush.bf16.msra.mxu0 %v11491_v54  ;;  %v21655_v54 = vld [vmem:[#allocation39_spill] sm:$0xff] }
 0x2f5   :  { %v2430_v55 = vpop.f32.mrf.mxu3 }
 0x2f6   :  { %v2431_v3 = vadd.f32 %v2430_v55, %v2362_v47  ;;  %v2364_v17 = vpop.f32.mrf.mxu1  ;;  %2827 = vmatpush.bf16.msra.mxu2 %v11587_v0  ;;  %v14112_v0 = vld [vmem:[%s21324_s3 + $0x25c] sm:$0xf] }
 0x2f7   :  { %v2365_v28 = vadd.f32 %v2364_v17, %v16148_v38  ;;  %v16477_v39 = vpop.f32.mrf.mxu2  ;;  %v11572_v38 = vld [vmem:[%s21324_s3 + $0x33c] sm:$0xf0]  ;;  %v11464_v17 = vld [vmem:[%s21324_s3 + $0x264] sm:$0xf0] }
 0x2f8   :  { %v2494_v47 = vpop.f32.mrf.mxu0  ;;  %v11575_v55 = vor.u32 %v14139_v34, %v11572_v38  ;;  %2759 = vmatpush.bf16.msra.mxu0 %v11479_v24  ;;  %v11467_v48 = vor.u32 %v14112_v0, %v11464_v17  ;;  %v14109_v0 = vld [vmem:[%s21324_s3 + $0x244] sm:$0xf]  ;;  %v11452_v17 = vld [vmem:[%s21324_s3 + $0x24c] sm:$0xf0] }
 0x2f9   :  { %2403 = vmatmul.bf16.gmra.mxu1 %v21655_v54  ;;  %v16493_v31 = vadd.f32 %v2494_v47, %v16409_v62  ;;  %v11560_v62 = vld [vmem:[%s21324_s3 + $0x324] sm:$0xf0] }
 0x2fa   :  { %2472 = vmatmul.bf16.gmra.mxu3 %v16230_v1  ;;  %2828 = vmatpush.bf16.msra.mxu2 %v11575_v55  ;;  %v11563_v47 = vor.u32 %v14136_v35, %v11560_v62  ;;  %v14133_v35 = vld [vmem:[%s21324_s3 + $0x304] sm:$0xf]  ;;  %v11455_v62 = vor.u32 %v14109_v0, %v11452_v17 }
 0x2fc   :  { %2760 = vmatpush.bf16.msra.mxu0 %v11467_v48 }
 0x2fd   :  { %v2433_v34 = vpop.f32.mrf.mxu3 }
 0x2fe   :  { %v2434_v24 = vadd.f32 %v2433_v34, %v2365_v28  ;;  %v2366_v38 = vpop.f32.mrf.mxu1  ;;  %2829 = vmatpush.bf16.msra.mxu2 %v11563_v47 }
 0x2ff   :  { %v2367_v55 = vadd.f32 %v2366_v38, %v16158_v46  ;;  %v16509_v15 = vpop.f32.mrf.mxu2  ;;  %v11548_v46 = vld [vmem:[%s21324_s3 + $0x30c] sm:$0xf0] }
 0x300   :  { %v2497_v28 = vpop.f32.mrf.mxu0  ;;  %v11551_v34 = vor.u32 %v14133_v35, %v11548_v46  ;;  %2761 = vmatpush.bf16.msra.mxu0 %v11455_v62 }
 0x301   :  { %v16523_v48 = vadd.f32 %v2497_v28, %v2429_v42  ;;  %v21656_v42 = vld [vmem:[#allocation8_spill] sm:$0xff] }
 0x302   :  { %2830 = vmatpush.bf16.msra.mxu2 %v11551_v34 }
 0x303   :  { %11638 = vmatmul.msk.bf16.gmra.mxu0 %vm2165_vm2, %v16259_v51 }
 0x304   :  { %2605 = vmatmul.bf16.gmra.mxu2 %v21633_v52 }
 0x305   :  { %v2435_v47 = vpop.f32.mrf.mxu3 }
 0x306   :  { %v2436_v38 = vadd.f32 %v2435_v47, %v2367_v55  ;;  %v2369_v10 = vpop.f32.mrf.mxu1 }
 0x307   :  { %v2370_v1 = vadd.f32 %v2369_v10, %v16167_v53  ;;  %v16529_v0 = vpop.f32.mrf.mxu2 }
 0x308   :  { %v2499_v17 = vpop.f32.mrf.mxu0 }
 0x309   :  { %v16531_v2 = vadd.f32 %v2499_v17, %v2431_v3  ;;  %2624 = vmatmul.bf16.vlgmr.msra.gmra.mxu1 %v21656_v42 }
 0x30a   :  { %2693 = vmatmul.bf16.vlgmr.msra.gmra.mxu3 %v15525_v4 }
 0x30d   :  { %v2438_v35 = vpop.f32.mrf.mxu3 }
 0x30e   :  { %v2439_v28 = vadd.f32 %v2438_v35, %v2370_v1  ;;  %v2371_v62 = vpop.f32.mrf.mxu1 }
 0x30f   :  { %v2372_v46 = vadd.f32 %v2371_v62, %v16177_v60  ;;  %v16536_v34 = vpop.f32.mrf.mxu2  ;;  %v21657_v60 = vld [vmem:[#allocation17_spill] sm:$0xff] }
 0x310   :  { %v2502_v55 = vpop.f32.mrf.mxu0 }
 0x311   :  { %v16538_v47 = vadd.f32 %v2502_v55, %v2434_v24 }
 0x313   :  { %11639 = vmatmul.msk.bf16.gmra.mxu0 %vm2165_vm2, %v16287_v11 }
 0x314   :  { %2610 = vmatmul.bf16.gmra.mxu2 %v15540_v25 }
 0x315   :  { %v2440_v10 = vpop.f32.mrf.mxu3 }
 0x316   :  { %v2441_v53 = vadd.f32 %v2440_v10, %v2372_v46  ;;  %v2374_v3 = vpop.f32.mrf.mxu1 }
 0x317   :  { %v2375_v17 = vadd.f32 %v2374_v3, %v16186_v37  ;;  %v16544_v52 = vpop.f32.mrf.mxu2 }
 0x318   :  { %v2504_v1 = vpop.f32.mrf.mxu0 }
 0x319   :  { %v16546_v35 = vadd.f32 %v2504_v1, %v2436_v38  ;;  %2629 = vmatmul.bf16.gmra.mxu1 %v21657_v60 }
 0x31a   :  { %2698 = vmatmul.bf16.gmra.mxu3 %v15604_v44 }
 0x31d   :  { %v2443_v24 = vpop.f32.mrf.mxu3 }
 0x31e   :  { %v2444_v62 = vadd.f32 %v2443_v24, %v2375_v17  ;;  %v2376_v55 = vpop.f32.mrf.mxu1 }
 0x31f   :  { %v2377_v4 = vadd.f32 %v2376_v55, %v16196_v9  ;;  %v16551_v25 = vpop.f32.mrf.mxu2  ;;  %v21658_v9 = vld [vmem:[#allocation19_spill] sm:$0xff] }
 0x320   :  { %v2507_v46 = vpop.f32.mrf.mxu0 }
 0x321   :  { %v16553_v10 = vadd.f32 %v2507_v46, %v2439_v28 }
 0x323   :  { %2762 = vmatmul.bf16.vlgmr.msra.gmra.mxu0 %v15645_v23 }
 0x324   :  { %11640 = vmatmul.msk.bf16.vlgmr.msra.gmra.mxu2 %vm2165_vm2, %v15945_v45 }
 0x325   :  { %v2445_v37 = vpop.f32.mrf.mxu3 }
 0x326   :  { %v2446_v38 = vadd.f32 %v2445_v37, %v2377_v4  ;;  %v2379_v3 = vpop.f32.mrf.mxu1 }
 0x327   :  { %v2380_v1 = vadd.f32 %v2379_v3, %v16205_v57  ;;  %v16559_v44 = vpop.f32.mrf.mxu2 }
 0x328   :  { %v2509_v17 = vpop.f32.mrf.mxu0 }
 0x329   :  { %v16561_v24 = vadd.f32 %v2509_v17, %v2441_v53  ;;  %2634 = vmatmul.bf16.gmra.mxu1 %v21658_v9 }
 0x32a   :  { %2703 = vmatmul.bf16.gmra.mxu3 %v15672_v14 }
 0x32d   :  { %v2448_v28 = vpop.f32.mrf.mxu3 }
 0x32e   :  { %v2449_v55 = vadd.f32 %v2448_v28, %v2380_v1  ;;  %v2381_v46 = vpop.f32.mrf.mxu1 }
 0x32f   :  { %v2382_v23 = vadd.f32 %v2381_v46, %v16215_v58  ;;  %v16566_v45 = vpop.f32.mrf.mxu2  ;;  %v21660_v58 = vld [vmem:[#allocation21_spill] sm:$0xff] }
 0x330   :  { %v2512_v4 = vpop.f32.mrf.mxu0 }
 0x331   :  { %v16568_v37 = vadd.f32 %v2512_v4, %v2444_v62 }
 0x333   :  { %21659 = vst [vmem:[#allocation8_spill] sm:$0xff] %v16568_v37  ;;  %2767 = vmatmul.bf16.gmra.mxu0 %v15844_v22 }
 0x334   :  { %11641 = vmatmul.msk.bf16.gmra.mxu2 %vm2165_vm2, %v16023_v40 }
 0x335   :  { %v2450_v57 = vpop.f32.mrf.mxu3 }
 0x336   :  { %v2451_v53 = vadd.f32 %v2450_v57, %v2382_v23  ;;  %v2384_v3 = vpop.f32.mrf.mxu1 }
 0x337   :  { %v2385_v17 = vadd.f32 %v2384_v3, %v16224_v12  ;;  %v16574_v14 = vpop.f32.mrf.mxu2 }
 0x338   :  { %v2514_v1 = vpop.f32.mrf.mxu0 }
 0x339   :  { %v16576_v28 = vadd.f32 %v2514_v1, %v2446_v38  ;;  %2639 = vmatmul.bf16.gmra.mxu1 %v21660_v58 }
 0x33a   :  { %2708 = vmatmul.bf16.gmra.mxu3 %v15716_v16 }
 0x33d   :  { %v2453_v62 = vpop.f32.mrf.mxu3 }
 0x33e   :  { %v2454_v46 = vadd.f32 %v2453_v62, %v2385_v17  ;;  %v2386_v4 = vpop.f32.mrf.mxu1 }
 0x33f   :  { %v2387_v37 = vadd.f32 %v2386_v4, %v16234_v32  ;;  %v16581_v40 = vpop.f32.mrf.mxu2  ;;  %v21663_v32 = vld [vmem:[#allocation24_spill] sm:$0xff] }
 0x340   :  { %v2517_v23 = vpop.f32.mrf.mxu0 }
 0x341   :  { %v16583_v57 = vadd.f32 %v2517_v23, %v2449_v55 }
 0x343   :  { %21661 = vst [vmem:[#allocation17_spill] sm:$0xff] %v16583_v57  ;;  %2772 = vmatmul.bf16.gmra.mxu0 %v15880_v33 }
 0x344   :  { %11642 = vmatmul.msk.bf16.gmra.mxu2 %vm2165_vm2, %v16090_v8 }
 0x345   :  { %v2455_v12 = vpop.f32.mrf.mxu3 }
 0x346   :  { %v2456_v38 = vadd.f32 %v2455_v12, %v2387_v37  ;;  %v2389_v3 = vpop.f32.mrf.mxu1 }
 0x347   :  { %v2390_v1 = vadd.f32 %v2389_v3, %v16241_v59  ;;  %v16589_v16 = vpop.f32.mrf.mxu2  ;;  %v21665_v59 = vld [vmem:[#allocation41_spill] sm:$0xff] }
 0x348   :  { %v2519_v17 = vpop.f32.mrf.mxu0 }
 0x349   :  { %v16591_v62 = vadd.f32 %v2519_v17, %v2451_v53  ;;  %2644 = vmatmul.bf16.gmra.mxu1 %v21663_v32 }
 0x34a   :  { %2713 = vmatmul.bf16.gmra.mxu3 %v15736_v20 }
 0x34b   :  { %21662 = vst [vmem:[#allocation19_spill] sm:$0xff] %v16591_v62 }
 0x34d   :  { %v2458_v55 = vpop.f32.mrf.mxu3 }
 0x34e   :  { %v2459_v4 = vadd.f32 %v2458_v55, %v2390_v1  ;;  %v2391_v23 = vpop.f32.mrf.mxu1 }
 0x34f   :  { %v2392_v57 = vadd.f32 %v2391_v23, %v16249_v29  ;;  %v16596_v8 = vpop.f32.mrf.mxu2  ;;  %v21667_v29 = vld [vmem:[#allocation27_spill] sm:$0xff]  ;;  %v21668_v23 = vld [vmem:[#allocation34_spill] sm:$0xff] }
 0x350   :  { %v2522_v37 = vpop.f32.mrf.mxu0 }
 0x351   :  { %v16598_v12 = vadd.f32 %v2522_v37, %v2454_v46 }
 0x353   :  { %21664 = vst [vmem:[#allocation21_spill] sm:$0xff] %v16598_v12  ;;  %2777 = vmatmul.bf16.gmra.mxu0 %v21665_v59 }
 0x354   :  { %11643 = vmatmul.msk.bf16.gmra.mxu2 %vm2165_vm2, %v16133_v41 }
 0x355   :  { %v2460_v53 = vpop.f32.mrf.mxu3 }
 0x356   :  { %v2461_v3 = vadd.f32 %v2460_v53, %v2392_v57  ;;  %v2394_v17 = vpop.f32.mrf.mxu1 }
 0x357   :  { %v2395_v20 = vadd.f32 %v2394_v17, %v16256_v27  ;;  %v16604_v62 = vpop.f32.mrf.mxu2  ;;  %v21670_v27 = vld [vmem:[#allocation43_spill] sm:$0xff]  ;;  %v21671_v17 = vld [vmem:[#allocation48_spill] sm:$0xff] }
 0x358   :  { %v2524_v1 = vpop.f32.mrf.mxu0 }
 0x359   :  { %v16606_v55 = vadd.f32 %v2524_v1, %v2456_v38  ;;  %2649 = vmatmul.bf16.gmra.mxu1 %v21667_v29 }
 0x35a   :  { %2718 = vmatmul.bf16.gmra.mxu3 %v21668_v23 }
 0x35b   :  { %21666 = vst [vmem:[#allocation61_spill] sm:$0xff] %v16606_v55 }
 0x35d   :  { %v2463_v46 = vpop.f32.mrf.mxu3 }
 0x35e   :  { %v2464_v37 = vadd.f32 %v2463_v46, %v2395_v20  ;;  %v2396_v59 = vpop.f32.mrf.mxu1 }
 0x35f   :  { %v2397_v12 = vadd.f32 %v2396_v59, %v16264_v13  ;;  %v16611_v41 = vpop.f32.mrf.mxu2  ;;  %v21674_v13 = vld [vmem:[#allocation29_spill] sm:$0xff]  ;;  %v21675_v59 = vld [vmem:[#allocation4_spill] sm:$0xff] }
 0x360   :  { %v2527_v57 = vpop.f32.mrf.mxu0 }
 0x361   :  { %v16613_v53 = vadd.f32 %v2527_v57, %v2459_v4 }
 0x363   :  { %21669 = vst [vmem:[#allocation62_spill] sm:$0xff] %v16613_v53  ;;  %2782 = vmatmul.bf16.gmra.mxu0 %v21670_v27 }
 0x364   :  { %11644 = vmatmul.msk.bf16.gmra.mxu2 %vm2165_vm2, %v21671_v17 }
 0x365   :  { %v2465_v38 = vpop.f32.mrf.mxu3 }
 0x366   :  { %v2466_v1 = vadd.f32 %v2465_v38, %v2397_v12  ;;  %v2399_v29 = vpop.f32.mrf.mxu1 }
 0x367   :  { %v2400_v23 = vadd.f32 %v2399_v29, %v16272_v21  ;;  %v16619_v55 = vpop.f32.mrf.mxu2  ;;  %v21678_v21 = vld [vmem:[#allocation45_spill] sm:$0xff]  ;;  %v21679_v29 = vld [vmem:[#allocation50_spill] sm:$0xff] }
 0x368   :  { %21672 = vst [vmem:[#allocation63_spill] sm:$0xff] %v16619_v55  ;;  %v2529_v20 = vpop.f32.mrf.mxu0 }
 0x369   :  { %v16621_v46 = vadd.f32 %v2529_v20, %v2461_v3  ;;  %2654 = vmatmul.bf16.gmra.mxu1 %v21674_v13 }
 0x36a   :  { %2723 = vmatmul.bf16.gmra.mxu3 %v21675_v59 }
 0x36b   :  { %21673 = vst [vmem:[#allocation64_spill] sm:$0xff] %v16621_v46 }
 0x36d   :  { %v2468_v4 = vpop.f32.mrf.mxu3 }
 0x36e   :  { %v2469_v57 = vadd.f32 %v2468_v4, %v2400_v23  ;;  %v2401_v53 = vpop.f32.mrf.mxu1 }
 0x36f   :  { %v2402_v27 = vadd.f32 %v2401_v53, %v16306_v49  ;;  %v16626_v17 = vpop.f32.mrf.mxu2  ;;  %v21682_v49 = vld [vmem:[#allocation31_spill] sm:$0xff] }
 0x370   :  { %21676 = vst [vmem:[#allocation65_spill] sm:$0xff] %v16626_v17  ;;  %v2532_v12 = vpop.f32.mrf.mxu0 }
 0x371   :  { %v16628_v38 = vadd.f32 %v2532_v12, %v2464_v37 }
 0x373   :  { %21677 = vst [vmem:[#allocation66_spill] sm:$0xff] %v16628_v38  ;;  %2787 = vmatmul.bf16.gmra.mxu0 %v21678_v21 }
 0x374   :  { %11645 = vmatmul.msk.bf16.gmra.mxu2 %vm2165_vm2, %v21679_v29 }
 0x375   :  { %v2470_v3 = vpop.f32.mrf.mxu3 }
 0x376   :  { %v2471_v20 = vadd.f32 %v2470_v3, %v2402_v27  ;;  %v2404_v46 = vpop.f32.mrf.mxu1  ;;  %v21685_v3 = vld [vmem:[#allocation47_spill] sm:$0xff] }
 0x377   :  { %v2405_v59 = vadd.f32 %v2404_v46, %v16339_v30  ;;  %v16634_v13 = vpop.f32.mrf.mxu2  ;;  %v14736_v30 = vld [vmem:[%s21325_s4] sm:$0x7] }
 0x378   :  { %21680 = vst [vmem:[#allocation67_spill] sm:$0xff] %v16634_v13  ;;  %v2534_v23 = vpop.f32.mrf.mxu0  ;;  %v16646_v46 = vperm.slane %v14736_v30, 1  ;;  %v11350_v30 = vld [vmem:[%s21324_s3 + $0x170] sm:$0xf] }
 0x379   :  { %v16636_v4 = vadd.f32 %v2534_v23, %v2466_v1  ;;  %2659 = vmatmul.bf16.gmra.mxu1 %v21682_v49 }
 0x37a   :  { %2728 = vmatmul.bf16.gmra.mxu3 %v21648_v63 }
 0x37b   :  { %21681 = vst [vmem:[#allocation68_spill] sm:$0xff] %v16636_v4 }
 0x37d   :  { %v2473_v37 = vpop.f32.mrf.mxu3 }
 0x37e   :  { %v2474_v53 = vadd.f32 %v2473_v37, %v2405_v59  ;;  %v2406_v12 = vpop.f32.mrf.mxu1  ;;  %v2557_v59 = vadd.f32 %v16412_v18, %v16646_v46 }
 0x37f   :  { %v2407_v38 = vadd.f32 %v2406_v12, %v16371_v43  ;;  %v16641_v29 = vpop.f32.mrf.mxu2 }
 0x380   :  { %21683 = vst [vmem:[#allocation69_spill] sm:$0xff] %v16641_v29  ;;  %v2537_v27 = vpop.f32.mrf.mxu0 }
 0x381   :  { %v16648_v1 = vadd.f32 %v2537_v27, %v2469_v57  ;;  %v11254_v57 = vld [vmem:[%s21324_s3 + $0xb0] sm:$0xf]  ;;  %v14060_v27 = vld [vmem:[%s21324_s3 + $0xb8] sm:$0xf0] }
 0x383   :  { %21684 = vst [vmem:[#allocation70_spill] sm:$0xff] %v16648_v1  ;;  %2792 = vmatmul.bf16.gmra.mxu0 %v21685_v3 }
 0x384   :  { %11646 = vmatmul.msk.bf16.gmra.mxu2 %vm2165_vm2, %v16189_v56  ;;  %v11242_v56 = vld [vmem:[%s21324_s3 + $0x98] sm:$0xf] }
 0x385   :  { %v2475_v43 = vpop.f32.mrf.mxu3 }
 0x386   :  { %v2476_v23 = vadd.f32 %v2475_v43, %v2407_v38  ;;  %v2625_v37 = vpop.f32.mrf.mxu1  ;;  %v21688_v38 = vld [vmem:[#allocation33_spill] sm:$0xff] }
 0x387   :  { %v2626_v12 = vadd.f32 %v2625_v37, %v2557_v59  ;;  %v16655_v63 = vpop.f32.mrf.mxu2  ;;  %v11255_v59 = vor.u32 %v14060_v27, %v11254_v57  ;;  %v14084_v43 = vld [vmem:[%s21324_s3 + $0x178] sm:$0xf0]  ;;  %v2559_v57 = vadd.f32 %v16444_v5, %v16646_v46  ;;  %v11230_v5 = vld [vmem:[%s21324_s3 + $0x80] sm:$0xf] }
 0x388   :  { %21686 = vst [vmem:[#allocation71_spill] sm:$0xff] %v16655_v63  ;;  %v2539_v4 = vpop.f32.mrf.mxu0  ;;  %v11351_v37 = vor.u32 %v14084_v43, %v11350_v30  ;;  %v14081_v30 = vld [vmem:[%s21324_s3 + $0x160] sm:$0xf0] }
 0x389   :  { %v16666_v18 = vadd.f32 %v2539_v4, %v2471_v20  ;;  %2664 = vmatmul.bf16.gmra.mxu1 %v21688_v38  ;;  %v14057_v20 = vld [vmem:[%s21324_s3 + $0xa0] sm:$0xf0]  ;;  %v11338_v4 = vld [vmem:[%s21324_s3 + $0x158] sm:$0xf] }
 0x38a   :  { %2733 = vmatmul.bf16.gmra.mxu3 %v21650_v36  ;;  %2892 = vmatpush.bf16.msrb.mxu1 %v11255_v59  ;;  %v11243_v36 = vor.u32 %v14057_v20, %v11242_v56  ;;  %v14054_v56 = vld [vmem:[%s21324_s3 + $0x88] sm:$0xf0] }
 0x38b   :  { %21687 = vst [vmem:[#allocation72_spill] sm:$0xff] %v16666_v18  ;;  %2961 = vmatpush.bf16.msrb.mxu3 %v11351_v37  ;;  %v11339_v37 = vor.u32 %v14081_v30, %v11338_v4  ;;  %v11231_v4 = vor.u32 %v14054_v56, %v11230_v5  ;;  %v21692_v30 = vld [vmem:[#allocation54_spill] sm:$0xff] }
 0x38d   :  { %v2694_v27 = vpop.f32.mrf.mxu3 }
 0x38e   :  { %v16687_v59 = vadd.f32 %v2694_v27, %v2626_v12  ;;  %v2627_v43 = vpop.f32.mrf.mxu1  ;;  %2893 = vmatpush.bf16.msrb.mxu1 %v11243_v36  ;;  %v11326_v12 = vld [vmem:[%s21324_s3 + $0x140] sm:$0xf]  ;;  %v14078_v36 = vld [vmem:[%s21324_s3 + $0x148] sm:$0xf0]  ;;  %v21691_v27 = vld [vmem:[#allocation49_spill] sm:$0xff] }
 0x38f   :  { %v2628_v38 = vadd.f32 %v2627_v43, %v2559_v57  ;;  %v16689_v3 = vpop.f32.mrf.mxu2  ;;  %2962 = vmatpush.bf16.msrb.mxu3 %v11339_v37  ;;  %v11327_v57 = vor.u32 %v14078_v36, %v11326_v12  ;;  %v11218_v43 = vld [vmem:[%s21324_s3 + $0x68] sm:$0xf]  ;;  %v2562_v37 = vadd.f32 %v16477_v39, %v16646_v46  ;;  %v14075_v12 = vld [vmem:[%s21324_s3 + $0x130] sm:$0xf0]  ;;  %v11206_v39 = vld [vmem:[%s21324_s3 + $0x50] sm:$0xf] }
 0x390   :  { %21689 = vst [vmem:[#allocation73_spill] sm:$0xff] %v16689_v3  ;;  %v2542_v18 = vpop.f32.mrf.mxu0 }
 0x391   :  { %v16700_v20 = vadd.f32 %v2542_v18, %v2474_v53  ;;  %v14051_v53 = vld [vmem:[%s21324_s3 + $0x70] sm:$0xf0]  ;;  %v11314_v18 = vld [vmem:[%s21324_s3 + $0x128] sm:$0xf] }
 0x392   :  { %2894 = vmatpush.bf16.msrb.mxu1 %v11231_v4  ;;  %v11219_v56 = vor.u32 %v14051_v53, %v11218_v43  ;;  %v14048_v43 = vld [vmem:[%s21324_s3 + $0x58] sm:$0xf0] }
 0x393   :  { %21690 = vst [vmem:[#allocation74_spill] sm:$0xff] %v16700_v20  ;;  %2797 = vmatmul.bf16.gmra.mxu0 %v21691_v27  ;;  %2963 = vmatpush.bf16.msrb.mxu3 %v11327_v57  ;;  %v11315_v57 = vor.u32 %v14075_v12, %v11314_v18  ;;  %v21695_v18 = vld [vmem:[#allocation35_spill] sm:$0xff] }
 0x394   :  { %11647 = vmatmul.msk.bf16.gmra.mxu2 %vm2165_vm2, %v21692_v30 }
 0x395   :  { %v2696_v5 = vpop.f32.mrf.mxu3 }
 0x396   :  { %v16722_v4 = vadd.f32 %v2696_v5, %v2628_v38  ;;  %v2630_v36 = vpop.f32.mrf.mxu1  ;;  %2895 = vmatpush.bf16.msrb.mxu1 %v11219_v56  ;;  %v11302_v38 = vld [vmem:[%s21324_s3 + $0x110] sm:$0xf]  ;;  %v14072_v5 = vld [vmem:[%s21324_s3 + $0x118] sm:$0xf0]  ;;  %v21696_v56 = vld [vmem:[#allocation6_spill] sm:$0xff] }
 0x397   :  { %v2631_v30 = vadd.f32 %v2630_v36, %v2562_v37  ;;  %v16724_v20 = vpop.f32.mrf.mxu2  ;;  %2964 = vmatpush.bf16.msrb.mxu3 %v11315_v57  ;;  %v11207_v37 = vor.u32 %v14048_v43, %v11206_v39  ;;  %v11303_v12 = vor.u32 %v14072_v5, %v11302_v38  ;;  %v11194_v36 = vld [vmem:[%s21324_s3 + $0x38] sm:$0xf]  ;;  %v2564_v57 = vadd.f32 %v16509_v15, %v16646_v46  ;;  %v14069_v38 = vld [vmem:[%s21324_s3 + $0x100] sm:$0xf0]  ;;  %v11182_v15 = vld [vmem:[%s21324_s3 + $0x20] sm:$0xf] }
 0x398   :  { %21693 = vst [vmem:[#allocation75_spill] sm:$0xff] %v16724_v20  ;;  %v2544_v27 = vpop.f32.mrf.mxu0 }
 0x399   :  { %v16735_v53 = vadd.f32 %v2544_v27, %v2476_v23  ;;  %2669 = vmatmul.bf16.gmra.mxu1 %v21695_v18  ;;  %v14045_v23 = vld [vmem:[%s21324_s3 + $0x40] sm:$0xf0]  ;;  %v11290_v27 = vld [vmem:[%s21324_s3 + $0xf8] sm:$0xf] }
 0x39a   :  { %2738 = vmatmul.bf16.gmra.mxu3 %v21696_v56  ;;  %2896 = vmatpush.bf16.msrb.mxu1 %v11207_v37  ;;  %v11195_v43 = vor.u32 %v14045_v23, %v11194_v36  ;;  %v14042_v36 = vld [vmem:[%s21324_s3 + $0x28] sm:$0xf0] }
 0x39b   :  { %21694 = vst [vmem:[#allocation76_spill] sm:$0xff] %v16735_v53  ;;  %2965 = vmatpush.bf16.msrb.mxu3 %v11303_v12  ;;  %v11291_v12 = vor.u32 %v14069_v38, %v11290_v27  ;;  %v11183_v27 = vor.u32 %v14042_v36, %v11182_v15  ;;  %v11446_v38 = vld [vmem:[%s21324_s3 + $0x230] sm:$0xf]  ;;  %v11170_v15 = vld [vmem:[%s21324_s3 + $0x8] sm:$0xf] }
 0x39c   :  { %v14039_v36 = vld [vmem:[%s21324_s3 + $0x10] sm:$0xf0] }
 0x39d   :  { %v2699_v39 = vpop.f32.mrf.mxu3 }
 0x39e   :  { %v16756_v37 = vadd.f32 %v2699_v39, %v2631_v30  ;;  %v2632_v5 = vpop.f32.mrf.mxu1  ;;  %2897 = vmatpush.bf16.msrb.mxu1 %v11195_v43  ;;  %v11278_v30 = vld [vmem:[%s21324_s3 + $0xe0] sm:$0xf]  ;;  %v21698_v43 = vld [vmem:[#allocation51_spill] sm:$0xff] }
 0x39f   :  { %v2633_v56 = vadd.f32 %v2632_v5, %v2564_v57  ;;  %v16758_v53 = vpop.f32.mrf.mxu2  ;;  %2966 = vmatpush.bf16.msrb.mxu3 %v11291_v12  ;;  %v14066_v57 = vld [vmem:[%s21324_s3 + $0xe8] sm:$0xf0]  ;;  %v14108_v5 = vld [vmem:[%s21324_s3 + $0x238] sm:$0xf0] }
 0x3a0   :  { %21697 = vst [vmem:[#allocation77_spill] sm:$0xff] %v16758_v53  ;;  %v2763_v18 = vpop.f32.mrf.mxu0  ;;  %v11279_v39 = vor.u32 %v14066_v57, %v11278_v30  ;;  %v14132_v12 = vld [vmem:[%s21324_s3 + $0x2f8] sm:$0xf0]  ;;  %v2567_v30 = vadd.f32 %v16529_v0, %v16646_v46  ;;  %v11434_v0 = vld [vmem:[%s21324_s3 + $0x218] sm:$0xf] }
 0x3a1   :  { %v2764_v23 = vadd.f32 %v2763_v18, %v16687_v59  ;;  %v11542_v59 = vld [vmem:[%s21324_s3 + $0x2f0] sm:$0xf]  ;;  %v11447_v18 = vor.u32 %v14108_v5, %v11446_v38  ;;  %v14063_v38 = vld [vmem:[%s21324_s3 + $0xd0] sm:$0xf0] }
 0x3a2   :  { %2898 = vmatpush.bf16.msrb.mxu1 %v11183_v27  ;;  %v11543_v57 = vor.u32 %v14132_v12, %v11542_v59  ;;  %v14105_v59 = vld [vmem:[%s21324_s3 + $0x220] sm:$0xf0] }
 0x3a3   :  { %2802 = vmatmul.bf16.gmra.mxu0 %v21698_v43  ;;  %2967 = vmatpush.bf16.msrb.mxu3 %v11279_v39  ;;  %v11266_v39 = vld [vmem:[%s21324_s3 + $0xc8] sm:$0xf] }
 0x3a4   :  { %11648 = vmatmul.msk.bf16.gmra.mxu2 %vm2165_vm2, %v16227_v50  ;;  %v11171_v50 = vor.u32 %v14039_v36, %v11170_v15  ;;  %3030 = vmatpush.bf16.msrb.mxu0 %v11447_v18  ;;  %v11267_v53 = vor.u32 %v14063_v38, %v11266_v39  ;;  %v11435_v18 = vor.u32 %v14105_v59, %v11434_v0 }
 0x3a5   :  { %v2701_v27 = vpop.f32.mrf.mxu3  ;;  %3099 = vmatpush.bf16.msrb.mxu2 %v11543_v57  ;;  %v2569_v38 = vadd.f32 %v16536_v34, %v16646_v46  ;;  %v11506_v34 = vld [vmem:[%s21324_s3 + $0x2a8] sm:$0xf] }
 0x3a6   :  { %v16802_v5 = vadd.f32 %v2701_v27, %v2633_v56  ;;  %v2635_v43 = vpop.f32.mrf.mxu1  ;;  %2899 = vmatpush.bf16.msrb.mxu1 %v11171_v50  ;;  %v11530_v56 = vld [vmem:[%s21324_s3 + $0x2d8] sm:$0xf]  ;;  %v14129_v50 = vld [vmem:[%s21324_s3 + $0x2e0] sm:$0xf0]  ;;  %v3237_v27 = vmax.f32 %v16383_v7, 0.0 }
 0x3a7   :  { %v2636_v1 = vadd.f32 %v2635_v43, %v2567_v30  ;;  %v2832_v49 = vpop.f32.mrf.mxu2  ;;  %2968 = vmatpush.bf16.msrb.mxu3 %v11267_v53  ;;  %v21699_v43 = vld [vmem:[#allocation2_spill] sm:$0xff]  ;;  %v11531_v30 = vor.u32 %v14129_v50, %v11530_v56  ;;  %v14102_v53 = vld [vmem:[%s21324_s3 + $0x208] sm:$0xf0]  ;;  %v11410_v50 = vld [vmem:[%s21324_s3 + $0x1e8] sm:$0xf] }
 0x3a8   :  { %v2833_v12 = vadd.f32 %v2832_v49, %v2764_v23  ;;  %v2765_v15 = vpop.f32.mrf.mxu0  ;;  %3031 = vmatpush.bf16.msrb.mxu0 %v11435_v18  ;;  %v11422_v49 = vld [vmem:[%s21324_s3 + $0x200] sm:$0xf]  ;;  %v14126_v7 = vld [vmem:[%s21324_s3 + $0x2c8] sm:$0xf0] }
 0x3a9   :  { %2674 = vmatmul.bf16.gmra.mxu1 %v21699_v43  ;;  %v2766_v36 = vadd.f32 %v2765_v15, %v16722_v4  ;;  %3100 = vmatpush.bf16.msrb.mxu2 %v11531_v30  ;;  %v11518_v4 = vld [vmem:[%s21324_s3 + $0x2c0] sm:$0xf]  ;;  %v11423_v39 = vor.u32 %v14102_v53, %v11422_v49  ;;  %v14099_v30 = vld [vmem:[%s21324_s3 + $0x1f0] sm:$0xf0] }
 0x3aa   :  { %v3238_v57 = vmax.f32 %v2833_v12, 0.0  ;;  %2743 = vmatmul.bf16.gmra.mxu3 %v21654_v26  ;;  %v11519_v59 = vor.u32 %v14126_v7, %v11518_v4  ;;  %v14123_v49 = vld [vmem:[%s21324_s3 + $0x2b0] sm:$0xf0] }
 0x3ab   :  { %v11507_v4 = vor.u32 %v14123_v49, %v11506_v34 }
 0x3ac   :  { %v3309_v23 = vpack.c.bf16 %v3238_v57, %v3237_v27  ;;  %3032 = vmatpush.bf16.msrb.mxu0 %v11423_v39  ;;  %v11411_v57 = vor.u32 %v14099_v30, %v11410_v50  ;;  %v3240_v39 = vmax.f32 %v16428_v19, 0.0 }
 0x3ad   :  { %v2704_v0 = vpop.f32.mrf.mxu3  ;;  %3101 = vmatpush.bf16.msrb.mxu2 %v11519_v59 }
 0x3ae   :  { %v16834_v56 = vadd.f32 %v2704_v0, %v2636_v1  ;;  %v2637_v12 = vpop.f32.mrf.mxu1  ;;  %v14096_v0 = vld [vmem:[%s21324_s3 + $0x1d8] sm:$0xf0]  ;;  %v3405_v50 = vunpack.c.l.b16 %v3309_v23 }
 0x3af   :  { %v2638_v15 = vadd.f32 %v2637_v12, %v2569_v38  ;;  %v2834_v18 = vpop.f32.mrf.mxu2  ;;  %v21700_v38 = vld [vmem:[#allocation53_spill] sm:$0xff] }
 0x3b0   :  { %v2835_v27 = vadd.f32 %v2834_v18, %v2766_v36  ;;  %v2768_v1 = vpop.f32.mrf.mxu0  ;;  %3033 = vmatpush.bf16.msrb.mxu0 %v11411_v57  ;;  %v11398_v36 = vld [vmem:[%s21324_s3 + $0x1d0] sm:$0xf]  ;;  %v14120_v12 = vld [vmem:[%s21324_s3 + $0x298] sm:$0xf0]  ;;  %v2572_v18 = vadd.f32 %v16544_v52, %v16646_v46  ;;  %v14093_v52 = vld [vmem:[%s21324_s3 + $0x1c0] sm:$0xf0] }
 0x3b1   :  { %v2769_v53 = vadd.f32 %v2768_v1, %v16756_v37  ;;  %3102 = vmatpush.bf16.msrb.mxu2 %v11507_v4  ;;  %v11494_v37 = vld [vmem:[%s21324_s3 + $0x290] sm:$0xf]  ;;  %v11399_v19 = vor.u32 %v14096_v0, %v11398_v36  ;;  %v11386_v36 = vld [vmem:[%s21324_s3 + $0x1b8] sm:$0xf] }
 0x3b2   :  { %v3241_v7 = vmax.f32 %v2835_v27, 0.0  ;;  %v11495_v34 = vor.u32 %v14120_v12, %v11494_v37  ;;  %v3406_v27 = vunpack.c.h.b16 %v3309_v23  ;;  %v11482_v23 = vld [vmem:[%s21324_s3 + $0x278] sm:$0xf]  ;;  %v14117_v12 = vld [vmem:[%s21324_s3 + $0x280] sm:$0xf0] }
 0x3b3   :  { %2807 = vmatmul.bf16.gmra.mxu0 %v21700_v38 }
 0x3b4   :  { %v3311_v59 = vpack.c.bf16 %v3241_v7, %v3240_v39  ;;  %11649 = vmatmul.msk.bf16.gmra.mxu2 %vm2165_vm2, %v16244_v61  ;;  %3034 = vmatpush.bf16.msrb.mxu0 %v11399_v19  ;;  %v11387_v19 = vor.u32 %v14093_v52, %v11386_v36 }
 0x3b5   :  { %v2706_v30 = vpop.f32.mrf.mxu3  ;;  %3103 = vmatpush.bf16.msrb.mxu2 %v11495_v34  ;;  %v11483_v34 = vor.u32 %v14117_v12, %v11482_v23 }
 0x3b6   :  { %v3408_v1 = vunpack.c.l.b16 %v3311_v59  ;;  %v3409_v57 = vunpack.c.h.b16 %v3311_v59  ;;  %v16867_v49 = vadd.f32 %v2706_v30, %v2638_v15  ;;  %v2640_v4 = vpop.f32.mrf.mxu1 }
 0x3b7   :  { %v2641_v39 = vadd.f32 %v2640_v4, %v2572_v18  ;;  %v2837_v7 = vpop.f32.mrf.mxu2  ;;  %v21703_v18 = vld [vmem:[#allocation3_spill] sm:$0xff]  ;;  %v3243_v4 = vmax.f32 %v16459_v6, 0.0 }
 0x3b8   :  { %v16878_v0 = vpack.c.b16 %v3408_v1, %v3405_v50  ;;  %v16880_v15 = vpack.c.b16 %v3409_v57, %v3406_v27  ;;  %v2838_v37 = vadd.f32 %v2837_v7, %v2769_v53  ;;  %v2770_v59 = vpop.f32.mrf.mxu0  ;;  %3035 = vmatpush.bf16.msrb.mxu0 %v11387_v19  ;;  %v11374_v53 = vld [vmem:[%s21324_s3 + $0x1a0] sm:$0xf]  ;;  %v14090_v50 = vld [vmem:[%s21324_s3 + $0x1a8] sm:$0xf0]  ;;  %v2574_v57 = vadd.f32 %v16551_v25, %v16646_v46  ;;  %v14087_v19 = vld [vmem:[%s21324_s3 + $0x190] sm:$0xf0] }
 0x3b9   :  { %2679 = vmatmul.bf16.gmra.mxu1 %v21703_v18  ;;  %v2771_v30 = vadd.f32 %v2770_v59, %v16802_v5  ;;  %3104 = vmatpush.bf16.msrb.mxu2 %v11483_v34  ;;  %v11470_v5 = vld [vmem:[%s21324_s3 + $0x260] sm:$0xf]  ;;  %v11375_v1 = vor.u32 %v14090_v50, %v11374_v53  ;;  %v14114_v6 = vld [vmem:[%s21324_s3 + $0x268] sm:$0xf0]  ;;  %v11458_v25 = vld [vmem:[%s21324_s3 + $0x248] sm:$0xf] }
 0x3ba   :  { %21701 = vst [vmem:[#allocation78_spill] sm:$0xff] %v16878_v0  ;;  %v3244_v61 = vmax.f32 %v2838_v37, 0.0  ;;  %2748 = vmatmul.bf16.gmra.mxu3 %v21655_v54  ;;  %v11471_v36 = vor.u32 %v14114_v6, %v11470_v5  ;;  %v3246_v5 = vmax.f32 %v16493_v31, 0.0  ;;  %v21704_v6 = vld [vmem:[#allocation55_spill] sm:$0xff]  ;;  %v4289_v29 = vrot.slane %v16880_v15, 5 }
 0x3bb   :  { %21702 = vst [vmem:[#allocation79_spill] sm:$0xff] %v16880_v15 }
 0x3bc   :  { %v3313_v27 = vpack.c.bf16 %v3244_v61, %v3243_v4  ;;  %3036 = vmatpush.bf16.msrb.mxu0 %v11375_v1  ;;  %v11362_v61 = vld [vmem:[%s21324_s3 + $0x188] sm:$0xf]  ;;  %v14111_v4 = vld [vmem:[%s21324_s3 + $0x250] sm:$0xf0] }
 0x3bd   :  { %v2709_v7 = vpop.f32.mrf.mxu3  ;;  %3105 = vmatpush.bf16.msrb.mxu2 %v11471_v36  ;;  %v11363_v34 = vor.u32 %v14087_v19, %v11362_v61  ;;  %v11459_v50 = vor.u32 %v14111_v4, %v11458_v25  ;;  %v3252_v25 = vmax.f32 %v16531_v2, 0.0 }
 0x3be   :  { %v16903_v52 = vadd.f32 %v2709_v7, %v2641_v39  ;;  %v2642_v23 = vpop.f32.mrf.mxu1  ;;  %v2577_v7 = vadd.f32 %v16559_v44, %v16646_v46  ;;  %v3411_v36 = vunpack.c.l.b16 %v3313_v27 }
 0x3bf   :  { %v2643_v37 = vadd.f32 %v2642_v23, %v2574_v57  ;;  %v2839_v59 = vpop.f32.mrf.mxu2 }
 0x3c0   :  { %v2840_v12 = vadd.f32 %v2839_v59, %v2771_v30  ;;  %v2773_v39 = vpop.f32.mrf.mxu0  ;;  %3037 = vmatpush.bf16.msrb.mxu0 %v11363_v34  ;;  %v3249_v30 = vmax.f32 %v16523_v48, 0.0 }
 0x3c1   :  { %v2774_v53 = vadd.f32 %v2773_v39, %v16834_v56  ;;  %3106 = vmatpush.bf16.msrb.mxu2 %v11459_v50  ;;  %v3412_v56 = vunpack.c.h.b16 %v3313_v27 }
 0x3c2   :  { %v3247_v1 = vmax.f32 %v2840_v12, 0.0 }
 0x3c3   :  { %2812 = vmatmul.bf16.gmra.mxu0 %v21704_v6 }
 0x3c4   :  { %v3315_v57 = vpack.c.bf16 %v3247_v1, %v3246_v5  ;;  %11650 = vmatmul.msk.bf16.gmra.mxu2 %vm2165_vm2, %v16259_v51  ;;  %v2579_v1 = vadd.f32 %v16566_v45, %v16646_v46  ;;  %v16948_v45 = vadd.f32 %v16581_v40, %v16646_v46 }
 0x3c5   :  { %v2711_v23 = vpop.f32.mrf.mxu3 }
 0x3c6   :  { %v3414_v59 = vunpack.c.l.b16 %v3315_v57  ;;  %v3415_v61 = vunpack.c.h.b16 %v3315_v57  ;;  %v16925_v31 = vadd.f32 %v2711_v23, %v2643_v37  ;;  %v2645_v19 = vpop.f32.mrf.mxu1  ;;  %v21707_v57 = vld [vmem:[#allocation7_spill] sm:$0xff]  ;;  %v3698_v23 = vrot.slane %v16878_v0, 1 }
 0x3c7   :  { %v2646_v34 = vadd.f32 %v2645_v19, %v2577_v7  ;;  %v2842_v4 = vpop.f32.mrf.mxu2 }
 0x3c8   :  { %v16931_v50 = vpack.c.b16 %v3414_v59, %v3411_v36  ;;  %v16933_v44 = vpack.c.b16 %v3415_v61, %v3412_v56  ;;  %v2843_v27 = vadd.f32 %v2842_v4, %v2774_v53  ;;  %v2775_v5 = vpop.f32.mrf.mxu0  ;;  %v3639_v36 = vshrl.u32 %v16878_v0, 16 }
 0x3c9   :  { %v2776_v2 = vadd.f32 %v2775_v5, %v16867_v49  ;;  %2900 = vmatmul.bf16.vlgmr.msrb.gmra.mxu1 %v21707_v57  ;;  %v3725_v53 = vrot.slane %v16880_v15, 1  ;;  %v2582_v56 = vadd.f32 %v16574_v14, %v16646_v46  ;;  %v3839_v49 = vrot.slane %v16878_v0, 2 }
 0x3ca   :  { %21705 = vst [vmem:[#allocation80_spill] sm:$0xff] %v16931_v50  ;;  %v3250_v7 = vmax.f32 %v2843_v27, 0.0  ;;  %2969 = vmatmul.bf16.vlgmr.msrb.gmra.mxu3 %v21656_v42  ;;  %v3866_v59 = vrot.slane %v16880_v15, 2  ;;  %v16954_v42 = vadd.f32 %v16589_v16, %v16646_v46  ;;  %v16958_v61 = vadd.f32 %v16596_v8, %v16646_v46 }
 0x3cb   :  { %21706 = vst [vmem:[#allocation81_spill] sm:$0xff] %v16933_v44  ;;  %v4007_v4 = vrot.slane %v16880_v15, 3  ;;  %v16963_v14 = vadd.f32 %v16604_v62, %v16646_v46  ;;  %v16967_v27 = vsel %vm3549_vm3, %v16878_v0, 0  ;;  %v16971_v16 = vsel %vm3549_vm3, %v16880_v15, 0 }
 0x3cc   :  { %v3317_v19 = vpack.c.bf16 %v3250_v7, %v3249_v30  ;;  %v3659_v5 = vshrl.u32 %v16880_v15, 16  ;;  %v16977_v57 = vsel %vm3549_vm3, %v3639_v36, 0  ;;  %v3780_v7 = vshrl.u32 %v3698_v23, 16 }
 0x3cd   :  { %v2714_v40 = vpop.f32.mrf.mxu3  ;;  %v3800_v62 = vshrl.u32 %v3725_v53, 16  ;;  %v3921_v39 = vshrl.u32 %v3839_v49, 16  ;;  %v3941_v12 = vshrl.u32 %v3866_v59, 16  ;;  %v3699_v26 = vsel %vm3549_vm3, %v3698_v23, 0  ;;  %v21708_v23 = vld [vmem:[#allocation57_spill] sm:$0xff] }
 0x3ce   :  { %v16974_v8 = vadd.f32 %v2714_v40, %v2646_v34  ;;  %v2647_v30 = vpop.f32.mrf.mxu1  ;;  %v4082_v18 = vshrl.u32 %v4007_v4, 16  ;;  %v4121_v34 = vrot.slane %v16878_v0, 4  ;;  %v3661_v36 = vsel %vm3549_vm3, %v3659_v5, 0 }
 0x3cf   :  { %v2648_v37 = vadd.f32 %v2647_v30, %v2579_v1  ;;  %v2844_v48 = vpop.f32.mrf.mxu2  ;;  %v3726_v38 = vsel %vm3549_vm3, %v3725_v53, 0  ;;  %v16986_v1 = vsel %vm3549_vm3, %v3839_v49, 0  ;;  %v3782_v51 = vsel %vm3549_vm3, %v3780_v7, 0 }
 0x3d0   :  { %v2845_v54 = vadd.f32 %v2844_v48, %v2776_v2  ;;  %v2778_v6 = vpop.f32.mrf.mxu0  ;;  %v3802_v48 = vsel %vm3549_vm3, %v3800_v62, 0  ;;  %v16991_v2 = vsel %vm3549_vm3, %v3866_v59, 0  ;;  %v16995_v43 = vsel %vm3549_vm3, %v3921_v39, 0 }
 0x3d1   :  { %v2779_v40 = vadd.f32 %v2778_v6, %v16903_v52  ;;  %v16998_v52 = vsel %vm3549_vm3, %v3941_v12, 0  ;;  %v17001_v6 = vsel %vm3549_vm3, %v4007_v4, 0  ;;  %v3551_v59 = vrot.slane %v16931_v50, 4 }
 0x3d2   :  { %v3253_v30 = vmax.f32 %v2845_v54, 0.0  ;;  %v21709_v54 = vrot.slane %v16878_v0, 3  ;;  %v17012_v39 = vsel %vm3549_vm3, %v4082_v18, 0  ;;  %v4203_v5 = vshrl.u32 %v4121_v34, 16 }
 0x3d3   :  { %2817 = vmatmul.bf16.gmra.mxu0 %v21708_v23  ;;  %v3417_v12 = vunpack.c.l.b16 %v3317_v19  ;;  %v3585_v4 = vrot.slane %v16933_v44, 4  ;;  %v3700_v62 = vrot.slane %v16931_v50, 5  ;;  %v3727_v23 = vrot.slane %v16933_v44, 5 }
 0x3d4   :  { %v17006_v53 = vsel %vm3549_vm3, %v21709_v54, 0  ;;  %v3319_v49 = vpack.c.bf16 %v3253_v30, %v3252_v25  ;;  %11651 = vmatmul.msk.bf16.gmra.mxu2 %vm2165_vm2, %v16287_v11  ;;  %v3418_v54 = vunpack.c.h.b16 %v3317_v19  ;;  %v3841_v18 = vrot.slane %v16931_v50, 6 }
 0x3d5   :  { %v2716_v7 = vpop.f32.mrf.mxu3  ;;  %v17021_v63 = vsel %vm3549_vm3, %v4121_v34, 0  ;;  %v3553_v33 = vshll.u32 %v3551_v59, 16  ;;  %v3729_v34 = vshll.u32 %v3727_v23, 16 }
 0x3d6   :  { %v3420_v21 = vunpack.c.l.b16 %v3319_v49  ;;  %v3421_v25 = vunpack.c.h.b16 %v3319_v49  ;;  %v17017_v30 = vadd.f32 %v2716_v7, %v2648_v37  ;;  %v2650_v11 = vpop.f32.mrf.mxu1  ;;  %v21712_v49 = vld [vmem:[#allocation9_spill] sm:$0xff]  ;;  %v3868_v7 = vrot.slane %v16933_v44, 6 }
 0x3d7   :  { %v2651_v20 = vadd.f32 %v2650_v11, %v2582_v56  ;;  %v2847_v3 = vpop.f32.mrf.mxu2  ;;  %v3587_v11 = vshll.u32 %v3585_v4, 16  ;;  %v3702_v56 = vshll.u32 %v3700_v62, 16 }
 0x3d8   :  { %v17024_v13 = vpack.c.b16 %v3420_v21, %v3417_v12  ;;  %v17026_v17 = vpack.c.b16 %v3421_v25, %v3418_v54  ;;  %v2848_v32 = vadd.f32 %v2847_v3, %v2779_v40  ;;  %v2780_v19 = vpop.f32.mrf.mxu0  ;;  %v4009_v21 = vrot.slane %v16933_v44, 7 }
 0x3d9   :  { %v2781_v37 = vadd.f32 %v2780_v19, %v16925_v31  ;;  %2905 = vmatmul.bf16.gmra.mxu1 %v21712_v49  ;;  %v4205_v12 = vsel %vm3549_vm3, %v4203_v5, 0  ;;  %v17036_v3 = vsel %vm3555_vm4, %v3551_v59, %v16977_v57  ;;  %v17039_v31 = vsel %vm3555_vm4, %v3585_v4, %v3661_v36 }
 0x3da   :  { %21710 = vst [vmem:[#allocation7_spill] sm:$0xff] %v17024_v13  ;;  %v3256_v55 = vmax.f32 %v2848_v32, 0.0  ;;  %2974 = vmatmul.bf16.gmra.mxu3 %v21657_v60  ;;  %v3982_v40 = vrot.slane %v16931_v50, 7  ;;  %v4148_v54 = vrot.slane %v16880_v15, 4  ;;  %v21713_v32 = vmax.f32 %v16538_v47, 0.0 }
 0x3db   :  { %21711 = vst [vmem:[#allocation82_spill] sm:$0xff] %v17026_v17  ;;  %v17047_v60 = vsel %vm3555_vm4, %v3553_v33, %v16967_v27  ;;  %v17050_v5 = vsel %vm3555_vm4, %v3700_v62, %v3782_v51  ;;  %v4403_v57 = vrot.slane %v16878_v0, 6  ;;  %v17055_v36 = vsel %vm3555_vm4, %v3587_v11, %v16971_v16 }
 0x3dc   :  { %v3321_v25 = vpack.c.bf16 %v3256_v55, %v21713_v32  ;;  %v17058_v4 = vsel %vm3555_vm4, %v3702_v56, %v3699_v26  ;;  %v3843_v19 = vshll.u32 %v3841_v18, 16  ;;  %v3870_v47 = vshll.u32 %v3868_v7, 16 }
 0x3dd   :  { %v2719_v59 = vpop.f32.mrf.mxu3  ;;  %v17063_v33 = vsel %vm3555_vm4, %v3729_v34, %v3726_v38  ;;  %v17066_v51 = vsel %vm3555_vm4, %v3727_v23, %v3802_v48  ;;  %v4011_v27 = vshll.u32 %v4009_v21, 16  ;;  %v3984_v16 = vshll.u32 %v3982_v40, 16 }
 0x3de   :  { %v17060_v55 = vadd.f32 %v2719_v59, %v2651_v20  ;;  %v2652_v49 = vpop.f32.mrf.mxu1  ;;  %v4223_v26 = vshrl.u32 %v4148_v54, 16  ;;  %v4364_v11 = vshrl.u32 %v4289_v29, 16  ;;  %v17073_v59 = vsel %vm3555_vm4, %v3841_v18, %v16995_v43 }
 0x3df   :  { %v2653_v62 = vadd.f32 %v2652_v49, %v16948_v45  ;;  %v2849_v32 = vpop.f32.mrf.mxu2  ;;  %v17077_v38 = vsel %vm3555_vm4, %v3868_v7, %v16998_v52  ;;  %v4485_v48 = vshrl.u32 %v4403_v57, 16  ;;  %v3845_v23 = vsel %vm3555_vm4, %v3843_v19, %v16986_v1  ;;  %v21715_v49 = vld [vmem:[#allocation22_spill] sm:$0xff] }
 0x3e0   :  { %v2850_v56 = vadd.f32 %v2849_v32, %v2781_v37  ;;  %v2783_v20 = vpop.f32.mrf.mxu0  ;;  %v17084_v34 = vsel %vm3555_vm4, %v3870_v47, %v16991_v2  ;;  %v17088_v37 = vsel %vm3555_vm4, %v4009_v21, %v17012_v39  ;;  %v17092_v18 = vsel %vm3555_vm4, %v4011_v27, %v17001_v6  ;;  %v21717_v47 = vld [vmem:[#allocation26_spill] sm:$0xff] }
 0x3e1   :  { %v2784_v45 = vadd.f32 %v2783_v20, %v16974_v8  ;;  %v4290_v52 = vsel %vm3549_vm3, %v4289_v29, 0  ;;  %v21714_v8 = vrot.slane %v16878_v0, 3  ;;  %v17100_v1 = vsel %vm3555_vm4, %v3984_v16, %v17006_v53 }
 0x3e2   :  { %v3259_v43 = vmax.f32 %v2850_v56, 0.0  ;;  %v4124_v2 = vshll.u32 %v17024_v13, 16  ;;  %v4225_v39 = vsel %vm3549_vm3, %v4223_v26, 0  ;;  %v4366_v21 = vsel %vm3549_vm3, %v4364_v11, 0 }
 0x3e3   :  { %v4062_v7 = vshrl.u32 %v21714_v8, 16  ;;  %3038 = vmatmul.bf16.vlgmr.msrb.gmra.mxu0 %v21715_v49  ;;  %v21716_v6 = vmax.f32 %v16546_v35, 0.0  ;;  %v4291_v29 = vrot.slane %v17026_v17, 1  ;;  %v4487_v27 = vsel %vm3549_vm3, %v4485_v48, 0 }
 0x3e4   :  { %3107 = vmatmul.bf16.vlgmr.msrb.gmra.mxu2 %v21717_v47  ;;  %v17111_v32 = vsel %vm3549_vm3, %v4403_v57, 0  ;;  %v3423_v53 = vunpack.c.l.b16 %v3321_v25  ;;  %v3424_v16 = vunpack.c.h.b16 %v3321_v25  ;;  %v4405_v20 = vrot.slane %v17024_v13, 2 }
 0x3e5   :  { %v3323_v19 = vpack.c.bf16 %v3259_v43, %v21716_v6  ;;  %v2721_v56 = vpop.f32.mrf.mxu3  ;;  %v4064_v26 = vsel %vm3549_vm3, %v4062_v7, 0  ;;  %v17123_v57 = vsel %vm3555_vm4, %v17024_v13, %v4205_v12  ;;  %v4126_v25 = vsel %vm3555_vm4, %v4124_v2, %v17021_v63 }
 0x3e6   :  { %v17115_v35 = vadd.f32 %v2721_v56, %v2653_v62  ;;  %v2655_v43 = vpop.f32.mrf.mxu1  ;;  %v17118_v49 = vsel %vm3555_vm4, %v3982_v40, %v4064_v26  ;;  %v17129_v7 = vsel %vm3555_vm4, %v17026_v17, %v4225_v39  ;;  %v4293_v56 = vshll.u32 %v4291_v29, 16  ;;  %v21720_v26 = vld [vmem:[#allocation10_spill] sm:$0xff] }
 0x3e7   :  { %v3426_v11 = vunpack.c.l.b16 %v3323_v19  ;;  %v3427_v8 = vunpack.c.h.b16 %v3323_v19  ;;  %v2656_v48 = vadd.f32 %v2655_v43, %v16954_v42  ;;  %v2852_v6 = vpop.f32.mrf.mxu2  ;;  %v17138_v12 = vsel %vm3555_vm4, %v4291_v29, %v4366_v21 }
 0x3e8   :  { %v2853_v40 = vadd.f32 %v2852_v6, %v2784_v45  ;;  %v2785_v47 = vpop.f32.mrf.mxu0  ;;  %v17141_v63 = vsel %vm3555_vm4, %v4405_v20, %v4487_v27  ;;  %v17143_v2 = vshll.u32 %v4405_v20, 16 }
 0x3e9   :  { %v17131_v62 = vpack.c.b16 %v3426_v11, %v3423_v53  ;;  %v17133_v19 = vpack.c.b16 %v3427_v8, %v3424_v16  ;;  %v2786_v42 = vadd.f32 %v2785_v47, %v17017_v30  ;;  %2910 = vmatmul.bf16.gmra.mxu1 %v21720_v26  ;;  %v21721_v16 = vmax.f32 %v16553_v10, 0.0 }
 0x3ea   :  { %v3262_v39 = vmax.f32 %v2853_v40, 0.0  ;;  %2979 = vmatmul.bf16.gmra.mxu3 %v21658_v9 }
 0x3eb   :  { %21718 = vst [vmem:[#allocation9_spill] sm:$0xff] %v17131_v62  ;;  %v3557_v53 = vrot.slane %v17131_v62, 7  ;;  %v3590_v45 = vrot.slane %v17133_v19, 7  ;;  %v17151_v30 = vsel %vm3558_vm5, %v17131_v62, %v17058_v4  ;;  %v17156_v21 = vsel %vm3558_vm5, %v17133_v19, %v17063_v33 }
 0x3ec   :  { %21719 = vst [vmem:[#allocation22_spill] sm:$0xff] %v17133_v19  ;;  %v3785_v29 = vshrl.u32 %v17131_v62, 16  ;;  %v3805_v27 = vshrl.u32 %v17133_v19, 16  ;;  %v3846_v9 = vrot.slane %v17131_v62, 1  ;;  %v3325_v20 = vpack.c.bf16 %v3262_v39, %v21721_v16 }
 0x3ed   :  { %v17165_v11 = vsel %vm3558_vm5, %v3557_v53, %v17047_v60  ;;  %v3644_v4 = vshrl.u32 %v3557_v53, 16  ;;  %v17169_v8 = vsel %vm3558_vm5, %v3590_v45, %v17055_v36  ;;  %v2724_v33 = vpop.f32.mrf.mxu3  ;;  %v3664_v43 = vshrl.u32 %v3590_v45, 16 }
 0x3ee   :  { %v17173_v6 = vsel %vm3558_vm5, %v3785_v29, %v17050_v5  ;;  %v17177_v40 = vsel %vm3558_vm5, %v3805_v27, %v17066_v51  ;;  %v17180_v10 = vsel %vm3558_vm5, %v3846_v9, %v3845_v23  ;;  %v3429_v60 = vunpack.c.l.b16 %v3325_v20  ;;  %v2657_v26 = vpop.f32.mrf.mxu1 }
 0x3ef   :  { %v17182_v47 = vadd.f32 %v2724_v33, %v2656_v48  ;;  %v17186_v36 = vsel %vm3558_vm5, %v3644_v4, %v17036_v3  ;;  %v4295_v39 = vsel %vm3555_vm4, %v4293_v56, %v4290_v52  ;;  %v2658_v5 = vadd.f32 %v2657_v26, %v16958_v61  ;;  %v2854_v53 = vpop.f32.mrf.mxu2  ;;  %v21722_v33 = vld [vmem:[#allocation25_spill] sm:$0xff] }
 0x3f0   :  { %v17192_v51 = vsel %vm3558_vm5, %v3664_v43, %v17039_v31  ;;  %v3873_v23 = vrot.slane %v17133_v19, 1  ;;  %v3926_v45 = vshrl.u32 %v3846_v9, 16  ;;  %v2855_v29 = vadd.f32 %v2854_v53, %v2786_v42  ;;  %v2788_v48 = vpop.f32.mrf.mxu0 }
 0x3f1   :  { %v4014_v27 = vrot.slane %v17133_v19, 2  ;;  %v3987_v16 = vrot.slane %v17131_v62, 2  ;;  %v4127_v3 = vrot.slane %v17131_v62, 3  ;;  %v2789_v52 = vadd.f32 %v2788_v48, %v17060_v55 }
 0x3f2   :  { %v17201_v61 = vsel %vm3558_vm5, %v3873_v23, %v17084_v34  ;;  %v17205_v31 = vsel %vm3558_vm5, %v3926_v45, %v17073_v59  ;;  %v3946_v56 = vshrl.u32 %v3873_v23, 16  ;;  %v3265_v9 = vmax.f32 %v2855_v29, 0.0 }
 0x3f3   :  { %v17209_v42 = vsel %vm3558_vm5, %v4014_v27, %v17092_v18  ;;  %v17215_v4 = vsel %vm3558_vm5, %v3987_v16, %v17100_v1  ;;  %v4087_v55 = vshrl.u32 %v4014_v27, 16  ;;  %3043 = vmatmul.bf16.gmra.mxu0 %v21722_v33  ;;  %v4208_v59 = vshrl.u32 %v4127_v3, 16 }
 0x3f4   :  { %v17220_v34 = vsel %vm3558_vm5, %v3946_v56, %v17077_v38  ;;  %v17223_v43 = vsel %vm3558_vm5, %v4127_v3, %v4126_v25  ;;  %v4296_v18 = vrot.slane %v17133_v19, 4  ;;  %v3430_v26 = vunpack.c.h.b16 %v3325_v20  ;;  %3112 = vmatmul.bf16.gmra.mxu2 %v15844_v22 }
 0x3f5   :  { %v21723_v53 = vmax.f32 %v16561_v24, 0.0  ;;  %v17231_v1 = vsel %vm3558_vm5, %v4087_v55, %v17088_v37  ;;  %v4154_v45 = vrot.slane %v17133_v19, 3  ;;  %v2726_v38 = vpop.f32.mrf.mxu3  ;;  %v17236_v29 = vsel %vm3558_vm5, %v4208_v59, %v17123_v57 }
 0x3f6   :  { %v17239_v25 = vsel %vm3558_vm5, %v4296_v18, %v4295_v39  ;;  %v4369_v20 = vshrl.u32 %v4296_v18, 16  ;;  %v4410_v24 = vrot.slane %v17131_v62, 5  ;;  %v17242_v22 = vadd.f32 %v2726_v38, %v2658_v5  ;;  %v2660_v3 = vpop.f32.mrf.mxu1 }
 0x3f7   :  { %v3327_v23 = vpack.c.bf16 %v3265_v9, %v21723_v53  ;;  %v4228_v37 = vshrl.u32 %v4154_v45, 16  ;;  %v2661_v56 = vadd.f32 %v2660_v3, %v16963_v14  ;;  %v2857_v9 = vpop.f32.mrf.mxu2  ;;  %v4409_v55 = vsel %vm3555_vm4, %v17143_v2, %v17111_v32  ;;  %v21727_v2 = vld [vmem:[#allocation8_spill] sm:$0xff] }
 0x3f8   :  { %v17249_v57 = vsel %vm3558_vm5, %v4369_v20, %v17138_v12  ;;  %v4490_v39 = vshrl.u32 %v4410_v24, 16  ;;  %v2858_v59 = vadd.f32 %v2857_v9, %v2789_v52  ;;  %v2790_v18 = vpop.f32.mrf.mxu0  ;;  %v17269_v32 = vsel %vm3558_vm5, %v4410_v24, %v4409_v55 }
 0x3f9   :  { %v3432_v48 = vunpack.c.l.b16 %v3327_v23  ;;  %v3433_v27 = vunpack.c.h.b16 %v3327_v23  ;;  %v17260_v53 = vsel %vm3558_vm5, %v4228_v37, %v17129_v7  ;;  %v2791_v14 = vadd.f32 %v2790_v18, %v17115_v35  ;;  %v21726_v23 = vld [vmem:[#allocation11_spill] sm:$0xff] }
 0x3fa   :  { %2915 = vmatmul.bf16.gmra.mxu1 %v21726_v23  ;;  %v17266_v12 = vsel %vm3558_vm5, %v4490_v39, %v17141_v63  ;;  %2984 = vmatmul.bf16.gmra.mxu3 %v21660_v58  ;;  %v4571_v52 = vrot.slane %v16880_v15, 7  ;;  %v4573_v7 = vrot.slane %v17026_v17, 3  ;;  %v2594_v35 = vadd.f32 %v16611_v41, %v16646_v46  ;;  %v21728_v18 = vld [vmem:[#allocation63_spill] sm:$0xff] }
 0x3fb   :  { %v17254_v33 = vpack.c.b16 %v3432_v48, %v3429_v60  ;;  %v17256_v5 = vpack.c.b16 %v3433_v27, %v3430_v26  ;;  %v3267_v60 = vmax.f32 %v21727_v2, 0.0  ;;  %v3268_v26 = vmax.f32 %v2858_v59, 0.0  ;;  %v21729_v2 = vld [vmem:[#allocation28_spill] sm:$0xff] }
 0x3fc   :  { %v4575_v3 = vshll.u32 %v4573_v7, 16  ;;  %v4646_v37 = vshrl.u32 %v4571_v52, 16  ;;  %v3270_v58 = vmax.f32 %v16576_v28, 0.0  ;;  %v4151_v59 = vshll.u32 %v17026_v17, 16 }
 0x3fd   :  { %21724 = vst [vmem:[#allocation26_spill] sm:$0xff] %v17254_v33  ;;  %v3329_v38 = vpack.c.bf16 %v3268_v26, %v3267_v60  ;;  %v2729_v20 = vpop.f32.mrf.mxu3  ;;  %v2597_v23 = vadd.f32 %v21728_v18, %v16646_v46  ;;  %v4149_v28 = vsel %vm3549_vm3, %v4148_v54, 0  ;;  %v4016_v50 = vrot.slane %v17256_v5, 6 }
 0x3fe   :  { %21725 = vst [vmem:[#allocation10_spill] sm:$0xff] %v17256_v5  ;;  %v17277_v48 = vadd.f32 %v2729_v20, %v2661_v56  ;;  %v2662_v63 = vpop.f32.mrf.mxu1  ;;  %v4572_v56 = vsel %vm3549_vm3, %v4571_v52, 0  ;;  %v4648_v26 = vsel %vm3549_vm3, %v4646_v37, 0  ;;  %v21434_v20 = vrot.slane %v17254_v33, 6 }
 0x3ff   :  { %v2663_v27 = vadd.f32 %v2662_v63, %v2594_v35  ;;  %v2859_v24 = vpop.f32.mrf.mxu2  ;;  %v4577_v60 = vsel %vm3555_vm4, %v4575_v3, %v4572_v56  ;;  %v21730_v35 = vld [vmem:[#allocation38_spill] sm:$0xff]  ;;  %v4649_v63 = vsel %vm3555_vm4, %v4573_v7, %v4648_v26  ;;  %v4067_v52 = vshrl.u32 %v3987_v16, 16 }
 0x400   :  { %v2860_v9 = vadd.f32 %v2859_v24, %v2791_v14  ;;  %v2793_v39 = vpop.f32.mrf.mxu0  ;;  %v4578_v14 = vrot.slane %v17133_v19, 6  ;;  %v3435_v24 = vunpack.c.l.b16 %v3329_v38  ;;  %v3436_v18 = vunpack.c.h.b16 %v3329_v38 }
 0x401   :  { %v2794_v55 = vadd.f32 %v2793_v39, %v17182_v47  ;;  %v4153_v39 = vsel %vm3555_vm4, %v4151_v59, %v4149_v28  ;;  %v3560_v7 = vrot.slane %v17254_v33, 3  ;;  %v21733_v28 = vld [vmem:[#allocation12_spill] sm:$0xff] }
 0x402   :  { %v3271_v41 = vmax.f32 %v2860_v9, 0.0  ;;  %v17298_v9 = vsel %vm3558_vm5, %v4578_v14, %v4577_v60  ;;  %v4651_v37 = vshrl.u32 %v4578_v14, 16  ;;  %v4069_v60 = vsel %vm3558_vm5, %v4067_v52, %v17118_v49  ;;  %v21734_v52 = vld [vmem:[#allocation17_spill] sm:$0xff] }
 0x403   :  { %3048 = vmatmul.bf16.gmra.mxu0 %v21729_v2  ;;  %v4155_v49 = vsel %vm3558_vm5, %v4154_v45, %v4153_v39  ;;  %v3848_v39 = vrot.slane %v17254_v33, 5  ;;  %v3562_v19 = vshll.u32 %v3560_v7, 16 }
 0x404   :  { %v3331_v47 = vpack.c.bf16 %v3271_v41, %v3270_v58  ;;  %3117 = vmatmul.bf16.gmra.mxu2 %v21730_v35  ;;  %v17305_v16 = vsel %vm3558_vm5, %v4651_v37, %v4649_v63  ;;  %v3706_v63 = vrot.slane %v17254_v33, 4  ;;  %v3733_v37 = vrot.slane %v17256_v5, 4 }
 0x405   :  { %v2731_v3 = vpop.f32.mrf.mxu3 }
 0x406   :  { %v3438_v54 = vunpack.c.l.b16 %v3331_v47  ;;  %v3439_v58 = vunpack.c.h.b16 %v3331_v47  ;;  %v17301_v41 = vadd.f32 %v2731_v3, %v2663_v27  ;;  %v2665_v56 = vpop.f32.mrf.mxu1  ;;  %v17316_v27 = vsel %vm3564_vm6, %v21434_v20, %v4069_v60  ;;  %v21735_v3 = vld [vmem:[#allocation24_spill] sm:$0xff]  ;;  %v21739_v60 = vld [vmem:[#allocation65_spill] sm:$0xff] }
 0x407   :  { %v2666_v2 = vadd.f32 %v2665_v56, %v2597_v23  ;;  %v2862_v35 = vpop.f32.mrf.mxu2  ;;  %v3592_v47 = vrot.slane %v17256_v5, 3  ;;  %v21738_v56 = vld [vmem:[#allocation61_spill] sm:$0xff]  ;;  %v3708_v15 = vshll.u32 %v3706_v63, 16 }
 0x408   :  { %v17309_v26 = vpack.c.b16 %v3438_v54, %v3435_v24  ;;  %v17311_v14 = vpack.c.b16 %v3439_v58, %v3436_v18  ;;  %v2863_v38 = vadd.f32 %v2862_v35, %v2794_v55  ;;  %v2795_v59 = vpop.f32.mrf.mxu0  ;;  %v3273_v55 = vmax.f32 %v21734_v52, 0.0  ;;  %v21736_v18 = vld [vmem:[#allocation19_spill] sm:$0xff]  ;;  %v21741_v52 = vld [vmem:[#allocation69_spill] sm:$0xff] }
 0x409   :  { %v2796_v23 = vadd.f32 %v2795_v59, %v17242_v22  ;;  %v3276_v54 = vmax.f32 %v21736_v18, 0.0  ;;  %v21737_v22 = vld [vmem:[#allocation21_spill] sm:$0xff]  ;;  %v2599_v59 = vadd.f32 %v21739_v60, %v16646_v46  ;;  %v3594_v58 = vshll.u32 %v3592_v47, 16  ;;  %v21742_v35 = vld [vmem:[#allocation71_spill] sm:$0xff] }
 0x40a   :  { %21731 = vst [vmem:[#allocation25_spill] sm:$0xff] %v17309_v26  ;;  %2920 = vmatmul.bf16.gmra.mxu1 %v21733_v28  ;;  %v3274_v24 = vmax.f32 %v2863_v38, 0.0  ;;  %2989 = vmatmul.bf16.gmra.mxu3 %v21735_v3  ;;  %v21740_v28 = vld [vmem:[#allocation67_spill] sm:$0xff]  ;;  %v3875_v38 = vrot.slane %v17256_v5, 5  ;;  %v17339_v3 = vadd.f32 %v21741_v52, %v16646_v46  ;;  %v17343_v62 = vadd.f32 %v21742_v35, %v16646_v46 }
 0x40b   :  { %21732 = vst [vmem:[#allocation11_spill] sm:$0xff] %v17311_v14  ;;  %v2602_v20 = vadd.f32 %v21740_v28, %v16646_v46  ;;  %v17353_v52 = vsel %vm3564_vm6, %v3592_v47, %v17192_v51  ;;  %v4156_v44 = vrot.slane %v17311_v14, 7  ;;  %v3596_v51 = vsel %vm3564_vm6, %v3594_v58, %v17169_v8 }
 0x40c   :  { %v3333_v45 = vpack.c.bf16 %v3274_v24, %v3273_v55  ;;  %v17349_v55 = vsel %vm3564_vm6, %v3560_v7, %v17186_v36  ;;  %v3735_v24 = vshll.u32 %v3733_v37, 16  ;;  %v3850_v36 = vshll.u32 %v3848_v39, 16 }
 0x40d   :  { %v2734_v18 = vpop.f32.mrf.mxu3  ;;  %v3877_v7 = vshll.u32 %v3875_v38, 16  ;;  %v3710_v47 = vsel %vm3564_vm6, %v3708_v15, %v17151_v30  ;;  %v21744_v15 = vrot.slane %v17254_v33, 6 }
 0x40e   :  { %v17345_v60 = vadd.f32 %v2734_v18, %v2666_v2  ;;  %v2667_v28 = vpop.f32.mrf.mxu1  ;;  %v17359_v2 = vsel %vm3564_vm6, %v3706_v63, %v17173_v6  ;;  %v3565_v18 = vsel %vm3564_vm6, %v3562_v19, %v17165_v11  ;;  %v17372_v6 = vsel %vm3564_vm6, %v3733_v37, %v17177_v40  ;;  %v21745_v40 = vld [vmem:[#allocation41_spill] sm:$0xff] }
 0x40f   :  { %v2668_v0 = vadd.f32 %v2667_v28, %v2599_v59  ;;  %v2864_v13 = vpop.f32.mrf.mxu2  ;;  %v17381_v19 = vsel %vm3564_vm6, %v3875_v38, %v17220_v34  ;;  %v4018_v11 = vshll.u32 %v4016_v50, 16  ;;  %v3991_v30 = vshll.u32 %v21744_v15, 16 }
 0x410   :  { %v2865_v35 = vadd.f32 %v2864_v13, %v2796_v23  ;;  %v2798_v17 = vpop.f32.mrf.mxu0  ;;  %v3737_v23 = vsel %vm3564_vm6, %v3735_v24, %v17156_v21  ;;  %v4158_v21 = vshll.u32 %v4156_v44, 16  ;;  %v3879_v63 = vsel %vm3564_vm6, %v3877_v7, %v17201_v61 }
 0x411   :  { %v2799_v59 = vadd.f32 %v2798_v17, %v17277_v48  ;;  %v17376_v17 = vsel %vm3564_vm6, %v3848_v39, %v17205_v31  ;;  %v21743_v48 = vld [vmem:[#allocation30_spill] sm:$0xff]  ;;  %v3852_v31 = vsel %vm3564_vm6, %v3850_v36, %v17180_v10  ;;  %v17394_v34 = vsel %vm3564_vm6, %v4016_v50, %v17231_v1 }
 0x412   :  { %v3277_v13 = vmax.f32 %v2865_v35, 0.0  ;;  %v3441_v37 = vunpack.c.l.b16 %v3333_v45  ;;  %v4129_v39 = vrot.slane %v17309_v26, 7  ;;  %v4299_v38 = vshll.u32 %v17311_v14, 16 }
 0x413   :  { %3053 = vmatmul.bf16.gmra.mxu0 %v21743_v48  ;;  %v3442_v28 = vunpack.c.h.b16 %v3333_v45  ;;  %v4020_v50 = vsel %vm3564_vm6, %v4018_v11, %v17209_v42  ;;  %v3993_v1 = vsel %vm3564_vm6, %v3991_v30, %v17215_v4  ;;  %v21749_v30 = vld [vmem:[#allocation27_spill] sm:$0xff] }
 0x414   :  { %v3335_v8 = vpack.c.bf16 %v3277_v13, %v3276_v54  ;;  %3122 = vmatmul.bf16.gmra.mxu2 %v21745_v40  ;;  %v17399_v54 = vsel %vm3564_vm6, %v4158_v21, %v4155_v49  ;;  %v17410_v13 = vsel %vm3564_vm6, %v17311_v14, %v17249_v57  ;;  %v21748_v21 = vld [vmem:[#allocation13_spill] sm:$0xff]  ;;  %v4211_v42 = vsel %vm3564_vm6, %v4129_v39, %v17236_v29 }
 0x415   :  { %v2736_v58 = vpop.f32.mrf.mxu3  ;;  %v4131_v4 = vshll.u32 %v4129_v39, 16  ;;  %v4301_v57 = vsel %vm3564_vm6, %v4299_v38, %v17239_v25 }
 0x416   :  { %v3444_v24 = vunpack.c.l.b16 %v3335_v8  ;;  %v3445_v35 = vunpack.c.h.b16 %v3335_v8  ;;  %v17401_v10 = vadd.f32 %v2736_v58, %v2668_v0  ;;  %v2670_v36 = vpop.f32.mrf.mxu1  ;;  %v21750_v58 = vmax.f32 %v21737_v22, 0.0 }
 0x417   :  { %v2671_v61 = vadd.f32 %v2670_v36, %v2602_v20  ;;  %v2867_v7 = vpop.f32.mrf.mxu2  ;;  %v4412_v20 = vrot.slane %v17309_v26, 1 }
 0x418   :  { %v17412_v49 = vpack.c.b16 %v3444_v24, %v3441_v37  ;;  %v17414_v45 = vpack.c.b16 %v3445_v35, %v3442_v28  ;;  %v2868_v0 = vadd.f32 %v2867_v7, %v2799_v59  ;;  %v2800_v48 = vpop.f32.mrf.mxu0 }
 0x419   :  { %v2801_v15 = vadd.f32 %v2800_v48, %v17301_v41  ;;  %v4414_v48 = vshll.u32 %v4412_v20, 16 }
 0x41a   :  { %21746 = vst [vmem:[#allocation8_spill] sm:$0xff] %v17412_v49  ;;  %2925 = vmatmul.bf16.gmra.mxu1 %v21748_v21  ;;  %v3280_v11 = vmax.f32 %v2868_v0, 0.0  ;;  %2994 = vmatmul.bf16.gmra.mxu3 %v21749_v30  ;;  %v3566_v8 = vrot.slane %v17412_v49, 6  ;;  %v3597_v59 = vrot.slane %v17414_v45, 6  ;;  %v3711_v40 = vrot.slane %v17412_v49, 7 }
 0x41b   :  { %21747 = vst [vmem:[#allocation63_spill] sm:$0xff] %v17414_v45  ;;  %v3738_v41 = vrot.slane %v17414_v45, 7  ;;  %v17430_v37 = vsel %vm3567_vm7, %v17412_v49, %v3852_v31  ;;  %v17434_v29 = vsel %vm3567_vm7, %v17414_v45, %v3879_v63  ;;  %v3931_v25 = vshrl.u32 %v17412_v49, 16 }
 0x41c   :  { %v3337_v39 = vpack.c.bf16 %v3280_v11, %v21750_v58  ;;  %v17440_v38 = vsel %vm3567_vm7, %v3566_v8, %v3565_v18  ;;  %v3649_v28 = vshrl.u32 %v3566_v8, 16  ;;  %v17443_v24 = vsel %vm3567_vm7, %v3597_v59, %v3596_v51 }
 0x41d   :  { %v2739_v35 = vpop.f32.mrf.mxu3  ;;  %v17446_v31 = vsel %vm3567_vm7, %v3711_v40, %v3710_v47  ;;  %v3669_v36 = vshrl.u32 %v3597_v59, 16  ;;  %v17449_v63 = vsel %vm3567_vm7, %v3738_v41, %v3737_v23  ;;  %v3790_v7 = vshrl.u32 %v3711_v40, 16 }
 0x41e   :  { %v17451_v0 = vadd.f32 %v2739_v35, %v2671_v61  ;;  %v2672_v22 = vpop.f32.mrf.mxu1  ;;  %v17455_v18 = vsel %vm3567_vm7, %v3649_v28, %v17349_v55  ;;  %v4133_v51 = vsel %vm3564_vm6, %v4131_v4, %v17223_v43  ;;  %v3810_v11 = vshrl.u32 %v3738_v41, 16 }
 0x41f   :  { %v2673_v47 = vadd.f32 %v2672_v22, %v17339_v3  ;;  %v2869_v21 = vpop.f32.mrf.mxu2  ;;  %v17464_v23 = vsel %vm3567_vm7, %v3669_v36, %v17353_v52  ;;  %v17468_v61 = vsel %vm3567_vm7, %v3790_v7, %v17359_v2  ;;  %v17472_v43 = vsel %vm3567_vm7, %v3931_v25, %v17376_v17  ;;  %v21751_v25 = vld [vmem:[#allocation32_spill] sm:$0xff] }
 0x420   :  { %v2870_v55 = vadd.f32 %v2869_v21, %v2801_v15  ;;  %v2803_v30 = vpop.f32.mrf.mxu0  ;;  %v3951_v4 = vshrl.u32 %v17414_v45, 16  ;;  %v4021_v3 = vrot.slane %v17414_v45, 1  ;;  %v17479_v52 = vsel %vm3567_vm7, %v3810_v11, %v17372_v6 }
 0x421   :  { %v2804_v8 = vadd.f32 %v2803_v30, %v17345_v60  ;;  %v3994_v2 = vrot.slane %v17412_v49, 1  ;;  %v4134_v59 = vrot.slane %v17412_v49, 2  ;;  %v4302_v28 = vrot.slane %v17414_v45, 3 }
 0x422   :  { %v3283_v15 = vmax.f32 %v2870_v55, 0.0  ;;  %v17485_v40 = vsel %vm3567_vm7, %v3951_v4, %v17381_v19  ;;  %v17488_v17 = vsel %vm3567_vm7, %v4021_v3, %v4020_v50  ;;  %v4092_v41 = vshrl.u32 %v4021_v3, 16  ;;  %v21753_v50 = vld [vmem:[#allocation43_spill] sm:$0xff] }
 0x423   :  { %3058 = vmatmul.bf16.gmra.mxu0 %v21751_v25  ;;  %v17494_v60 = vsel %vm3567_vm7, %v3994_v2, %v3993_v1  ;;  %v4213_v6 = vshrl.u32 %v4134_v59, 16  ;;  %v17497_v58 = vsel %vm3567_vm7, %v4134_v59, %v4133_v51  ;;  %v3447_v35 = vunpack.c.l.b16 %v3337_v39 }
 0x424   :  { %v21752_v19 = vmax.f32 %v21738_v56, 0.0  ;;  %3127 = vmatmul.bf16.gmra.mxu2 %v21753_v50  ;;  %v17505_v7 = vsel %vm3567_vm7, %v4092_v41, %v17394_v34  ;;  %v4161_v22 = vrot.slane %v17414_v45, 2  ;;  %v17512_v51 = vsel %vm3567_vm7, %v4302_v28, %v4301_v57  ;;  %v21758_v50 = vld [vmem:[#allocation29_spill] sm:$0xff] }
 0x425   :  { %v2741_v1 = vpop.f32.mrf.mxu3  ;;  %v17509_v21 = vsel %vm3567_vm7, %v4213_v6, %v4211_v42  ;;  %v4374_v11 = vshrl.u32 %v4302_v28, 16  ;;  %v4417_v55 = vrot.slane %v17412_v49, 4  ;;  %v3448_v56 = vunpack.c.h.b16 %v3337_v39 }
 0x426   :  { %v3339_v36 = vpack.c.bf16 %v3283_v15, %v21752_v19  ;;  %v17515_v3 = vadd.f32 %v2741_v1, %v2673_v47  ;;  %v2675_v59 = vpop.f32.mrf.mxu1  ;;  %v4231_v42 = vsel %vm3564_vm6, %v4156_v44, %v17260_v53  ;;  %v4233_v57 = vshrl.u32 %v4161_v22, 16  ;;  %v21756_v19 = vld [vmem:[#allocation14_spill] sm:$0xff] }
 0x427   :  { %v2676_v34 = vadd.f32 %v2675_v59, %v17343_v62  ;;  %v2872_v15 = vpop.f32.mrf.mxu2  ;;  %v17526_v41 = vsel %vm3567_vm7, %v4374_v11, %v17410_v13  ;;  %v4416_v62 = vsel %vm3564_vm6, %v4414_v48, %v17269_v32  ;;  %v21757_v13 = vld [vmem:[#allocation62_spill] sm:$0xff]  ;;  %v4580_v1 = vrot.slane %v17311_v14, 2  ;;  %v21759_v32 = vld [vmem:[#allocation73_spill] sm:$0xff] }
 0x428   :  { %v3450_v30 = vunpack.c.l.b16 %v3339_v36  ;;  %v3451_v4 = vunpack.c.h.b16 %v3339_v36  ;;  %v2873_v25 = vadd.f32 %v2872_v15, %v2804_v8  ;;  %v2805_v6 = vpop.f32.mrf.mxu0  ;;  %v17537_v44 = vsel %vm3567_vm7, %v4233_v57, %v4231_v42 }
 0x429   :  { %v2806_v28 = vadd.f32 %v2805_v6, %v17401_v10  ;;  %v17540_v53 = vsel %vm3567_vm7, %v4417_v55, %v4416_v62  ;;  %v2609_v48 = vadd.f32 %v21759_v32, %v16646_v46  ;;  %v4495_v15 = vshrl.u32 %v4417_v55, 16  ;;  %v21760_v62 = vld [vmem:[#allocation64_spill] sm:$0xff]  ;;  %v21761_v55 = vld [vmem:[#allocation75_spill] sm:$0xff] }
 0x42a   :  { %v17528_v39 = vpack.c.b16 %v3450_v30, %v3447_v35  ;;  %v17530_v47 = vpack.c.b16 %v3451_v4, %v3448_v56  ;;  %2930 = vmatmul.bf16.gmra.mxu1 %v21756_v19  ;;  %v3285_v35 = vmax.f32 %v21757_v13, 0.0  ;;  %v3286_v36 = vmax.f32 %v2873_v25, 0.0  ;;  %2999 = vmatmul.bf16.gmra.mxu3 %v21758_v50  ;;  %v14161_v30 = vld [vmem:[%s21326_s5 + $0x38] sm:$0xff] }
 0x42b   :  { %9861 = vmatpush.bf16.msra.mxu3 %v14161_v30  ;;  %v4582_v25 = vshll.u32 %v4580_v1, 16  ;;  %v3288_v19 = vmax.f32 %v21760_v62, 0.0  ;;  %v4654_v50 = vsel %vm3564_vm6, %v4580_v1, %v17305_v16  ;;  %v17581_v16 = vsel %vm3567_vm7, %v4161_v22, %v17399_v54 }
 0x42c   :  { %21754 = vst [vmem:[#allocation28_spill] sm:$0xff] %v17528_v39  ;;  %v3341_v8 = vpack.c.bf16 %v3286_v36, %v3285_v35  ;;  %v4493_v35 = vsel %vm3564_vm6, %v4412_v20, %v17266_v12  ;;  %v21762_v36 = vld [vmem:[#allocation34_spill] sm:$0xff]  ;;  %v4585_v20 = vrot.slane %v17414_v45, 5 }
 0x42d   :  { %21755 = vst [vmem:[#allocation38_spill] sm:$0xff] %v17530_v47  ;;  %v2744_v10 = vpop.f32.mrf.mxu3  ;;  %v4584_v12 = vsel %vm3564_vm6, %v4582_v25, %v17298_v9  ;;  %v14159_v25 = vld [vmem:[%s21326_s5 + $0x28] sm:$0xff] }
 0x42e   :  { %v17547_v11 = vadd.f32 %v2744_v10, %v2676_v34  ;;  %v2677_v56 = vpop.f32.mrf.mxu1  ;;  %v14160_v34 = vld [vmem:[%s21326_s5 + $0x30] sm:$0xff]  ;;  %v3569_v10 = vrot.slane %v17528_v39, 2  ;;  %v3454_v1 = vunpack.c.h.b16 %v3341_v8 }
 0x42f   :  { %v2678_v4 = vadd.f32 %v2677_v56, %v2609_v48  ;;  %v2874_v59 = vpop.f32.mrf.mxu2  ;;  %v21763_v48 = vld [vmem:[#allocation45_spill] sm:$0xff]  ;;  %9862 = vmatpush.bf16.msra.mxu3 %v14160_v34  ;;  %v3453_v56 = vunpack.c.l.b16 %v3341_v8  ;;  %v17590_v34 = vsel %vm3567_vm7, %v4585_v20, %v4584_v12 }
 0x430   :  { %v2875_v42 = vadd.f32 %v2874_v59, %v2806_v28  ;;  %v2808_v57 = vpop.f32.mrf.mxu0  ;;  %v2612_v28 = vadd.f32 %v21761_v55, %v16646_v46  ;;  %v21451_v59 = vrot.slane %v17528_v39, 5 }
 0x431   :  { %v2809_v6 = vadd.f32 %v2808_v57, %v17451_v0  ;;  %v17565_v0 = vsel %vm3567_vm7, %v4495_v15, %v4493_v35  ;;  %v4072_v15 = vshrl.u32 %v3994_v2, 16  ;;  %v3599_v2 = vrot.slane %v17530_v47, 2 }
 0x432   :  { %v3289_v13 = vmax.f32 %v2875_v42, 0.0  ;;  %v4656_v35 = vshrl.u32 %v4585_v20, 16 }
 0x433   :  { %3063 = vmatmul.bf16.gmra.mxu0 %v21762_v36  ;;  %9863 = vmatpush.bf16.msra.mxu3 %v14159_v25  ;;  %v4074_v55 = vsel %vm3567_vm7, %v4072_v15, %v17316_v27  ;;  %v14158_v27 = vld [vmem:[%s21326_s5 + $0x20] sm:$0xff]  ;;  %v21769_v15 = vld [vmem:[#allocation68_spill] sm:$0xff]  ;;  %v17642_v49 = vsel %vm3573_vm8, %v3599_v2, %v17464_v23 }
 0x434   :  { %v3343_v32 = vpack.c.bf16 %v3289_v13, %v3288_v19  ;;  %3132 = vmatmul.bf16.gmra.mxu2 %v21763_v48  ;;  %v17602_v48 = vsel %vm3567_vm7, %v4656_v35, %v4654_v50  ;;  %v17607_v12 = vsel %vm3573_vm8, %v21451_v59, %v4074_v55  ;;  %v21770_v50 = vld [vmem:[#allocation70_spill] sm:$0xff]  ;;  %v3601_v55 = vshll.u32 %v3599_v2, 16 }
 0x435   :  { %v2746_v30 = vpop.f32.mrf.mxu3 }
 0x436   :  { %v3456_v42 = vunpack.c.l.b16 %v3343_v32  ;;  %v3457_v57 = vunpack.c.h.b16 %v3343_v32  ;;  %v17583_v62 = vadd.f32 %v2746_v30, %v2678_v4  ;;  %v2680_v9 = vpop.f32.mrf.mxu1  ;;  %v3713_v32 = vrot.slane %v17528_v39, 3  ;;  %v21768_v30 = vld [vmem:[#allocation31_spill] sm:$0xff] }
 0x437   :  { %v2681_v19 = vadd.f32 %v2680_v9, %v2612_v28  ;;  %v2877_v13 = vpop.f32.mrf.mxu2  ;;  %v21766_v28 = vld [vmem:[#allocation15_spill] sm:$0xff]  ;;  %9864 = vmatpush.bf16.msra.mxu3 %v14158_v27  ;;  %v3881_v9 = vrot.slane %v17530_v47, 4 }
 0x438   :  { %v17592_v54 = vpack.c.b16 %v3456_v42, %v3453_v56  ;;  %v17594_v22 = vpack.c.b16 %v3457_v57, %v3454_v1  ;;  %v2878_v8 = vadd.f32 %v2877_v13, %v2809_v6  ;;  %v2810_v4 = vpop.f32.mrf.mxu0  ;;  %v21767_v6 = vld [vmem:[#allocation66_spill] sm:$0xff]  ;;  %v3294_v1 = vmax.f32 %v21769_v15, 0.0  ;;  %v21771_v57 = vld [vmem:[#allocation72_spill] sm:$0xff]  ;;  %v21772_v13 = vld [vmem:[#allocation77_spill] sm:$0xff] }
 0x439   :  { %v2811_v36 = vadd.f32 %v2810_v4, %v17515_v3  ;;  %v3291_v20 = vmax.f32 %v21767_v6, 0.0  ;;  %v3740_v3 = vrot.slane %v17530_v47, 3  ;;  %v2614_v35 = vadd.f32 %v21772_v13, %v16646_v46  ;;  %v14737_v15 = vld [vmem:[%s21325_s4] sm:$0x7] }
 0x43a   :  { %21764 = vst [vmem:[#allocation12_spill] sm:$0xff] %v17592_v54  ;;  %2935 = vmatmul.bf16.gmra.mxu1 %v21766_v28  ;;  %v3292_v56 = vmax.f32 %v2878_v8, 0.0  ;;  %3004 = vmatmul.bf16.gmra.mxu3 %v21768_v30  ;;  %v3571_v4 = vshll.u32 %v3569_v10, 16  ;;  %v3715_v28 = vshll.u32 %v3713_v32, 16  ;;  %v17627_v42 = vperm.slane %v14737_v15, 2 }
 0x43b   :  { %21765 = vst [vmem:[#allocation17_spill] sm:$0xff] %v17594_v22  ;;  %v3854_v46 = vrot.slane %v17528_v39, 4  ;;  %v17638_v15 = vsel %vm3573_vm8, %v3569_v10, %v17455_v18  ;;  %v4136_v10 = vrot.slane %v17592_v54, 6 }
 0x43c   :  { %v17618_v25 = vpack.c.bf16 %v3292_v56, %v3291_v20  ;;  %v14157_v20 = vld [vmem:[%s21326_s5 + $0x18] sm:$0xff]  ;;  %v3742_v56 = vshll.u32 %v3740_v3, 16  ;;  %v17658_v18 = vsel %vm3573_vm8, %v3715_v28, %v17446_v31  ;;  %v3883_v31 = vshll.u32 %v3881_v9, 16 }
 0x43d   :  { %v2749_v8 = vpop.f32.mrf.mxu3  ;;  %9865 = vmatpush.bf16.msra.mxu3 %v14157_v20  ;;  %v21774_v20 = vld [vmem:[#allocation47_spill] sm:$0xff] }
 0x43e   :  { %v17622_v6 = vadd.f32 %v2749_v8, %v2681_v19  ;;  %v2682_v30 = vpop.f32.mrf.mxu1  ;;  %v4023_v19 = vrot.slane %v17530_v47, 5  ;;  %v21456_v8 = vrot.slane %v17594_v22, 6  ;;  %v17666_v2 = vsel %vm3573_vm8, %v3742_v56, %v17449_v63 }
 0x43f   :  { %v2683_v27 = vadd.f32 %v2682_v30, %v2614_v35  ;;  %v2879_v13 = vpop.f32.mrf.mxu2  ;;  %v17646_v35 = vsel %vm3573_vm8, %v3713_v32, %v17468_v61  ;;  %v17650_v30 = vsel %vm3573_vm8, %v3571_v4, %v17440_v38  ;;  %v14156_v61 = vld [vmem:[%s21326_s5 + $0x10] sm:$0xff]  ;;  %v17670_v38 = vsel %vm3573_vm8, %v3740_v3, %v17479_v52 }
 0x440   :  { %v2880_v59 = vadd.f32 %v2879_v13, %v2811_v36  ;;  %v2813_v45 = vpop.f32.mrf.mxu0  ;;  %v17654_v36 = vsel %vm3573_vm8, %v3601_v55, %v17443_v24  ;;  %v3856_v24 = vshll.u32 %v3854_v46, 16  ;;  %v21773_v32 = vld [vmem:[#allocation4_spill] sm:$0xff]  ;;  %v17675_v4 = vsel %vm3573_vm8, %v3854_v46, %v17472_v43 }
 0x441   :  { %v4165_v55 = vshll.u32 %v21456_v8, 16  ;;  %9866 = vmatpush.bf16.msra.mxu3 %v14156_v61  ;;  %v17682_v63 = vsel %vm3573_vm8, %v3881_v9, %v17485_v40  ;;  %v21775_v52 = vrot.slane %v17528_v39, 5  ;;  %v3459_v43 = vunpack.c.l.b16 %v17618_v25 }
 0x442   :  { %v3295_v23 = vmax.f32 %v2880_v59, 0.0  ;;  %v4025_v59 = vshll.u32 %v4023_v19, 16  ;;  %v3460_v46 = vunpack.c.h.b16 %v17618_v25  ;;  %v2814_v40 = vadd.f32 %v2813_v45, %v17547_v11 }
 0x443   :  { %3068 = vmatmul.bf16.gmra.mxu0 %v21773_v32  ;;  %v3998_v3 = vshll.u32 %v21775_v52, 16  ;;  %v4138_v32 = vshll.u32 %v4136_v10, 16  ;;  %v14155_v52 = vld [vmem:[%s21326_s5 + $0x8] sm:$0xff]  ;;  %v3858_v25 = vsel %vm3573_vm8, %v3856_v24, %v17430_v37  ;;  %v3885_v56 = vsel %vm3573_vm8, %v3883_v31, %v17434_v29  ;;  %v21778_v24 = vld [vmem:[#allocation16_spill] sm:$0xff] }
 0x444   :  { %v3347_v28 = vpack.c.bf16 %v3295_v23, %v3294_v1  ;;  %3137 = vmatmul.bf16.gmra.mxu2 %v21774_v20  ;;  %v17691_v1 = vsel %vm3573_vm8, %v4165_v55, %v17581_v16  ;;  %v4027_v16 = vsel %vm3573_vm8, %v4025_v59, %v17488_v17  ;;  %v17707_v45 = vsel %vm3573_vm8, %v4023_v19, %v17505_v7  ;;  %v14169_v17 = vld [vmem:[%s21326_s5 + $0x78] sm:$0xff] }
 0x445   :  { %v2751_v13 = vpop.f32.mrf.mxu3  ;;  %9867 = vmatpush.bf16.msra.mxu3 %v14155_v52  ;;  %v17715_v37 = vsel %vm3573_vm8, %v3998_v3, %v17494_v60  ;;  %v17724_v7 = vsel %vm3573_vm8, %v4136_v10, %v17509_v21  ;;  %v17728_v19 = vsel %vm3573_vm8, %v4138_v32, %v17497_v58  ;;  %v21780_v59 = vld [vmem:[#allocation33_spill] sm:$0xff]  ;;  %v14154_v3 = vld [vmem:[%s21326_s5] sm:$0xff]  ;;  %9874 = vmatpush.bf16.msra.mxu0 %v14169_v17 }
 0x446   :  { %v3462_v23 = vunpack.c.l.b16 %v3347_v28  ;;  %v3463_v61 = vunpack.c.h.b16 %v3347_v28  ;;  %v17694_v9 = vadd.f32 %v2751_v13, %v2683_v27  ;;  %v2901_v20 = vpop.f32.mrf.mxu1  ;;  %v14185_v58 = vld [vmem:[%s21326_s5 + $0xf8] sm:$0xff]  ;;  %v14153_v52 = vld [vmem:[%s21324_s3 + $0x3a0] sm:$0xf0] }
 0x447   :  { %v2882_v8 = vpop.f32.mrf.mxu2  ;;  %v2902_v29 = vadd.f32 %v2901_v20, %v17627_v42  ;;  %v11626_v20 = vld [vmem:[%s21324_s3 + $0x398] sm:$0xf] }
 0x448   :  { %v17709_v11 = vpack.c.b16 %v3462_v23, %v3459_v43  ;;  %v17711_v27 = vpack.c.b16 %v3463_v61, %v3460_v46  ;;  %v2883_v55 = vadd.f32 %v2882_v8, %v2814_v40  ;;  %v2815_v28 = vpop.f32.mrf.mxu0  ;;  %v21779_v8 = vrot.slane %v17594_v22, 7 }
 0x449   :  { %v21781_v61 = vmax.f32 %v21770_v50, 0.0  ;;  %9868 = vmatpush.bf16.msra.mxu3 %v14154_v3  ;;  %v11627_v17 = vor.u32 %v14153_v52, %v11626_v20  ;;  %v2816_v3 = vadd.f32 %v2815_v28, %v17583_v62 }
 0x44a   :  { %21776 = vst [vmem:[#allocation24_spill] sm:$0xff] %v17709_v11  ;;  %2940 = vmatmul.bf16.gmra.mxu1 %v21778_v24  ;;  %v4306_v60 = vshll.u32 %v21779_v8, 16  ;;  %v3298_v31 = vmax.f32 %v2883_v55, 0.0  ;;  %3009 = vmatmul.bf16.gmra.mxu3 %v21780_v59  ;;  %v3575_v43 = vrot.slane %v17709_v11, 5  ;;  %v3604_v46 = vrot.slane %v17711_v27, 5  ;;  %v14168_v8 = vld [vmem:[%s21326_s5 + $0x70] sm:$0xff] }
 0x44b   :  { %21777 = vst [vmem:[#allocation19_spill] sm:$0xff] %v17711_v27  ;;  %v3718_v21 = vrot.slane %v17709_v11, 6  ;;  %v3745_v10 = vrot.slane %v17711_v27, 6  ;;  %v3859_v13 = vrot.slane %v17709_v11, 7  ;;  %v3886_v32 = vrot.slane %v17711_v27, 7  ;;  %3169 = vmatpush.bf16.msra.mxu1 %v11627_v17  ;;  %9875 = vmatpush.bf16.msra.mxu0 %v14168_v8 }
 0x44c   :  { %v17747_v23 = vsel %vm3576_vm9, %v17711_v27, %v4027_v16  ;;  %v17751_v40 = vpack.c.bf16 %v3298_v31, %v21781_v61  ;;  %v17761_v55 = vsel %vm3576_vm9, %v3575_v43, %v17650_v30  ;;  %v3654_v24 = vshrl.u32 %v3575_v43, 16 }
 0x44d   :  { %v17765_v16 = vsel %vm3576_vm9, %v3604_v46, %v17654_v36  ;;  %v2970_v50 = vpop.f32.mrf.mxu3  ;;  %9900 = vmatpush.bf16.msrb.mxu3 %v14185_v58  ;;  %v17772_v31 = vsel %vm3576_vm9, %v3718_v21, %v17658_v18  ;;  %v3674_v59 = vshrl.u32 %v3604_v46, 16  ;;  %v17776_v30 = vsel %vm3576_vm9, %v3745_v10, %v17666_v2  ;;  %v14184_v2 = vld [vmem:[%s21326_s5 + $0xf0] sm:$0xff] }
 0x44e   :  { %v17779_v36 = vadd.f32 %v2970_v50, %v2902_v29  ;;  %v2903_v43 = vpop.f32.mrf.mxu1  ;;  %v17783_v58 = vsel %vm3576_vm9, %v3654_v24, %v17638_v15  ;;  %v4308_v61 = vsel %vm3573_vm8, %v4306_v60, %v17512_v51  ;;  %v3465_v18 = vunpack.c.l.b16 %v17751_v40  ;;  %v11614_v51 = vld [vmem:[%s21324_s3 + $0x380] sm:$0xf]  ;;  %v14150_v60 = vld [vmem:[%s21324_s3 + $0x388] sm:$0xf0] }
 0x44f   :  { %v2884_v20 = vpop.f32.mrf.mxu2  ;;  %v17793_v62 = vsel %vm3576_vm9, %v3674_v59, %v17642_v49  ;;  %v3795_v28 = vshrl.u32 %v3718_v21, 16  ;;  %v3815_v29 = vshrl.u32 %v3745_v10, 16  ;;  %v17802_v52 = vsel %vm3576_vm9, %v3859_v13, %v3858_v25  ;;  %v14167_v50 = vld [vmem:[%s21326_s5 + $0x68] sm:$0xff]  ;;  %v21782_v59 = vld [vmem:[#allocation5_spill] sm:$0xff] }
 0x450   :  { %v2885_v15 = vadd.f32 %v2884_v20, %v2816_v3  ;;  %v2818_v46 = vpop.f32.mrf.mxu0  ;;  %v17805_v24 = vsel %vm3576_vm9, %v3886_v32, %v3885_v56  ;;  %v3936_v49 = vshrl.u32 %v3859_v13, 16  ;;  %v11615_v10 = vor.u32 %v14150_v60, %v11614_v51  ;;  %9876 = vmatpush.bf16.msra.mxu0 %v14167_v50 }
 0x451   :  { %v2819_v21 = vadd.f32 %v2818_v46, %v17622_v6  ;;  %9901 = vmatpush.bf16.msrb.mxu3 %v14184_v2  ;;  %v17813_v17 = vsel %vm3576_vm9, %v3795_v28, %v17646_v35  ;;  %v17817_v25 = vsel %vm3576_vm9, %v3815_v29, %v17670_v38  ;;  %v3956_v6 = vshrl.u32 %v3886_v32, 16  ;;  %v14183_v35 = vld [vmem:[%s21326_s5 + $0xe8] sm:$0xff]  ;;  %v21784_v29 = vld [vmem:[#allocation49_spill] sm:$0xff]  ;;  %v14147_v46 = vld [vmem:[%s21324_s3 + $0x370] sm:$0xf0] }
 0x452   :  { %v3301_v8 = vmax.f32 %v2885_v15, 0.0  ;;  %v17821_v56 = vsel %vm3576_vm9, %v3936_v49, %v17675_v4  ;;  %v17826_v13 = vsel %vm3576_vm9, %v17709_v11, %v17715_v37  ;;  %3170 = vmatpush.bf16.msra.mxu1 %v11615_v10  ;;  %v4097_v38 = vshrl.u32 %v17711_v27, 16  ;;  %v11602_v15 = vld [vmem:[%s21324_s3 + $0x368] sm:$0xf] }
 0x453   :  { %3073 = vmatmul.bf16.gmra.mxu0 %v21782_v59  ;;  %v4141_v3 = vrot.slane %v17709_v11, 1  ;;  %v4309_v4 = vrot.slane %v17711_v27, 2  ;;  %v21457_v32 = vrot.slane %v17711_v27, 1  ;;  %v3466_v20 = vunpack.c.h.b16 %v17751_v40 }
 0x454   :  { %v2904_v37 = vadd.f32 %v2903_v43, %v17627_v42  ;;  %v21783_v2 = vmax.f32 %v21771_v57, 0.0  ;;  %3142 = vmatmul.bf16.gmra.mxu2 %v21784_v29  ;;  %v17849_v51 = vsel %vm3576_vm9, %v3956_v6, %v17682_v63  ;;  %v11603_v43 = vor.u32 %v14147_v46, %v11602_v15  ;;  %v14166_v57 = vld [vmem:[%s21326_s5 + $0x60] sm:$0xff]  ;;  %v14144_v29 = vld [vmem:[%s21324_s3 + $0x358] sm:$0xf0] }
 0x455   :  { %v2972_v40 = vpop.f32.mrf.mxu3  ;;  %9902 = vmatpush.bf16.msrb.mxu3 %v14183_v35  ;;  %v17856_v60 = vsel %vm3576_vm9, %v4097_v38, %v17707_v45  ;;  %v4218_v49 = vshrl.u32 %v4141_v3, 16  ;;  %v17860_v10 = vsel %vm3576_vm9, %v4141_v3, %v17728_v19  ;;  %v17865_v59 = vsel %vm3576_vm9, %v4309_v4, %v4308_v61  ;;  %v14182_v45 = vld [vmem:[%s21326_s5 + $0xe0] sm:$0xff]  ;;  %9877 = vmatpush.bf16.msra.mxu0 %v14166_v57  ;;  %v14165_v46 = vld [vmem:[%s21326_s5 + $0x58] sm:$0xff] }
 0x456   :  { %v3351_v28 = vpack.c.bf16 %v3301_v8, %v21783_v2  ;;  %21785 = vst [vmem:[#allocation21_spill] sm:$0xff] %v17860_v10  ;;  %v17862_v63 = vadd.f32 %v2972_v40, %v2904_v37  ;;  %v2906_v6 = vpop.f32.mrf.mxu1  ;;  %3171 = vmatpush.bf16.msra.mxu1 %v11603_v43  ;;  %v4238_v19 = vshrl.u32 %v21457_v32, 16  ;;  %v21792_v43 = vld [vmem:[#allocation74_spill] sm:$0xff]  ;;  %v4498_v32 = vsel %vm3573_vm8, %v17592_v54, %v17565_v0  ;;  %v21798_v0 = vld [vmem:[#allocation51_spill] sm:$0xff] }
 0x457   :  { %21786 = vst [vmem:[#allocation61_spill] sm:$0xff] %v17865_v59  ;;  %v2887_v35 = vpop.f32.mrf.mxu2  ;;  %v17872_v38 = vsel %vm3576_vm9, %v4218_v49, %v17724_v7  ;;  %v21789_v7 = vrot.slane %v17594_v22, 6  ;;  %v3303_v57 = vmax.f32 %v21792_v43, 0.0 }
 0x458   :  { %v3468_v50 = vunpack.c.l.b16 %v3351_v28  ;;  %v3469_v8 = vunpack.c.h.b16 %v3351_v28  ;;  %21787 = vst [vmem:[#allocation65_spill] sm:$0xff] %v17872_v38  ;;  %v2888_v2 = vadd.f32 %v2887_v35, %v2819_v21  ;;  %v2820_v61 = vpop.f32.mrf.mxu0  ;;  %v11590_v28 = vld [vmem:[%s21324_s3 + $0x350] sm:$0xf] }
 0x459   :  { %v4236_v15 = vsel %vm3573_vm8, %v21789_v7, %v17537_v44  ;;  %9903 = vmatpush.bf16.msrb.mxu3 %v14182_v45  ;;  %v11591_v21 = vor.u32 %v14144_v29, %v11590_v28  ;;  %v14181_v44 = vld [vmem:[%s21326_s5 + $0xd8] sm:$0xff]  ;;  %9878 = vmatpush.bf16.msra.mxu0 %v14165_v46  ;;  %v4420_v46 = vshll.u32 %v17592_v54, 16 }
 0x45a   :  { %v17876_v3 = vpack.c.b16 %v3468_v50, %v3465_v18  ;;  %v17878_v37 = vpack.c.b16 %v3469_v8, %v3466_v20  ;;  %v2821_v18 = vadd.f32 %v2820_v61, %v17694_v9  ;;  %v21790_v20 = vld [vmem:[#allocation18_spill] sm:$0xff]  ;;  %v17896_v40 = vsel %vm3576_vm9, %v4238_v19, %v4236_v15  ;;  %v21793_v50 = vld [vmem:[#allocation35_spill] sm:$0xff]  ;;  %v11578_v45 = vld [vmem:[%s21324_s3 + $0x338] sm:$0xf] }
 0x45b   :  { %2945 = vmatmul.bf16.gmra.mxu1 %v21790_v20  ;;  %21791 = vst [vmem:[#allocation69_spill] sm:$0xff] %v17896_v40  ;;  %v3304_v49 = vmax.f32 %v2888_v2, 0.0  ;;  %3014 = vmatmul.bf16.gmra.mxu3 %v21793_v50  ;;  %v21458_v9 = vrot.slane %v17594_v22, 1  ;;  %v2907_v8 = vadd.f32 %v2906_v6, %v17627_v42  ;;  %v14141_v19 = vld [vmem:[%s21324_s3 + $0x340] sm:$0xf0]  ;;  %v4423_v2 = vrot.slane %v17709_v11, 3 }
 0x45c   :  { %21788 = vst [vmem:[#allocation67_spill] sm:$0xff] %v17876_v3  ;;  %3172 = vmatpush.bf16.msra.mxu1 %v11591_v21  ;;  %v11579_v28 = vor.u32 %v14141_v19, %v11578_v45  ;;  %v14164_v6 = vld [vmem:[%s21326_s5 + $0x50] sm:$0xff]  ;;  %v4379_v21 = vshrl.u32 %v4309_v4, 16  ;;  %v11566_v50 = vld [vmem:[%s21324_s3 + $0x320] sm:$0xf]  ;;  %v14163_v19 = vld [vmem:[%s21326_s5 + $0x48] sm:$0xff] }
 0x45d   :  { %v17905_v35 = vpack.c.bf16 %v3304_v49, %v3303_v57  ;;  %v2975_v61 = vpop.f32.mrf.mxu3  ;;  %9904 = vmatpush.bf16.msrb.mxu3 %v14181_v44  ;;  %v14180_v20 = vld [vmem:[%s21326_s5 + $0xd0] sm:$0xff]  ;;  %v4589_v43 = vshll.u32 %v21458_v9, 16  ;;  %9879 = vmatpush.bf16.msra.mxu0 %v14164_v6  ;;  %v14138_v44 = vld [vmem:[%s21324_s3 + $0x328] sm:$0xf0]  ;;  %v21795_v6 = vrot.slane %v17594_v22, 7 }
 0x45e   :  { %v17917_v29 = vadd.f32 %v2975_v61, %v2907_v8  ;;  %v2908_v7 = vpop.f32.mrf.mxu1  ;;  %v4500_v8 = vshrl.u32 %v4423_v2, 16  ;;  %v11567_v4 = vor.u32 %v14138_v44, %v11566_v50  ;;  %v21796_v9 = vld [vmem:[#allocation36_spill] sm:$0xff] }
 0x45f   :  { %v2889_v15 = vpop.f32.mrf.mxu2 }
 0x460   :  { %3173 = vmatpush.bf16.msra.mxu1 %v11579_v28  ;;  %v2890_v57 = vadd.f32 %v2889_v15, %v2821_v18  ;;  %v3039_v49 = vpop.f32.mrf.mxu0  ;;  %v21794_v18 = vld [vmem:[#allocation76_spill] sm:$0xff]  ;;  %v4377_v15 = vsel %vm3573_vm8, %v21795_v6, %v17526_v41  ;;  %v4591_v41 = vsel %vm3573_vm8, %v4589_v43, %v17590_v34  ;;  %v17963_v44 = vsel %vm3576_vm9, %v4500_v8, %v4498_v32 }
 0x461   :  { %v3040_v45 = vadd.f32 %v3039_v49, %v17779_v36  ;;  %9905 = vmatpush.bf16.msrb.mxu3 %v14180_v20  ;;  %v3306_v61 = vmax.f32 %v21794_v18, 0.0  ;;  %v14179_v36 = vld [vmem:[%s21326_s5 + $0xc8] sm:$0xff]  ;;  %v17948_v20 = vsel %vm3576_vm9, %v4379_v21, %v4377_v15  ;;  %v2909_v49 = vadd.f32 %v2908_v7, %v17627_v42  ;;  %9880 = vmatpush.bf16.msra.mxu0 %v14163_v19  ;;  %v14135_v21 = vld [vmem:[%s21324_s3 + $0x310] sm:$0xf0]  ;;  %v14178_v15 = vld [vmem:[%s21326_s5 + $0xc0] sm:$0xff] }
 0x462   :  { %v3307_v28 = vmax.f32 %v2890_v57, 0.0  ;;  %21797 = vst [vmem:[#allocation71_spill] sm:$0xff] %v17948_v20  ;;  %v4422_v57 = vsel %vm3573_vm8, %v4420_v46, %v17540_v53  ;;  %v3471_v53 = vunpack.c.l.b16 %v17905_v35  ;;  %v14162_v46 = vld [vmem:[%s21326_s5 + $0x40] sm:$0xff]  ;;  %v3472_v19 = vunpack.c.h.b16 %v17905_v35  ;;  %v21821_v20 = vld [vmem:[#allocation40_spill] sm:$0xff] }
 0x463   :  { %3078 = vmatmul.bf16.gmra.mxu0 %v21796_v9  ;;  %v11554_v9 = vld [vmem:[%s21324_s3 + $0x308] sm:$0xf]  ;;  %21799 = vst [vmem:[#allocation30_spill] sm:$0xff] %v17963_v44  ;;  %v17970_v43 = vsel %vm3576_vm9, %v4423_v2, %v4422_v57 }
 0x464   :  { %3174 = vmatpush.bf16.msra.mxu1 %v11567_v4  ;;  %v3355_v50 = vpack.c.bf16 %v3307_v28, %v3306_v61  ;;  %3147 = vmatmul.bf16.gmra.mxu2 %v21798_v0  ;;  %v11555_v7 = vor.u32 %v14135_v21, %v11554_v9  ;;  %21800 = vst [vmem:[#allocation41_spill] sm:$0xff] %v17970_v43  ;;  %v4592_v4 = vrot.slane %v17711_v27, 4  ;;  %v14193_v28 = vld [vmem:[%s21326_s5 + $0x138] sm:$0xff]  ;;  %v21803_v0 = vld [vmem:[#allocation20_spill] sm:$0xff]  ;;  %v21804_v21 = vld [vmem:[#allocation2_spill] sm:$0xff] }
 0x465   :  { %v2977_v34 = vpop.f32.mrf.mxu3  ;;  %9906 = vmatpush.bf16.msrb.mxu3 %v14179_v36  ;;  %9881 = vmatpush.bf16.msra.mxu0 %v14162_v46 }
 0x466   :  { %v3474_v18 = vunpack.c.l.b16 %v3355_v50  ;;  %v3475_v61 = vunpack.c.h.b16 %v3355_v50  ;;  %v2978_v32 = vadd.f32 %v2977_v34, %v2909_v49  ;;  %v2911_v8 = vpop.f32.mrf.mxu1  ;;  %v17981_v2 = vsel %vm3576_vm9, %v4592_v4, %v4591_v41 }
 0x467   :  { %v3108_v6 = vpop.f32.mrf.mxu2  ;;  %21801 = vst [vmem:[#allocation13_spill] sm:$0xff] %v17981_v2  ;;  %v4661_v50 = vshrl.u32 %v4592_v4, 16  ;;  %v21805_v41 = vrot.slane %v17594_v22, 1  ;;  %v21460_v4 = vrot.slane %v17876_v3, 4 }
 0x468   :  { %3175 = vmatpush.bf16.msra.mxu1 %v11555_v7  ;;  %v17983_v36 = vpack.c.b16 %v3474_v18, %v3471_v53  ;;  %v17985_v35 = vpack.c.b16 %v3475_v61, %v3472_v19  ;;  %v17987_v57 = vadd.f32 %v3108_v6, %v3040_v45  ;;  %v3041_v49 = vpop.f32.mrf.mxu0  ;;  %v14192_v45 = vld [vmem:[%s21326_s5 + $0x130] sm:$0xff]  ;;  %v2912_v7 = vadd.f32 %v2911_v8, %v17627_v42  ;;  %v14191_v61 = vld [vmem:[%s21326_s5 + $0x128] sm:$0xff] }
 0x469   :  { %v17991_v9 = vadd.f32 %v3041_v49, %v17862_v63  ;;  %9913 = vmatpush.bf16.msrb.mxu0 %v14193_v28  ;;  %v4659_v53 = vsel %vm3573_vm8, %v21805_v41, %v17602_v48  ;;  %9907 = vmatpush.bf16.msrb.mxu3 %v14178_v15  ;;  %v4077_v63 = vshrl.u32 %v17709_v11, 16  ;;  %v14190_v41 = vld [vmem:[%s21326_s5 + $0x120] sm:$0xff] }
 0x46a   :  { %21802 = vst [vmem:[#allocation27_spill] sm:$0xff] %v17985_v35  ;;  %v18002_v34 = vsel %vm3576_vm9, %v4661_v50, %v4659_v53  ;;  %v21459_v28 = vrot.slane %v17985_v35, 5  ;;  %v21808_v50 = vrot.slane %v17711_v27, 1  ;;  %v21810_v53 = vld [vmem:[#allocation53_spill] sm:$0xff] }
 0x46b   :  { %2950 = vmatmul.bf16.gmra.mxu1 %v21803_v0  ;;  %3019 = vmatmul.bf16.gmra.mxu3 %v21804_v21  ;;  %21806 = vst [vmem:[#allocation32_spill] sm:$0xff] %v18002_v34  ;;  %v4079_v8 = vsel %vm3576_vm9, %v4077_v63, %v17607_v12  ;;  %v21809_v21 = vld [vmem:[#allocation6_spill] sm:$0xff]  ;;  %v21819_v34 = vld [vmem:[#allocation7_spill] sm:$0xff] }
 0x46c   :  { %v18019_v49 = vsel %vm3582_vm10, %v21460_v4, %v4079_v8  ;;  %v4169_v0 = vsel %vm3576_vm9, %v21808_v50, %v17691_v1  ;;  %v4172_v12 = vshll.u32 %v21459_v28, 16  ;;  %v21812_v50 = vld [vmem:[#allocation23_spill] sm:$0xff]  ;;  %v21818_v28 = vld [vmem:[#allocation80_spill] sm:$0xff] }
 0x46d   :  { %v2980_v46 = vpop.f32.mrf.mxu3  ;;  %9914 = vmatpush.bf16.msrb.mxu0 %v14192_v45  ;;  %21807 = vst [vmem:[#allocation43_spill] sm:$0xff] %v18019_v49  ;;  %v21820_v43 = vrot.slane %v21818_v28, 3 }
 0x46e   :  { %v2981_v19 = vadd.f32 %v2980_v46, %v2912_v7  ;;  %v2913_v18 = vpop.f32.mrf.mxu1  ;;  %v18034_v7 = vsel %vm3582_vm10, %v4172_v12, %v4169_v0  ;;  %v14188_v0 = vld [vmem:[%s21326_s5 + $0x110] sm:$0xff] }
 0x46f   :  { %v18007_v48 = vpop.f32.mrf.mxu2  ;;  %21811 = vst [vmem:[#allocation14_spill] sm:$0xff] %v18034_v7  ;;  %v5190_v44 = vshrl.u32 %v21820_v43, 16 }
 0x470   :  { %v3044_v6 = vpop.f32.mrf.mxu0 }
 0x471   :  { %v3045_v15 = vadd.f32 %v3044_v6, %v17917_v29  ;;  %9915 = vmatpush.bf16.msrb.mxu0 %v14191_v61  ;;  %v2914_v29 = vadd.f32 %v2913_v18, %v17627_v42  ;;  %v14189_v61 = vld [vmem:[%s21326_s5 + $0x118] sm:$0xff]  ;;  %v5192_v40 = vsel %vm3549_vm3, %v5190_v44, 0  ;;  %v14207_v44 = vld [vmem:[%s21326_s5 + $0x1a8] sm:$0xff] }
 0x473   :  { %3083 = vmatmul.bf16.gmra.mxu0 %v21809_v21  ;;  %v21813_v21 = vld [vmem:[#allocation3_spill] sm:$0xff] }
 0x474   :  { %3152 = vmatmul.bf16.gmra.mxu2 %v21810_v53 }
 0x475   :  { %v2982_v45 = vpop.f32.mrf.mxu3  ;;  %9916 = vmatpush.bf16.msrb.mxu0 %v14190_v41 }
 0x476   :  { %v2983_v63 = vadd.f32 %v2982_v45, %v2914_v29 }
 0x477   :  { %v2916_v1 = vpop.f32.mrf.mxu1  ;;  %v3113_v46 = vpop.f32.mrf.mxu2 }
 0x478   :  { %v18039_v6 = vadd.f32 %v3113_v46, %v3045_v15  ;;  %v3046_v8 = vpop.f32.mrf.mxu0  ;;  %v2917_v41 = vadd.f32 %v2916_v1, %v17627_v42  ;;  %v14186_v1 = vld [vmem:[%s21326_s5 + $0x100] sm:$0xff] }
 0x479   :  { %v18042_v18 = vadd.f32 %v3046_v8, %v2978_v32  ;;  %9917 = vmatpush.bf16.msrb.mxu0 %v14189_v61  ;;  %v14187_v32 = vld [vmem:[%s21326_s5 + $0x108] sm:$0xff]  ;;  %v3578_v61 = vrot.slane %v17876_v3, 1  ;;  %v21814_v8 = vld [vmem:[#allocation82_spill] sm:$0xff] }
 0x47b   :  { %2955 = vmatmul.bf16.gmra.mxu1 %v21812_v50  ;;  %3024 = vmatmul.bf16.gmra.mxu3 %v21813_v21  ;;  %v21463_v50 = vrot.slane %v21814_v8, 6  ;;  %v21815_v21 = vld [vmem:[#allocation37_spill] sm:$0xff] }
 0x47d   :  { %v2985_v12 = vpop.f32.mrf.mxu3  ;;  %9918 = vmatpush.bf16.msrb.mxu0 %v14188_v0  ;;  %v21816_v0 = vld [vmem:[#allocation81_spill] sm:$0xff] }
 0x47e   :  { %v2986_v29 = vadd.f32 %v2985_v12, %v2917_v41  ;;  %v21464_v41 = vrot.slane %v21816_v0, 2  ;;  %v21817_v12 = vld [vmem:[#allocation55_spill] sm:$0xff] }
 0x47f   :  { %v18049_v53 = vpop.f32.mrf.mxu1  ;;  %v18051_v15 = vpop.f32.mrf.mxu2 }
 0x480   :  { %v3049_v45 = vpop.f32.mrf.mxu0 }
 0x481   :  { %v3050_v46 = vadd.f32 %v3049_v45, %v2981_v19  ;;  %9919 = vmatpush.bf16.msrb.mxu0 %v14187_v32  ;;  %v3580_v19 = vshll.u32 %v3578_v61, 16  ;;  %v4998_v32 = vshll.u32 %v21463_v50, 16 }
 0x483   :  { %3088 = vmatmul.bf16.gmra.mxu0 %v21815_v21  ;;  %v14209_v21 = vld [vmem:[%s21326_s5 + $0x1b8] sm:$0xff]  ;;  %v3583_v2 = vsel %vm3582_vm10, %v3580_v19, %v17761_v55 }
 0x484   :  { %3157 = vmatmul.bf16.gmra.mxu2 %v21817_v12  ;;  %v4995_v12 = vsel %vm3549_vm3, %v21464_v41, 0 }
 0x485   :  { %v18065_v7 = vpop.f32.mrf.mxu3  ;;  %9920 = vmatpush.bf16.msrb.mxu0 %v14186_v1  ;;  %v5000_v1 = vsel %vm3555_vm4, %v4998_v32, %v4995_v12 }
 0x487   :  { %v2921_v45 = vpop.f32.mrf.mxu1  ;;  %v3118_v49 = vpop.f32.mrf.mxu2 }
 0x488   :  { %v18076_v4 = vadd.f32 %v3118_v49, %v3050_v46  ;;  %v3051_v27 = vpop.f32.mrf.mxu0  ;;  %v14208_v49 = vld [vmem:[%s21326_s5 + $0x1b0] sm:$0xff]  ;;  %v21822_v46 = vrot.slane %v21819_v34, 7  ;;  %v21828_v34 = vrot.slane %v17254_v33, 2 }
 0x489   :  { %v18081_v50 = vadd.f32 %v3051_v27, %v2983_v63  ;;  %v2922_v27 = vadd.f32 %v2921_v45, %v17627_v42  ;;  %v21824_v45 = vld [vmem:[#allocation57_spill] sm:$0xff] }
 0x48a   :  { %v5193_v43 = vsel %vm3555_vm4, %v21822_v46, %v5192_v40  ;;  %v14206_v40 = vld [vmem:[%s21326_s5 + $0x1a0] sm:$0xff]  ;;  %v5195_v10 = vshrl.u32 %v21828_v34, 16 }
 0x48b   :  { %11652 = vmatmul.msk.bf16.vlgmr.msra.gmra.mxu1 %vm2165_vm2, %v21821_v20  ;;  %9869 = vmatmul.bf16.vlgmr.msra.gmra.mxu3 %v3583_v2 }
 0x48c   :  { %9939 = vmatpush.bf16.msra.mxu3 %v14209_v21  ;;  %v21823_v21 = vld [vmem:[#allocation39_spill] sm:$0xff] }
 0x48d   :  { %v2990_v63 = vpop.f32.mrf.mxu3 }
 0x48e   :  { %v2991_v32 = vadd.f32 %v2990_v63, %v2922_v27  ;;  %v14205_v27 = vld [vmem:[%s21326_s5 + $0x198] sm:$0xff] }
 0x48f   :  { %v18095_v20 = vpop.f32.mrf.mxu1  ;;  %v18097_v55 = vpop.f32.mrf.mxu2 }
 0x490   :  { %9940 = vmatpush.bf16.msra.mxu3 %v14208_v49  ;;  %v3054_v2 = vpop.f32.mrf.mxu0 }
 0x491   :  { %v3055_v19 = vadd.f32 %v3054_v2, %v2986_v29  ;;  %v21825_v2 = vld [vmem:[#allocation42_spill] sm:$0xff] }
 0x493   :  { %3093 = vmatmul.bf16.gmra.mxu0 %v21823_v21  ;;  %v3657_v21 = vsel %vm3582_vm10, %v3578_v61, %v17783_v58 }
 0x494   :  { %9941 = vmatpush.bf16.msra.mxu3 %v14207_v44  ;;  %3162 = vmatmul.bf16.gmra.mxu2 %v21824_v45  ;;  %v21466_v44 = vrot.slane %v21814_v8, 4  ;;  %v14204_v45 = vld [vmem:[%s21326_s5 + $0x190] sm:$0xff]  ;;  %v21827_v8 = vrot.slane %v17256_v5, 1 }
 0x495   :  { %v18107_v12 = vpop.f32.mrf.mxu3 }
 0x496   :  { %v5002_v11 = vsel %vm3558_vm5, %v21827_v8, %v5000_v1  ;;  %v14216_v8 = vld [vmem:[%s21326_s5 + $0x1f0] sm:$0xff] }
 0x497   :  { %v2926_v49 = vpop.f32.mrf.mxu1  ;;  %v3123_v46 = vpop.f32.mrf.mxu2 }
 0x498   :  { %9942 = vmatpush.bf16.msra.mxu3 %v14206_v40  ;;  %v18112_v63 = vadd.f32 %v3123_v46, %v3055_v19  ;;  %v18114_v29 = vpop.f32.mrf.mxu0  ;;  %v21467_v40 = vrot.slane %v17878_v37, 1  ;;  %v2927_v19 = vadd.f32 %v2926_v49, %v17627_v42  ;;  %v4715_v46 = vshll.u32 %v21466_v44, 16  ;;  %v14203_v49 = vld [vmem:[%s21326_s5 + $0x188] sm:$0xff] }
 0x499   :  { %v4712_v44 = vsel %vm3549_vm3, %v21816_v0, 0 }
 0x49a   :  { %v3608_v61 = vshll.u32 %v21467_v40, 16 }
 0x49b   :  { %11653 = vmatmul.msk.bf16.gmra.mxu1 %vm2165_vm2, %v21825_v2  ;;  %9908 = vmatmul.bf16.vlgmr.msrb.gmra.mxu3 %v3657_v21 }
 0x49c   :  { %9943 = vmatpush.bf16.msra.mxu3 %v14205_v27  ;;  %v21473_v27 = vrot.slane %v17876_v3, 2  ;;  %v3610_v0 = vsel %vm3582_vm10, %v3608_v61, %v17765_v16  ;;  %v5197_v16 = vsel %vm3558_vm5, %v5195_v10, %v5193_v43  ;;  %v14215_v10 = vld [vmem:[%s21326_s5 + $0x1e8] sm:$0xff]  ;;  %v21829_v43 = vld [vmem:[#allocation44_spill] sm:$0xff] }
 0x49d   :  { %v2995_v41 = vpop.f32.mrf.mxu3 }
 0x49e   :  { %v2996_v59 = vadd.f32 %v2995_v41, %v2927_v19  ;;  %v14217_v41 = vld [vmem:[%s21326_s5 + $0x1f8] sm:$0xff]  ;;  %v4717_v19 = vsel %vm3555_vm4, %v4715_v46, %v4712_v44  ;;  %v3722_v34 = vshll.u32 %v21473_v27, 16 }
 0x49f   :  { %v18130_v58 = vpop.f32.mrf.mxu1  ;;  %v18135_v21 = vpop.f32.mrf.mxu2 }
 0x4a0   :  { %9944 = vmatpush.bf16.msra.mxu3 %v14204_v45  ;;  %v3059_v28 = vpop.f32.mrf.mxu0  ;;  %v21826_v45 = vrot.slane %v17256_v5, 7 }
 0x4a1   :  { %v3060_v40 = vadd.f32 %v3059_v28, %v2991_v32  ;;  %v14202_v28 = vld [vmem:[%s21326_s5 + $0x180] sm:$0xff]  ;;  %v14233_v32 = vld [vmem:[%s21326_s5 + $0x278] sm:$0xff] }
 0x4a2   :  { %v4719_v2 = vsel %vm3558_vm5, %v21826_v45, %v4717_v19  ;;  %v14231_v19 = vld [vmem:[%s21326_s5 + $0x268] sm:$0xff]  ;;  %v14214_v45 = vld [vmem:[%s21326_s5 + $0x1e0] sm:$0xff] }
 0x4a3   :  { %9882 = vmatmul.bf16.vlgmr.msra.gmra.mxu0 %v3610_v0 }
 0x4a4   :  { %9945 = vmatpush.bf16.msra.mxu3 %v14203_v49  ;;  %9952 = vmatpush.bf16.msra.mxu0 %v14217_v41  ;;  %v14232_v49 = vld [vmem:[%s21326_s5 + $0x270] sm:$0xff]  ;;  %v3724_v41 = vsel %vm3582_vm10, %v3722_v34, %v17772_v31  ;;  %v21477_v31 = vrot.slane %v17309_v26, 6  ;;  %v21476_v34 = vrot.slane %v17311_v14, 5 }
 0x4a5   :  { %v18167_v1 = vpop.f32.mrf.mxu3 }
 0x4a7   :  { %v2931_v0 = vpop.f32.mrf.mxu1  ;;  %v3128_v44 = vpop.f32.mrf.mxu2 }
 0x4a8   :  { %9946 = vmatpush.bf16.msra.mxu3 %v14202_v28  ;;  %v18171_v46 = vadd.f32 %v3128_v44, %v3060_v40  ;;  %9953 = vmatpush.bf16.msra.mxu0 %v14216_v8  ;;  %v18173_v61 = vpop.f32.mrf.mxu0  ;;  %v2932_v40 = vadd.f32 %v2931_v0, %v17627_v42 }
 0x4ab   :  { %11654 = vmatmul.msk.bf16.gmra.mxu1 %vm2165_vm2, %v21829_v43  ;;  %9947 = vmatmul.bf16.vlgmr.msra.gmra.mxu3 %v3724_v41  ;;  %v14213_v43 = vld [vmem:[%s21326_s5 + $0x1d8] sm:$0xff] }
 0x4ac   :  { %9978 = vmatpush.bf16.msrb.mxu3 %v14233_v32  ;;  %9954 = vmatpush.bf16.msra.mxu0 %v14215_v10  ;;  %v21478_v32 = vrot.slane %v17311_v14, 3  ;;  %v14230_v10 = vld [vmem:[%s21326_s5 + $0x260] sm:$0xff] }
 0x4ad   :  { %v3000_v28 = vpop.f32.mrf.mxu3 }
 0x4ae   :  { %v3001_v8 = vadd.f32 %v3000_v28, %v2932_v40  ;;  %v4722_v40 = vshll.u32 %v21478_v32, 16  ;;  %v21830_v28 = vrot.slane %v17878_v37, 1  ;;  %v14226_v32 = vld [vmem:[%s21326_s5 + $0x240] sm:$0xff] }
 0x4af   :  { %v18193_v44 = vpop.f32.mrf.mxu1  ;;  %v18197_v0 = vpop.f32.mrf.mxu2 }
 0x4b0   :  { %9979 = vmatpush.bf16.msrb.mxu3 %v14232_v49  ;;  %9955 = vmatpush.bf16.msra.mxu0 %v14214_v45  ;;  %v3064_v49 = vpop.f32.mrf.mxu0  ;;  %v3677_v27 = vsel %vm3582_vm10, %v21830_v28, %v17793_v62  ;;  %v18216_v45 = vsel %vm3564_vm6, %v21477_v31, %v5197_v16  ;;  %v18219_v5 = vsel %vm3564_vm6, %v4722_v40, %v4719_v2  ;;  %v14212_v62 = vld [vmem:[%s21326_s5 + $0x1d0] sm:$0xff]  ;;  %v14211_v40 = vld [vmem:[%s21326_s5 + $0x1c8] sm:$0xff] }
 0x4b1   :  { %v3065_v41 = vadd.f32 %v3064_v49, %v2996_v59  ;;  %v14229_v59 = vld [vmem:[%s21326_s5 + $0x258] sm:$0xff] }
 0x4b3   :  { %9921 = vmatmul.bf16.vlgmr.msrb.gmra.mxu0 %v3677_v27 }
 0x4b4   :  { %9980 = vmatpush.bf16.msrb.mxu3 %v14231_v19  ;;  %v5005_v19 = vshll.u32 %v21476_v34, 16  ;;  %9956 = vmatpush.bf16.msra.mxu0 %v14213_v43  ;;  %v14228_v43 = vld [vmem:[%s21326_s5 + $0x250] sm:$0xff]  ;;  %v14241_v34 = vld [vmem:[%s21326_s5 + $0x2b8] sm:$0xff] }
 0x4b5   :  { %v18230_v28 = vpop.f32.mrf.mxu3 }
 0x4b6   :  { %v18228_v49 = vsel %vm3564_vm6, %v5005_v19, %v5002_v11  ;;  %v21831_v11 = vld [vmem:[#allocation46_spill] sm:$0xff]  ;;  %v21481_v19 = vrot.slane %v17878_v37, 2 }
 0x4b7   :  { %v2936_v16 = vpop.f32.mrf.mxu1  ;;  %v3133_v27 = vpop.f32.mrf.mxu2 }
 0x4b8   :  { %9981 = vmatpush.bf16.msrb.mxu3 %v14230_v10  ;;  %v18232_v2 = vadd.f32 %v3133_v27, %v3065_v41  ;;  %9957 = vmatpush.bf16.msra.mxu0 %v14212_v62  ;;  %v18234_v10 = vpop.f32.mrf.mxu0  ;;  %v14227_v41 = vld [vmem:[%s21326_s5 + $0x248] sm:$0xff]  ;;  %v14210_v62 = vld [vmem:[%s21326_s5 + $0x1c0] sm:$0xff] }
 0x4bb   :  { %11655 = vmatmul.msk.bf16.gmra.mxu1 %vm2165_vm2, %v21831_v11 }
 0x4bc   :  { %9982 = vmatpush.bf16.msrb.mxu3 %v14229_v59  ;;  %v2937_v59 = vadd.f32 %v2936_v16, %v17627_v42  ;;  %9958 = vmatpush.bf16.msra.mxu0 %v14211_v40  ;;  %v3749_v16 = vshll.u32 %v21481_v19, 16 }
 0x4bd   :  { %v3005_v27 = vpop.f32.mrf.mxu3 }
 0x4be   :  { %v3006_v11 = vadd.f32 %v3005_v27, %v2937_v59  ;;  %v14257_v59 = vld [vmem:[%s21326_s5 + $0x338] sm:$0xff]  ;;  %v14240_v27 = vld [vmem:[%s21326_s5 + $0x2b0] sm:$0xff]  ;;  %v3751_v19 = vsel %vm3582_vm10, %v3749_v16, %v17776_v30  ;;  %v14239_v30 = vld [vmem:[%s21326_s5 + $0x2a8] sm:$0xff] }
 0x4bf   :  { %v18255_v31 = vpop.f32.mrf.mxu1 }
 0x4c0   :  { %9983 = vmatpush.bf16.msrb.mxu3 %v14228_v43  ;;  %v18259_v43 = vpop.f32.mrf.mxu2  ;;  %9959 = vmatpush.bf16.msra.mxu0 %v14210_v62  ;;  %v3069_v40 = vpop.f32.mrf.mxu0 }
 0x4c1   :  { %v3070_v33 = vadd.f32 %v3069_v40, %v3001_v8  ;;  %v14256_v8 = vld [vmem:[%s21326_s5 + $0x330] sm:$0xff] }
 0x4c3   :  { %9960 = vmatmul.bf16.vlgmr.msra.gmra.mxu0 %v3751_v19 }
 0x4c4   :  { %9984 = vmatpush.bf16.msrb.mxu3 %v14227_v41  ;;  %9991 = vmatpush.bf16.msrb.mxu0 %v14241_v34  ;;  %v21833_v34 = vrot.slane %v17876_v3, 2 }
 0x4c5   :  { %v18272_v41 = vpop.f32.mrf.mxu3 }
 0x4c6   :  { %21832 = vst [vmem:[#allocation62_spill] sm:$0xff] %v18272_v41  ;;  %v3798_v62 = vsel %vm3582_vm10, %v21833_v34, %v17813_v17  ;;  %v14238_v17 = vld [vmem:[%s21326_s5 + $0x2a0] sm:$0xff]  ;;  %v21844_v41 = vrot.slane %v17592_v54, 5 }
 0x4c7   :  { %v2941_v40 = vpop.f32.mrf.mxu1 }
 0x4c8   :  { %9985 = vmatpush.bf16.msrb.mxu3 %v14226_v32  ;;  %9992 = vmatpush.bf16.msrb.mxu0 %v14240_v27  ;;  %v3138_v32 = vpop.f32.mrf.mxu2  ;;  %v18286_v16 = vpop.f32.mrf.mxu0  ;;  %v14255_v27 = vld [vmem:[%s21326_s5 + $0x328] sm:$0xff]  ;;  %v2942_v34 = vadd.f32 %v2941_v40, %v17627_v42 }
 0x4c9   :  { %v18284_v19 = vadd.f32 %v3138_v32, %v3070_v33  ;;  %v21486_v32 = vrot.slane %v17528_v39, 1 }
 0x4cb   :  { %9986 = vmatmul.bf16.vlgmr.msrb.gmra.mxu3 %v3798_v62  ;;  %v21487_v62 = vrot.slane %v17530_v47, 6 }
 0x4cc   :  { %10017 = vmatpush.bf16.msra.mxu3 %v14257_v59  ;;  %v21834_v59 = vld [vmem:[#allocation48_spill] sm:$0xff]  ;;  %9993 = vmatpush.bf16.msrb.mxu0 %v14239_v30  ;;  %v14237_v30 = vld [vmem:[%s21326_s5 + $0x298] sm:$0xff] }
 0x4cd   :  { %11656 = vmatmul.msk.bf16.gmra.mxu1 %vm2165_vm2, %v21834_v59  ;;  %v3010_v33 = vpop.f32.mrf.mxu3 }
 0x4ce   :  { %v3011_v59 = vadd.f32 %v3010_v33, %v2942_v34  ;;  %v4726_v34 = vsel %vm3567_vm7, %v21487_v62, %v18219_v5  ;;  %v14236_v33 = vld [vmem:[%s21326_s5 + $0x290] sm:$0xff]  ;;  %v21839_v62 = vld [vmem:[#allocation50_spill] sm:$0xff] }
 0x4cf   :  { %v18302_v14 = vpop.f32.mrf.mxu1 }
 0x4d0   :  { %10018 = vmatpush.bf16.msra.mxu3 %v14256_v8  ;;  %v14254_v8 = vld [vmem:[%s21326_s5 + $0x320] sm:$0xff]  ;;  %9994 = vmatpush.bf16.msrb.mxu0 %v14238_v17  ;;  %21835 = vst [vmem:[#allocation29_spill] sm:$0xff] %v18302_v14  ;;  %v3074_v26 = vpop.f32.mrf.mxu0  ;;  %v5200_v17 = vshrl.u32 %v21486_v32, 16  ;;  %v14281_v14 = vld [vmem:[%s21326_s5 + $0x3f8] sm:$0xff] }
 0x4d1   :  { %v18307_v40 = vadd.f32 %v3074_v26, %v3006_v11 }
 0x4d2   :  { %v5202_v26 = vsel %vm3567_vm7, %v5200_v17, %v18216_v45  ;;  %v14251_v45 = vld [vmem:[%s21326_s5 + $0x308] sm:$0xff]  ;;  %v14265_v17 = vld [vmem:[%s21326_s5 + $0x378] sm:$0xff] }
 0x4d3   :  { %21836 = vst [vmem:[#allocation73_spill] sm:$0xff] %v18307_v40 }
 0x4d4   :  { %10019 = vmatpush.bf16.msra.mxu3 %v14255_v27  ;;  %v14253_v27 = vld [vmem:[%s21326_s5 + $0x318] sm:$0xff]  ;;  %9995 = vmatpush.bf16.msrb.mxu0 %v14237_v30  ;;  %v14235_v30 = vld [vmem:[%s21326_s5 + $0x288] sm:$0xff] }
 0x4d5   :  { %v18323_v11 = vpop.f32.mrf.mxu3 }
 0x4d6   :  { %21837 = vst [vmem:[#allocation64_spill] sm:$0xff] %v18323_v11 }
 0x4d8   :  { %10020 = vmatpush.bf16.msra.mxu3 %v14254_v8  ;;  %v14252_v8 = vld [vmem:[%s21326_s5 + $0x310] sm:$0xff]  ;;  %9996 = vmatpush.bf16.msrb.mxu0 %v14236_v33  ;;  %v2946_v5 = vpop.f32.mrf.mxu1  ;;  %v18331_v32 = vpop.f32.mrf.mxu0  ;;  %v21843_v33 = vrot.slane %v17594_v22, 2 }
 0x4d9   :  { %21838 = vst [vmem:[#allocation75_spill] sm:$0xff] %v18331_v32 }
 0x4dc   :  { %10021 = vmatpush.bf16.msra.mxu3 %v14253_v27  ;;  %9997 = vmatpush.bf16.msrb.mxu0 %v14235_v30  ;;  %v14234_v27 = vld [vmem:[%s21326_s5 + $0x280] sm:$0xff]  ;;  %v14264_v30 = vld [vmem:[%s21326_s5 + $0x370] sm:$0xff] }
 0x4dd   :  { %11657 = vmatmul.msk.bf16.gmra.mxu1 %vm2165_vm2, %v21839_v62  ;;  %v14250_v62 = vld [vmem:[%s21326_s5 + $0x300] sm:$0xff] }
 0x4de   :  { %v3015_v39 = vpop.f32.mrf.mxu3 }
 0x4e0   :  { %10022 = vmatpush.bf16.msra.mxu3 %v14252_v8  ;;  %v2947_v8 = vadd.f32 %v2946_v5, %v17627_v42  ;;  %9998 = vmatpush.bf16.msrb.mxu0 %v14234_v27  ;;  %v18350_v11 = vpop.f32.mrf.mxu1  ;;  %v21490_v5 = vrot.slane %v17594_v22, 4  ;;  %v21498_v22 = vrot.slane %v17878_v37, 7 }
 0x4e1   :  { %21840 = vst [vmem:[#allocation34_spill] sm:$0xff] %v18350_v11 }
 0x4e2   :  { %v3016_v38 = vadd.f32 %v3015_v39, %v2947_v8  ;;  %v21842_v39 = vrot.slane %v17878_v37, 2  ;;  %v3079_v8 = vpop.f32.mrf.mxu0  ;;  %v5011_v32 = vshll.u32 %v21490_v5, 16 }
 0x4e3   :  { %v18366_v11 = vadd.f32 %v3079_v8, %v3011_v59 }
 0x4e4   :  { %10023 = vmatpush.bf16.msra.mxu3 %v14251_v45  ;;  %10030 = vmatpush.bf16.msra.mxu0 %v14265_v17  ;;  %v21841_v45 = vrot.slane %v17876_v3, 3  ;;  %v3818_v27 = vsel %vm3582_vm10, %v21842_v39, %v17817_v25  ;;  %v4729_v17 = vshll.u32 %v21843_v33, 16  ;;  %v18378_v25 = vsel %vm3573_vm8, %v21844_v41, %v5202_v26 }
 0x4e5   :  { %9999 = vmatmul.bf16.vlgmr.msrb.gmra.mxu0 %v3818_v27 }
 0x4e6   :  { %v3863_v40 = vshll.u32 %v21841_v45, 16  ;;  %v14280_v45 = vld [vmem:[%s21326_s5 + $0x3f0] sm:$0xff]  ;;  %v18386_v33 = vsel %vm3573_vm8, %v4729_v17, %v4726_v34  ;;  %v18394_v41 = vpop.f32.mrf.mxu3  ;;  %v14262_v34 = vld [vmem:[%s21326_s5 + $0x360] sm:$0xff] }
 0x4e8   :  { %10024 = vmatpush.bf16.msra.mxu3 %v14250_v62  ;;  %v3865_v59 = vsel %vm3582_vm10, %v3863_v40, %v17802_v52  ;;  %10031 = vmatpush.bf16.msra.mxu0 %v14264_v30  ;;  %v5008_v62 = vsel %vm3567_vm7, %v17530_v47, %v18228_v49  ;;  %v2951_v52 = vpop.f32.mrf.mxu1  ;;  %v14279_v40 = vld [vmem:[%s21326_s5 + $0x3e8] sm:$0xff]  ;;  %v21845_v49 = vld [vmem:[#allocation52_spill] sm:$0xff]  ;;  %v14261_v30 = vld [vmem:[%s21326_s5 + $0x358] sm:$0xff] }
 0x4e9   :  { %v18392_v39 = vsel %vm3573_vm8, %v5011_v32, %v5008_v62  ;;  %v14278_v32 = vld [vmem:[%s21326_s5 + $0x3e0] sm:$0xff]  ;;  %v2952_v27 = vadd.f32 %v2951_v52, %v17627_v42  ;;  %v14276_v52 = vld [vmem:[%s21326_s5 + $0x3d0] sm:$0xff] }
 0x4ea   :  { %v18402_v26 = vpop.f32.mrf.mxu0 }
 0x4eb   :  { %10025 = vmatmul.bf16.vlgmr.msra.gmra.mxu3 %v3865_v59  ;;  %v14277_v59 = vld [vmem:[%s21326_s5 + $0x3d8] sm:$0xff] }
 0x4ec   :  { %10056 = vmatpush.bf16.msrb.mxu3 %v14281_v14  ;;  %v14263_v14 = vld [vmem:[%s21326_s5 + $0x368] sm:$0xff] }
 0x4ed   :  { %10032 = vmatpush.bf16.msra.mxu0 %v14263_v14  ;;  %11658 = vmatmul.msk.bf16.gmra.mxu1 %vm2165_vm2, %v21845_v49  ;;  %v14260_v14 = vld [vmem:[%s21326_s5 + $0x350] sm:$0xff] }
 0x4ee   :  { %v3020_v8 = vpop.f32.mrf.mxu3 }
 0x4ef   :  { %v3021_v17 = vadd.f32 %v3020_v8, %v2952_v27  ;;  %v14258_v27 = vld [vmem:[%s21326_s5 + $0x340] sm:$0xff] }
 0x4f0   :  { %10057 = vmatpush.bf16.msrb.mxu3 %v14280_v45  ;;  %v18413_v45 = vpop.f32.mrf.mxu1 }
 0x4f1   :  { %10033 = vmatpush.bf16.msra.mxu0 %v14262_v34  ;;  %v14259_v34 = vld [vmem:[%s21326_s5 + $0x348] sm:$0xff] }
 0x4f2   :  { %v3084_v62 = vpop.f32.mrf.mxu0 }
 0x4f4   :  { %10058 = vmatpush.bf16.msrb.mxu3 %v14279_v40  ;;  %v18421_v40 = vadd.f32 %v3084_v62, %v3016_v38  ;;  %v14275_v38 = vld [vmem:[%s21326_s5 + $0x3c8] sm:$0xff] }
 0x4f5   :  { %10034 = vmatpush.bf16.msra.mxu0 %v14261_v30 }
 0x4f6   :  { %v18429_v49 = vpop.f32.mrf.mxu3 }
 0x4f7   :  { %21846 = vst [vmem:[#allocation45_spill] sm:$0xff] %v18429_v49 }
 0x4f8   :  { %10059 = vmatpush.bf16.msrb.mxu3 %v14278_v32  ;;  %v21493_v32 = vrot.slane %v17878_v37, 3  ;;  %v2956_v30 = vpop.f32.mrf.mxu1 }
 0x4f9   :  { %10035 = vmatpush.bf16.msra.mxu0 %v14260_v14  ;;  %v21847_v14 = vld [vmem:[#allocation54_spill] sm:$0xff]  ;;  %v2957_v5 = vadd.f32 %v2956_v30, %v17627_v42  ;;  %v14305_v30 = vld [vmem:[%s21326_s5 + $0x4b8] sm:$0xff] }
 0x4fa   :  { %v18438_v8 = vpop.f32.mrf.mxu0  ;;  %v3890_v62 = vshll.u32 %v21493_v32, 16  ;;  %v21499_v32 = vrot.slane %v17878_v37, 5  ;;  %10095 = vmatpush.bf16.msrb.mxu1 %v14305_v30 }
 0x4fc   :  { %10060 = vmatpush.bf16.msrb.mxu3 %v14277_v59  ;;  %v14289_v59 = vld [vmem:[%s21326_s5 + $0x438] sm:$0xff] }
 0x4fd   :  { %10036 = vmatpush.bf16.msra.mxu0 %v14259_v34  ;;  %11659 = vmatmul.msk.bf16.gmra.mxu1 %vm2165_vm2, %v21847_v14  ;;  %v14313_v34 = vld [vmem:[%s21326_s5 + $0x4f8] sm:$0xff]  ;;  %v14288_v14 = vld [vmem:[%s21326_s5 + $0x430] sm:$0xff] }
 0x4fe   :  { %v3025_v47 = vpop.f32.mrf.mxu3 }
 0x500   :  { %10061 = vmatpush.bf16.msrb.mxu3 %v14276_v52  ;;  %v14274_v52 = vld [vmem:[%s21326_s5 + $0x3c0] sm:$0xff]  ;;  %v18461_v54 = vpop.f32.mrf.mxu1 }
 0x501   :  { %10037 = vmatpush.bf16.msra.mxu0 %v14258_v27  ;;  %v3026_v27 = vadd.f32 %v3025_v47, %v2957_v5  ;;  %21848 = vst [vmem:[#allocation15_spill] sm:$0xff] %v18461_v54  ;;  %v14287_v5 = vld [vmem:[%s21326_s5 + $0x428] sm:$0xff] }
 0x502   :  { %v3089_v47 = vpop.f32.mrf.mxu0 }
 0x504   :  { %10062 = vmatpush.bf16.msrb.mxu3 %v14275_v38  ;;  %v3892_v38 = vsel %vm3582_vm10, %v3890_v62, %v17805_v24  ;;  %v21849_v24 = vrot.slane %v17876_v3, 3 }
 0x505   :  { %10069 = vmatpush.bf16.msrb.mxu0 %v14289_v59  ;;  %v14312_v59 = vld [vmem:[%s21326_s5 + $0x4f0] sm:$0xff] }
 0x506   :  { %10038 = vmatmul.bf16.vlgmr.msra.gmra.mxu0 %v3892_v38  ;;  %v3939_v62 = vsel %vm3582_vm10, %v21849_v24, %v17821_v56  ;;  %v5015_v56 = vsel %vm3576_vm9, %v21498_v22, %v18392_v39  ;;  %v18492_v38 = vpop.f32.mrf.mxu3  ;;  %v14310_v39 = vld [vmem:[%s21326_s5 + $0x4e0] sm:$0xff] }
 0x507   :  { %21851 = vst [vmem:[#allocation31_spill] sm:$0xff] %v18492_v38  ;;  %v21500_v38 = vrot.slane %v17985_v35, 3 }
 0x508   :  { %10063 = vmatpush.bf16.msrb.mxu3 %v14274_v52  ;;  %v18476_v52 = vadd.f32 %v3089_v47, %v3021_v17  ;;  %v14286_v17 = vld [vmem:[%s21326_s5 + $0x420] sm:$0xff]  ;;  %v3177_v30 = vpop.f32.mrf.mxu1  ;;  %v21853_v47 = vld [vmem:[#allocation56_spill] sm:$0xff] }
 0x509   :  { %10070 = vmatpush.bf16.msrb.mxu0 %v14288_v14  ;;  %v14311_v14 = vld [vmem:[%s21326_s5 + $0x4e8] sm:$0xff] }
 0x50a   :  { %21850 = vst [vmem:[#allocation66_spill] sm:$0xff] %v18476_v52  ;;  %v18501_v24 = vpop.f32.mrf.mxu0 }
 0x50b   :  { %10064 = vmatmul.bf16.vlgmr.msrb.gmra.mxu3 %v3939_v62  ;;  %21852 = vst [vmem:[#allocation68_spill] sm:$0xff] %v18501_v24  ;;  %v14285_v62 = vld [vmem:[%s21326_s5 + $0x418] sm:$0xff]  ;;  %v21855_v24 = vrot.slane %v17983_v36, 4 }
 0x50c   :  { %10108 = vmatpush.bf16.msra.mxu3 %v14313_v34  ;;  %v4733_v34 = vsel %vm3576_vm9, %v21499_v32, %v18386_v33  ;;  %v3178_v33 = vadd.f32 %v3177_v30, %v17987_v57  ;;  %v14303_v57 = vld [vmem:[%s21326_s5 + $0x4a8] sm:$0xff]  ;;  %v3111_v30 = vadd.f32 %v18007_v48, %v17991_v9  ;;  %v14308_v9 = vld [vmem:[%s21326_s5 + $0x4d0] sm:$0xff] }
 0x50d   :  { %10071 = vmatpush.bf16.msrb.mxu0 %v14287_v5  ;;  %11660 = vmatmul.msk.bf16.gmra.mxu1 %vm2165_vm2, %v21853_v47  ;;  %v14309_v5 = vld [vmem:[%s21326_s5 + $0x4d8] sm:$0xff] }
 0x50e   :  { %v9870_v47 = vpop.f32.mrf.mxu3 }
 0x510   :  { %10109 = vmatpush.bf16.msra.mxu3 %v14312_v59  ;;  %v14304_v59 = vld [vmem:[%s21326_s5 + $0x4b0] sm:$0xff]  ;;  %v3179_v32 = vpop.f32.mrf.mxu1 }
 0x511   :  { %10072 = vmatpush.bf16.msrb.mxu0 %v14286_v17  ;;  %10096 = vmatpush.bf16.msrb.mxu1 %v14304_v59  ;;  %v5205_v17 = vshrl.u32 %v17876_v3, 16  ;;  %v3239_v59 = vmax.f32 %v3178_v33, 0.0  ;;  %v3180_v54 = vadd.f32 %v3179_v32, %v3111_v30  ;;  %v14283_v33 = vld [vmem:[%s21326_s5 + $0x408] sm:$0xff]  ;;  %v5018_v30 = vshll.u32 %v21500_v38, 16 }
 0x512   :  { %v3094_v48 = vpop.f32.mrf.mxu0 }
 0x513   :  { %v3310_v22 = vpack.c.bf16 %v3239_v59, %v3239_v59  ;;  %v3242_v52 = vmax.f32 %v3180_v54, 0.0  ;;  %v14307_v54 = vld [vmem:[%s21326_s5 + $0x4c8] sm:$0xff]  ;;  %v18558_v59 = vsel %vm3582_vm10, %v5018_v30, %v5015_v56  ;;  %v14300_v56 = vld [vmem:[%s21326_s5 + $0x490] sm:$0xff] }
 0x514   :  { %10110 = vmatpush.bf16.msra.mxu3 %v14311_v14  ;;  %v14284_v14 = vld [vmem:[%s21326_s5 + $0x410] sm:$0xff]  ;;  %21858 = vst [vmem:[#allocation77_spill] sm:$0xff] %v18558_v59  ;;  %v14299_v30 = vld [vmem:[%s21326_s5 + $0x488] sm:$0xff] }
 0x515   :  { %10073 = vmatpush.bf16.msrb.mxu0 %v14285_v62  ;;  %10097 = vmatpush.bf16.msrb.mxu1 %v14303_v57  ;;  %v5207_v57 = vsel %vm3576_vm9, %v5205_v17, %v18378_v25  ;;  %v18534_v62 = vadd.f32 %v3094_v48, %v3026_v27  ;;  %v3312_v25 = vpack.c.bf16 %v3242_v52, %v3242_v52  ;;  %v14282_v17 = vld [vmem:[%s21326_s5 + $0x400] sm:$0xff]  ;;  %v21501_v52 = vrot.slane %v17878_v37, 4 }
 0x516   :  { %v18546_v49 = vsel %vm3582_vm10, %v21855_v24, %v5207_v57  ;;  %v9872_v48 = vpop.f32.mrf.mxu3 }
 0x517   :  { %21856 = vst [vmem:[#allocation70_spill] sm:$0xff] %v18546_v49  ;;  %v3410_v24 = vunpack.c.l.b16 %v3312_v25  ;;  %v14730_v25 = vld [vmem:[%s21327_s6] ss:$0 sm:$0xff] }
 0x518   :  { %10111 = vmatpush.bf16.msra.mxu3 %v14310_v39  ;;  %v14302_v39 = vld [vmem:[%s21326_s5 + $0x4a0] sm:$0xff] }
 0x519   :  { %10074 = vmatpush.bf16.msrb.mxu0 %v14284_v14  ;;  %10098 = vmatpush.bf16.msrb.mxu1 %v14302_v39  ;;  %v14301_v14 = vld [vmem:[%s21326_s5 + $0x498] sm:$0xff]  ;;  %v3407_v39 = vunpack.c.l.b16 %v3310_v22  ;;  %v14298_v48 = vld [vmem:[%s21326_s5 + $0x480] sm:$0xff] }
 0x51a   :  { %v18570_v22 = vpop.f32.mrf.mxu0 }
 0x51b   :  { %v18561_v57 = vpack.c.b16 %v3410_v24, %v3407_v39 }
 0x51c   :  { %10112 = vmatpush.bf16.msra.mxu3 %v14309_v5  ;;  %v21854_v5 = vrot.slane %v17985_v35, 1 }
 0x51d   :  { %10075 = vmatpush.bf16.msrb.mxu0 %v14283_v33  ;;  %10099 = vmatpush.bf16.msrb.mxu1 %v14301_v14  ;;  %21859 = vst [vmem:[#allocation4_spill] sm:$0xff] %v18561_v57  ;;  %v14306_v33 = vld [vmem:[%s21326_s5 + $0x4c0] sm:$0xff] }
 0x51e   :  { %v4736_v32 = vshll.u32 %v21854_v5, 16  ;;  %v21860_v5 = vld [vmem:[#allocation58_spill] sm:$0xff]  ;;  %v18588_v39 = vpop.f32.mrf.mxu3 }
 0x51f   :  { %11661 = vmatmul.msk.bf16.gmra.mxu1 %vm2165_vm2, %v21860_v5  ;;  %21862 = vst [vmem:[#allocation47_spill] sm:$0xff] %v18588_v39 }
 0x520   :  { %10113 = vmatpush.bf16.msra.mxu3 %v14308_v9  ;;  %v18552_v27 = vsel %vm3582_vm10, %v4736_v32, %v4733_v34  ;;  %v3182_v9 = vpop.f32.mrf.mxu1  ;;  %v4031_v32 = vshll.u32 %v21501_v52, 16 }
 0x521   :  { %21857 = vst [vmem:[#allocation72_spill] sm:$0xff] %v18552_v27  ;;  %v3183_v34 = vadd.f32 %v3182_v9, %v18039_v6  ;;  %10076 = vmatpush.bf16.msrb.mxu0 %v14282_v17  ;;  %v21861_v6 = vrot.slane %v17878_v37, 3  ;;  %10100 = vmatpush.bf16.msrb.mxu1 %v14300_v56  ;;  %v9871_v9 = vadd.f32 %v14730_v25, %v9870_v47  ;;  %v14336_v47 = vld [vmem:[%s21326_s5 + $0x5b0] sm:$0xff] }
 0x523   :  { %v3959_v14 = vsel %vm3582_vm10, %v21861_v6, %v17849_v51  ;;  %v3245_v17 = vmax.f32 %v3183_v34, 0.0  ;;  %v4033_v51 = vsel %vm3582_vm10, %v4031_v32, %v17747_v23 }
 0x524   :  { %10114 = vmatpush.bf16.msra.mxu3 %v14307_v54  ;;  %10077 = vmatmul.bf16.vlgmr.msrb.gmra.mxu0 %v3959_v14  ;;  %v3116_v54 = vadd.f32 %v18051_v15, %v18042_v18  ;;  %v9883_v18 = vpop.f32.mrf.mxu0 }
 0x525   :  { %10101 = vmatpush.bf16.msrb.mxu1 %v14299_v30  ;;  %v3314_v15 = vpack.c.bf16 %v3245_v17, %v3245_v17  ;;  %v18598_v5 = vadd.f32 %v9883_v18, %v9871_v9  ;;  %v14335_v17 = vld [vmem:[%s21326_s5 + $0x5a8] sm:$0xff] }
 0x526   :  { %v9911_v14 = vpop.f32.mrf.mxu3 }
 0x527   :  { %21863 = vst [vmem:[#allocation16_spill] sm:$0xff] %v18598_v5  ;;  %v3413_v32 = vunpack.c.l.b16 %v3314_v15  ;;  %v14333_v15 = vld [vmem:[%s21326_s5 + $0x598] sm:$0xff] }
 0x528   :  { %10115 = vmatpush.bf16.msra.mxu3 %v14306_v33  ;;  %v3184_v24 = vpop.f32.mrf.mxu1  ;;  %v14337_v33 = vld [vmem:[%s21326_s5 + $0x5b8] sm:$0xff] }
 0x529   :  { %v3185_v56 = vadd.f32 %v3184_v24, %v3116_v54  ;;  %10102 = vmatpush.bf16.msrb.mxu1 %v14298_v48  ;;  %v21865_v24 = vld [vmem:[#allocation59_spill] sm:$0xff]  ;;  %v3121_v48 = vadd.f32 %v18097_v55, %v18081_v50 }
 0x52b   :  { %10116 = vmatmul.bf16.vlgmr.msra.gmra.mxu3 %v4033_v51  ;;  %v3248_v34 = vmax.f32 %v3185_v56, 0.0 }
 0x52c   :  { %v9885_v51 = vpop.f32.mrf.mxu0 }
 0x52d   :  { %v3316_v23 = vpack.c.bf16 %v3248_v34, %v3248_v34  ;;  %10147 = vmatpush.bf16.msra.mxu1 %v14337_v33 }
 0x52e   :  { %v18613_v56 = vpop.f32.mrf.mxu3 }
 0x52f   :  { %v3416_v6 = vunpack.c.l.b16 %v3316_v23  ;;  %11662 = vmatmul.msk.bf16.gmra.mxu1 %vm2165_vm2, %v21865_v24  ;;  %21866 = vst [vmem:[#allocation5_spill] sm:$0xff] %v18613_v56 }
 0x530   :  { %v3187_v30 = vpop.f32.mrf.mxu1 }
 0x531   :  { %v18603_v25 = vpack.c.b16 %v3416_v6, %v3413_v32  ;;  %v3188_v54 = vadd.f32 %v3187_v30, %v18076_v4  ;;  %10148 = vmatpush.bf16.msra.mxu1 %v14336_v47  ;;  %v14334_v4 = vld [vmem:[%s21326_s5 + $0x5a0] sm:$0xff]  ;;  %v14332_v47 = vld [vmem:[%s21326_s5 + $0x590] sm:$0xff] }
 0x533   :  { %21864 = vst [vmem:[#allocation33_spill] sm:$0xff] %v18603_v25  ;;  %v3251_v9 = vmax.f32 %v3188_v54, 0.0  ;;  %v2919_v54 = vadd.f32 %v18049_v53, %v17627_v42  ;;  %v21869_v53 = vrot.slane %v17876_v3, 4  ;;  %v3895_v49 = vrot.slane %v18603_v25, 6 }
 0x534   :  { %v18621_v34 = vpop.f32.mrf.mxu0 }
 0x535   :  { %10149 = vmatpush.bf16.msra.mxu1 %v14335_v17  ;;  %21867 = vst [vmem:[#allocation49_spill] sm:$0xff] %v18621_v34  ;;  %v3318_v23 = vpack.c.bf16 %v3251_v9, %v3251_v9  ;;  %v2924_v17 = vadd.f32 %v18095_v20, %v17627_v42  ;;  %v4004_v20 = vshll.u32 %v21869_v53, 16  ;;  %v3754_v53 = vrot.slane %v18603_v25, 5 }
 0x536   :  { %v9950_v14 = vpop.f32.mrf.mxu3 }
 0x537   :  { %v3419_v50 = vunpack.c.l.b16 %v3318_v23  ;;  %v3756_v59 = vshll.u32 %v3754_v53, 16 }
 0x538   :  { %v3189_v33 = vpop.f32.mrf.mxu1 }
 0x539   :  { %v3190_v18 = vadd.f32 %v3189_v33, %v3121_v48  ;;  %10150 = vmatpush.bf16.msra.mxu1 %v14334_v4  ;;  %v14331_v48 = vld [vmem:[%s21326_s5 + $0x588] sm:$0xff]  ;;  %v2988_v4 = vadd.f32 %v18065_v7, %v2919_v54  ;;  %v2993_v33 = vadd.f32 %v18107_v12, %v2924_v17  ;;  %v3752_v7 = vrot.slane %v18561_v57, 1 }
 0x53a   :  { %v21502_v12 = vrot.slane %v18561_v57, 4  ;;  %v3611_v54 = vsel %vm3549_vm3, %v18561_v57, 0 }
 0x53b   :  { %v3254_v32 = vmax.f32 %v3190_v18, 0.0  ;;  %v21868_v18 = vld [vmem:[#allocation60_spill] sm:$0xff]  ;;  %v3057_v23 = vadd.f32 %v18114_v29, %v2988_v4  ;;  %v14330_v29 = vld [vmem:[%s21326_s5 + $0x580] sm:$0xff]  ;;  %v4036_v4 = vrot.slane %v18603_v25, 7 }
 0x53c   :  { %v9924_v9 = vpop.f32.mrf.mxu0 }
 0x53d   :  { %v3320_v6 = vpack.c.bf16 %v3254_v32, %v3254_v32  ;;  %10151 = vmatpush.bf16.msra.mxu1 %v14333_v15  ;;  %v4034_v15 = vrot.slane %v18561_v57, 3  ;;  %v3062_v32 = vadd.f32 %v18173_v61, %v2993_v33  ;;  %v3820_v9 = vshrl.u32 %v3752_v7, 16 }
 0x53e   :  { %v3612_v33 = vrot.slane %v18603_v25, 4  ;;  %v3897_v25 = vshll.u32 %v3895_v49, 16 }
 0x53f   :  { %v3422_v55 = vunpack.c.l.b16 %v3320_v6  ;;  %11663 = vmatmul.msk.bf16.gmra.mxu1 %vm2165_vm2, %v21868_v18  ;;  %v3679_v6 = vshrl.u32 %v18561_v57, 16  ;;  %v4176_v18 = vsel %vm3549_vm3, %v21502_v12, 0  ;;  %v3822_v12 = vsel %vm3549_vm3, %v3820_v9, 0 }
 0x540   :  { %v3192_v30 = vpop.f32.mrf.mxu1  ;;  %v3823_v56 = vsel %vm3555_vm4, %v3754_v53, %v3822_v12 }
 0x541   :  { %v18630_v51 = vpack.c.b16 %v3422_v55, %v3419_v50  ;;  %v3193_v24 = vadd.f32 %v3192_v30, %v18112_v63  ;;  %10152 = vmatpush.bf16.msra.mxu1 %v14332_v47  ;;  %v4316_v63 = vrot.slane %v18561_v57, 5  ;;  %v3126_v50 = vadd.f32 %v18135_v21, %v3057_v23 }
 0x542   :  { %v18651_v55 = vadd.f32 %v18197_v0, %v3062_v32  ;;  %v4006_v47 = vsel %vm3582_vm10, %v4004_v20, %v17826_v13  ;;  %v4102_v30 = vshrl.u32 %v4034_v15, 16  ;;  %v4035_v0 = vsel %vm3549_vm3, %v4034_v15, 0 }
 0x543   :  { %v3257_v14 = vmax.f32 %v3193_v24, 0.0  ;;  %v4384_v17 = vshrl.u32 %v4316_v63, 16  ;;  %v3681_v24 = vsel %vm3549_vm3, %v3679_v6, 0  ;;  %v3753_v32 = vsel %vm3549_vm3, %v3752_v7, 0 }
 0x544   :  { %v18663_v13 = vpop.f32.mrf.mxu0  ;;  %v4598_v15 = vrot.slane %v18561_v57, 7  ;;  %v4104_v6 = vsel %vm3549_vm3, %v4102_v30, 0  ;;  %v4318_v52 = vrot.slane %v18630_v51, 1  ;;  %v4178_v7 = vshll.u32 %v18630_v51, 16 }
 0x545   :  { %10153 = vmatpush.bf16.msra.mxu1 %v14331_v48  ;;  %v3893_v48 = vrot.slane %v18561_v57, 2  ;;  %21870 = vst [vmem:[#allocation18_spill] sm:$0xff] %v18663_v13  ;;  %v3322_v20 = vpack.c.bf16 %v3257_v14, %v3257_v14  ;;  %v3614_v14 = vshll.u32 %v3612_v33, 16 }
 0x546   :  { %v4320_v5 = vshll.u32 %v4318_v52, 16  ;;  %v4180_v35 = vsel %vm3555_vm4, %v4178_v7, %v4176_v18 }
 0x547   :  { %v3425_v27 = vunpack.c.l.b16 %v3322_v20  ;;  %v3894_v30 = vsel %vm3549_vm3, %v3893_v48, 0 }
 0x548   :  { %v3194_v61 = vpop.f32.mrf.mxu1 }
 0x549   :  { %v3195_v21 = vadd.f32 %v3194_v61, %v3126_v50  ;;  %10154 = vmatpush.bf16.msra.mxu1 %v14330_v29  ;;  %v4386_v50 = vsel %vm3549_vm3, %v4384_v17, 0  ;;  %v4317_v29 = vsel %vm3549_vm3, %v4316_v63, 0  ;;  %v3961_v61 = vshrl.u32 %v3893_v48, 16 }
 0x54a   :  { %v4666_v17 = vshrl.u32 %v4598_v15, 16  ;;  %v4105_v63 = vsel %vm3555_vm4, %v4036_v4, %v4104_v6  ;;  %v4322_v53 = vsel %vm3555_vm4, %v4320_v5, %v4317_v29 }
 0x54b   :  { %v3260_v23 = vmax.f32 %v3195_v21, 0.0  ;;  %v4038_v21 = vshll.u32 %v4036_v4, 16  ;;  %v3963_v9 = vsel %vm3549_vm3, %v3961_v61, 0  ;;  %v3758_v4 = vsel %vm3555_vm4, %v3756_v59, %v3753_v32 }
 0x54c   :  { %v9963_v20 = vpop.f32.mrf.mxu0 }
 0x54d   :  { %v3324_v38 = vpack.c.bf16 %v3260_v23, %v3260_v23  ;;  %v3682_v23 = vsel %vm3555_vm4, %v3612_v33, %v3681_v24  ;;  %v4040_v48 = vsel %vm3555_vm4, %v4038_v21, %v4035_v0 }
 0x54f   :  { %v3428_v3 = vunpack.c.l.b16 %v3324_v38  ;;  %v3616_v38 = vsel %vm3555_vm4, %v3614_v14, %v3611_v54  ;;  %10103 = vmatmul.bf16.vlgmr.msrb.gmra.mxu1 %v4006_v47 }
 0x550   :  { %v3197_v13 = vpop.f32.mrf.mxu1 }
 0x551   :  { %v18685_v34 = vpack.c.b16 %v3428_v3, %v3425_v27  ;;  %v3198_v39 = vadd.f32 %v3197_v13, %v18171_v46  ;;  %v4600_v46 = vrot.slane %v18630_v51, 3  ;;  %v18696_v27 = vpop.f32.mrf.mxu3  ;;  %v4387_v13 = vsel %vm3555_vm4, %v4318_v52, %v4386_v50 }
 0x553   :  { %21871 = vst [vmem:[#allocation74_spill] sm:$0xff] %v18685_v34  ;;  %v4041_v12 = vrot.slane %v18685_v34, 2  ;;  %v3617_v24 = vrot.slane %v18685_v34, 7  ;;  %v4181_v3 = vrot.slane %v18685_v34, 3  ;;  %v18700_v54 = vsel %vm3558_vm5, %v18685_v34, %v3758_v4 }
 0x554   :  { %v4323_v0 = vrot.slane %v18685_v34, 4  ;;  %v3825_v59 = vshrl.u32 %v18685_v34, 16  ;;  %v3263_v50 = vmax.f32 %v3198_v39, 0.0  ;;  %v4602_v7 = vshll.u32 %v4600_v46, 16 }
 0x555   :  { %v4107_v47 = vshrl.u32 %v4041_v12, 16  ;;  %v18706_v33 = vsel %vm3558_vm5, %v3617_v24, %v3616_v38  ;;  %v18709_v18 = vsel %vm3558_vm5, %v4041_v12, %v4040_v48  ;;  %v3684_v32 = vshrl.u32 %v3617_v24, 16 }
 0x556   :  { %v18715_v6 = vsel %vm3558_vm5, %v4181_v3, %v4180_v35  ;;  %v4389_v61 = vshrl.u32 %v4323_v0, 16  ;;  %v18718_v52 = vsel %vm3558_vm5, %v3825_v59, %v3823_v56  ;;  %v18724_v21 = vsel %vm3558_vm5, %v4323_v0, %v4322_v53  ;;  %v3140_v0 = vpop.f32.mrf.mxu2 }
 0x557   :  { %v18721_v14 = vsel %vm3558_vm5, %v4107_v47, %v4105_v63  ;;  %v18727_v5 = vsel %vm3558_vm5, %v3684_v32, %v3682_v23  ;;  %v3900_v35 = vrot.slane %v18685_v34, 1  ;;  %v4605_v56 = vrot.slane %v18685_v34, 6 }
 0x558   :  { %v3199_v20 = vpop.f32.mrf.mxu1  ;;  %v18730_v29 = vsel %vm3558_vm5, %v4389_v61, %v4387_v13  ;;  %v3899_v63 = vsel %vm3555_vm4, %v3897_v25, %v3894_v30  ;;  %v4668_v38 = vsel %vm3549_vm3, %v4666_v17, 0  ;;  %v4599_v48 = vsel %vm3549_vm3, %v4598_v15, 0 }
 0x559   :  { %v3200_v39 = vadd.f32 %v3199_v20, %v18651_v55  ;;  %v18739_v4 = vsel %vm3558_vm5, %v3900_v35, %v3899_v63  ;;  %v3964_v23 = vsel %vm3555_vm4, %v3895_v49, %v3963_v9  ;;  %v3966_v12 = vshrl.u32 %v3900_v35, 16  ;;  %v9989_v53 = vpop.f32.mrf.mxu3 }
 0x55a   :  { %v4671_v24 = vshrl.u32 %v4605_v56, 16  ;;  %v3326_v13 = vpack.c.bf16 %v3263_v50, %v3263_v50  ;;  %v4669_v47 = vsel %vm3555_vm4, %v4600_v46, %v4668_v38  ;;  %v4604_v55 = vsel %vm3555_vm4, %v4602_v7, %v4599_v48 }
 0x55b   :  { %v3266_v59 = vmax.f32 %v3200_v39, 0.0  ;;  %v18745_v25 = vsel %vm3558_vm5, %v3966_v12, %v3964_v23  ;;  %v18751_v30 = vsel %vm3558_vm5, %v4605_v56, %v4604_v55  ;;  %v2929_v61 = vadd.f32 %v18130_v58, %v17627_v42 }
 0x55c   :  { %v18748_v15 = vsel %vm3558_vm5, %v4671_v24, %v4669_v47  ;;  %v3431_v17 = vunpack.c.l.b16 %v3326_v13  ;;  %v21872_v7 = vrot.slane %v17878_v37, 4 }
 0x55d   :  { %v3328_v49 = vpack.c.bf16 %v3266_v59, %v3266_v59  ;;  %v2998_v35 = vadd.f32 %v18167_v1, %v2929_v61  ;;  %v2934_v1 = vadd.f32 %v18193_v44, %v17627_v42 }
 0x55e   :  { %v4100_v20 = vsel %vm3582_vm10, %v21872_v7, %v17856_v60  ;;  %v3143_v39 = vpop.f32.mrf.mxu2  ;;  %v14176_v7 = vld [vmem:[%s21326_s5 + $0xb0] sm:$0xff] }
 0x55f   :  { %v3434_v9 = vunpack.c.l.b16 %v3328_v49  ;;  %10155 = vmatmul.bf16.vlgmr.msra.gmra.mxu1 %v4100_v20  ;;  %v3067_v56 = vadd.f32 %v18234_v10, %v2998_v35  ;;  %v14345_v49 = vld [vmem:[%s21326_s5 + $0x5f8] sm:$0xff]  ;;  %v3003_v44 = vadd.f32 %v18230_v28, %v2934_v1  ;;  %v14320_v20 = vld [vmem:[%s21326_s5 + $0x530] sm:$0xff]  ;;  %v2939_v28 = vadd.f32 %v18255_v31, %v17627_v42 }
 0x560   :  { %v3202_v32 = vpop.f32.mrf.mxu1  ;;  %10160 = vmatpush.bf16.msrb.mxu3 %v14345_v49 }
 0x561   :  { %v18755_v46 = vpack.c.b16 %v3434_v9, %v3431_v17  ;;  %v3203_v50 = vadd.f32 %v3202_v32, %v18232_v2  ;;  %v3136_v63 = vadd.f32 %v18259_v43, %v3067_v56  ;;  %v14177_v17 = vld [vmem:[%s21326_s5 + $0xb8] sm:$0xff]  ;;  %v3072_v32 = vadd.f32 %v18286_v16, %v3003_v44 }
 0x562   :  { %v18765_v48 = vpop.f32.mrf.mxu0  ;;  %v14321_v9 = vld [vmem:[%s21326_s5 + $0x538] sm:$0xff]  ;;  %9887 = vmatpush.bf16.msra.mxu2 %v14177_v17 }
 0x563   :  { %v3269_v38 = vmax.f32 %v3203_v50, 0.0  ;;  %10121 = vmatpush.bf16.msra.mxu0 %v14321_v9  ;;  %v14344_v50 = vld [vmem:[%s21326_s5 + $0x5f0] sm:$0xff]  ;;  %v4043_v16 = vrot.slane %v18755_v46, 6  ;;  %v3760_v31 = vrot.slane %v18755_v46, 4 }
 0x564   :  { %10161 = vmatpush.bf16.msrb.mxu3 %v14344_v50 }
 0x565   :  { %v3330_v12 = vpack.c.bf16 %v3269_v38, %v3269_v38  ;;  %v4045_v9 = vshll.u32 %v4043_v16, 16 }
 0x566   :  { %v3145_v13 = vpop.f32.mrf.mxu2  ;;  %9888 = vmatpush.bf16.msra.mxu2 %v14176_v7  ;;  %v3762_v7 = vshll.u32 %v3760_v31, 16 }
 0x567   :  { %v3437_v59 = vunpack.c.l.b16 %v3330_v12  ;;  %v21873_v12 = vld [vmem:[#allocation62_spill] sm:$0xff]  ;;  %10122 = vmatpush.bf16.msra.mxu0 %v14320_v20 }
 0x568   :  { %v3204_v58 = vpop.f32.mrf.mxu1 }
 0x569   :  { %v3205_v23 = vadd.f32 %v3204_v58, %v3136_v63  ;;  %v14343_v58 = vld [vmem:[%s21326_s5 + $0x5e8] sm:$0xff] }
 0x56a   :  { %v10002_v60 = vpop.f32.mrf.mxu0  ;;  %10162 = vmatpush.bf16.msrb.mxu3 %v14343_v58  ;;  %v4110_v58 = vsel %vm3564_vm6, %v4043_v16, %v18721_v14  ;;  %v14174_v14 = vld [vmem:[%s21326_s5 + $0xa0] sm:$0xff] }
 0x56b   :  { %v3272_v2 = vmax.f32 %v3205_v23, 0.0  ;;  %v14175_v23 = vld [vmem:[%s21326_s5 + $0xa8] sm:$0xff] }
 0x56c   :  { %9889 = vmatpush.bf16.msra.mxu2 %v14175_v23 }
 0x56d   :  { %v3332_v24 = vpack.c.bf16 %v3272_v2, %v3272_v2  ;;  %v3008_v2 = vadd.f32 %v21873_v12, %v2939_v28 }
 0x56e   :  { %v18771_v53 = vpop.f32.mrf.mxu3  ;;  %v18798_v56 = vpop.f32.mrf.mxu2 }
 0x56f   :  { %v3440_v47 = vunpack.c.l.b16 %v3332_v24  ;;  %v14319_v24 = vld [vmem:[%s21326_s5 + $0x528] sm:$0xff] }
 0x570   :  { %v3207_v55 = vpop.f32.mrf.mxu1  ;;  %10123 = vmatpush.bf16.msra.mxu0 %v14319_v24  ;;  %9890 = vmatpush.bf16.msra.mxu2 %v14174_v14 }
 0x571   :  { %v18769_v10 = vpack.c.b16 %v3440_v47, %v3437_v59  ;;  %v3208_v43 = vadd.f32 %v3207_v55, %v18284_v19  ;;  %v3141_v19 = vadd.f32 %v3140_v0, %v3072_v32  ;;  %v3619_v0 = vrot.slane %v18755_v46, 3  ;;  %v21876_v32 = vld [vmem:[#allocation73_spill] sm:$0xff] }
 0x572   :  { %v3902_v59 = vrot.slane %v18755_v46, 5  ;;  %v21874_v47 = vrot.slane %v18561_v57, 4 }
 0x573   :  { %v3275_v61 = vmax.f32 %v3208_v43, 0.0  ;;  %v21875_v43 = vld [vmem:[#allocation75_spill] sm:$0xff]  ;;  %v3621_v17 = vshll.u32 %v3619_v0, 16  ;;  %v4183_v44 = vrot.slane %v18769_v10, 7 }
 0x574   :  { %v4243_v60 = vshrl.u32 %v21874_v47, 16  ;;  %v3077_v49 = vadd.f32 %v21875_v43, %v3008_v2  ;;  %v3904_v28 = vshll.u32 %v3902_v59, 16  ;;  %v4047_v2 = vsel %vm3564_vm6, %v4045_v9, %v18709_v18  ;;  %v14341_v18 = vld [vmem:[%s21326_s5 + $0x5d8] sm:$0xff] }
 0x575   :  { %v3334_v55 = vpack.c.bf16 %v3275_v61, %v3275_v61  ;;  %v4326_v61 = vshll.u32 %v18769_v10, 16  ;;  %v3623_v12 = vsel %vm3564_vm6, %v3621_v17, %v18706_v33  ;;  %v4185_v24 = vshll.u32 %v4183_v44, 16  ;;  %v14318_v33 = vld [vmem:[%s21326_s5 + $0x520] sm:$0xff]  ;;  %v14173_v9 = vld [vmem:[%s21326_s5 + $0x98] sm:$0xff] }
 0x576   :  { %v10028_v63 = vpop.f32.mrf.mxu3  ;;  %v18819_v20 = vadd.f32 %v3145_v13, %v3077_v49  ;;  %v3687_v13 = vsel %vm3564_vm6, %v3619_v0, %v18727_v5  ;;  %v4248_v47 = vshrl.u32 %v4181_v3, 16  ;;  %v3764_v5 = vsel %vm3564_vm6, %v3762_v7, %v18700_v54  ;;  %v14369_v0 = vld [vmem:[%s21326_s5 + $0x6b8] sm:$0xff]  ;;  %v18869_v49 = vpop.f32.mrf.mxu2  ;;  %10124 = vmatpush.bf16.msra.mxu0 %v14318_v33  ;;  %9891 = vmatpush.bf16.msra.mxu2 %v14173_v9  ;;  %v14316_v33 = vld [vmem:[%s21326_s5 + $0x510] sm:$0xff] }
 0x577   :  { %v3443_v63 = vunpack.c.l.b16 %v3334_v55  ;;  %v4607_v3 = vrot.slane %v18769_v10, 2  ;;  %v4392_v55 = vsel %vm3564_vm6, %v18769_v10, %v18730_v29  ;;  %v3906_v43 = vsel %vm3564_vm6, %v3904_v28, %v18739_v4  ;;  %v14317_v29 = vld [vmem:[%s21326_s5 + $0x518] sm:$0xff]  ;;  %10199 = vmatpush.bf16.msrb.mxu1 %v14369_v0 }
 0x578   :  { %v3209_v35 = vpop.f32.mrf.mxu1 }
 0x579   :  { %v3210_v38 = vadd.f32 %v3209_v35, %v3141_v19  ;;  %v3144_v19 = vadd.f32 %v3143_v39, %v21876_v32  ;;  %v4245_v35 = vsel %vm3549_vm3, %v4243_v60, 0  ;;  %v14342_v39 = vld [vmem:[%s21326_s5 + $0x5e0] sm:$0xff] }
 0x57a   :  { %10163 = vmatpush.bf16.msrb.mxu3 %v14342_v39  ;;  %v4246_v16 = vsel %vm3555_vm4, %v18630_v51, %v4245_v35  ;;  %10125 = vmatpush.bf16.msra.mxu0 %v14317_v29 }
 0x57b   :  { %v3278_v1 = vmax.f32 %v3210_v38, 0.0  ;;  %v18867_v54 = vsel %vm3558_vm5, %v4248_v47, %v4246_v16 }
 0x57d   :  { %v3336_v50 = vpack.c.bf16 %v3278_v1, %v3278_v1  ;;  %v4328_v1 = vsel %vm3564_vm6, %v4326_v61, %v18724_v21 }
 0x57e   :  { %10164 = vmatpush.bf16.msrb.mxu3 %v14341_v18  ;;  %10126 = vmatpush.bf16.msra.mxu0 %v14316_v33 }
 0x57f   :  { %v3446_v38 = vunpack.c.l.b16 %v3336_v50 }
 0x580   :  { %v3212_v23 = vpop.f32.mrf.mxu1 }
 0x581   :  { %v18840_v60 = vpack.c.b16 %v3446_v38, %v3443_v63  ;;  %v3213_v17 = vadd.f32 %v3212_v23, %v3144_v19  ;;  %v4187_v19 = vsel %vm3564_vm6, %v4185_v24, %v18715_v6  ;;  %v4609_v6 = vshll.u32 %v4607_v3, 16 }
 0x583   :  { %21877 = vst [vmem:[#allocation35_spill] sm:$0xff] %v18840_v60  ;;  %v4048_v21 = vrot.slane %v18840_v60, 1  ;;  %v3624_v4 = vrot.slane %v18840_v60, 6  ;;  %v4188_v32 = vrot.slane %v18840_v60, 2  ;;  %v3765_v50 = vrot.slane %v18840_v60, 7  ;;  %v18888_v28 = vpop.f32.mrf.mxu0 }
 0x584   :  { %v4329_v7 = vrot.slane %v18840_v60, 3  ;;  %v18886_v61 = vsel %vm3567_vm7, %v18840_v60, %v3906_v43  ;;  %v3281_v14 = vmax.f32 %v3213_v17, 0.0  ;;  %v14368_v43 = vld [vmem:[%s21326_s5 + $0x6b0] sm:$0xff]  ;;  %v3971_v29 = vshrl.u32 %v18840_v60, 16 }
 0x585   :  { %v4112_v35 = vshrl.u32 %v4048_v21, 16  ;;  %v18891_v63 = vsel %vm3567_vm7, %v3624_v4, %v3623_v12  ;;  %v18894_v38 = vsel %vm3567_vm7, %v4048_v21, %v4047_v2  ;;  %v3689_v39 = vshrl.u32 %v3624_v4, 16  ;;  %v14340_v12 = vld [vmem:[%s21326_s5 + $0x5d0] sm:$0xff]  ;;  %v14339_v21 = vld [vmem:[%s21326_s5 + $0x5c8] sm:$0xff]  ;;  %10200 = vmatpush.bf16.msrb.mxu1 %v14368_v43 }
 0x586   :  { %v18901_v23 = vsel %vm3567_vm7, %v4188_v32, %v4187_v19  ;;  %v18904_v24 = vsel %vm3567_vm7, %v3765_v50, %v3764_v5  ;;  %v4394_v47 = vshrl.u32 %v4329_v7, 16  ;;  %v14172_v2 = vld [vmem:[%s21326_s5 + $0x90] sm:$0xff]  ;;  %v3830_v5 = vshrl.u32 %v3765_v50, 16  ;;  %10165 = vmatpush.bf16.msrb.mxu3 %v14340_v12  ;;  %v14171_v50 = vld [vmem:[%s21326_s5 + $0x88] sm:$0xff] }
 0x587   :  { %v18916_v18 = vsel %vm3567_vm7, %v4112_v35, %v4110_v58  ;;  %v18919_v16 = vsel %vm3567_vm7, %v4329_v7, %v4328_v1  ;;  %v18925_v17 = vsel %vm3567_vm7, %v3689_v39, %v3687_v13  ;;  %v3828_v58 = vsel %vm3564_vm6, %v3760_v31, %v18718_v52  ;;  %v14367_v52 = vld [vmem:[%s21326_s5 + $0x6a8] sm:$0xff]  ;;  %9892 = vmatpush.bf16.msra.mxu2 %v14172_v2 }
 0x588   :  { %v3214_v0 = vpop.f32.mrf.mxu1  ;;  %v18928_v9 = vsel %vm3567_vm7, %v4394_v47, %v4392_v55  ;;  %v18940_v13 = vsel %vm3567_vm7, %v3830_v5, %v3828_v58  ;;  %v3969_v55 = vsel %vm3564_vm6, %v3902_v59, %v18745_v25  ;;  %v4612_v4 = vrot.slane %v18840_v60, 5  ;;  %v14315_v25 = vld [vmem:[%s21326_s5 + $0x508] sm:$0xff]  ;;  %v18968_v47 = vpop.f32.mrf.mxu2  ;;  %v14377_v5 = vld [vmem:[%s21326_s5 + $0x6f8] sm:$0xff] }
 0x589   :  { %v3215_v1 = vadd.f32 %v3214_v0, %v18819_v20  ;;  %v18951_v31 = vsel %vm3567_vm7, %v3971_v29, %v3969_v55  ;;  %v3338_v20 = vpack.c.bf16 %v3281_v14, %v3281_v14  ;;  %v4611_v7 = vsel %vm3564_vm6, %v4609_v6, %v18751_v30  ;;  %10201 = vmatpush.bf16.msrb.mxu1 %v14367_v52  ;;  %v21878_v0 = vld [vmem:[#allocation29_spill] sm:$0xff]  ;;  %v14366_v55 = vld [vmem:[%s21326_s5 + $0x6a0] sm:$0xff]  ;;  %v21879_v52 = vld [vmem:[#allocation64_spill] sm:$0xff] }
 0x58a   :  { %v4676_v59 = vshrl.u32 %v4612_v4, 16  ;;  %v4674_v35 = vsel %vm3564_vm6, %v4607_v3, %v18748_v15  ;;  %v18966_v39 = vsel %vm3567_vm7, %v4612_v4, %v4611_v7  ;;  %10166 = vmatpush.bf16.msrb.mxu3 %v14339_v21  ;;  %10127 = vmatpush.bf16.msra.mxu0 %v14315_v25  ;;  %v14338_v15 = vld [vmem:[%s21326_s5 + $0x5c0] sm:$0xff]  ;;  %v2944_v43 = vadd.f32 %v21878_v0, %v17627_v42  ;;  %v14376_v4 = vld [vmem:[%s21326_s5 + $0x6f0] sm:$0xff] }
 0x58b   :  { %v3284_v19 = vmax.f32 %v3215_v1, 0.0  ;;  %v10041_v12 = vpop.f32.mrf.mxu0  ;;  %v3449_v30 = vunpack.c.l.b16 %v3338_v20  ;;  %9893 = vmatpush.bf16.msra.mxu2 %v14171_v50  ;;  %v3149_v58 = vadd.f32 %v18798_v56, %v18366_v11  ;;  %v14170_v1 = vld [vmem:[%s21326_s5 + $0x80] sm:$0xff]  ;;  %v14201_v11 = vld [vmem:[%s21326_s5 + $0x178] sm:$0xff]  ;;  %v14200_v25 = vld [vmem:[%s21326_s5 + $0x170] sm:$0xff] }
 0x58c   :  { %v18971_v2 = vsel %vm3567_vm7, %v4676_v59, %v4674_v35  ;;  %v14314_v21 = vld [vmem:[%s21326_s5 + $0x500] sm:$0xff]  ;;  %v14353_v56 = vld [vmem:[%s21326_s5 + $0x638] sm:$0xff]  ;;  %v3013_v20 = vadd.f32 %v21879_v52, %v2944_v43  ;;  %v14352_v7 = vld [vmem:[%s21326_s5 + $0x630] sm:$0xff] }
 0x58d   :  { %v3340_v14 = vpack.c.bf16 %v3284_v19, %v3284_v19  ;;  %10202 = vmatpush.bf16.msrb.mxu1 %v14366_v55  ;;  %v14365_v50 = vld [vmem:[%s21326_s5 + $0x698] sm:$0xff]  ;;  %v14374_v0 = vld [vmem:[%s21326_s5 + $0x6e0] sm:$0xff] }
 0x58e   :  { %v18973_v33 = vpop.f32.mrf.mxu3  ;;  %10167 = vmatpush.bf16.msrb.mxu3 %v14338_v15  ;;  %10128 = vmatpush.bf16.msra.mxu0 %v14314_v21  ;;  %v3082_v59 = vadd.f32 %v18402_v26, %v3013_v20  ;;  %v14364_v26 = vld [vmem:[%s21326_s5 + $0x690] sm:$0xff]  ;;  %v14198_v21 = vld [vmem:[%s21326_s5 + $0x160] sm:$0xff]  ;;  %v14373_v20 = vld [vmem:[%s21326_s5 + $0x6d8] sm:$0xff] }
 0x58f   :  { %v3452_v6 = vunpack.c.l.b16 %v3340_v14  ;;  %9894 = vmatpush.bf16.msra.mxu2 %v14170_v1  ;;  %v14363_v1 = vld [vmem:[%s21326_s5 + $0x688] sm:$0xff] }
 0x590   :  { %v3217_v3 = vpop.f32.mrf.mxu1  ;;  %v3151_v14 = vadd.f32 %v18869_v49, %v3082_v59  ;;  %v3155_v12 = vpop.f32.mrf.mxu2  ;;  %v14351_v49 = vld [vmem:[%s21326_s5 + $0x628] sm:$0xff]  ;;  %v3154_v59 = vadd.f32 %v18968_v47, %v18421_v40  ;;  %v14401_v40 = vld [vmem:[%s21326_s5 + $0x7b8] sm:$0xff]  ;;  %v14372_v47 = vld [vmem:[%s21326_s5 + $0x6d0] sm:$0xff] }
 0x591   :  { %v18985_v29 = vpack.c.b16 %v3452_v6, %v3449_v30  ;;  %v3218_v19 = vadd.f32 %v3217_v3, %v3149_v58  ;;  %v14375_v6 = vld [vmem:[%s21326_s5 + $0x6e8] sm:$0xff]  ;;  %10203 = vmatpush.bf16.msrb.mxu1 %v14365_v50  ;;  %v21880_v50 = vld [vmem:[#allocation34_spill] sm:$0xff] }
 0x592   :  { %10212 = vmatpush.bf16.msra.mxu3 %v14377_v5  ;;  %10173 = vmatpush.bf16.msrb.mxu0 %v14353_v56  ;;  %v14199_v3 = vld [vmem:[%s21326_s5 + $0x168] sm:$0xff] }
 0x593   :  { %9926 = vmatpush.bf16.msrb.mxu2 %v14201_v11  ;;  %v3287_v30 = vmax.f32 %v3218_v19, 0.0  ;;  %v14350_v11 = vld [vmem:[%s21326_s5 + $0x620] sm:$0xff]  ;;  %v19048_v19 = vsel %vm3564_vm6, %v4183_v44, %v18867_v54  ;;  %v14349_v44 = vld [vmem:[%s21326_s5 + $0x618] sm:$0xff] }
 0x595   :  { %v3342_v43 = vpack.c.bf16 %v3287_v30, %v3287_v30  ;;  %10204 = vmatpush.bf16.msrb.mxu1 %v14364_v26  ;;  %v14197_v30 = vld [vmem:[%s21326_s5 + $0x158] sm:$0xff]  ;;  %v14196_v26 = vld [vmem:[%s21326_s5 + $0x150] sm:$0xff] }
 0x596   :  { %v10067_v35 = vpop.f32.mrf.mxu3  ;;  %10213 = vmatpush.bf16.msra.mxu3 %v14376_v4  ;;  %10174 = vmatpush.bf16.msrb.mxu0 %v14352_v7 }
 0x597   :  { %9927 = vmatpush.bf16.msrb.mxu2 %v14200_v25  ;;  %v3455_v56 = vunpack.c.l.b16 %v3342_v43  ;;  %v2949_v25 = vadd.f32 %v21880_v50, %v17627_v42  ;;  %v14371_v43 = vld [vmem:[%s21326_s5 + $0x6c8] sm:$0xff]  ;;  %v3767_v50 = vrot.slane %v18985_v29, 3 }
 0x598   :  { %v3219_v15 = vpop.f32.mrf.mxu1  ;;  %v3158_v7 = vpop.f32.mrf.mxu2 }
 0x599   :  { %v3220_v5 = vadd.f32 %v3219_v15, %v3151_v14  ;;  %10205 = vmatpush.bf16.msrb.mxu1 %v14363_v1  ;;  %v14362_v14 = vld [vmem:[%s21326_s5 + $0x680] sm:$0xff]  ;;  %v14195_v1 = vld [vmem:[%s21326_s5 + $0x148] sm:$0xff] }
 0x59a   :  { %10214 = vmatpush.bf16.msra.mxu3 %v14375_v6  ;;  %10175 = vmatpush.bf16.msrb.mxu0 %v14351_v49  ;;  %v3018_v6 = vadd.f32 %v18394_v41, %v2949_v25  ;;  %v14400_v49 = vld [vmem:[%s21326_s5 + $0x7b0] sm:$0xff] }
 0x59b   :  { %v3290_v58 = vmax.f32 %v3220_v5, 0.0  ;;  %9928 = vmatpush.bf16.msrb.mxu2 %v14199_v3  ;;  %v14348_v5 = vld [vmem:[%s21326_s5 + $0x610] sm:$0xff] }
 0x59c   :  { %v3087_v3 = vadd.f32 %v18438_v8, %v3018_v6  ;;  %v2954_v8 = vadd.f32 %v18413_v45, %v17627_v42  ;;  %v3626_v45 = vrot.slane %v18985_v29, 2 }
 0x59d   :  { %v3344_v55 = vpack.c.bf16 %v3290_v58, %v3290_v58  ;;  %10206 = vmatpush.bf16.msrb.mxu1 %v14362_v14 }
 0x59e   :  { %10215 = vmatpush.bf16.msra.mxu3 %v14374_v0  ;;  %10176 = vmatpush.bf16.msrb.mxu0 %v14350_v11  ;;  %v3156_v41 = vadd.f32 %v3155_v12, %v3087_v3  ;;  %v14347_v12 = vld [vmem:[%s21326_s5 + $0x608] sm:$0xff]  ;;  %v4050_v11 = vrot.slane %v18985_v29, 5  ;;  %v14346_v3 = vld [vmem:[%s21326_s5 + $0x600] sm:$0xff] }
 0x59f   :  { %v3458_v4 = vunpack.c.l.b16 %v3344_v55  ;;  %9929 = vmatpush.bf16.msrb.mxu2 %v14198_v21  ;;  %v14399_v55 = vld [vmem:[%s21326_s5 + $0x7a8] sm:$0xff] }
 0x5a0   :  { %v3222_v52 = vpop.f32.mrf.mxu1  ;;  %v3160_v25 = vpop.f32.mrf.mxu2 }
 0x5a1   :  { %v19054_v35 = vpack.c.b16 %v3458_v4, %v3455_v56  ;;  %v19065_v54 = vpop.f32.mrf.mxu0  ;;  %v3223_v15 = vadd.f32 %v3222_v52, %v3154_v59  ;;  %10251 = vmatpush.bf16.msra.mxu1 %v14401_v40  ;;  %v21881_v56 = vld [vmem:[#allocation45_spill] sm:$0xff] }
 0x5a2   :  { %10216 = vmatpush.bf16.msra.mxu3 %v14373_v20  ;;  %10177 = vmatpush.bf16.msrb.mxu0 %v14349_v44  ;;  %v3023_v4 = vadd.f32 %v21881_v56, %v2954_v8  ;;  %v14370_v20 = vld [vmem:[%s21326_s5 + $0x6c0] sm:$0xff]  ;;  %v21883_v44 = vld [vmem:[#allocation68_spill] sm:$0xff]  ;;  %v3692_v56 = vsel %vm3573_vm8, %v3626_v45, %v18925_v17 }
 0x5a3   :  { %9930 = vmatpush.bf16.msrb.mxu2 %v14197_v30  ;;  %v3293_v0 = vmax.f32 %v3223_v15, 0.0  ;;  %v4190_v6 = vrot.slane %v19054_v35, 6  ;;  %v3908_v15 = vrot.slane %v18985_v29, 4 }
 0x5a4   :  { %v3092_v40 = vadd.f32 %v21883_v44, %v3023_v4 }
 0x5a5   :  { %10252 = vmatpush.bf16.msra.mxu1 %v14400_v49  ;;  %v3346_v59 = vpack.c.bf16 %v3293_v0, %v3293_v0  ;;  %v3628_v49 = vshll.u32 %v3626_v45, 16  ;;  %v4331_v0 = vrot.slane %v19054_v35, 7 }
 0x5a6   :  { %10217 = vmatpush.bf16.msra.mxu3 %v14372_v47  ;;  %10178 = vmatpush.bf16.msrb.mxu0 %v14348_v5  ;;  %v14194_v47 = vld [vmem:[%s21326_s5 + $0x140] sm:$0xff] }
 0x5a7   :  { %9931 = vmatpush.bf16.msrb.mxu2 %v14196_v26  ;;  %v14398_v5 = vld [vmem:[%s21326_s5 + $0x7a0] sm:$0xff] }
 0x5a8   :  { %v3224_v58 = vpop.f32.mrf.mxu1 }
 0x5a9   :  { %v3225_v21 = vadd.f32 %v3224_v58, %v3156_v41  ;;  %v10080_v52 = vpop.f32.mrf.mxu0  ;;  %10253 = vmatpush.bf16.msra.mxu1 %v14399_v55  ;;  %v4052_v41 = vshll.u32 %v4050_v11, 16  ;;  %v3161_v58 = vadd.f32 %v3160_v25, %v3092_v40  ;;  %v4115_v55 = vsel %vm3573_vm8, %v4050_v11, %v18916_v18 }
 0x5aa   :  { %10218 = vmatpush.bf16.msra.mxu3 %v14371_v43  ;;  %10179 = vmatpush.bf16.msrb.mxu0 %v14347_v12  ;;  %v21884_v43 = vld [vmem:[#allocation66_spill] sm:$0xff]  ;;  %v4192_v52 = vshll.u32 %v4190_v6, 16  ;;  %v3630_v18 = vsel %vm3573_vm8, %v3628_v49, %v18891_v63  ;;  %v4333_v11 = vshll.u32 %v4331_v0, 16  ;;  %v14396_v49 = vld [vmem:[%s21326_s5 + $0x790] sm:$0xff] }
 0x5ab   :  { %v3296_v14 = vmax.f32 %v3225_v21, 0.0  ;;  %9932 = vmatpush.bf16.msrb.mxu2 %v14195_v1  ;;  %v3159_v8 = vadd.f32 %v3158_v7, %v21884_v43  ;;  %v3769_v1 = vshll.u32 %v3767_v50, 16  ;;  %v3461_v21 = vunpack.c.l.b16 %v3346_v59 }
 0x5ac   :  { %v3910_v7 = vshll.u32 %v3908_v15, 16  ;;  %v4054_v17 = vsel %vm3573_vm8, %v4052_v41, %v18894_v38 }
 0x5ad   :  { %v3348_v26 = vpack.c.bf16 %v3296_v14, %v3296_v14  ;;  %v3833_v14 = vsel %vm3573_vm8, %v3767_v50, %v18940_v13  ;;  %10254 = vmatpush.bf16.msra.mxu1 %v14398_v5  ;;  %v14397_v13 = vld [vmem:[%s21326_s5 + $0x798] sm:$0xff]  ;;  %v3771_v45 = vsel %vm3573_vm8, %v3769_v1, %v18904_v24  ;;  %v4614_v50 = vrot.slane %v19054_v35, 1 }
 0x5ae   :  { %v19105_v30 = vpop.f32.mrf.mxu3  ;;  %10219 = vmatpush.bf16.msra.mxu3 %v14370_v20  ;;  %v4253_v20 = vshrl.u32 %v4188_v32, 16  ;;  %10180 = vmatpush.bf16.msrb.mxu0 %v14346_v3  ;;  %v4397_v32 = vsel %vm3573_vm8, %v4331_v0, %v18928_v9  ;;  %v4194_v24 = vsel %vm3573_vm8, %v4192_v52, %v18901_v23  ;;  %v4335_v0 = vsel %vm3573_vm8, %v4333_v11, %v18919_v16 }
 0x5af   :  { %21882 = vst [vmem:[#allocation76_spill] sm:$0xff] %v19105_v30  ;;  %v3464_v12 = vunpack.c.l.b16 %v3348_v26  ;;  %9933 = vmatpush.bf16.msrb.mxu2 %v14194_v47  ;;  %v3912_v11 = vsel %vm3573_vm8, %v3910_v7, %v18886_v61 }
 0x5b0   :  { %v3227_v4 = vpop.f32.mrf.mxu1  ;;  %v19149_v59 = vsel %vm3567_vm7, %v4253_v20, %v19048_v19 }
 0x5b1   :  { %v19133_v25 = vpack.c.b16 %v3464_v12, %v3461_v21  ;;  %v3228_v63 = vadd.f32 %v3227_v4, %v3159_v8  ;;  %10255 = vmatpush.bf16.msra.mxu1 %v14397_v13  ;;  %v4616_v4 = vshll.u32 %v4614_v50, 16 }
 0x5b3   :  { %21885 = vst [vmem:[#allocation36_spill] sm:$0xff] %v19133_v25  ;;  %v4117_v38 = vshrl.u32 %v19133_v25, 16  ;;  %v3631_v40 = vrot.slane %v19133_v25, 5  ;;  %v19155_v47 = vsel %vm3576_vm9, %v19133_v25, %v4054_v17  ;;  %v4195_v9 = vrot.slane %v19133_v25, 1 }
 0x5b4   :  { %v3772_v26 = vrot.slane %v19133_v25, 6  ;;  %v4336_v19 = vrot.slane %v19133_v25, 2  ;;  %v3299_v21 = vmax.f32 %v3228_v63, 0.0  ;;  %v4619_v17 = vrot.slane %v19133_v25, 4 }
 0x5b5   :  { %v4119_v3 = vsel %vm3576_vm9, %v4117_v38, %v4115_v55  ;;  %v3632_v5 = vsel %vm3576_vm9, %v3631_v40, %v3630_v18  ;;  %v3694_v41 = vshrl.u32 %v3631_v40, 16  ;;  %v19172_v23 = vsel %vm3576_vm9, %v4195_v9, %v4194_v24  ;;  %10256 = vmatpush.bf16.msra.mxu1 %v14396_v49 }
 0x5b6   :  { %v10119_v44 = vpop.f32.mrf.mxu3  ;;  %v19175_v43 = vsel %vm3576_vm9, %v3772_v26, %v3771_v45  ;;  %v4399_v8 = vshrl.u32 %v4336_v19, 16  ;;  %v3835_v1 = vshrl.u32 %v3772_v26, 16  ;;  %v19181_v55 = vsel %vm3576_vm9, %v4336_v19, %v4335_v0  ;;  %v3163_v45 = vpop.f32.mrf.mxu2 }
 0x5b7   :  { %v19178_v12 = vsel %vm3576_vm9, %v3694_v41, %v3692_v56  ;;  %v3913_v18 = vrot.slane %v19133_v25, 7  ;;  %v14395_v56 = vld [vmem:[%s21326_s5 + $0x788] sm:$0xff]  ;;  %v4681_v44 = vshrl.u32 %v4619_v17, 16  ;;  %v4679_v40 = vsel %vm3573_vm8, %v4614_v50, %v18971_v2 }
 0x5b8   :  { %v3229_v52 = vpop.f32.mrf.mxu1  ;;  %v19184_v16 = vsel %vm3576_vm9, %v4399_v8, %v4397_v32  ;;  %v19187_v20 = vsel %vm3576_vm9, %v3835_v1, %v3833_v14  ;;  %v3974_v14 = vsel %vm3573_vm8, %v3908_v15, %v18951_v31  ;;  %v4618_v24 = vsel %vm3573_vm8, %v4616_v4, %v18966_v39  ;;  %v14394_v15 = vld [vmem:[%s21326_s5 + $0x780] sm:$0xff]  ;;  %v21886_v39 = vld [vmem:[#allocation15_spill] sm:$0xff] }
 0x5b9   :  { %v3230_v13 = vadd.f32 %v3229_v52, %v3161_v58  ;;  %v19197_v32 = vsel %vm3576_vm9, %v3913_v18, %v3912_v11  ;;  %v3976_v63 = vshrl.u32 %v3913_v18, 16  ;;  %v3350_v58 = vpack.c.bf16 %v3299_v21, %v3299_v21  ;;  %10257 = vmatpush.bf16.msra.mxu1 %v14395_v56  ;;  %v21887_v8 = vld [vmem:[#allocation31_spill] sm:$0xff]  ;;  %v14409_v52 = vld [vmem:[%s21326_s5 + $0x7f8] sm:$0xff] }
 0x5ba   :  { %v19211_v7 = vsel %vm3576_vm9, %v4681_v44, %v4679_v40  ;;  %v19214_v26 = vsel %vm3576_vm9, %v4619_v17, %v4618_v24  ;;  %v2959_v49 = vadd.f32 %v21886_v39, %v17627_v42  ;;  %v3164_v41 = vadd.f32 %v3163_v45, %v18534_v62  ;;  %v14225_v56 = vld [vmem:[%s21326_s5 + $0x238] sm:$0xff]  ;;  %v14224_v40 = vld [vmem:[%s21326_s5 + $0x230] sm:$0xff] }
 0x5bb   :  { %v3302_v38 = vmax.f32 %v3230_v13, 0.0  ;;  %v19208_v61 = vsel %vm3576_vm9, %v3976_v63, %v3974_v14  ;;  %v3467_v19 = vunpack.c.l.b16 %v3350_v58  ;;  %v14385_v45 = vld [vmem:[%s21326_s5 + $0x738] sm:$0xff] }
 0x5bc   :  { %v3028_v1 = vadd.f32 %v21887_v8, %v2959_v49  ;;  %v14406_v49 = vld [vmem:[%s21326_s5 + $0x7e0] sm:$0xff] }
 0x5bd   :  { %v3352_v31 = vpack.c.bf16 %v3302_v38, %v3302_v38  ;;  %10258 = vmatpush.bf16.msra.mxu1 %v14394_v15 }
 0x5be   :  { %v3165_v17 = vpop.f32.mrf.mxu2  ;;  %v3097_v13 = vadd.f32 %v18570_v22, %v3028_v1  ;;  %v19269_v1 = vsel %vm3573_vm8, %v4190_v6, %v19149_v59  ;;  %v21889_v59 = vld [vmem:[#allocation65_spill] sm:$0xff] }
 0x5bf   :  { %v3470_v2 = vunpack.c.l.b16 %v3352_v31  ;;  %v14407_v31 = vld [vmem:[%s21326_s5 + $0x7e8] sm:$0xff] }
 0x5c0   :  { %v3232_v50 = vpop.f32.mrf.mxu1  ;;  %v3166_v14 = vadd.f32 %v3165_v17, %v3097_v13  ;;  %v14405_v17 = vld [vmem:[%s21326_s5 + $0x7d8] sm:$0xff] }
 0x5c1   :  { %v19222_v0 = vpack.c.b16 %v3470_v2, %v3467_v19  ;;  %v3233_v21 = vadd.f32 %v3232_v50, %v3164_v41  ;;  %v14223_v19 = vld [vmem:[%s21326_s5 + $0x228] sm:$0xff]  ;;  %v4143_v41 = vrot.slane %v17983_v36, 5 }
 0x5c2   :  { %v14383_v2 = vld [vmem:[%s21326_s5 + $0x728] sm:$0xff] }
 0x5c3   :  { %v4056_v4 = vrot.slane %v19222_v0, 4  ;;  %v3633_v18 = vrot.slane %v19222_v0, 1  ;;  %v3305_v63 = vmax.f32 %v3233_v21, 0.0  ;;  %v4145_v13 = vshll.u32 %v4143_v41, 16 }
 0x5c5   :  { %v4120_v42 = vsel %vm3582_vm10, %v4056_v4, %v4119_v3  ;;  %v3635_v62 = vshll.u32 %v3633_v18, 16  ;;  %v4058_v11 = vshll.u32 %v4056_v4, 16  ;;  %v14408_v3 = vld [vmem:[%s21326_s5 + $0x7f0] sm:$0xff]  ;;  %v3354_v24 = vpack.c.bf16 %v3305_v63, %v3305_v63  ;;  %v14222_v4 = vld [vmem:[%s21326_s5 + $0x220] sm:$0xff]  ;;  %v21890_v63 = vld [vmem:[#allocation21_spill] sm:$0xff] }
 0x5c6   :  { %10168 = vmatmul.bf16.vlgmr.msrb.gmra.mxu3 %v4120_v42  ;;  %v4221_v42 = vsel %vm3582_vm10, %v4143_v41, %v21889_v59  ;;  %v21896_v59 = vld [vmem:[#allocation9_spill] sm:$0xff] }
 0x5c7   :  { %10264 = vmatpush.bf16.msrb.mxu3 %v14409_v52  ;;  %v3637_v44 = vsel %vm3582_vm10, %v3635_v62, %v3632_v5  ;;  %v4060_v22 = vsel %vm3582_vm10, %v4058_v11, %v19155_v47  ;;  %v14384_v5 = vld [vmem:[%s21326_s5 + $0x730] sm:$0xff]  ;;  %v3473_v50 = vunpack.c.l.b16 %v3354_v24  ;;  %v14382_v52 = vld [vmem:[%s21326_s5 + $0x720] sm:$0xff]  ;;  %v14221_v62 = vld [vmem:[%s21326_s5 + $0x218] sm:$0xff] }
 0x5c8   :  { %v3234_v58 = vpop.f32.mrf.mxu1  ;;  %9895 = vmatmul.bf16.vlgmr.msra.gmra.mxu2 %v3637_v44  ;;  %10129 = vmatmul.bf16.vlgmr.msra.gmra.mxu0 %v4060_v22  ;;  %v14381_v11 = vld [vmem:[%s21326_s5 + $0x718] sm:$0xff]  ;;  %v4147_v44 = vsel %vm3582_vm10, %v4145_v13, %v21890_v63  ;;  %v14219_v24 = vld [vmem:[%s21326_s5 + $0x208] sm:$0xff] }
 0x5c9   :  { %v3235_v38 = vadd.f32 %v3234_v58, %v3166_v14  ;;  %9965 = vmatpush.bf16.msra.mxu2 %v14225_v56  ;;  %10225 = vmatpush.bf16.msra.mxu0 %v14385_v45  ;;  %v14433_v45 = vld [vmem:[%s21326_s5 + $0x8b8] sm:$0xff]  ;;  %v3697_v14 = vsel %vm3582_vm10, %v3633_v18, %v19178_v12  ;;  %v14380_v12 = vld [vmem:[%s21326_s5 + $0x710] sm:$0xff]  ;;  %v14403_v18 = vld [vmem:[%s21326_s5 + $0x7c8] sm:$0xff] }
 0x5ca   :  { %v14441_v13 = vld [vmem:[%s21326_s5 + $0x8f8] sm:$0xff] }
 0x5cb   :  { %v3308_v47 = vmax.f32 %v3235_v38, 0.0  ;;  %10265 = vmatpush.bf16.msrb.mxu3 %v14408_v3  ;;  %v14404_v3 = vld [vmem:[%s21326_s5 + $0x7d0] sm:$0xff]  ;;  %v21898_v63 = vld [vmem:[#allocation33_spill] sm:$0xff] }
 0x5cc   :  { %v14220_v38 = vld [vmem:[%s21326_s5 + $0x210] sm:$0xff] }
 0x5cd   :  { %v3356_v15 = vpack.c.bf16 %v3308_v47, %v3308_v47  ;;  %9966 = vmatpush.bf16.msra.mxu2 %v14224_v40  ;;  %10226 = vmatpush.bf16.msra.mxu0 %v14384_v5  ;;  %v21891_v40 = vld [vmem:[#allocation7_spill] sm:$0xff] }
 0x5ce   :  { %v21509_v5 = vrot.slane %v21891_v40, 1  ;;  %v14379_v47 = vld [vmem:[%s21326_s5 + $0x708] sm:$0xff] }
 0x5cf   :  { %v3476_v39 = vunpack.c.l.b16 %v3356_v15  ;;  %10266 = vmatpush.bf16.msrb.mxu3 %v14407_v31  ;;  %v14431_v31 = vld [vmem:[%s21326_s5 + $0x8a8] sm:$0xff]  ;;  %v21892_v15 = vld [vmem:[#allocation78_spill] sm:$0xff] }
 0x5d0   :  { %v19263_v8 = vpop.f32.mrf.mxu1  ;;  %v4266_v41 = vshll.u32 %v21509_v5, 16 }
 0x5d1   :  { %21888 = vst [vmem:[#allocation51_spill] sm:$0xff] %v19263_v8  ;;  %v19271_v21 = vpack.c.b16 %v3476_v39, %v3473_v50  ;;  %9967 = vmatpush.bf16.msra.mxu2 %v14223_v19  ;;  %10227 = vmatpush.bf16.msra.mxu0 %v14383_v2  ;;  %v21510_v19 = vrot.slane %v21892_v15, 5  ;;  %v14402_v2 = vld [vmem:[%s21326_s5 + $0x7c0] sm:$0xff]  ;;  %v21893_v50 = vld [vmem:[#allocation27_spill] sm:$0xff] }
 0x5d2   :  { %v4311_v39 = vrot.slane %v21893_v50, 6 }
 0x5d3   :  { %10267 = vmatpush.bf16.msrb.mxu3 %v14406_v49  ;;  %v21511_v6 = vrot.slane %v19271_v21, 5  ;;  %v3774_v49 = vrot.slane %v19222_v0, 2  ;;  %v21560_v30 = vrot.slane %v19271_v21, 3 }
 0x5d5   :  { %9968 = vmatpush.bf16.msra.mxu2 %v14222_v4  ;;  %10228 = vmatpush.bf16.msra.mxu0 %v14382_v52  ;;  %v4199_v56 = vshll.u32 %v21511_v6, 16  ;;  %v21894_v4 = vld [vmem:[#allocation12_spill] sm:$0xff] }
 0x5d6   :  { %10220 = vmatmul.bf16.vlgmr.msra.gmra.mxu3 %v4221_v42  ;;  %v21512_v52 = vrot.slane %v21894_v4, 7  ;;  %v21544_v42 = vrot.slane %v21896_v59, 4 }
 0x5d7   :  { %10268 = vmatpush.bf16.msrb.mxu3 %v14405_v17  ;;  %v4201_v22 = vsel %vm3582_vm10, %v4199_v56, %v19172_v23  ;;  %v14432_v23 = vld [vmem:[%s21326_s5 + $0x8b0] sm:$0xff]  ;;  %v14218_v56 = vld [vmem:[%s21326_s5 + $0x200] sm:$0xff] }
 0x5d8   :  { %9934 = vmatmul.bf16.vlgmr.msrb.gmra.mxu2 %v3697_v14  ;;  %v10106_v58 = vpop.f32.mrf.mxu1  ;;  %10181 = vmatmul.bf16.vlgmr.msrb.gmra.mxu0 %v4147_v44  ;;  %v21534_v14 = vrot.slane %v17983_v36, 6  ;;  %v21529_v44 = vrot.slane %v21898_v63, 2 }
 0x5d9   :  { %9969 = vmatpush.bf16.msra.mxu2 %v14221_v62  ;;  %10207 = vmatmul.bf16.vlgmr.msrb.gmra.mxu1 %v4201_v22  ;;  %v4258_v62 = vshrl.u32 %v4195_v9, 16  ;;  %v14378_v22 = vld [vmem:[%s21326_s5 + $0x700] sm:$0xff]  ;;  %v21899_v58 = vld [vmem:[#allocation8_spill] sm:$0xff] }
 0x5da   :  { %10229 = vmatpush.bf16.msra.mxu0 %v14381_v11  ;;  %10303 = vmatpush.bf16.msrb.mxu1 %v14433_v45  ;;  %v21897_v11 = vld [vmem:[#allocation25_spill] sm:$0xff]  ;;  %v14430_v9 = vld [vmem:[%s21326_s5 + $0x8a0] sm:$0xff] }
 0x5db   :  { %10269 = vmatpush.bf16.msrb.mxu3 %v14404_v3  ;;  %v4272_v45 = vshll.u32 %v21897_v11, 16  ;;  %v4263_v3 = vsel %vm3549_vm3, %v21510_v19, 0  ;;  %v14440_v19 = vld [vmem:[%s21326_s5 + $0x8f0] sm:$0xff] }
 0x5dd   :  { %9970 = vmatpush.bf16.msra.mxu2 %v14220_v38  ;;  %v21542_v38 = vrot.slane %v21899_v58, 3 }
 0x5de   :  { %10230 = vmatpush.bf16.msra.mxu0 %v14380_v12  ;;  %10304 = vmatpush.bf16.msrb.mxu1 %v14432_v23  ;;  %v19362_v12 = vsel %vm3576_vm9, %v4258_v62, %v19269_v1  ;;  %v14249_v23 = vld [vmem:[%s21326_s5 + $0x2f8] sm:$0xff]  ;;  %v4279_v1 = vshll.u32 %v21512_v52, 16  ;;  %v21900_v62 = vld [vmem:[#allocation24_spill] sm:$0xff] }
 0x5df   :  { %10270 = vmatpush.bf16.msrb.mxu3 %v14403_v18  ;;  %v14417_v18 = vld [vmem:[%s21326_s5 + $0x838] sm:$0xff]  ;;  %v21535_v5 = vrot.slane %v21900_v62, 2 }
 0x5e0   :  { %v19336_v17 = vpop.f32.mrf.mxu1 }
 0x5e1   :  { %21895 = vst [vmem:[#allocation20_spill] sm:$0xff] %v19336_v17  ;;  %9971 = vmatpush.bf16.msra.mxu2 %v14219_v24  ;;  %v4313_v24 = vshll.u32 %v4311_v39, 16 }
 0x5e2   :  { %10231 = vmatpush.bf16.msra.mxu0 %v14379_v47  ;;  %10305 = vmatpush.bf16.msrb.mxu1 %v14431_v31  ;;  %v3776_v47 = vshll.u32 %v3774_v49, 16  ;;  %v4268_v31 = vsel %vm3555_vm4, %v4266_v41, %v4263_v3  ;;  %v4286_v41 = vshll.u32 %v21534_v14, 16  ;;  %v5089_v3 = vshrl.u32 %v21529_v44, 16 }
 0x5e3   :  { %10271 = vmatpush.bf16.msrb.mxu3 %v14402_v2  ;;  %v4270_v2 = vsel %vm3558_vm5, %v21544_v42, %v4268_v31  ;;  %v21901_v31 = vld [vmem:[#allocation61_spill] sm:$0xff]  ;;  %v21538_v14 = vrot.slane %v21893_v50, 7 }
 0x5e4   :  { %v4274_v6 = vsel %vm3564_vm6, %v4272_v45, %v4270_v2  ;;  %v4315_v52 = vsel %vm3582_vm10, %v4313_v24, %v21901_v31  ;;  %v3778_v45 = vsel %vm3582_vm10, %v3776_v47, %v19175_v43  ;;  %v14416_v47 = vld [vmem:[%s21326_s5 + $0x830] sm:$0xff]  ;;  %v14357_v42 = vld [vmem:[%s21326_s5 + $0x658] sm:$0xff] }
 0x5e5   :  { %9972 = vmatpush.bf16.msra.mxu2 %v14218_v56  ;;  %v21532_v56 = vrot.slane %v18630_v51, 6 }
 0x5e6   :  { %10232 = vmatpush.bf16.msra.mxu0 %v14378_v22  ;;  %10306 = vmatpush.bf16.msrb.mxu1 %v14430_v9  ;;  %v14429_v22 = vld [vmem:[%s21326_s5 + $0x898] sm:$0xff] }
 0x5e7   :  { %10316 = vmatpush.bf16.msra.mxu3 %v14441_v13  ;;  %v4276_v13 = vsel %vm3567_vm7, %v21542_v38, %v4274_v6  ;;  %v14248_v6 = vld [vmem:[%s21326_s5 + $0x2f0] sm:$0xff] }
 0x5e8   :  { %v4281_v2 = vsel %vm3573_vm8, %v4279_v1, %v4276_v13  ;;  %10272 = vmatmul.bf16.vlgmr.msrb.gmra.mxu3 %v4315_v52  ;;  %9973 = vmatmul.bf16.vlgmr.msra.gmra.mxu2 %v3778_v45  ;;  %v10158_v9 = vpop.f32.mrf.mxu1  ;;  %v14439_v52 = vld [vmem:[%s21326_s5 + $0x8e8] sm:$0xff]  ;;  %v5091_v13 = vsel %vm3549_vm3, %v5089_v3, 0  ;;  %v14438_v45 = vld [vmem:[%s21326_s5 + $0x8e0] sm:$0xff] }
 0x5e9   :  { %10004 = vmatpush.bf16.msrb.mxu2 %v14249_v23  ;;  %v21902_v23 = vld [vmem:[#allocation69_spill] sm:$0xff]  ;;  %v4283_v43 = vsel %vm3576_vm9, %v21535_v5, %v4281_v2  ;;  %v19422_v31 = vsel %vm3555_vm4, %v21532_v56, %v5091_v13  ;;  %v14415_v3 = vld [vmem:[%s21326_s5 + $0x828] sm:$0xff]  ;;  %v14464_v13 = vld [vmem:[%s21326_s5 + $0x9b0] sm:$0xff] }
 0x5ea   :  { %10277 = vmatpush.bf16.msrb.mxu0 %v14417_v18  ;;  %v21903_v18 = vrot.slane %v21893_v50, 5  ;;  %v4288_v1 = vsel %vm3582_vm10, %v4286_v41, %v4283_v43  ;;  %10307 = vmatpush.bf16.msrb.mxu1 %v14429_v22  ;;  %v14247_v41 = vld [vmem:[%s21326_s5 + $0x2e8] sm:$0xff]  ;;  %v14246_v22 = vld [vmem:[%s21326_s5 + $0x2e0] sm:$0xff]  ;;  %v14437_v9 = vld [vmem:[%s21326_s5 + $0x8d8] sm:$0xff] }
 0x5eb   :  { %10317 = vmatpush.bf16.msra.mxu3 %v14440_v19  ;;  %10259 = vmatmul.bf16.vlgmr.msra.gmra.mxu1 %v4288_v1  ;;  %v14428_v19 = vld [vmem:[%s21326_s5 + $0x890] sm:$0xff]  ;;  %v14427_v2 = vld [vmem:[%s21326_s5 + $0x888] sm:$0xff]  ;;  %v14465_v43 = vld [vmem:[%s21326_s5 + $0x9b8] sm:$0xff] }
 0x5ec   :  { %v4241_v24 = vsel %vm3582_vm10, %v21903_v18, %v21902_v23  ;;  %v14426_v23 = vld [vmem:[%s21326_s5 + $0x880] sm:$0xff]  ;;  %v14245_v18 = vld [vmem:[%s21326_s5 + $0x2d8] sm:$0xff]  ;;  %v14244_v1 = vld [vmem:[%s21326_s5 + $0x2d0] sm:$0xff] }
 0x5ed   :  { %10233 = vmatmul.bf16.vlgmr.msra.gmra.mxu0 %v4241_v24  ;;  %10005 = vmatpush.bf16.msrb.mxu2 %v14248_v6  ;;  %v14414_v6 = vld [vmem:[%s21326_s5 + $0x820] sm:$0xff]  ;;  %v14413_v24 = vld [vmem:[%s21326_s5 + $0x818] sm:$0xff] }
 0x5ee   :  { %10278 = vmatpush.bf16.msrb.mxu0 %v14416_v47  ;;  %10308 = vmatpush.bf16.msrb.mxu1 %v14428_v19  ;;  %v14436_v47 = vld [vmem:[%s21326_s5 + $0x8d0] sm:$0xff]  ;;  %v21904_v19 = vld [vmem:[#allocation71_spill] sm:$0xff] }
 0x5ef   :  { %10318 = vmatpush.bf16.msra.mxu3 %v14439_v52  ;;  %v14412_v52 = vld [vmem:[%s21326_s5 + $0x810] sm:$0xff] }
 0x5f1   :  { %10006 = vmatpush.bf16.msrb.mxu2 %v14247_v41  ;;  %v4382_v41 = vsel %vm3582_vm10, %v4311_v39, %v21904_v19  ;;  %v14463_v39 = vld [vmem:[%s21326_s5 + $0x9a8] sm:$0xff]  ;;  %v14472_v19 = vld [vmem:[%s21326_s5 + $0x9f0] sm:$0xff] }
 0x5f2   :  { %10279 = vmatpush.bf16.msrb.mxu0 %v14415_v3  ;;  %10309 = vmatpush.bf16.msrb.mxu1 %v14427_v2  ;;  %v14435_v3 = vld [vmem:[%s21326_s5 + $0x8c8] sm:$0xff] }
 0x5f3   :  { %10319 = vmatpush.bf16.msra.mxu3 %v14438_v45  ;;  %v14243_v45 = vld [vmem:[%s21326_s5 + $0x2c8] sm:$0xff] }
 0x5f4   :  { %v14411_v2 = vld [vmem:[%s21326_s5 + $0x808] sm:$0xff] }
 0x5f5   :  { %10007 = vmatpush.bf16.msrb.mxu2 %v14246_v22  ;;  %v14434_v22 = vld [vmem:[%s21326_s5 + $0x8c0] sm:$0xff] }
 0x5f6   :  { %10280 = vmatpush.bf16.msrb.mxu0 %v14414_v6  ;;  %10310 = vmatpush.bf16.msrb.mxu1 %v14426_v23  ;;  %v14473_v6 = vld [vmem:[%s21326_s5 + $0x9f8] sm:$0xff]  ;;  %v14242_v23 = vld [vmem:[%s21326_s5 + $0x2c0] sm:$0xff] }
 0x5f7   :  { %10320 = vmatpush.bf16.msra.mxu3 %v14437_v9  ;;  %v4338_v9 = vrot.slane %v19271_v21, 6 }
 0x5f9   :  { %10008 = vmatpush.bf16.msrb.mxu2 %v14245_v18  ;;  %v14410_v18 = vld [vmem:[%s21326_s5 + $0x800] sm:$0xff] }
 0x5fa   :  { %10281 = vmatpush.bf16.msrb.mxu0 %v14413_v24  ;;  %10355 = vmatpush.bf16.msra.mxu1 %v14465_v43  ;;  %v14462_v24 = vld [vmem:[%s21326_s5 + $0x9a0] sm:$0xff]  ;;  %v21905_v43 = vrot.slane %v19271_v21, 5 }
 0x5fb   :  { %10321 = vmatpush.bf16.msra.mxu3 %v14436_v47  ;;  %10311 = vmatmul.bf16.vlgmr.msrb.gmra.mxu1 %v4382_v41  ;;  %v14461_v41 = vld [vmem:[%s21326_s5 + $0x998] sm:$0xff] }
 0x5fc   :  { %v19508_v47 = vsel %vm3582_vm10, %v21905_v43, %v19362_v12  ;;  %v4402_v12 = vsel %vm3582_vm10, %v4338_v9, %v19184_v16  ;;  %v14459_v43 = vld [vmem:[%s21326_s5 + $0x988] sm:$0xff] }
 0x5fd   :  { %10009 = vmatpush.bf16.msrb.mxu2 %v14244_v1  ;;  %v14273_v1 = vld [vmem:[%s21326_s5 + $0x3b8] sm:$0xff] }
 0x5fe   :  { %10282 = vmatpush.bf16.msrb.mxu0 %v14412_v52  ;;  %10356 = vmatpush.bf16.msra.mxu1 %v14464_v13  ;;  %v14449_v52 = vld [vmem:[%s21326_s5 + $0x938] sm:$0xff]  ;;  %v4340_v13 = vshll.u32 %v4338_v9, 16  ;;  %v21514_v9 = vrot.slane %v18769_v10, 1 }
 0x5ff   :  { %10322 = vmatpush.bf16.msra.mxu3 %v14435_v3  ;;  %v3838_v3 = vsel %vm3582_vm10, %v3774_v49, %v19187_v20  ;;  %v14471_v20 = vld [vmem:[%s21326_s5 + $0x9e8] sm:$0xff]  ;;  %v14460_v49 = vld [vmem:[%s21326_s5 + $0x990] sm:$0xff] }
 0x600   :  { %v4342_v16 = vsel %vm3582_vm10, %v4340_v13, %v19181_v55  ;;  %v14271_v55 = vld [vmem:[%s21326_s5 + $0x3a8] sm:$0xff]  ;;  %v14270_v13 = vld [vmem:[%s21326_s5 + $0x3a0] sm:$0xff] }
 0x601   :  { %10010 = vmatpush.bf16.msrb.mxu2 %v14243_v45  ;;  %v14272_v45 = vld [vmem:[%s21326_s5 + $0x3b0] sm:$0xff] }
 0x602   :  { %10283 = vmatpush.bf16.msrb.mxu0 %v14411_v2  ;;  %10357 = vmatpush.bf16.msra.mxu1 %v14463_v39  ;;  %v14448_v2 = vld [vmem:[%s21326_s5 + $0x930] sm:$0xff]  ;;  %v21528_v39 = vrot.slane %v18755_v46, 1 }
 0x603   :  { %10323 = vmatpush.bf16.msra.mxu3 %v14434_v22  ;;  %v21519_v22 = vrot.slane %v18630_v51, 2 }
 0x605   :  { %10011 = vmatpush.bf16.msrb.mxu2 %v14242_v23  ;;  %v5094_v23 = vshrl.u32 %v21528_v39, 16  ;;  %v14526_v39 = vld [vmem:[%s21326_s5 + $0xba0] sm:$0xff] }
 0x606   :  { %10284 = vmatpush.bf16.msrb.mxu0 %v14410_v18  ;;  %10358 = vmatpush.bf16.msra.mxu1 %v14462_v24  ;;  %v14470_v18 = vld [vmem:[%s21326_s5 + $0x9e0] sm:$0xff]  ;;  %v21526_v24 = vrot.slane %v18561_v57, 6 }
 0x607   :  { %10368 = vmatpush.bf16.msrb.mxu3 %v14473_v6  ;;  %v14447_v6 = vld [vmem:[%s21326_s5 + $0x928] sm:$0xff] }
 0x608   :  { %10324 = vmatmul.bf16.vlgmr.msra.gmra.mxu3 %v4402_v12  ;;  %10012 = vmatmul.bf16.vlgmr.msrb.gmra.mxu2 %v3838_v3  ;;  %v14446_v12 = vld [vmem:[%s21326_s5 + $0x920] sm:$0xff]  ;;  %v21513_v3 = vrot.slane %v19271_v21, 7 }
 0x609   :  { %10043 = vmatpush.bf16.msra.mxu2 %v14273_v1  ;;  %10285 = vmatmul.bf16.vlgmr.msrb.gmra.mxu0 %v4342_v16  ;;  %v4461_v1 = vshll.u32 %v21519_v22, 16  ;;  %v21524_v16 = vrot.slane %v18840_v60, 4  ;;  %v21522_v22 = vrot.slane %v21900_v62, 4 }
 0x60a   :  { %10329 = vmatpush.bf16.msra.mxu0 %v14449_v52  ;;  %10359 = vmatpush.bf16.msra.mxu1 %v14461_v41  ;;  %v5096_v52 = vsel %vm3558_vm5, %v5094_v23, %v19422_v31  ;;  %v4468_v41 = vshll.u32 %v21514_v9, 16  ;;  %v14469_v31 = vld [vmem:[%s21326_s5 + $0x9d8] sm:$0xff] }
 0x60b   :  { %10369 = vmatpush.bf16.msrb.mxu3 %v14472_v19  ;;  %v21525_v19 = vrot.slane %v18685_v34, 5 }
 0x60d   :  { %10044 = vmatpush.bf16.msra.mxu2 %v14272_v45  ;;  %v4458_v45 = vsel %vm3549_vm3, %v21526_v24, 0  ;;  %v21913_v24 = vld [vmem:[#allocation11_spill] sm:$0xff] }
 0x60e   :  { %10330 = vmatpush.bf16.msra.mxu0 %v14448_v2  ;;  %10360 = vmatpush.bf16.msra.mxu1 %v14460_v49  ;;  %v14458_v2 = vld [vmem:[%s21326_s5 + $0x980] sm:$0xff]  ;;  %v4474_v49 = vshll.u32 %v19054_v35, 16 }
 0x60f   :  { %10370 = vmatpush.bf16.msrb.mxu3 %v14471_v20  ;;  %v4463_v20 = vsel %vm3555_vm4, %v4461_v1, %v4458_v45 }
 0x610   :  { %v4465_v23 = vsel %vm3558_vm5, %v21525_v19, %v4463_v20  ;;  %v14468_v20 = vld [vmem:[%s21326_s5 + $0x9d0] sm:$0xff] }
 0x611   :  { %10045 = vmatpush.bf16.msra.mxu2 %v14271_v55  ;;  %v14269_v55 = vld [vmem:[%s21326_s5 + $0x398] sm:$0xff]  ;;  %v4470_v1 = vsel %vm3564_vm6, %v4468_v41, %v4465_v23  ;;  %v14496_v23 = vld [vmem:[%s21326_s5 + $0xab0] sm:$0xff] }
 0x612   :  { %10331 = vmatpush.bf16.msra.mxu0 %v14447_v6  ;;  %10361 = vmatpush.bf16.msra.mxu1 %v14459_v43  ;;  %v14497_v6 = vld [vmem:[%s21326_s5 + $0xab8] sm:$0xff]  ;;  %v4472_v45 = vsel %vm3567_vm7, %v21524_v16, %v4470_v1 }
 0x613   :  { %10371 = vmatpush.bf16.msrb.mxu3 %v14470_v18  ;;  %v21515_v18 = vrot.slane %v19133_v25, 3  ;;  %v14445_v43 = vld [vmem:[%s21326_s5 + $0x918] sm:$0xff]  ;;  %v4707_v25 = vrot.slane %v17983_v36, 1 }
 0x615   :  { %10046 = vmatpush.bf16.msra.mxu2 %v14270_v13  ;;  %v4481_v13 = vshll.u32 %v21513_v3, 16  ;;  %v14493_v3 = vld [vmem:[%s21326_s5 + $0xa98] sm:$0xff] }
 0x616   :  { %10332 = vmatpush.bf16.msra.mxu0 %v14446_v12  ;;  %10362 = vmatpush.bf16.msra.mxu1 %v14458_v2  ;;  %v4476_v12 = vsel %vm3573_vm8, %v4474_v49, %v4472_v45  ;;  %v14444_v2 = vld [vmem:[%s21326_s5 + $0x910] sm:$0xff]  ;;  %v21531_v49 = vrot.slane %v18769_v10, 5 }
 0x617   :  { %10372 = vmatpush.bf16.msrb.mxu3 %v14469_v31  ;;  %v4478_v41 = vsel %vm3576_vm9, %v21515_v18, %v4476_v12  ;;  %v14268_v31 = vld [vmem:[%s21326_s5 + $0x390] sm:$0xff]  ;;  %v3915_v12 = vrot.slane %v19222_v0, 3 }
 0x618   :  { %v4483_v1 = vsel %vm3582_vm10, %v4481_v13, %v4478_v41  ;;  %v14443_v13 = vld [vmem:[%s21326_s5 + $0x908] sm:$0xff]  ;;  %v19638_v45 = vsel %vm3564_vm6, %v21531_v49, %v5096_v52  ;;  %v14505_v41 = vld [vmem:[%s21326_s5 + $0xaf8] sm:$0xff]  ;;  %v14266_v52 = vld [vmem:[%s21326_s5 + $0x380] sm:$0xff] }
 0x619   :  { %10047 = vmatpush.bf16.msra.mxu2 %v14269_v55  ;;  %10363 = vmatmul.bf16.vlgmr.msra.gmra.mxu1 %v4483_v1  ;;  %v14467_v55 = vld [vmem:[%s21326_s5 + $0x9c8] sm:$0xff]  ;;  %v14442_v1 = vld [vmem:[%s21326_s5 + $0x900] sm:$0xff] }
 0x61a   :  { %10407 = vmatpush.bf16.msrb.mxu1 %v14497_v6  ;;  %10333 = vmatpush.bf16.msra.mxu0 %v14445_v43  ;;  %v14267_v6 = vld [vmem:[%s21326_s5 + $0x388] sm:$0xff]  ;;  %v14474_v49 = vld [vmem:[%s21326_s5 + $0xa00] sm:$0xff] }
 0x61b   :  { %10373 = vmatpush.bf16.msrb.mxu3 %v14468_v20  ;;  %v14495_v43 = vld [vmem:[%s21326_s5 + $0xaa8] sm:$0xff]  ;;  %v14466_v20 = vld [vmem:[%s21326_s5 + $0x9c0] sm:$0xff] }
 0x61d   :  { %10048 = vmatpush.bf16.msra.mxu2 %v14268_v31  ;;  %v4425_v31 = vrot.slane %v17983_v36, 7 }
 0x61e   :  { %10408 = vmatpush.bf16.msrb.mxu1 %v14496_v23  ;;  %10334 = vmatpush.bf16.msra.mxu0 %v14444_v2  ;;  %v14494_v23 = vld [vmem:[%s21326_s5 + $0xaa0] sm:$0xff]  ;;  %v14297_v2 = vld [vmem:[%s21326_s5 + $0x478] sm:$0xff] }
 0x61f   :  { %10374 = vmatpush.bf16.msrb.mxu3 %v14467_v55  ;;  %v14481_v55 = vld [vmem:[%s21326_s5 + $0xa38] sm:$0xff] }
 0x621   :  { %10049 = vmatpush.bf16.msra.mxu2 %v14267_v6  ;;  %v3917_v6 = vshll.u32 %v3915_v12, 16 }
 0x622   :  { %10409 = vmatpush.bf16.msrb.mxu1 %v14495_v43  ;;  %10335 = vmatpush.bf16.msra.mxu0 %v14443_v13  ;;  %v4427_v43 = vshll.u32 %v4425_v31, 16  ;;  %v14504_v13 = vld [vmem:[%s21326_s5 + $0xaf0] sm:$0xff] }
 0x623   :  { %10375 = vmatpush.bf16.msrb.mxu3 %v14466_v20  ;;  %v21906_v20 = vld [vmem:[#allocation30_spill] sm:$0xff]  ;;  %v3919_v18 = vsel %vm3582_vm10, %v3917_v6, %v19197_v32  ;;  %v21516_v32 = vrot.slane %v21891_v40, 3  ;;  %v21518_v6 = vrot.slane %v21892_v15, 7 }
 0x624   :  { %v4503_v9 = vsel %vm3582_vm10, %v4425_v31, %v21906_v20  ;;  %v14503_v31 = vld [vmem:[%s21326_s5 + $0xae8] sm:$0xff]  ;;  %v21520_v20 = vrot.slane %v21894_v4, 1 }
 0x625   :  { %10050 = vmatpush.bf16.msra.mxu2 %v14266_v52  ;;  %v14480_v52 = vld [vmem:[%s21326_s5 + $0xa30] sm:$0xff] }
 0x626   :  { %10410 = vmatpush.bf16.msrb.mxu1 %v14494_v23  ;;  %10336 = vmatpush.bf16.msra.mxu0 %v14442_v1  ;;  %v21907_v23 = vld [vmem:[#allocation41_spill] sm:$0xff] }
 0x627   :  { %10420 = vmatpush.bf16.msra.mxu3 %v14505_v41  ;;  %v14296_v41 = vld [vmem:[%s21326_s5 + $0x470] sm:$0xff]  ;;  %v4429_v1 = vsel %vm3582_vm10, %v4427_v43, %v21907_v23  ;;  %v14491_v43 = vld [vmem:[%s21326_s5 + $0xa88] sm:$0xff]  ;;  %v14478_v23 = vld [vmem:[%s21326_s5 + $0xa20] sm:$0xff] }
 0x628   :  { %10376 = vmatmul.bf16.vlgmr.msrb.gmra.mxu3 %v4503_v9  ;;  %10051 = vmatmul.bf16.vlgmr.msra.gmra.mxu2 %v3919_v18  ;;  %v14492_v9 = vld [vmem:[%s21326_s5 + $0xa90] sm:$0xff]  ;;  %v14295_v18 = vld [vmem:[%s21326_s5 + $0x468] sm:$0xff] }
 0x629   :  { %10082 = vmatpush.bf16.msrb.mxu2 %v14297_v2  ;;  %10337 = vmatmul.bf16.vlgmr.msra.gmra.mxu0 %v4429_v1  ;;  %v14479_v2 = vld [vmem:[%s21326_s5 + $0xa28] sm:$0xff] }
 0x62a   :  { %10381 = vmatpush.bf16.msrb.mxu0 %v14481_v55  ;;  %10411 = vmatpush.bf16.msrb.mxu1 %v14493_v3  ;;  %v21517_v55 = vrot.slane %v21897_v11, 2  ;;  %v14502_v3 = vld [vmem:[%s21326_s5 + $0xae0] sm:$0xff] }
 0x62b   :  { %10421 = vmatpush.bf16.msra.mxu3 %v14504_v13  ;;  %v4548_v13 = vshll.u32 %v21516_v32, 16 }
 0x62c   :  { %v4555_v1 = vshll.u32 %v21517_v55, 16  ;;  %v14293_v55 = vld [vmem:[%s21326_s5 + $0x458] sm:$0xff] }
 0x62d   :  { %10083 = vmatpush.bf16.msrb.mxu2 %v14296_v41  ;;  %v14294_v41 = vld [vmem:[%s21326_s5 + $0x460] sm:$0xff] }
 0x62e   :  { %10382 = vmatpush.bf16.msrb.mxu0 %v14480_v52  ;;  %10412 = vmatpush.bf16.msrb.mxu1 %v14492_v9  ;;  %v21523_v52 = vrot.slane %v21896_v59, 6  ;;  %v4545_v9 = vsel %vm3549_vm3, %v21518_v6, 0  ;;  %v14529_v6 = vld [vmem:[%s21326_s5 + $0xbb8] sm:$0xff] }
 0x62f   :  { %10422 = vmatpush.bf16.msra.mxu3 %v14503_v31  ;;  %v14501_v31 = vld [vmem:[%s21326_s5 + $0xad8] sm:$0xff]  ;;  %v4550_v32 = vsel %vm3555_vm4, %v4548_v13, %v4545_v9  ;;  %v4568_v9 = vshll.u32 %v17983_v36, 16 }
 0x630   :  { %v14477_v13 = vld [vmem:[%s21326_s5 + $0xa18] sm:$0xff] }
 0x631   :  { %10084 = vmatpush.bf16.msrb.mxu2 %v14295_v18  ;;  %v21521_v18 = vrot.slane %v21899_v58, 5 }
 0x632   :  { %10383 = vmatpush.bf16.msrb.mxu0 %v14479_v2  ;;  %10413 = vmatpush.bf16.msrb.mxu1 %v14491_v43  ;;  %v14490_v2 = vld [vmem:[%s21326_s5 + $0xa80] sm:$0xff]  ;;  %v4552_v43 = vsel %vm3558_vm5, %v21523_v52, %v4550_v32  ;;  %v14500_v32 = vld [vmem:[%s21326_s5 + $0xad0] sm:$0xff]  ;;  %v21912_v52 = vld [vmem:[#allocation19_spill] sm:$0xff] }
 0x633   :  { %10423 = vmatpush.bf16.msra.mxu3 %v14502_v3  ;;  %v4562_v3 = vshll.u32 %v21520_v20, 16  ;;  %v21536_v16 = vrot.slane %v21912_v52, 3 }
 0x635   :  { %10085 = vmatpush.bf16.msrb.mxu2 %v14294_v41  ;;  %v4557_v41 = vsel %vm3564_vm6, %v4555_v1, %v4552_v43  ;;  %v14528_v43 = vld [vmem:[%s21326_s5 + $0xbb0] sm:$0xff] }
 0x636   :  { %10384 = vmatpush.bf16.msrb.mxu0 %v14478_v23  ;;  %v4559_v20 = vsel %vm3567_vm7, %v21521_v18, %v4557_v41  ;;  %10414 = vmatpush.bf16.msrb.mxu1 %v14490_v2  ;;  %v21908_v41 = vld [vmem:[#allocation79_spill] sm:$0xff] }
 0x637   :  { %10424 = vmatpush.bf16.msra.mxu3 %v14501_v31  ;;  %v4564_v23 = vsel %vm3573_vm8, %v4562_v3, %v4559_v20  ;;  %v14292_v31 = vld [vmem:[%s21326_s5 + $0x450] sm:$0xff]  ;;  %v21527_v18 = vrot.slane %v21908_v41, 6  ;;  %v21909_v20 = vld [vmem:[#allocation22_spill] sm:$0xff] }
 0x638   :  { %v4566_v1 = vsel %vm3576_vm9, %v21522_v22, %v4564_v23  ;;  %v21530_v3 = vrot.slane %v21909_v20, 5  ;;  %v21910_v23 = vld [vmem:[#allocation63_spill] sm:$0xff]  ;;  %v14498_v22 = vld [vmem:[%s21326_s5 + $0xac0] sm:$0xff] }
 0x639   :  { %10086 = vmatpush.bf16.msrb.mxu2 %v14293_v55  ;;  %v4570_v2 = vsel %vm3582_vm10, %v4568_v9, %v4566_v1  ;;  %v14476_v55 = vld [vmem:[%s21326_s5 + $0xa10] sm:$0xff]  ;;  %v14527_v9 = vld [vmem:[%s21326_s5 + $0xba8] sm:$0xff]  ;;  %v21533_v1 = vrot.slane %v21910_v23, 4 }
 0x63a   :  { %10459 = vmatpush.bf16.msra.mxu1 %v14529_v6  ;;  %10385 = vmatpush.bf16.msrb.mxu0 %v14477_v13  ;;  %v14499_v6 = vld [vmem:[%s21326_s5 + $0xac8] sm:$0xff]  ;;  %v4510_v19 = vshrl.u32 %v21530_v3, 16 }
 0x63b   :  { %10415 = vmatmul.bf16.vlgmr.msrb.gmra.mxu1 %v4570_v2  ;;  %10425 = vmatpush.bf16.msra.mxu3 %v14500_v32  ;;  %v14291_v13 = vld [vmem:[%s21326_s5 + $0x448] sm:$0xff]  ;;  %v4505_v32 = vshrl.u32 %v21527_v18, 16  ;;  %v21537_v18 = vrot.slane %v21913_v24, 1  ;;  %v4515_v3 = vshrl.u32 %v21533_v1, 16  ;;  %v4520_v1 = vshrl.u32 %v21536_v16, 16  ;;  %v21915_v16 = vld [vmem:[#allocation17_spill] sm:$0xff] }
 0x63c   :  { %v14475_v2 = vld [vmem:[%s21326_s5 + $0xa08] sm:$0xff] }
 0x63d   :  { %10087 = vmatpush.bf16.msrb.mxu2 %v14292_v31  ;;  %v21911_v31 = vld [vmem:[#allocation82_spill] sm:$0xff]  ;;  %v4507_v44 = vsel %vm3549_vm3, %v4505_v32, 0  ;;  %v14513_v32 = vld [vmem:[%s21326_s5 + $0xb38] sm:$0xff] }
 0x63e   :  { %10460 = vmatpush.bf16.msra.mxu1 %v14528_v43  ;;  %10386 = vmatpush.bf16.msrb.mxu0 %v14476_v55  ;;  %v21539_v43 = vrot.slane %v21911_v31, 2  ;;  %v14537_v55 = vld [vmem:[%s21326_s5 + $0xbf8] sm:$0xff] }
 0x63f   :  { %10426 = vmatpush.bf16.msra.mxu3 %v14499_v6  ;;  %v14290_v6 = vld [vmem:[%s21326_s5 + $0x440] sm:$0xff] }
 0x640   :  { %v4508_v56 = vsel %vm3555_vm4, %v21539_v43, %v4507_v44  ;;  %v14536_v44 = vld [vmem:[%s21326_s5 + $0xbf0] sm:$0xff]  ;;  %v21925_v43 = vld [vmem:[#allocation43_spill] sm:$0xff] }
 0x641   :  { %10088 = vmatpush.bf16.msrb.mxu2 %v14291_v13  ;;  %v14329_v13 = vld [vmem:[%s21326_s5 + $0x578] sm:$0xff] }
 0x642   :  { %10461 = vmatpush.bf16.msra.mxu1 %v14527_v9  ;;  %10387 = vmatpush.bf16.msrb.mxu0 %v14475_v2  ;;  %v4595_v9 = vshll.u32 %v21893_v50, 16  ;;  %v4512_v2 = vsel %vm3558_vm5, %v4510_v19, %v4508_v56  ;;  %v14525_v56 = vld [vmem:[%s21326_s5 + $0xb98] sm:$0xff] }
 0x643   :  { %10427 = vmatpush.bf16.msra.mxu3 %v14498_v22  ;;  %v4513_v5 = vsel %vm3564_vm6, %v21537_v18, %v4512_v2  ;;  %v21914_v19 = vld [vmem:[#allocation13_spill] sm:$0xff]  ;;  %v14328_v18 = vld [vmem:[%s21326_s5 + $0x570] sm:$0xff] }
 0x644   :  { %v4517_v22 = vsel %vm3567_vm7, %v4515_v3, %v4513_v5  ;;  %v3979_v5 = vsel %vm3582_vm10, %v3915_v12, %v19208_v61  ;;  %v14524_v61 = vld [vmem:[%s21326_s5 + $0xb90] sm:$0xff]  ;;  %v14327_v12 = vld [vmem:[%s21326_s5 + $0x568] sm:$0xff] }
 0x645   :  { %10089 = vmatpush.bf16.msrb.mxu2 %v14290_v6  ;;  %v4518_v2 = vsel %vm3573_vm8, %v21915_v16, %v4517_v22  ;;  %v14535_v6 = vld [vmem:[%s21326_s5 + $0xbe8] sm:$0xff]  ;;  %v14326_v22 = vld [vmem:[%s21326_s5 + $0x560] sm:$0xff] }
 0x646   :  { %10462 = vmatpush.bf16.msra.mxu1 %v14526_v39  ;;  %10388 = vmatpush.bf16.msrb.mxu0 %v14474_v49  ;;  %v4522_v39 = vsel %vm3576_vm9, %v4520_v1, %v4518_v2  ;;  %v14512_v49 = vld [vmem:[%s21326_s5 + $0xb30] sm:$0xff]  ;;  %v14511_v1 = vld [vmem:[%s21326_s5 + $0xb28] sm:$0xff] }
 0x647   :  { %10472 = vmatpush.bf16.msrb.mxu3 %v14537_v55  ;;  %v4597_v55 = vsel %vm3582_vm10, %v4595_v9, %v21914_v19  ;;  %v4523_v3 = vsel %vm3582_vm10, %v21538_v14, %v4522_v39  ;;  %v14534_v9 = vld [vmem:[%s21326_s5 + $0xbe0] sm:$0xff] }
 0x648   :  { %10428 = vmatmul.bf16.vlgmr.msra.gmra.mxu3 %v4597_v55  ;;  %10090 = vmatmul.bf16.vlgmr.msrb.gmra.mxu2 %v3979_v5  ;;  %v14533_v55 = vld [vmem:[%s21326_s5 + $0xbd8] sm:$0xff]  ;;  %v14522_v5 = vld [vmem:[%s21326_s5 + $0xb80] sm:$0xff] }
 0x649   :  { %10134 = vmatpush.bf16.msra.mxu2 %v14329_v13  ;;  %10389 = vmatmul.bf16.vlgmr.msrb.gmra.mxu0 %v4523_v3  ;;  %v19858_v13 = vpop.f32.mrf.mxu0  ;;  %v19874_v19 = vpop.f32.mrf.mxu3  ;;  %v14325_v3 = vld [vmem:[%s21326_s5 + $0x558] sm:$0xff] }
 0x64a   :  { %10433 = vmatpush.bf16.msra.mxu0 %v14513_v32  ;;  %10463 = vmatpush.bf16.msra.mxu1 %v14525_v56  ;;  %21916 = vst [vmem:[#allocation2_spill] sm:$0xff] %v19858_v13  ;;  %v5099_v32 = vshrl.u32 %v18985_v29, 16  ;;  %v14510_v56 = vld [vmem:[%s21326_s5 + $0xb20] sm:$0xff] }
 0x64b   :  { %10473 = vmatpush.bf16.msrb.mxu3 %v14536_v44  ;;  %v21541_v44 = vrot.slane %v19054_v35, 4  ;;  %21917 = vst [vmem:[#allocation6_spill] sm:$0xff] %v19874_v19 }
 0x64c   :  { %v5101_v2 = vsel %vm3567_vm7, %v5099_v32, %v19638_v45  ;;  %v14561_v45 = vld [vmem:[%s21326_s5 + $0xcb8] sm:$0xff]  ;;  %v14324_v32 = vld [vmem:[%s21326_s5 + $0x550] sm:$0xff] }
 0x64d   :  { %10135 = vmatpush.bf16.msra.mxu2 %v14328_v18  ;;  %v14523_v18 = vld [vmem:[%s21326_s5 + $0xb88] sm:$0xff]  ;;  %v19887_v39 = vsel %vm3573_vm8, %v21541_v44, %v5101_v2 }
 0x64e   :  { %10434 = vmatpush.bf16.msra.mxu0 %v14512_v49  ;;  %10464 = vmatpush.bf16.msra.mxu1 %v14524_v61  ;;  %v9896_v49 = vpop.f32.mrf.mxu2 }
 0x64f   :  { %10474 = vmatpush.bf16.msrb.mxu3 %v14535_v6  ;;  %v21918_v6 = vld [vmem:[#allocation16_spill] sm:$0xff] }
 0x650   :  { %v9897_v61 = vadd.f32 %v9896_v49, %v21918_v6  ;;  %v14507_v6 = vld [vmem:[%s21326_s5 + $0xb08] sm:$0xff] }
 0x651   :  { %10136 = vmatpush.bf16.msra.mxu2 %v14327_v12  ;;  %v14509_v12 = vld [vmem:[%s21326_s5 + $0xb18] sm:$0xff]  ;;  %v10171_v2 = vpop.f32.mrf.mxu3 }
 0x652   :  { %10435 = vmatpush.bf16.msra.mxu0 %v14511_v1  ;;  %10465 = vmatpush.bf16.msra.mxu1 %v14523_v18  ;;  %v10132_v1 = vpop.f32.mrf.mxu0  ;;  %v14560_v18 = vld [vmem:[%s21326_s5 + $0xcb0] sm:$0xff]  ;;  %v14361_v2 = vld [vmem:[%s21326_s5 + $0x678] sm:$0xff] }
 0x653   :  { %10475 = vmatpush.bf16.msrb.mxu3 %v14534_v9  ;;  %v14532_v9 = vld [vmem:[%s21326_s5 + $0xbd0] sm:$0xff]  ;;  %v14530_v1 = vld [vmem:[%s21326_s5 + $0xbc0] sm:$0xff] }
 0x655   :  { %10137 = vmatpush.bf16.msra.mxu2 %v14326_v22  ;;  %v21919_v22 = vld [vmem:[#allocation32_spill] sm:$0xff] }
 0x656   :  { %10436 = vmatpush.bf16.msra.mxu0 %v14510_v56  ;;  %10466 = vmatpush.bf16.msra.mxu1 %v14522_v5  ;;  %v4664_v56 = vsel %vm3582_vm10, %v21893_v50, %v21919_v22  ;;  %v14531_v5 = vld [vmem:[%s21326_s5 + $0xbc8] sm:$0xff]  ;;  %v9898_v49 = vpop.f32.mrf.mxu2  ;;  %v14569_v22 = vld [vmem:[%s21326_s5 + $0xcf8] sm:$0xff] }
 0x657   :  { %10476 = vmatpush.bf16.msrb.mxu3 %v14533_v55  ;;  %v14508_v55 = vld [vmem:[%s21326_s5 + $0xb10] sm:$0xff]  ;;  %v14545_v49 = vld [vmem:[%s21326_s5 + $0xc38] sm:$0xff] }
 0x659   :  { %10138 = vmatpush.bf16.msra.mxu2 %v14325_v3  ;;  %10467 = vmatmul.bf16.vlgmr.msra.gmra.mxu1 %v4664_v56  ;;  %v14323_v3 = vld [vmem:[%s21326_s5 + $0x548] sm:$0xff]  ;;  %v14322_v56 = vld [vmem:[%s21326_s5 + $0x540] sm:$0xff] }
 0x65a   :  { %10511 = vmatpush.bf16.msrb.mxu1 %v14561_v45  ;;  %10437 = vmatpush.bf16.msra.mxu0 %v14509_v12  ;;  %v14559_v45 = vld [vmem:[%s21326_s5 + $0xca8] sm:$0xff]  ;;  %v19926_v12 = vpop.f32.mrf.mxu0 }
 0x65b   :  { %10477 = vmatpush.bf16.msrb.mxu3 %v14532_v9  ;;  %21920 = vst [vmem:[#allocation53_spill] sm:$0xff] %v19926_v12  ;;  %v21921_v9 = vld [vmem:[#allocation47_spill] sm:$0xff] }
 0x65d   :  { %10139 = vmatpush.bf16.msra.mxu2 %v14324_v32  ;;  %v9910_v32 = vadd.f32 %v21921_v9, %v9897_v61  ;;  %v14506_v61 = vld [vmem:[%s21326_s5 + $0xb00] sm:$0xff]  ;;  %v14568_v9 = vld [vmem:[%s21326_s5 + $0xcf0] sm:$0xff] }
 0x65e   :  { %10512 = vmatpush.bf16.msrb.mxu1 %v14560_v18  ;;  %10438 = vmatpush.bf16.msra.mxu0 %v14508_v55  ;;  %v19932_v18 = vpop.f32.mrf.mxu1  ;;  %v14558_v55 = vld [vmem:[%s21326_s5 + $0xca0] sm:$0xff]  ;;  %v9935_v14 = vpop.f32.mrf.mxu2 }
 0x65f   :  { %10478 = vmatpush.bf16.msrb.mxu3 %v14531_v5  ;;  %21922 = vst [vmem:[#allocation23_spill] sm:$0xff] %v19932_v18  ;;  %v19949_v5 = vpop.f32.mrf.mxu3 }
 0x660   :  { %21923 = vst [vmem:[#allocation3_spill] sm:$0xff] %v19949_v5 }
 0x661   :  { %10140 = vmatpush.bf16.msra.mxu2 %v14323_v3  ;;  %v21924_v3 = vld [vmem:[#allocation49_spill] sm:$0xff] }
 0x662   :  { %10513 = vmatpush.bf16.msrb.mxu1 %v14559_v45  ;;  %10439 = vmatpush.bf16.msra.mxu0 %v14507_v6  ;;  %v9923_v45 = vadd.f32 %v21924_v3, %v9910_v32  ;;  %v4622_v6 = vshll.u32 %v19271_v21, 16  ;;  %v14360_v3 = vld [vmem:[%s21326_s5 + $0x670] sm:$0xff] }
 0x663   :  { %10479 = vmatpush.bf16.msrb.mxu3 %v14530_v1  ;;  %v14557_v1 = vld [vmem:[%s21326_s5 + $0xc98] sm:$0xff] }
 0x664   :  { %v9936_v32 = vadd.f32 %v9935_v14, %v9923_v45  ;;  %v14556_v14 = vld [vmem:[%s21326_s5 + $0xc90] sm:$0xff]  ;;  %v14543_v45 = vld [vmem:[%s21326_s5 + $0xc28] sm:$0xff] }
 0x665   :  { %10141 = vmatpush.bf16.msra.mxu2 %v14322_v56  ;;  %v10184_v56 = vpop.f32.mrf.mxu0 }
 0x666   :  { %10514 = vmatpush.bf16.msrb.mxu1 %v14558_v55  ;;  %10440 = vmatpush.bf16.msra.mxu0 %v14506_v61  ;;  %v14544_v55 = vld [vmem:[%s21326_s5 + $0xc30] sm:$0xff]  ;;  %v4624_v61 = vsel %vm3582_vm10, %v4622_v6, %v19214_v26  ;;  %v21543_v6 = vrot.slane %v18769_v10, 3  ;;  %v21545_v56 = vrot.slane %v19054_v35, 2 }
 0x667   :  { %10524 = vmatpush.bf16.msra.mxu3 %v14569_v22  ;;  %v4684_v22 = vsel %vm3582_vm10, %v19271_v21, %v19211_v7  ;;  %v14567_v7 = vld [vmem:[%s21326_s5 + $0xce8] sm:$0xff]  ;;  %v10223_v26 = vpop.f32.mrf.mxu3 }
 0x668   :  { %10480 = vmatmul.bf16.vlgmr.msrb.gmra.mxu3 %v4684_v22  ;;  %10142 = vmatmul.bf16.vlgmr.msra.gmra.mxu2 %v21925_v43  ;;  %v14359_v43 = vld [vmem:[%s21326_s5 + $0x668] sm:$0xff]  ;;  %v21926_v26 = vld [vmem:[#allocation5_spill] sm:$0xff] }
 0x669   :  { %10186 = vmatpush.bf16.msrb.mxu2 %v14361_v2  ;;  %v10210_v2 = vpop.f32.mrf.mxu1  ;;  %10441 = vmatmul.bf16.vlgmr.msra.gmra.mxu0 %v4624_v61  ;;  %v14555_v22 = vld [vmem:[%s21326_s5 + $0xc88] sm:$0xff]  ;;  %v21546_v61 = vrot.slane %v18755_v46, 7 }
 0x66a   :  { %10485 = vmatpush.bf16.msrb.mxu0 %v14545_v49  ;;  %10515 = vmatpush.bf16.msrb.mxu1 %v14557_v1  ;;  %v21540_v49 = vrot.slane %v18630_v51, 4  ;;  %v9937_v1 = vpop.f32.mrf.mxu2  ;;  %v14542_v2 = vld [vmem:[%s21326_s5 + $0xc20] sm:$0xff] }
 0x66b   :  { %10525 = vmatpush.bf16.msra.mxu3 %v14568_v9  ;;  %v14566_v9 = vld [vmem:[%s21326_s5 + $0xce0] sm:$0xff]  ;;  %v9949_v1 = vadd.f32 %v21926_v26, %v9936_v32  ;;  %v4756_v26 = vshll.u32 %v21545_v56, 16 }
 0x66c   :  { %v14554_v32 = vld [vmem:[%s21326_s5 + $0xc80] sm:$0xff] }
 0x66d   :  { %10187 = vmatpush.bf16.msrb.mxu2 %v14360_v3  ;;  %v4742_v3 = vshll.u32 %v21540_v49, 16  ;;  %v14565_v49 = vld [vmem:[%s21326_s5 + $0xcd8] sm:$0xff]  ;;  %v21929_v56 = vld [vmem:[#allocation18_spill] sm:$0xff] }
 0x66e   :  { %10486 = vmatpush.bf16.msrb.mxu0 %v14544_v55  ;;  %10516 = vmatpush.bf16.msrb.mxu1 %v14556_v14  ;;  %v14358_v55 = vld [vmem:[%s21326_s5 + $0x660] sm:$0xff]  ;;  %v21547_v14 = vrot.slane %v19271_v21, 1 }
 0x66f   :  { %10526 = vmatpush.bf16.msra.mxu3 %v14567_v7  ;;  %v4749_v7 = vshll.u32 %v21543_v6, 16  ;;  %v20050_v44 = vpop.f32.mrf.mxu3 }
 0x670   :  { %21932 = vst [vmem:[#allocation40_spill] sm:$0xff] %v20050_v44  ;;  %v4700_v44 = vrot.slane %v21894_v4, 2 }
 0x671   :  { %10188 = vmatpush.bf16.msrb.mxu2 %v14359_v43  ;;  %v20008_v43 = vpop.f32.mrf.mxu0  ;;  %v20017_v6 = vpop.f32.mrf.mxu1 }
 0x672   :  { %10487 = vmatpush.bf16.msrb.mxu0 %v14543_v45  ;;  %21927 = vst [vmem:[#allocation37_spill] sm:$0xff] %v20008_v43  ;;  %v4739_v45 = vsel %vm3549_vm3, %v21898_v63, 0  ;;  %10517 = vmatpush.bf16.msrb.mxu1 %v14555_v22  ;;  %v14593_v22 = vld [vmem:[%s21326_s5 + $0xdb8] sm:$0xff]  ;;  %v21930_v43 = vrot.slane %v18985_v29, 6  ;;  %v4702_v13 = vshll.u32 %v4700_v44, 16 }
 0x673   :  { %10527 = vmatpush.bf16.msra.mxu3 %v14566_v9  ;;  %21928 = vst [vmem:[#allocation55_spill] sm:$0xff] %v20017_v6  ;;  %v4744_v9 = vsel %vm3555_vm4, %v4742_v3, %v4739_v45  ;;  %v14541_v3 = vld [vmem:[%s21326_s5 + $0xc18] sm:$0xff]  ;;  %v4763_v45 = vshll.u32 %v21547_v14, 16  ;;  %v9962_v6 = vadd.f32 %v21929_v56, %v9949_v1  ;;  %v21933_v56 = vrot.slane %v19222_v0, 5 }
 0x674   :  { %v4746_v38 = vsel %vm3558_vm5, %v21546_v61, %v4744_v9  ;;  %v21931_v9 = vrot.slane %v19222_v0, 7 }
 0x675   :  { %10189 = vmatpush.bf16.msrb.mxu2 %v14358_v55  ;;  %v4751_v55 = vsel %vm3564_vm6, %v4749_v7, %v4746_v38  ;;  %v9974_v38 = vpop.f32.mrf.mxu2 }
 0x676   :  { %10488 = vmatpush.bf16.msrb.mxu0 %v14542_v2  ;;  %v4753_v5 = vsel %vm3567_vm7, %v21930_v43, %v4751_v55  ;;  %v14564_v2 = vld [vmem:[%s21326_s5 + $0xcd0] sm:$0xff]  ;;  %v5104_v61 = vshrl.u32 %v21931_v9, 16  ;;  %10518 = vmatpush.bf16.msrb.mxu1 %v14554_v32  ;;  %v21934_v55 = vld [vmem:[#allocation26_spill] sm:$0xff] }
 0x677   :  { %10528 = vmatpush.bf16.msra.mxu3 %v14565_v49  ;;  %v4758_v7 = vsel %vm3573_vm8, %v4756_v26, %v4753_v5  ;;  %v20053_v49 = vadd.f32 %v9974_v38, %v9962_v6  ;;  %v14356_v43 = vld [vmem:[%s21326_s5 + $0x650] sm:$0xff]  ;;  %v4691_v9 = vrot.slane %v21934_v55, 7  ;;  %v4686_v26 = vrot.slane %v21891_v40, 4  ;;  %v14563_v38 = vld [vmem:[%s21326_s5 + $0xcc8] sm:$0xff]  ;;  %v10275_v19 = vpop.f32.mrf.mxu3 }
 0x678   :  { %v4760_v1 = vsel %vm3576_vm9, %v21933_v56, %v4758_v7  ;;  %v14592_v32 = vld [vmem:[%s21326_s5 + $0xdb0] sm:$0xff]  ;;  %v14590_v19 = vld [vmem:[%s21326_s5 + $0xda0] sm:$0xff] }
 0x679   :  { %10190 = vmatpush.bf16.msrb.mxu2 %v14357_v42  ;;  %v20067_v42 = vsel %vm3576_vm9, %v5104_v61, %v19887_v39  ;;  %v4765_v5 = vsel %vm3582_vm10, %v4763_v45, %v4760_v1  ;;  %v14540_v6 = vld [vmem:[%s21326_s5 + $0xc10] sm:$0xff]  ;;  %v4693_v45 = vrot.slane %v21897_v11, 3  ;;  %v14355_v1 = vld [vmem:[%s21326_s5 + $0x648] sm:$0xff]  ;;  %v4772_v14 = vshrl.u32 %v4691_v9, 16 }
 0x67a   :  { %10563 = vmatpush.bf16.msra.mxu1 %v14593_v22  ;;  %10489 = vmatpush.bf16.msrb.mxu0 %v14541_v3  ;;  %v10236_v22 = vpop.f32.mrf.mxu0  ;;  %v21935_v7 = vld [vmem:[#allocation28_spill] sm:$0xff]  ;;  %v10262_v3 = vpop.f32.mrf.mxu1 }
 0x67b   :  { %10519 = vmatmul.bf16.vlgmr.msrb.gmra.mxu1 %v4765_v5  ;;  %10529 = vmatpush.bf16.msra.mxu3 %v14564_v2  ;;  %v4698_v56 = vrot.slane %v21935_v7, 6  ;;  %v21936_v39 = vld [vmem:[#allocation80_spill] sm:$0xff]  ;;  %v14591_v2 = vld [vmem:[%s21326_s5 + $0xda8] sm:$0xff]  ;;  %v4695_v34 = vshll.u32 %v4693_v45, 16 }
 0x67c   :  { %v4767_v61 = vshrl.u32 %v21936_v39, 16  ;;  %v21937_v5 = vld [vmem:[#allocation67_spill] sm:$0xff]  ;;  %v4685_v57 = vsel %vm3549_vm3, %v21936_v39, 0 }
 0x67d   :  { %10191 = vmatpush.bf16.msrb.mxu2 %v14356_v43  ;;  %v4705_v22 = vrot.slane %v21937_v5, 5  ;;  %v14539_v3 = vld [vmem:[%s21326_s5 + $0xc08] sm:$0xff]  ;;  %v4688_v43 = vshll.u32 %v4686_v26, 16  ;;  %v4777_v12 = vshrl.u32 %v4698_v56, 16  ;;  %v9976_v17 = vpop.f32.mrf.mxu2 }
 0x67e   :  { %10564 = vmatpush.bf16.msra.mxu1 %v14592_v32  ;;  %10490 = vmatpush.bf16.msrb.mxu0 %v14540_v6  ;;  %v14562_v32 = vld [vmem:[%s21326_s5 + $0xcc0] sm:$0xff]  ;;  %v4769_v18 = vsel %vm3549_vm3, %v4767_v61, 0  ;;  %v14601_v6 = vld [vmem:[%s21326_s5 + $0xdf8] sm:$0xff] }
 0x67f   :  { %10530 = vmatpush.bf16.msra.mxu3 %v14563_v38  ;;  %v4770_v60 = vsel %vm3555_vm4, %v4686_v26, %v4769_v18  ;;  %v14354_v38 = vld [vmem:[%s21326_s5 + $0x640] sm:$0xff]  ;;  %v4782_v61 = vshrl.u32 %v4705_v22, 16  ;;  %v14393_v26 = vld [vmem:[%s21326_s5 + $0x778] sm:$0xff] }
 0x680   :  { %v4774_v17 = vsel %vm3558_vm5, %v4772_v14, %v4770_v60  ;;  %v14538_v18 = vld [vmem:[%s21326_s5 + $0xc00] sm:$0xff]  ;;  %v14577_v14 = vld [vmem:[%s21326_s5 + $0xd38] sm:$0xff] }
 0x681   :  { %10192 = vmatpush.bf16.msrb.mxu2 %v14355_v1  ;;  %v4775_v1 = vsel %vm3564_vm6, %v4693_v45, %v4774_v17  ;;  %v21557_v17 = vrot.slane %v21891_v40, 5 }
 0x682   :  { %10565 = vmatpush.bf16.msra.mxu1 %v14591_v2  ;;  %10491 = vmatpush.bf16.msrb.mxu0 %v14539_v3  ;;  %v4690_v2 = vsel %vm3555_vm4, %v4688_v43, %v4685_v57  ;;  %v4779_v60 = vsel %vm3567_vm7, %v4777_v12, %v4775_v1  ;;  %v20123_v8 = vpop.f32.mrf.mxu1  ;;  %v4709_v57 = vshll.u32 %v4707_v25, 16  ;;  %v14600_v12 = vld [vmem:[%s21326_s5 + $0xdf0] sm:$0xff]  ;;  %v14598_v1 = vld [vmem:[%s21326_s5 + $0xde0] sm:$0xff] }
 0x683   :  { %10531 = vmatpush.bf16.msra.mxu3 %v14562_v32  ;;  %v4692_v3 = vsel %vm3558_vm5, %v4691_v9, %v4690_v2  ;;  %v4780_v52 = vsel %vm3573_vm8, %v4700_v44, %v4779_v60  ;;  %v14589_v32 = vld [vmem:[%s21326_s5 + $0xd98] sm:$0xff]  ;;  %v21559_v2 = vrot.slane %v21936_v39, 1  ;;  %v14587_v60 = vld [vmem:[%s21326_s5 + $0xd88] sm:$0xff] }
 0x684   :  { %v4697_v45 = vsel %vm3564_vm6, %v4695_v34, %v4692_v3  ;;  %v4784_v43 = vsel %vm3576_vm9, %v4782_v61, %v4780_v52  ;;  %v14575_v61 = vld [vmem:[%s21326_s5 + $0xd28] sm:$0xff]  ;;  %v21554_v3 = vrot.slane %v21894_v4, 3 }
 0x685   :  { %10193 = vmatpush.bf16.msrb.mxu2 %v14354_v38  ;;  %v4699_v9 = vsel %vm3567_vm7, %v4698_v56, %v4697_v45  ;;  %v4785_v44 = vsel %vm3582_vm10, %v4707_v25, %v4784_v43  ;;  %v14576_v56 = vld [vmem:[%s21326_s5 + $0xd30] sm:$0xff]  ;;  %v20148_v38 = vsel %vm3582_vm10, %v21560_v30, %v20067_v42  ;;  %v21939_v25 = vld [vmem:[#allocation14_spill] sm:$0xff]  ;;  %v14391_v42 = vld [vmem:[%s21326_s5 + $0x768] sm:$0xff]  ;;  %v21553_v43 = vrot.slane %v17983_v36, 2 }
 0x686   :  { %10566 = vmatpush.bf16.msra.mxu1 %v14590_v19  ;;  %10492 = vmatpush.bf16.msrb.mxu0 %v14538_v18  ;;  %v4704_v34 = vsel %vm3573_vm8, %v4702_v13, %v4699_v9  ;;  %21938 = vst [vmem:[#allocation39_spill] sm:$0xff] %v20148_v38  ;;  %v14599_v19 = vld [vmem:[%s21326_s5 + $0xde8] sm:$0xff]  ;;  %v21555_v18 = vrot.slane %v21897_v11, 4  ;;  %v14390_v45 = vld [vmem:[%s21326_s5 + $0x760] sm:$0xff]  ;;  %v14597_v9 = vld [vmem:[%s21326_s5 + $0xdd8] sm:$0xff]  ;;  %v4873_v30 = vrot.slane %v17878_v37, 6 }
 0x687   :  { %10576 = vmatpush.bf16.msrb.mxu3 %v14601_v6  ;;  %v14392_v6 = vld [vmem:[%s21326_s5 + $0x770] sm:$0xff]  ;;  %v4706_v52 = vsel %vm3576_vm9, %v4705_v22, %v4704_v34  ;;  %v9988_v34 = vadd.f32 %v18696_v27, %v20053_v49  ;;  %v14625_v27 = vld [vmem:[%s21326_s5 + $0xeb8] sm:$0xff] }
 0x688   :  { %10532 = vmatmul.bf16.vlgmr.msra.gmra.mxu3 %v4785_v44  ;;  %10194 = vmatmul.bf16.vlgmr.msrb.gmra.mxu2 %v21939_v25  ;;  %v4711_v13 = vsel %vm3582_vm10, %v4709_v57, %v4706_v52  ;;  %v14588_v22 = vld [vmem:[%s21326_s5 + $0xd90] sm:$0xff]  ;;  %v14574_v57 = vld [vmem:[%s21326_s5 + $0xd20] sm:$0xff]  ;;  %v21558_v44 = vrot.slane %v21935_v7, 7  ;;  %v4843_v25 = vshll.u32 %v21554_v3, 16 }
 0x689   :  { %10238 = vmatpush.bf16.msra.mxu2 %v14393_v26  ;;  %10493 = vmatmul.bf16.vlgmr.msrb.gmra.mxu0 %v4711_v13  ;;  %v14586_v52 = vld [vmem:[%s21326_s5 + $0xd80] sm:$0xff]  ;;  %v14389_v13 = vld [vmem:[%s21326_s5 + $0x758] sm:$0xff] }
 0x68a   :  { %10537 = vmatpush.bf16.msra.mxu0 %v14577_v14  ;;  %10567 = vmatpush.bf16.msra.mxu1 %v14589_v32  ;;  %v10314_v26 = vpop.f32.mrf.mxu1  ;;  %v4830_v14 = vshll.u32 %v21557_v17, 16  ;;  %v4827_v32 = vsel %vm3549_vm3, %v21559_v2, 0  ;;  %v14386_v2 = vld [vmem:[%s21326_s5 + $0x740] sm:$0xff] }
 0x68b   :  { %10577 = vmatpush.bf16.msrb.mxu3 %v14600_v12  ;;  %v4836_v12 = vshll.u32 %v21555_v18, 16 }
 0x68d   :  { %10239 = vmatpush.bf16.msra.mxu2 %v14392_v6  ;;  %v20194_v6 = vpop.f32.mrf.mxu0 }
 0x68e   :  { %10538 = vmatpush.bf16.msra.mxu0 %v14576_v56  ;;  %10568 = vmatpush.bf16.msra.mxu1 %v14588_v22  ;;  %v4832_v56 = vsel %vm3555_vm4, %v4830_v14, %v4827_v32  ;;  %v14573_v22 = vld [vmem:[%s21326_s5 + $0xd18] sm:$0xff]  ;;  %v10001_v14 = vadd.f32 %v18765_v48, %v9988_v34  ;;  %v14388_v32 = vld [vmem:[%s21326_s5 + $0x750] sm:$0xff] }
 0x68f   :  { %10578 = vmatpush.bf16.msrb.mxu3 %v14599_v19  ;;  %v4833_v49 = vsel %vm3558_vm5, %v21934_v55, %v4832_v56  ;;  %v21556_v19 = vrot.slane %v21937_v5, 6  ;;  %v14572_v56 = vld [vmem:[%s21326_s5 + $0xd10] sm:$0xff] }
 0x691   :  { %10240 = vmatpush.bf16.msra.mxu2 %v14391_v42  ;;  %v4838_v42 = vsel %vm3564_vm6, %v4836_v12, %v4833_v49  ;;  %v10013_v12 = vpop.f32.mrf.mxu2 }
 0x692   :  { %10539 = vmatpush.bf16.msra.mxu0 %v14575_v61  ;;  %10569 = vmatpush.bf16.msra.mxu1 %v14587_v60  ;;  %v4850_v61 = vshll.u32 %v21553_v43, 16  ;;  %v4840_v26 = vsel %vm3567_vm7, %v21558_v44, %v4838_v42  ;;  %v20223_v60 = vpop.f32.mrf.mxu3  ;;  %v20237_v48 = vadd.f32 %v10013_v12, %v10001_v14 }
 0x693   :  { %10579 = vmatpush.bf16.msrb.mxu3 %v14598_v1  ;;  %v14596_v1 = vld [vmem:[%s21326_s5 + $0xdd0] sm:$0xff] }
 0x695   :  { %10241 = vmatpush.bf16.msra.mxu2 %v14390_v45  ;;  %v4845_v45 = vsel %vm3573_vm8, %v4843_v25, %v4840_v26  ;;  %v21562_v25 = vrot.slane %v21913_v24, 4  ;;  %v10288_v42 = vpop.f32.mrf.mxu0  ;;  %v14387_v26 = vld [vmem:[%s21326_s5 + $0x748] sm:$0xff] }
 0x696   :  { %10540 = vmatpush.bf16.msra.mxu0 %v14574_v57  ;;  %10570 = vmatpush.bf16.msra.mxu1 %v14586_v52  ;;  %v21563_v57 = vrot.slane %v21911_v31, 5  ;;  %v14624_v52 = vld [vmem:[%s21326_s5 + $0xeb0] sm:$0xff]  ;;  %v21942_v42 = vld [vmem:[#allocation10_spill] sm:$0xff] }
 0x697   :  { %10580 = vmatpush.bf16.msrb.mxu3 %v14597_v9  ;;  %v4847_v9 = vsel %vm3576_vm9, %v21556_v19, %v4845_v45  ;;  %v14571_v45 = vld [vmem:[%s21326_s5 + $0xd08] sm:$0xff]  ;;  %v4863_v12 = vshll.u32 %v21562_v25, 16  ;;  %v21943_v43 = vrot.slane %v21942_v42, 7  ;;  %v14633_v19 = vld [vmem:[%s21326_s5 + $0xef8] sm:$0xff]  ;;  %v21945_v25 = vrot.slane %v21911_v31, 4 }
 0x698   :  { %v4852_v34 = vsel %vm3582_vm10, %v4850_v61, %v4847_v9  ;;  %v21561_v61 = vrot.slane %v21915_v16, 3  ;;  %v21565_v9 = vrot.slane %v21893_v50, 2 }
 0x699   :  { %10242 = vmatpush.bf16.msra.mxu2 %v14389_v13  ;;  %10571 = vmatmul.bf16.vlgmr.msra.gmra.mxu1 %v4852_v34  ;;  %v14595_v13 = vld [vmem:[%s21326_s5 + $0xdc8] sm:$0xff]  ;;  %v21941_v34 = vld [vmem:[#allocation38_spill] sm:$0xff]  ;;  %v4792_v3 = vshrl.u32 %v21943_v43, 16  ;;  %v10015_v44 = vpop.f32.mrf.mxu2 }
 0x69a   :  { %10615 = vmatpush.bf16.msrb.mxu1 %v14625_v27  ;;  %10541 = vmatpush.bf16.msra.mxu0 %v14573_v22  ;;  %v21940_v27 = vld [vmem:[#allocation81_spill] sm:$0xff]  ;;  %v4857_v22 = vshll.u32 %v21563_v57, 16  ;;  %v10327_v18 = vpop.f32.mrf.mxu3  ;;  %v4870_v17 = vshll.u32 %v21561_v61, 16  ;;  %v14570_v44 = vld [vmem:[%s21326_s5 + $0xd00] sm:$0xff] }
 0x69b   :  { %10581 = vmatpush.bf16.msrb.mxu3 %v14596_v1  ;;  %v21564_v49 = vrot.slane %v21940_v27, 1  ;;  %v14623_v1 = vld [vmem:[%s21326_s5 + $0xea8] sm:$0xff]  ;;  %v4787_v14 = vshrl.u32 %v21940_v27, 16  ;;  %v14622_v18 = vld [vmem:[%s21326_s5 + $0xea0] sm:$0xff] }
 0x69d   :  { %10243 = vmatpush.bf16.msra.mxu2 %v14388_v32  ;;  %v14594_v32 = vld [vmem:[%s21326_s5 + $0xdc0] sm:$0xff] }
 0x69e   :  { %10616 = vmatpush.bf16.msrb.mxu1 %v14624_v52  ;;  %10542 = vmatpush.bf16.msra.mxu0 %v14572_v56  ;;  %v4854_v52 = vsel %vm3549_vm3, %v21564_v49, 0  ;;  %v4866_v56 = vrot.slane %v21941_v34, 7  ;;  %v20312_v49 = vpop.f32.mrf.mxu1 }
 0x69f   :  { %10582 = vmatpush.bf16.msrb.mxu3 %v14595_v13  ;;  %v4859_v13 = vsel %vm3555_vm4, %v4857_v22, %v4854_v52  ;;  %v4789_v22 = vsel %vm3549_vm3, %v4787_v14, 0  ;;  %v21944_v52 = vrot.slane %v21941_v34, 6  ;;  %21947 = vst [vmem:[#allocation57_spill] sm:$0xff] %v20312_v49  ;;  %v21962_v49 = vrot.slane %v19222_v0, 6 }
 0x6a0   :  { %v4860_v43 = vsel %vm3558_vm5, %v21942_v42, %v4859_v13  ;;  %v4877_v13 = vshll.u32 %v21565_v9, 16  ;;  %v4790_v14 = vsel %vm3555_vm4, %v21945_v25, %v4789_v22  ;;  %v21948_v25 = vrot.slane %v21913_v24, 3 }
 0x6a1   :  { %10244 = vmatpush.bf16.msra.mxu2 %v14387_v26  ;;  %v4797_v26 = vshrl.u32 %v21944_v52, 16  ;;  %v4865_v61 = vsel %vm3564_vm6, %v4863_v12, %v4860_v43  ;;  %v14609_v52 = vld [vmem:[%s21326_s5 + $0xe38] sm:$0xff]  ;;  %v4794_v57 = vsel %vm3558_vm5, %v4792_v3, %v4790_v14  ;;  %v21946_v12 = vrot.slane %v17878_v37, 5 }
 0x6a2   :  { %10617 = vmatpush.bf16.msrb.mxu1 %v14623_v1  ;;  %10543 = vmatpush.bf16.msra.mxu0 %v14571_v45  ;;  %v14425_v1 = vld [vmem:[%s21326_s5 + $0x878] sm:$0xff]  ;;  %v4867_v45 = vsel %vm3567_vm7, %v4866_v56, %v4865_v61  ;;  %v14632_v61 = vld [vmem:[%s21326_s5 + $0xef0] sm:$0xff] }
 0x6a3   :  { %10583 = vmatpush.bf16.msrb.mxu3 %v14594_v32  ;;  %v4802_v43 = vshrl.u32 %v21946_v12, 16  ;;  %v4872_v9 = vsel %vm3573_vm8, %v4870_v17, %v4867_v45  ;;  %v4795_v32 = vsel %vm3564_vm6, %v21948_v25, %v4794_v57  ;;  %v14621_v17 = vld [vmem:[%s21326_s5 + $0xe98] sm:$0xff]  ;;  %v21949_v57 = vrot.slane %v21915_v16, 2  ;;  %v14607_v45 = vld [vmem:[%s21326_s5 + $0xe28] sm:$0xff]  ;;  %v14630_v12 = vld [vmem:[%s21326_s5 + $0xee0] sm:$0xff] }
 0x6a4   :  { %v4874_v3 = vsel %vm3576_vm9, %v4873_v30, %v4872_v9  ;;  %v4799_v22 = vsel %vm3567_vm7, %v4797_v26, %v4795_v32  ;;  %v21950_v26 = vrot.slane %v21893_v50, 1  ;;  %v14619_v32 = vld [vmem:[%s21326_s5 + $0xe88] sm:$0xff] }
 0x6a5   :  { %10245 = vmatpush.bf16.msra.mxu2 %v14386_v2  ;;  %v4800_v14 = vsel %vm3573_vm8, %v21949_v57, %v4799_v22  ;;  %v14424_v2 = vld [vmem:[%s21326_s5 + $0x870] sm:$0xff]  ;;  %v14606_v22 = vld [vmem:[%s21326_s5 + $0xe20] sm:$0xff]  ;;  %v4938_v57 = vshrl.u32 %v4866_v56, 16  ;;  %v14657_v56 = vld [vmem:[%s21326_s5 + $0xfb8] sm:$0xff] }
 0x6a6   :  { %10618 = vmatpush.bf16.msrb.mxu1 %v14622_v18  ;;  %10544 = vmatpush.bf16.msra.mxu0 %v14570_v44  ;;  %v4804_v9 = vsel %vm3576_vm9, %v4802_v43, %v4800_v14  ;;  %v14608_v18 = vld [vmem:[%s21326_s5 + $0xe30] sm:$0xff]  ;;  %v21951_v43 = vrot.slane %v21940_v27, 1  ;;  %v14618_v14 = vld [vmem:[%s21326_s5 + $0xe80] sm:$0xff] }
 0x6a7   :  { %10628 = vmatpush.bf16.msra.mxu3 %v14633_v19  ;;  %v4879_v19 = vsel %vm3582_vm10, %v4877_v13, %v4874_v3  ;;  %v4805_v44 = vsel %vm3582_vm10, %v21950_v26, %v4804_v9  ;;  %v14620_v13 = vld [vmem:[%s21326_s5 + $0xe90] sm:$0xff]  ;;  %v4933_v3 = vshrl.u32 %v21942_v42, 16  ;;  %v20384_v26 = vpop.f32.mrf.mxu0 }
 0x6a8   :  { %10584 = vmatmul.bf16.vlgmr.msrb.gmra.mxu3 %v4879_v19  ;;  %10246 = vmatmul.bf16.vlgmr.msra.gmra.mxu2 %v19508_v47  ;;  %v14423_v47 = vld [vmem:[%s21326_s5 + $0x868] sm:$0xff]  ;;  %v4928_v25 = vshrl.u32 %v21951_v43, 16  ;;  %21953 = vst [vmem:[#allocation42_spill] sm:$0xff] %v20384_v26 }
 0x6a9   :  { %10290 = vmatpush.bf16.msrb.mxu2 %v14425_v1  ;;  %v14631_v1 = vld [vmem:[%s21326_s5 + $0xee8] sm:$0xff]  ;;  %10545 = vmatmul.bf16.vlgmr.msra.gmra.mxu0 %v4805_v44  ;;  %v14421_v44 = vld [vmem:[%s21326_s5 + $0x858] sm:$0xff] }
 0x6aa   :  { %10589 = vmatpush.bf16.msrb.mxu0 %v14609_v52  ;;  %10619 = vmatpush.bf16.msrb.mxu1 %v14621_v17  ;;  %v10366_v52 = vpop.f32.mrf.mxu1  ;;  %v14629_v17 = vld [vmem:[%s21326_s5 + $0xed8] sm:$0xff]  ;;  %v4930_v19 = vsel %vm3549_vm3, %v4928_v25, 0 }
 0x6ab   :  { %10629 = vmatpush.bf16.msra.mxu3 %v14632_v61  ;;  %v14422_v61 = vld [vmem:[%s21326_s5 + $0x860] sm:$0xff]  ;;  %v14628_v52 = vld [vmem:[%s21326_s5 + $0xed0] sm:$0xff]  ;;  %v20409_v25 = vpop.f32.mrf.mxu3 }
 0x6ac   :  { %21956 = vst [vmem:[#allocation44_spill] sm:$0xff] %v20409_v25 }
 0x6ad   :  { %10291 = vmatpush.bf16.msrb.mxu2 %v14424_v2  ;;  %v21952_v2 = vrot.slane %v21911_v31, 5 }
 0x6ae   :  { %10590 = vmatpush.bf16.msrb.mxu0 %v14608_v18  ;;  %10620 = vmatpush.bf16.msrb.mxu1 %v14620_v13  ;;  %v10027_v18 = vadd.f32 %v18771_v53, %v20237_v48  ;;  %v4943_v13 = vshrl.u32 %v4873_v30, 16  ;;  %v14605_v53 = vld [vmem:[%s21326_s5 + $0xe18] sm:$0xff]  ;;  %v21954_v48 = vrot.slane %v21913_v24, 4  ;;  %v21955_v30 = vrot.slane %v21915_v16, 3 }
 0x6af   :  { %10630 = vmatpush.bf16.msra.mxu3 %v14631_v1  ;;  %v4931_v9 = vsel %vm3555_vm4, %v21952_v2, %v4930_v19  ;;  %v21957_v19 = vrot.slane %v21893_v50, 2  ;;  %v21958_v2 = vrot.slane %v21892_v15, 5 }
 0x6b0   :  { %v4935_v1 = vsel %vm3558_vm5, %v4933_v3, %v4931_v9  ;;  %v14420_v3 = vld [vmem:[%s21326_s5 + $0x850] sm:$0xff] }
 0x6b1   :  { %10292 = vmatpush.bf16.msrb.mxu2 %v14423_v47  ;;  %v4936_v47 = vsel %vm3564_vm6, %v21954_v48, %v4935_v1  ;;  %v4344_v9 = vshrl.u32 %v21958_v2, 16  ;;  %v14419_v48 = vld [vmem:[%s21326_s5 + $0x848] sm:$0xff]  ;;  %v21960_v2 = vrot.slane %v21891_v40, 1 }
 0x6b2   :  { %10591 = vmatpush.bf16.msrb.mxu0 %v14607_v45  ;;  %10621 = vmatpush.bf16.msrb.mxu1 %v14619_v32  ;;  %v4940_v45 = vsel %vm3567_vm7, %v4938_v57, %v4936_v47  ;;  %v10040_v32 = vadd.f32 %v18888_v28, %v10027_v18  ;;  %v14604_v28 = vld [vmem:[%s21326_s5 + $0xe10] sm:$0xff]  ;;  %v14655_v47 = vld [vmem:[%s21326_s5 + $0xfa8] sm:$0xff] }
 0x6b3   :  { %10631 = vmatpush.bf16.msra.mxu3 %v14630_v12  ;;  %v4880_v12 = vrot.slane %v21898_v63, 1  ;;  %v4941_v43 = vsel %vm3573_vm8, %v21955_v30, %v4940_v45  ;;  %v21959_v30 = vrot.slane %v21896_v59, 4  ;;  %v10379_v25 = vpop.f32.mrf.mxu3 }
 0x6b5   :  { %10293 = vmatpush.bf16.msrb.mxu2 %v14422_v61  ;;  %v4945_v61 = vsel %vm3576_vm9, %v4943_v13, %v4941_v43  ;;  %v4948_v1 = vshrl.u32 %v4880_v12, 16  ;;  %v4888_v13 = vrot.slane %v18769_v10, 4  ;;  %v4349_v43 = vshrl.u32 %v21959_v30, 16 }
 0x6b6   :  { %10592 = vmatpush.bf16.msrb.mxu0 %v14606_v22  ;;  %10622 = vmatpush.bf16.msrb.mxu1 %v14618_v14  ;;  %v14656_v22 = vld [vmem:[%s21326_s5 + $0xfb0] sm:$0xff]  ;;  %v4946_v57 = vsel %vm3582_vm10, %v21957_v19, %v4945_v61  ;;  %v4882_v14 = vrot.slane %v18630_v51, 5  ;;  %v4895_v61 = vrot.slane %v19054_v35, 3  ;;  %v4902_v30 = vrot.slane %v19271_v21, 2 }
 0x6b7   :  { %10632 = vmatpush.bf16.msra.mxu3 %v14629_v17  ;;  %v10052_v17 = vpop.f32.mrf.mxu2  ;;  %v4950_v19 = vsel %vm3549_vm3, %v4948_v1, 0  ;;  %v4890_v38 = vshll.u32 %v4888_v13, 16  ;;  %v14418_v1 = vld [vmem:[%s21326_s5 + $0x840] sm:$0xff] }
 0x6b8   :  { %v20428_v18 = vadd.f32 %v10052_v17, %v10040_v32  ;;  %v14603_v32 = vld [vmem:[%s21326_s5 + $0xe08] sm:$0xff]  ;;  %v14626_v17 = vld [vmem:[%s21326_s5 + $0xec0] sm:$0xff] }
 0x6b9   :  { %10294 = vmatpush.bf16.msrb.mxu2 %v14421_v44  ;;  %10623 = vmatmul.bf16.vlgmr.msrb.gmra.mxu1 %v4946_v57  ;;  %v14627_v44 = vld [vmem:[%s21326_s5 + $0xec8] sm:$0xff] }
 0x6ba   :  { %10667 = vmatpush.bf16.msra.mxu1 %v14657_v56  ;;  %10593 = vmatpush.bf16.msrb.mxu0 %v14605_v53  ;;  %v4893_v56 = vrot.slane %v18985_v29, 7  ;;  %v10340_v53 = vpop.f32.mrf.mxu0 }
 0x6bb   :  { %10633 = vmatpush.bf16.msra.mxu3 %v14628_v52  ;;  %v4953_v52 = vshrl.u32 %v18755_v46, 16  ;;  %v14665_v53 = vld [vmem:[%s21326_s5 + $0xff8] sm:$0xff] }
 0x6bc   :  { %v4958_v57 = vshrl.u32 %v4893_v56, 16 }
 0x6bd   :  { %10295 = vmatpush.bf16.msrb.mxu2 %v14420_v3  ;;  %v4346_v3 = vsel %vm3549_vm3, %v4344_v9, 0  ;;  %v4951_v9 = vsel %vm3555_vm4, %v4882_v14, %v4950_v19 }
 0x6be   :  { %10668 = vmatpush.bf16.msra.mxu1 %v14656_v22  ;;  %10594 = vmatpush.bf16.msrb.mxu0 %v14604_v28  ;;  %v4884_v22 = vshll.u32 %v4882_v14, 16  ;;  %v4347_v28 = vsel %vm3555_vm4, %v21960_v2, %v4346_v3  ;;  %v14654_v3 = vld [vmem:[%s21326_s5 + $0xfa0] sm:$0xff]  ;;  %v4955_v2 = vsel %vm3558_vm5, %v4953_v52, %v4951_v9  ;;  %v4963_v14 = vshrl.u32 %v21962_v49, 16 }
 0x6bf   :  { %10634 = vmatpush.bf16.msra.mxu3 %v14627_v44  ;;  %v21961_v44 = vrot.slane %v21899_v58, 3  ;;  %v4351_v19 = vsel %vm3558_vm5, %v4349_v43, %v4347_v28  ;;  %v10054_v25 = vpop.f32.mrf.mxu2  ;;  %v4956_v26 = vsel %vm3564_vm6, %v4888_v13, %v4955_v2  ;;  %v21963_v52 = vrot.slane %v21900_v62, 2  ;;  %v20493_v13 = vpop.f32.mrf.mxu1 }
 0x6c0   :  { %v4897_v43 = vshll.u32 %v4895_v61, 16  ;;  %v4352_v28 = vsel %vm3564_vm6, %v21897_v11, %v4351_v19  ;;  %21964 = vst [vmem:[#allocation46_spill] sm:$0xff] %v20493_v13 }
 0x6c1   :  { %v4354_v45 = vshrl.u32 %v21961_v44, 16  ;;  %10296 = vmatpush.bf16.msrb.mxu2 %v14419_v48  ;;  %v4881_v44 = vsel %vm3549_vm3, %v4880_v12, 0  ;;  %v14602_v48 = vld [vmem:[%s21326_s5 + $0xe00] sm:$0xff]  ;;  %v4359_v9 = vshrl.u32 %v21963_v52, 16  ;;  %v4960_v12 = vsel %vm3567_vm7, %v4958_v57, %v4956_v26  ;;  %v14664_v57 = vld [vmem:[%s21326_s5 + $0xff0] sm:$0xff] }
 0x6c2   :  { %10669 = vmatpush.bf16.msra.mxu1 %v14655_v47  ;;  %10595 = vmatpush.bf16.msrb.mxu0 %v14603_v32  ;;  %v14457_v47 = vld [vmem:[%s21326_s5 + $0x978] sm:$0xff]  ;;  %v4886_v49 = vsel %vm3555_vm4, %v4884_v22, %v4881_v44  ;;  %v4961_v2 = vsel %vm3573_vm8, %v4895_v61, %v4960_v12  ;;  %v4904_v26 = vshll.u32 %v4902_v30, 16  ;;  %v21965_v44 = vrot.slane %v21894_v4, 7  ;;  %v14455_v12 = vld [vmem:[%s21326_s5 + $0x968] sm:$0xff] }
 0x6c3   :  { %10635 = vmatpush.bf16.msra.mxu3 %v14626_v17  ;;  %v14641_v32 = vld [vmem:[%s21326_s5 + $0xf38] sm:$0xff]  ;;  %v4887_v25 = vsel %vm3558_vm5, %v18755_v46, %v4886_v49  ;;  %v4356_v22 = vsel %vm3567_vm7, %v4354_v45, %v4352_v28  ;;  %v4965_v19 = vsel %vm3576_vm9, %v4963_v14, %v4961_v2  ;;  %v21967_v49 = vrot.slane %v19222_v0, 6  ;;  %v14651_v2 = vld [vmem:[%s21326_s5 + $0xf88] sm:$0xff] }
 0x6c4   :  { %v4892_v17 = vsel %vm3564_vm6, %v4890_v38, %v4887_v25  ;;  %v4357_v52 = vsel %vm3573_vm8, %v21965_v44, %v4356_v22  ;;  %v14653_v45 = vld [vmem:[%s21326_s5 + $0xf98] sm:$0xff]  ;;  %v4966_v38 = vsel %vm3582_vm10, %v4902_v30, %v4965_v19  ;;  %v14640_v30 = vld [vmem:[%s21326_s5 + $0xf30] sm:$0xff]  ;;  %v14662_v25 = vld [vmem:[%s21326_s5 + $0xfe0] sm:$0xff]  ;;  %v21968_v22 = vrot.slane %v18630_v51, 6 }
 0x6c5   :  { %10297 = vmatpush.bf16.msrb.mxu2 %v14418_v1  ;;  %v4361_v61 = vsel %vm3576_vm9, %v4359_v9, %v4357_v52  ;;  %v14663_v9 = vld [vmem:[%s21326_s5 + $0xfe8] sm:$0xff]  ;;  %v21969_v19 = vrot.slane %v18769_v10, 5  ;;  %v14661_v52 = vld [vmem:[%s21326_s5 + $0xfd8] sm:$0xff] }
 0x6c6   :  { %10670 = vmatpush.bf16.msra.mxu1 %v14654_v3  ;;  %10596 = vmatpush.bf16.msrb.mxu0 %v14602_v48  ;;  %v14456_v3 = vld [vmem:[%s21326_s5 + $0x970] sm:$0xff] }
 0x6c7   :  { %10680 = vmatpush.bf16.msrb.mxu3 %v14665_v53  ;;  %v4894_v53 = vsel %vm3567_vm7, %v4893_v56, %v4892_v17  ;;  %v21966_v56 = vrot.slane %v17983_v36, 6  ;;  %v10418_v28 = vpop.f32.mrf.mxu1  ;;  %v5025_v17 = vshll.u32 %v21968_v22, 16  ;;  %v5032_v44 = vshll.u32 %v21969_v19, 16  ;;  %v14688_v19 = vld [vmem:[%s21326_s5 + $0x10b0] sm:$0xff] }
 0x6c8   :  { %v4899_v1 = vsel %vm3573_vm8, %v4897_v43, %v4894_v53  ;;  %10636 = vmatmul.bf16.vlgmr.msra.gmra.mxu3 %v4966_v38  ;;  %v14652_v43 = vld [vmem:[%s21326_s5 + $0xf90] sm:$0xff]  ;;  %v21970_v53 = vrot.slane %v21898_v63, 2  ;;  %v14650_v38 = vld [vmem:[%s21326_s5 + $0xf80] sm:$0xff]  ;;  %v4967_v28 = vrot.slane %v21936_v39, 2 }
 0x6c9   :  { %10342 = vmatpush.bf16.msra.mxu2 %v14457_v47  ;;  %v4362_v14 = vsel %vm3582_vm10, %v21966_v56, %v4361_v61  ;;  %v4901_v48 = vsel %vm3576_vm9, %v21967_v49, %v4899_v1  ;;  %v21971_v1 = vrot.slane %v19054_v35, 4  ;;  %v10066_v56 = vadd.f32 %v18973_v33, %v20428_v18  ;;  %v14453_v49 = vld [vmem:[%s21326_s5 + $0x958] sm:$0xff] }
 0x6ca   :  { %10641 = vmatpush.bf16.msra.mxu0 %v14641_v32  ;;  %10298 = vmatmul.bf16.vlgmr.msrb.gmra.mxu2 %v4362_v14  ;;  %v4906_v47 = vsel %vm3582_vm10, %v4904_v26, %v4901_v48  ;;  %v14639_v32 = vld [vmem:[%s21326_s5 + $0xf28] sm:$0xff]  ;;  %v14454_v26 = vld [vmem:[%s21326_s5 + $0x960] sm:$0xff]  ;;  %v20567_v14 = vpop.f32.mrf.mxu0  ;;  %v14689_v48 = vld [vmem:[%s21326_s5 + $0x10b8] sm:$0xff] }
 0x6cb   :  { %10681 = vmatpush.bf16.msrb.mxu3 %v14664_v57  ;;  %10597 = vmatmul.bf16.vlgmr.msrb.gmra.mxu0 %v4906_v47  ;;  %v14638_v57 = vld [vmem:[%s21326_s5 + $0xf20] sm:$0xff]  ;;  %v14637_v33 = vld [vmem:[%s21326_s5 + $0xf18] sm:$0xff]  ;;  %v10079_v22 = vadd.f32 %v19065_v54, %v10066_v56  ;;  %v14636_v54 = vld [vmem:[%s21326_s5 + $0xf10] sm:$0xff]  ;;  %v21976_v56 = vrot.slane %v21911_v31, 2 }
 0x6cc   :  { %10671 = vmatpush.bf16.msra.mxu1 %v14653_v45  ;;  %v5022_v45 = vsel %vm3549_vm3, %v21970_v53, 0 }
 0x6cd   :  { %10343 = vmatpush.bf16.msra.mxu2 %v14456_v3  ;;  %v5027_v61 = vsel %vm3555_vm4, %v5025_v17, %v5022_v45  ;;  %v5038_v3 = vshll.u32 %v21971_v1, 16  ;;  %v21975_v17 = vrot.slane %v19222_v0, 7  ;;  %v4969_v45 = vrot.slane %v21891_v40, 6 }
 0x6ce   :  { %10642 = vmatpush.bf16.msra.mxu0 %v14640_v30  ;;  %v21972_v30 = vrot.slane %v18755_v46, 1  ;;  %v5049_v1 = vshrl.u32 %v4967_v28, 16 }
 0x6cf   :  { %10682 = vmatpush.bf16.msrb.mxu3 %v14663_v9  ;;  %v21973_v9 = vrot.slane %v19271_v21, 3 }
 0x6d0   :  { %10672 = vmatpush.bf16.msra.mxu1 %v14652_v43  ;;  %v5029_v47 = vsel %vm3558_vm5, %v21972_v30, %v5027_v61  ;;  %v14659_v61 = vld [vmem:[%s21326_s5 + $0xfc8] sm:$0xff] }
 0x6d1   :  { %10344 = vmatpush.bf16.msra.mxu2 %v14455_v12  ;;  %v5034_v18 = vsel %vm3564_vm6, %v5032_v44, %v5029_v47  ;;  %v5045_v43 = vshll.u32 %v21973_v9, 16  ;;  %v4974_v44 = vrot.slane %v21934_v55, 1  ;;  %v14451_v30 = vld [vmem:[%s21326_s5 + $0x948] sm:$0xff] }
 0x6d2   :  { %10643 = vmatpush.bf16.msra.mxu0 %v14639_v32  ;;  %v5035_v12 = vsel %vm3567_vm7, %v18985_v29, %v5034_v18  ;;  %v14660_v32 = vld [vmem:[%s21326_s5 + $0xfd0] sm:$0xff]  ;;  %v14687_v47 = vld [vmem:[%s21326_s5 + $0x10a8] sm:$0xff] }
 0x6d3   :  { %10683 = vmatpush.bf16.msrb.mxu3 %v14662_v25  ;;  %v5040_v25 = vsel %vm3573_vm8, %v5038_v3, %v5035_v12  ;;  %v4976_v3 = vrot.slane %v21897_v11, 5  ;;  %v5054_v18 = vshrl.u32 %v4974_v44, 16  ;;  %v14635_v9 = vld [vmem:[%s21326_s5 + $0xf08] sm:$0xff]  ;;  %v4971_v12 = vshll.u32 %v4969_v45, 16 }
 0x6d4   :  { %10673 = vmatpush.bf16.msra.mxu1 %v14651_v2  ;;  %v20591_v2 = vpop.f32.mrf.mxu3 }
 0x6d5   :  { %10345 = vmatpush.bf16.msra.mxu2 %v14454_v26  ;;  %21974 = vst [vmem:[#allocation48_spill] sm:$0xff] %v20591_v2  ;;  %v5042_v26 = vsel %vm3576_vm9, %v21975_v17, %v5040_v25  ;;  %v5051_v25 = vsel %vm3549_vm3, %v5049_v1, 0  ;;  %v21977_v17 = vrot.slane %v21908_v41, 6  ;;  %v4978_v1 = vshll.u32 %v4976_v3, 16  ;;  %v14450_v41 = vld [vmem:[%s21326_s5 + $0x940] sm:$0xff] }
 0x6d6   :  { %10644 = vmatpush.bf16.msra.mxu0 %v14638_v57  ;;  %v14452_v57 = vld [vmem:[%s21326_s5 + $0x950] sm:$0xff]  ;;  %v5047_v53 = vsel %vm3582_vm10, %v5045_v43, %v5042_v26  ;;  %v4982_v43 = vrot.slane %v21894_v4, 4  ;;  %v21980_v2 = vrot.slane %v21893_v50, 7 }
 0x6d7   :  { %10684 = vmatpush.bf16.msrb.mxu3 %v14661_v52  ;;  %v10091_v52 = vpop.f32.mrf.mxu2  ;;  %v4431_v26 = vsel %vm3549_vm3, %v21977_v17, 0 }
 0x6d8   :  { %10674 = vmatpush.bf16.msra.mxu1 %v14650_v38  ;;  %v20609_v38 = vadd.f32 %v10091_v52, %v10079_v22  ;;  %v5059_v22 = vshrl.u32 %v21935_v7, 16  ;;  %v14697_v52 = vld [vmem:[%s21326_s5 + $0x10f8] sm:$0xff]  ;;  %v4454_v13 = vshll.u32 %v21980_v2, 16 }
 0x6d9   :  { %10346 = vmatpush.bf16.msra.mxu2 %v14453_v49  ;;  %v4434_v49 = vshll.u32 %v21976_v56, 16 }
 0x6da   :  { %10645 = vmatpush.bf16.msra.mxu0 %v14637_v33  ;;  %v21566_v33 = vrot.slane %v21937_v5, 7 }
 0x6db   :  { %10675 = vmatmul.bf16.vlgmr.msra.gmra.mxu1 %v5047_v53  ;;  %10685 = vmatpush.bf16.msrb.mxu3 %v14660_v32  ;;  %v14658_v32 = vld [vmem:[%s21326_s5 + $0xfc0] sm:$0xff]  ;;  %v4989_v53 = vrot.slane %v17983_v36, 3 }
 0x6dc   :  { %10719 = vmatpush.bf16.msrb.mxu1 %v14689_v48  ;;  %v10392_v48 = vpop.f32.mrf.mxu0  ;;  %v10431_v56 = vpop.f32.mrf.mxu3 }
 0x6dd   :  { %10347 = vmatpush.bf16.msra.mxu2 %v14452_v57  ;;  %v21978_v57 = vrot.slane %v21913_v24, 1  ;;  %v14686_v48 = vld [vmem:[%s21326_s5 + $0x10a0] sm:$0xff] }
 0x6de   :  { %10646 = vmatpush.bf16.msra.mxu0 %v14636_v54  ;;  %v5052_v54 = vsel %vm3555_vm4, %v4969_v45, %v5051_v25  ;;  %v4447_v45 = vshll.u32 %v21915_v16, 16  ;;  %v14489_v25 = vld [vmem:[%s21326_s5 + $0xa78] sm:$0xff] }
 0x6df   :  { %10686 = vmatpush.bf16.msrb.mxu3 %v14659_v61  ;;  %v4436_v61 = vsel %vm3555_vm4, %v4434_v49, %v4431_v26  ;;  %v5056_v17 = vsel %vm3558_vm5, %v5054_v18, %v5052_v54  ;;  %v4968_v49 = vsel %vm3549_vm3, %v4967_v28, 0  ;;  %v21979_v18 = vrot.slane %v21909_v20, 5  ;;  %v20674_v20 = vpop.f32.mrf.mxu1 }
 0x6e0   :  { %10720 = vmatpush.bf16.msrb.mxu1 %v14688_v19  ;;  %v4441_v19 = vshll.u32 %v21978_v57, 16  ;;  %v5064_v57 = vshrl.u32 %v21566_v33, 16  ;;  %v5057_v26 = vsel %vm3564_vm6, %v4976_v3, %v5056_v17  ;;  %v4973_v56 = vsel %vm3555_vm4, %v4971_v12, %v4968_v49 }
 0x6e1   :  { %10348 = vmatpush.bf16.msra.mxu2 %v14451_v30  ;;  %v10093_v30 = vpop.f32.mrf.mxu2  ;;  %v4438_v54 = vsel %vm3558_vm5, %v21979_v18, %v4436_v61  ;;  %v4984_v33 = vshll.u32 %v4982_v43, 16  ;;  %v5061_v28 = vsel %vm3567_vm7, %v5059_v22, %v5057_v26  ;;  %v4975_v3 = vsel %vm3558_vm5, %v4974_v44, %v4973_v56  ;;  %v14487_v18 = vld [vmem:[%s21326_s5 + $0xa68] sm:$0xff] }
 0x6e2   :  { %10647 = vmatpush.bf16.msra.mxu0 %v14635_v9  ;;  %v14673_v9 = vld [vmem:[%s21326_s5 + $0x1038] sm:$0xff]  ;;  %v4443_v30 = vsel %vm3564_vm6, %v4441_v19, %v4438_v54  ;;  %v5062_v12 = vsel %vm3573_vm8, %v4982_v43, %v5061_v28  ;;  %v4980_v61 = vsel %vm3564_vm6, %v4978_v1, %v4975_v3  ;;  %v4991_v17 = vshll.u32 %v4989_v53, 16  ;;  %v14696_v19 = vld [vmem:[%s21326_s5 + $0x10f0] sm:$0xff]  ;;  %v21982_v1 = vld [vmem:[#allocation19_spill] sm:$0xff] }
 0x6e3   :  { %10687 = vmatpush.bf16.msrb.mxu3 %v14658_v32  ;;  %v21981_v32 = vrot.slane %v21910_v23, 4  ;;  %v5066_v2 = vsel %vm3576_vm9, %v5064_v57, %v5062_v12  ;;  %v4981_v43 = vsel %vm3567_vm7, %v21935_v7, %v4980_v61  ;;  %v14685_v23 = vld [vmem:[%s21326_s5 + $0x1098] sm:$0xff]  ;;  %v21983_v49 = vrot.slane %v21982_v1, 3  ;;  %v14488_v57 = vld [vmem:[%s21326_s5 + $0xa70] sm:$0xff]  ;;  %v14671_v54 = vld [vmem:[%s21326_s5 + $0x1028] sm:$0xff] }
 0x6e4   :  { %10721 = vmatpush.bf16.msrb.mxu1 %v14687_v47  ;;  %v14634_v47 = vld [vmem:[%s21326_s5 + $0xf00] sm:$0xff]  ;;  %v21984_v26 = vrot.slane %v21937_v5, 7  ;;  %v21986_v12 = vld [vmem:[#allocation51_spill] sm:$0xff] }
 0x6e5   :  { %v4445_v22 = vsel %vm3567_vm7, %v21981_v32, %v4443_v30  ;;  %10349 = vmatpush.bf16.msra.mxu2 %v14450_v41  ;;  %v14694_v28 = vld [vmem:[%s21326_s5 + $0x10e0] sm:$0xff]  ;;  %v21985_v30 = vrot.slane %v21891_v40, 7  ;;  %v10105_v32 = vadd.f32 %v21986_v12, %v20609_v38  ;;  %v21988_v38 = vrot.slane %v21936_v39, 3 }
 0x6e6   :  { %v4449_v44 = vsel %vm3573_vm8, %v4447_v45, %v4445_v22  ;;  %10648 = vmatpush.bf16.msra.mxu0 %v14634_v47  ;;  %v14486_v22 = vld [vmem:[%s21326_s5 + $0xa60] sm:$0xff] }
 0x6e7   :  { %10732 = vmatpush.bf16.msra.mxu3 %v14697_v52  ;;  %v5067_v52 = vsel %vm3582_vm10, %v4989_v53, %v5066_v2  ;;  %v4451_v41 = vsel %vm3576_vm9, %v21983_v49, %v4449_v44  ;;  %v14672_v53 = vld [vmem:[%s21326_s5 + $0x1030] sm:$0xff]  ;;  %v10470_v56 = vpop.f32.mrf.mxu1  ;;  %v5112_v3 = vshll.u32 %v21985_v30, 16  ;;  %v14670_v61 = vld [vmem:[%s21326_s5 + $0x1020] sm:$0xff]  ;;  %v14693_v2 = vld [vmem:[%s21326_s5 + $0x10d8] sm:$0xff]  ;;  %v5109_v44 = vsel %vm3549_vm3, %v21988_v38, 0  ;;  %v20749_v49 = vpop.f32.mrf.mxu0 }
 0x6e8   :  { %10722 = vmatpush.bf16.msrb.mxu1 %v14686_v48  ;;  %v4986_v48 = vsel %vm3573_vm8, %v4984_v33, %v4981_v43  ;;  %10688 = vmatmul.bf16.vlgmr.msrb.gmra.mxu3 %v5067_v52  ;;  %v4456_v45 = vsel %vm3582_vm10, %v4454_v13, %v4451_v41  ;;  %v14695_v33 = vld [vmem:[%s21326_s5 + $0x10e8] sm:$0xff]  ;;  %v14684_v13 = vld [vmem:[%s21326_s5 + $0x1090] sm:$0xff]  ;;  %v14682_v43 = vld [vmem:[%s21326_s5 + $0x1080] sm:$0xff]  ;;  %v21989_v52 = vrot.slane %v21894_v4, 5  ;;  %v5135_v38 = vrot.slane %v21940_v27, 3 }
 0x6e9   :  { %10394 = vmatpush.bf16.msrb.mxu2 %v14489_v25  ;;  %v4988_v47 = vsel %vm3576_vm9, %v21984_v26, %v4986_v48  ;;  %v14485_v41 = vld [vmem:[%s21326_s5 + $0xa58] sm:$0xff]  ;;  %v21991_v26 = vrot.slane %v21934_v55, 2  ;;  %v14692_v56 = vld [vmem:[%s21326_s5 + $0x10d0] sm:$0xff] }
 0x6ea   :  { %10693 = vmatpush.bf16.msrb.mxu0 %v14673_v9  ;;  %10350 = vmatmul.bf16.vlgmr.msra.gmra.mxu2 %v4456_v45  ;;  %v4993_v25 = vsel %vm3582_vm10, %v4991_v17, %v4988_v47  ;;  %v14683_v9 = vld [vmem:[%s21326_s5 + $0x1088] sm:$0xff]  ;;  %v21987_v17 = vrot.slane %v21897_v11, 6  ;;  %v5126_v1 = vshll.u32 %v21989_v52, 16  ;;  %v14721_v48 = vld [vmem:[%s21326_s5 + $0x11b8] sm:$0xff] }
 0x6eb   :  { %10733 = vmatpush.bf16.msra.mxu3 %v14696_v19  ;;  %10649 = vmatmul.bf16.vlgmr.msra.gmra.mxu0 %v4993_v25  ;;  %v20775_v30 = vpop.f32.mrf.mxu3 }
 0x6ec   :  { %10723 = vmatpush.bf16.msrb.mxu1 %v14685_v23  ;;  %v5119_v19 = vshll.u32 %v21987_v17, 16  ;;  %v5114_v23 = vsel %vm3555_vm4, %v5112_v3, %v5109_v44  ;;  %v21994_v3 = vld [vmem:[#allocation2_spill] sm:$0xff]  ;;  %v10143_v17 = vpop.f32.mrf.mxu2  ;;  %v21568_v44 = vrot.slane %v21913_v24, 6 }
 0x6ed   :  { %10395 = vmatpush.bf16.msrb.mxu2 %v14488_v57  ;;  %v21990_v57 = vld [vmem:[#allocation76_spill] sm:$0xff]  ;;  %v5116_v47 = vsel %vm3558_vm5, %v21991_v26, %v5114_v23  ;;  %v14691_v23 = vld [vmem:[%s21326_s5 + $0x10c8] sm:$0xff] }
 0x6ee   :  { %10694 = vmatpush.bf16.msrb.mxu0 %v14672_v53  ;;  %v10118_v45 = vadd.f32 %v21990_v57, %v10105_v32  ;;  %v14669_v53 = vld [vmem:[%s21326_s5 + $0x1018] sm:$0xff]  ;;  %v5121_v25 = vsel %vm3564_vm6, %v5119_v19, %v5116_v47 }
 0x6ef   :  { %10734 = vmatpush.bf16.msra.mxu3 %v14695_v33  ;;  %v21992_v33 = vrot.slane %v17983_v36, 4  ;;  %v10444_v47 = vpop.f32.mrf.mxu0 }
 0x6f0   :  { %10724 = vmatpush.bf16.msrb.mxu1 %v14684_v13  ;;  %v10131_v12 = vadd.f32 %v21994_v3, %v10118_v45  ;;  %v21997_v45 = vrot.slane %v21940_v27, 2  ;;  %v14702_v27 = vld [vmem:[%s21326_s5 + $0x1120] sm:$0xff] }
 0x6f1   :  { %10396 = vmatpush.bf16.msrb.mxu2 %v14487_v18  ;;  %v5132_v13 = vshll.u32 %v21992_v33, 16  ;;  %v21993_v18 = vrot.slane %v21935_v7, 1  ;;  %v5142_v33 = vrot.slane %v21942_v42, 2 }
 0x6f2   :  { %10695 = vmatpush.bf16.msrb.mxu0 %v14671_v54  ;;  %v5069_v26 = vshrl.u32 %v21997_v45, 16 }
 0x6f3   :  { %10735 = vmatpush.bf16.msra.mxu3 %v14694_v28  ;;  %v5123_v54 = vsel %vm3567_vm7, %v21993_v18, %v5121_v25  ;;  %v21569_v28 = vrot.slane %v21911_v31, 7  ;;  %v14719_v25 = vld [vmem:[%s21326_s5 + $0x11a8] sm:$0xff]  ;;  %v5136_v18 = vsel %vm3549_vm3, %v5135_v38, 0 }
 0x6f4   :  { %10725 = vmatpush.bf16.msrb.mxu1 %v14683_v9  ;;  %v5128_v9 = vsel %vm3573_vm8, %v5126_v1, %v5123_v54  ;;  %v21567_v1 = vrot.slane %v21915_v16, 5  ;;  %v5146_v54 = vshll.u32 %v21568_v44, 16 }
 0x6f5   :  { %10397 = vmatpush.bf16.msrb.mxu2 %v14486_v22  ;;  %v5129_v32 = vsel %vm3576_vm9, %v21937_v5, %v5128_v9  ;;  %v14484_v22 = vld [vmem:[%s21326_s5 + $0xa50] sm:$0xff]  ;;  %v5139_v52 = vshll.u32 %v21569_v28, 16  ;;  %v21998_v9 = vld [vmem:[#allocation74_spill] sm:$0xff]  ;;  %v22007_v28 = vrot.slane %v18769_v10, 1 }
 0x6f6   :  { %10696 = vmatpush.bf16.msrb.mxu0 %v14670_v61  ;;  %v14720_v61 = vld [vmem:[%s21326_s5 + $0x11b0] sm:$0xff]  ;;  %v5134_v19 = vsel %vm3582_vm10, %v5132_v13, %v5129_v32  ;;  %v14667_v13 = vld [vmem:[%s21326_s5 + $0x1008] sm:$0xff]  ;;  %v21999_v3 = vrot.slane %v21998_v9, 5  ;;  %v14690_v32 = vld [vmem:[%s21326_s5 + $0x10c0] sm:$0xff]  ;;  %v5071_v9 = vsel %vm3549_vm3, %v5069_v26, 0  ;;  %v22004_v26 = vrot.slane %v21911_v31, 6 }
 0x6f7   :  { %10736 = vmatpush.bf16.msra.mxu3 %v14693_v2  ;;  %v14668_v2 = vld [vmem:[%s21326_s5 + $0x1010] sm:$0xff] }
 0x6f8   :  { %10726 = vmatpush.bf16.msrb.mxu1 %v14682_v43  ;;  %v20792_v43 = vadd.f32 %v10143_v17, %v10131_v12  ;;  %v4530_v12 = vshrl.u32 %v21999_v3, 16  ;;  %v22000_v17 = vrot.slane %v21942_v42, 1  ;;  %v14718_v3 = vld [vmem:[%s21326_s5 + $0x11a0] sm:$0xff] }
 0x6f9   :  { %10398 = vmatpush.bf16.msrb.mxu2 %v14485_v41  ;;  %v21995_v41 = vld [vmem:[#allocation4_spill] sm:$0xff]  ;;  %v14714_v42 = vld [vmem:[%s21326_s5 + $0x1180] sm:$0xff] }
 0x6fa   :  { %10697 = vmatpush.bf16.msrb.mxu0 %v14669_v53  ;;  %v14483_v53 = vld [vmem:[%s21326_s5 + $0xa48] sm:$0xff] }
 0x6fb   :  { %10727 = vmatmul.bf16.vlgmr.msrb.gmra.mxu1 %v5134_v19  ;;  %10737 = vmatpush.bf16.msra.mxu3 %v14692_v56  ;;  %v21570_v56 = vrot.slane %v21893_v50, 4  ;;  %v5074_v19 = vshrl.u32 %v22000_v17, 16  ;;  %v22003_v17 = vrot.slane %v18630_v51, 2 }
 0x6fc   :  { %10771 = vmatpush.bf16.msra.mxu1 %v14721_v48  ;;  %v21996_v48 = vrot.slane %v21995_v41, 6  ;;  %v5153_v41 = vshll.u32 %v21567_v1, 16 }
 0x6fd   :  { %10399 = vmatpush.bf16.msrb.mxu2 %v14484_v22  ;;  %v5141_v22 = vsel %vm3555_vm4, %v5139_v52, %v5136_v18  ;;  %v10483_v52 = vpop.f32.mrf.mxu3  ;;  %v14482_v18 = vld [vmem:[%s21326_s5 + $0xa40] sm:$0xff] }
 0x6fe   :  { %v4525_v57 = vshrl.u32 %v21996_v48, 16  ;;  %10698 = vmatpush.bf16.msrb.mxu0 %v14668_v2  ;;  %v14729_v2 = vld [vmem:[%s21326_s5 + $0x11f8] sm:$0xff]  ;;  %v22001_v48 = vld [vmem:[#allocation35_spill] sm:$0xff]  ;;  %v14666_v52 = vld [vmem:[%s21326_s5 + $0x1000] sm:$0xff] }
 0x6ff   :  { %10738 = vmatpush.bf16.msra.mxu3 %v14691_v23  ;;  %v22002_v45 = vrot.slane %v22001_v48, 4 }
 0x700   :  { %10772 = vmatpush.bf16.msra.mxu1 %v14720_v61  ;;  %v5149_v61 = vrot.slane %v21941_v34, 1  ;;  %v4527_v23 = vsel %vm3549_vm3, %v4525_v57, 0  ;;  %v5143_v57 = vsel %vm3558_vm5, %v5142_v33, %v5141_v22  ;;  %v14521_v22 = vld [vmem:[%s21326_s5 + $0xb78] sm:$0xff] }
 0x701   :  { %v4535_v47 = vshrl.u32 %v22002_v45, 16  ;;  %10400 = vmatpush.bf16.msrb.mxu2 %v14483_v53  ;;  %v4528_v48 = vsel %vm3555_vm4, %v22003_v17, %v4527_v23  ;;  %v5072_v53 = vsel %vm3555_vm4, %v22004_v26, %v5071_v9  ;;  %v10145_v45 = vpop.f32.mrf.mxu2  ;;  %v5148_v1 = vsel %vm3564_vm6, %v5146_v54, %v5143_v57  ;;  %v22005_v9 = vld [vmem:[#allocation36_spill] sm:$0xff] }
 0x702   :  { %10699 = vmatpush.bf16.msrb.mxu0 %v14667_v13  ;;  %v5159_v23 = vshll.u32 %v21570_v56, 16  ;;  %v4532_v17 = vsel %vm3558_vm5, %v4530_v12, %v4528_v48  ;;  %v22006_v26 = vrot.slane %v22005_v9, 3  ;;  %v5150_v13 = vsel %vm3567_vm7, %v5149_v61, %v5148_v1  ;;  %v14705_v45 = vld [vmem:[%s21326_s5 + $0x1138] sm:$0xff]  ;;  %v20878_v9 = vpop.f32.mrf.mxu1 }
 0x703   :  { %10739 = vmatpush.bf16.msra.mxu3 %v14690_v32  ;;  %v4533_v54 = vsel %vm3564_vm6, %v22007_v28, %v4532_v17  ;;  %v5076_v57 = vsel %vm3558_vm5, %v5074_v19, %v5072_v53  ;;  %v22008_v12 = vrot.slane %v17878_v37, 7  ;;  %v5155_v32 = vsel %vm3573_vm8, %v5153_v41, %v5150_v13  ;;  %v14728_v28 = vld [vmem:[%s21326_s5 + $0x11f0] sm:$0xff] }
 0x704   :  { %10773 = vmatpush.bf16.msra.mxu1 %v14719_v25  ;;  %v5079_v25 = vshrl.u32 %v21941_v34, 16  ;;  %v4540_v44 = vshrl.u32 %v22006_v26, 16  ;;  %v4537_v1 = vsel %vm3567_vm7, %v4535_v47, %v4533_v54  ;;  %v22009_v26 = vrot.slane %v21913_v24, 5  ;;  %v14717_v47 = vld [vmem:[%s21326_s5 + $0x1198] sm:$0xff]  ;;  %v14520_v13 = vld [vmem:[%s21326_s5 + $0xb70] sm:$0xff] }
 0x705   :  { %v5084_v48 = vshrl.u32 %v22008_v12, 16  ;;  %10401 = vmatpush.bf16.msrb.mxu2 %v14482_v18  ;;  %v5156_v19 = vsel %vm3576_vm9, %v17878_v37, %v5155_v32  ;;  %v22010_v18 = vrot.slane %v21915_v16, 4  ;;  %v14716_v54 = vld [vmem:[%s21326_s5 + $0x1190] sm:$0xff]  ;;  %v14703_v12 = vld [vmem:[%s21326_s5 + $0x1128] sm:$0xff]  ;;  %v14726_v32 = vld [vmem:[%s21326_s5 + $0x11e0] sm:$0xff] }
 0x706   :  { %v5077_v56 = vsel %vm3564_vm6, %v22009_v26, %v5076_v57  ;;  %10700 = vmatpush.bf16.msrb.mxu0 %v14666_v52  ;;  %v5161_v53 = vsel %vm3582_vm10, %v5159_v23, %v5156_v19  ;;  %v14519_v57 = vld [vmem:[%s21326_s5 + $0xb68] sm:$0xff] }
 0x707   :  { %10784 = vmatpush.bf16.msrb.mxu3 %v14729_v2  ;;  %v4538_v2 = vsel %vm3573_vm8, %v19054_v35, %v4537_v1  ;;  %v5081_v41 = vsel %vm3567_vm7, %v5079_v25, %v5077_v56  ;;  %v22011_v56 = vrot.slane %v19271_v21, 7  ;;  %v5210_v1 = vshrl.u32 %v5135_v38, 16  ;;  %v14715_v26 = vld [vmem:[%s21326_s5 + $0x1188] sm:$0xff]  ;;  %v14725_v38 = vld [vmem:[%s21326_s5 + $0x11d8] sm:$0xff] }
 0x708   :  { %10774 = vmatpush.bf16.msra.mxu1 %v14718_v3  ;;  %v4542_v17 = vsel %vm3576_vm9, %v4540_v44, %v4538_v2  ;;  %v5082_v3 = vsel %vm3573_vm8, %v22010_v18, %v5081_v41  ;;  %10740 = vmatmul.bf16.vlgmr.msra.gmra.mxu3 %v5161_v53  ;;  %v14704_v44 = vld [vmem:[%s21326_s5 + $0x1130] sm:$0xff]  ;;  %v14518_v2 = vld [vmem:[%s21326_s5 + $0xb60] sm:$0xff]  ;;  %v5215_v41 = vshrl.u32 %v5142_v33, 16  ;;  %v22014_v33 = vrot.slane %v21911_v31, 7  ;;  %v14517_v18 = vld [vmem:[%s21326_s5 + $0xb58] sm:$0xff] }
 0x709   :  { %10446 = vmatpush.bf16.msra.mxu2 %v14521_v22  ;;  %v4543_v25 = vsel %vm3582_vm10, %v22011_v56, %v4542_v17  ;;  %v5086_v52 = vsel %vm3576_vm9, %v5084_v48, %v5082_v3  ;;  %v22012_v22 = vrot.slane %v21893_v50, 3  ;;  %v20956_v17 = vpop.f32.mrf.mxu0  ;;  %v22015_v3 = vld [vmem:[#allocation6_spill] sm:$0xff]  ;;  %v14701_v31 = vld [vmem:[%s21326_s5 + $0x1118] sm:$0xff]  ;;  %v22016_v56 = vrot.slane %v21913_v24, 6 }
 0x70a   :  { %10745 = vmatpush.bf16.msra.mxu0 %v14705_v45  ;;  %10402 = vmatmul.bf16.vlgmr.msrb.gmra.mxu2 %v4543_v25  ;;  %v14727_v45 = vld [vmem:[%s21326_s5 + $0x11e8] sm:$0xff]  ;;  %v10522_v48 = vpop.f32.mrf.mxu1  ;;  %v22018_v24 = vld [vmem:[#allocation53_spill] sm:$0xff] }
 0x70b   :  { %v5087_v23 = vsel %vm3582_vm10, %v22012_v22, %v5086_v52  ;;  %10785 = vmatpush.bf16.msrb.mxu3 %v14728_v28  ;;  %v22013_v28 = vld [vmem:[#allocation20_spill] sm:$0xff]  ;;  %v5162_v22 = vrot.slane %v21898_v63, 3  ;;  %v5169_v48 = vrot.slane %v18755_v46, 2 }
 0x70c   :  { %10701 = vmatmul.bf16.vlgmr.msrb.gmra.mxu0 %v5087_v23  ;;  %10775 = vmatpush.bf16.msra.mxu1 %v14717_v47  ;;  %v10157_v19 = vadd.f32 %v22013_v28, %v20792_v43  ;;  %v5212_v43 = vsel %vm3549_vm3, %v5210_v1, 0  ;;  %v5220_v47 = vshrl.u32 %v5149_v61, 16  ;;  %v5225_v61 = vshrl.u32 %v17878_v37, 16 }
 0x70d   :  { %10447 = vmatpush.bf16.msra.mxu2 %v14520_v13  ;;  %v5213_v53 = vsel %vm3555_vm4, %v22014_v33, %v5212_v43  ;;  %v22017_v37 = vrot.slane %v21915_v16, 5  ;;  %v22019_v1 = vrot.slane %v21893_v50, 4  ;;  %v5164_v28 = vrot.slane %v18630_v51, 7 }
 0x70e   :  { %10746 = vmatpush.bf16.msra.mxu0 %v14704_v44  ;;  %v10170_v13 = vadd.f32 %v22015_v3, %v10157_v19  ;;  %v5217_v34 = vsel %vm3558_vm5, %v5215_v41, %v5213_v53  ;;  %v14724_v44 = vld [vmem:[%s21326_s5 + $0x11d0] sm:$0xff]  ;;  %v22020_v19 = vrot.slane %v21892_v15, 7  ;;  %v5176_v50 = vrot.slane %v18985_v29, 1  ;;  %v14515_v15 = vld [vmem:[%s21326_s5 + $0xb48] sm:$0xff] }
 0x70f   :  { %10786 = vmatpush.bf16.msrb.mxu3 %v14727_v45  ;;  %v5218_v25 = vsel %vm3564_vm6, %v22016_v56, %v5217_v34  ;;  %v20978_v45 = vpop.f32.mrf.mxu3  ;;  %v5171_v43 = vrot.slane %v18769_v10, 6  ;;  %v22021_v33 = vrot.slane %v21896_v59, 6  ;;  %v5178_v3 = vrot.slane %v19054_v35, 5 }
 0x710   :  { %10776 = vmatpush.bf16.msra.mxu1 %v14716_v54  ;;  %v5222_v52 = vsel %vm3567_vm7, %v5220_v47, %v5218_v25  ;;  %v10183_v54 = vadd.f32 %v22018_v24, %v10170_v13  ;;  %v5166_v34 = vshll.u32 %v5164_v28, 16  ;;  %v5240_v56 = vshrl.u32 %v5176_v50, 16 }
 0x711   :  { %10448 = vmatpush.bf16.msra.mxu2 %v14519_v57  ;;  %v5223_v23 = vsel %vm3573_vm8, %v22017_v37, %v5222_v52  ;;  %v10496_v47 = vpop.f32.mrf.mxu0  ;;  %v4631_v53 = vshrl.u32 %v22021_v33, 16  ;;  %v22022_v59 = vrot.slane %v21891_v40, 3  ;;  %v5184_v52 = vrot.slane %v19271_v21, 4 }
 0x712   :  { %10747 = vmatpush.bf16.msra.mxu0 %v14703_v12  ;;  %v5227_v57 = vsel %vm3576_vm9, %v5225_v61, %v5223_v23  ;;  %v14516_v12 = vld [vmem:[%s21326_s5 + $0xb50] sm:$0xff]  ;;  %v14722_v61 = vld [vmem:[%s21326_s5 + $0x11c0] sm:$0xff]  ;;  %v22023_v37 = vrot.slane %v21899_v58, 5  ;;  %v5173_v24 = vshll.u32 %v5171_v43, 16  ;;  %v5180_v47 = vshll.u32 %v5178_v3, 16 }
 0x713   :  { %10787 = vmatpush.bf16.msrb.mxu3 %v14726_v32  ;;  %v10195_v32 = vpop.f32.mrf.mxu2  ;;  %v5228_v16 = vsel %vm3582_vm10, %v22019_v1, %v5227_v57  ;;  %v14514_v57 = vld [vmem:[%s21326_s5 + $0xb40] sm:$0xff] }
 0x714   :  { %10777 = vmatpush.bf16.msra.mxu1 %v14715_v26  ;;  %v14700_v26 = vld [vmem:[%s21326_s5 + $0x1110] sm:$0xff]  ;;  %v20995_v41 = vadd.f32 %v10195_v32, %v10183_v54  ;;  %v4636_v23 = vshrl.u32 %v22023_v37, 16  ;;  %v5245_v32 = vshrl.u32 %v19222_v0, 16  ;;  %v14698_v58 = vld [vmem:[%s21326_s5 + $0x1100] sm:$0xff] }
 0x715   :  { %10449 = vmatpush.bf16.msra.mxu2 %v14518_v2  ;;  %v4626_v2 = vshrl.u32 %v22020_v19, 16 }
 0x716   :  { %10748 = vmatpush.bf16.msra.mxu0 %v14702_v27  ;;  %v14723_v27 = vld [vmem:[%s21326_s5 + $0x11c8] sm:$0xff] }
 0x717   :  { %10788 = vmatpush.bf16.msrb.mxu3 %v14725_v38  ;;  %v5230_v38 = vshrl.u32 %v5162_v22, 16  ;;  %v4628_v13 = vsel %vm3549_vm3, %v4626_v2, 0  ;;  %v10535_v54 = vpop.f32.mrf.mxu3  ;;  %v22024_v2 = vrot.slane %v21900_v62, 4 }
 0x718   :  { %10778 = vmatpush.bf16.msra.mxu1 %v14714_v42  ;;  %v5235_v42 = vshrl.u32 %v5169_v48, 16  ;;  %v4629_v25 = vsel %vm3555_vm4, %v22022_v59, %v4628_v13  ;;  %v5186_v13 = vshll.u32 %v5184_v52, 16 }
 0x719   :  { %10450 = vmatpush.bf16.msra.mxu2 %v14517_v18  ;;  %v14699_v18 = vld [vmem:[%s21326_s5 + $0x1108] sm:$0xff]  ;;  %v4633_v1 = vsel %vm3558_vm5, %v4631_v53, %v4629_v25  ;;  %v21045_v53 = vpop.f32.mrf.mxu1  ;;  %v14552_v25 = vld [vmem:[%s21326_s5 + $0xc70] sm:$0xff] }
 0x71a   :  { %10749 = vmatpush.bf16.msra.mxu0 %v14701_v31  ;;  %v5232_v31 = vsel %vm3549_vm3, %v5230_v38, 0 }
 0x71b   :  { %10779 = vmatmul.bf16.vlgmr.msra.gmra.mxu1 %v5228_v16  ;;  %10789 = vmatpush.bf16.msrb.mxu3 %v14724_v44  ;;  %v5233_v44 = vsel %vm3555_vm4, %v5164_v28, %v5232_v31  ;;  %v5163_v16 = vsel %vm3549_vm3, %v5162_v22, 0  ;;  %v14553_v28 = vld [vmem:[%s21326_s5 + $0xc78] sm:$0xff] }
 0x71c   :  { %v5168_v38 = vsel %vm3555_vm4, %v5166_v34, %v5163_v16 }
 0x71d   :  { %10451 = vmatpush.bf16.msra.mxu2 %v14516_v12  ;;  %v5237_v12 = vsel %vm3558_vm5, %v5235_v42, %v5233_v44  ;;  %v5170_v33 = vsel %vm3558_vm5, %v5169_v48, %v5168_v38  ;;  %v14547_v38 = vld [vmem:[%s21326_s5 + $0xc48] sm:$0xff] }
 0x71e   :  { %10750 = vmatpush.bf16.msra.mxu0 %v14700_v26  ;;  %v10197_v26 = vpop.f32.mrf.mxu2  ;;  %v5238_v19 = vsel %vm3564_vm6, %v5171_v43, %v5237_v12  ;;  %v5175_v62 = vsel %vm3564_vm6, %v5173_v24, %v5170_v33  ;;  %v22027_v24 = vld [vmem:[#allocation23_spill] sm:$0xff] }
 0x71f   :  { %10790 = vmatpush.bf16.msrb.mxu3 %v14723_v27  ;;  %v4641_v27 = vshrl.u32 %v22024_v2, 16  ;;  %v5242_v22 = vsel %vm3567_vm7, %v5240_v56, %v5238_v19  ;;  %v5177_v56 = vsel %vm3567_vm7, %v5176_v50, %v5175_v62  ;;  %v10209_v54 = vadd.f32 %v22027_v24, %v20995_v41  ;;  %v14548_v41 = vld [vmem:[%s21326_s5 + $0xc50] sm:$0xff]  ;;  %v14583_v62 = vld [vmem:[%s21326_s5 + $0xd68] sm:$0xff] }
 0x720   :  { %v5182_v59 = vsel %vm3573_vm8, %v5180_v47, %v5177_v56 }
 0x721   :  { %10452 = vmatpush.bf16.msra.mxu2 %v14515_v15  ;;  %v22025_v15 = vrot.slane %v21897_v11, 2  ;;  %v5183_v37 = vsel %vm3576_vm9, %v19222_v0, %v5182_v59 }
 0x722   :  { %10751 = vmatpush.bf16.msra.mxu0 %v14699_v18  ;;  %v5243_v18 = vsel %vm3573_vm8, %v5178_v3, %v5242_v22  ;;  %v5188_v50 = vsel %vm3582_vm10, %v5186_v13, %v5183_v37  ;;  %v14546_v22 = vld [vmem:[%s21326_s5 + $0xc40] sm:$0xff]  ;;  %v14580_v37 = vld [vmem:[%s21326_s5 + $0xd50] sm:$0xff] }
 0x723   :  { %10791 = vmatpush.bf16.msrb.mxu3 %v14722_v61  ;;  %v4634_v42 = vsel %vm3564_vm6, %v22025_v15, %v4633_v1  ;;  %v5247_v34 = vsel %vm3576_vm9, %v5245_v32, %v5243_v18  ;;  %v22026_v61 = vrot.slane %v21894_v4, 1  ;;  %v14549_v32 = vld [vmem:[%s21326_s5 + $0xc58] sm:$0xff]  ;;  %v22028_v1 = vld [vmem:[#allocation3_spill] sm:$0xff]  ;;  %v14584_v18 = vld [vmem:[%s21326_s5 + $0xd70] sm:$0xff] }
 0x724   :  { %v4638_v43 = vsel %vm3567_vm7, %v4636_v23, %v4634_v42  ;;  %v5248_v48 = vsel %vm3582_vm10, %v5184_v52, %v5247_v34  ;;  %v14551_v52 = vld [vmem:[%s21326_s5 + $0xc68] sm:$0xff]  ;;  %v10574_v23 = vpop.f32.mrf.mxu1  ;;  %v10222_v16 = vadd.f32 %v22028_v1, %v10209_v54  ;;  %v14585_v42 = vld [vmem:[%s21326_s5 + $0xd78] sm:$0xff] }
 0x725   :  { %10453 = vmatpush.bf16.msra.mxu2 %v14514_v57  ;;  %v4639_v31 = vsel %vm3573_vm8, %v22026_v61, %v4638_v43  ;;  %v14550_v57 = vld [vmem:[%s21326_s5 + $0xc60] sm:$0xff]  ;;  %v22030_v43 = vld [vmem:[#allocation72_spill] sm:$0xff]  ;;  %v22031_v34 = vld [vmem:[#allocation55_spill] sm:$0xff]  ;;  %v4807_v23 = vshrl.u32 %v21898_v63, 16 }
 0x726   :  { %10752 = vmatpush.bf16.msra.mxu0 %v14698_v58  ;;  %v4643_v3 = vsel %vm3576_vm9, %v4641_v27, %v4639_v31  ;;  %10792 = vmatmul.bf16.vlgmr.msrb.gmra.mxu3 %v5248_v48  ;;  %v21074_v12 = vpop.f32.mrf.mxu0  ;;  %v22029_v58 = vld [vmem:[#allocation37_spill] sm:$0xff]  ;;  %v14582_v31 = vld [vmem:[%s21326_s5 + $0xd60] sm:$0xff]  ;;  %v14579_v54 = vld [vmem:[%s21326_s5 + $0xd48] sm:$0xff] }
 0x727   :  { %v4644_v44 = vsel %vm3582_vm10, %v17983_v36, %v4643_v3  ;;  %v14581_v48 = vld [vmem:[%s21326_s5 + $0xd58] sm:$0xff]  ;;  %v22032_v3 = vld [vmem:[#allocation40_spill] sm:$0xff]  ;;  %v4809_v1 = vsel %vm3549_vm3, %v4807_v23, 0  ;;  %v14578_v63 = vld [vmem:[%s21326_s5 + $0xd40] sm:$0xff] }
 0x728   :  { %10454 = vmatmul.bf16.vlgmr.msra.gmra.mxu2 %v4644_v44 }
 0x729   :  { %10498 = vmatpush.bf16.msrb.mxu2 %v14553_v28  ;;  %10753 = vmatmul.bf16.vlgmr.msra.gmra.mxu0 %v5188_v50  ;;  %v10235_v28 = vadd.f32 %v22029_v58, %v10222_v16 }
 0x72b   :  { %v21080_v26 = vpop.f32.mrf.mxu3  ;;  %v10247_v19 = vpop.f32.mrf.mxu2 }
 0x72c   :  { %v10248_v2 = vadd.f32 %v10247_v19, %v10235_v28  ;;  %v22035_v28 = vrot.slane %v18630_v51, 4 }
 0x72d   :  { %10499 = vmatpush.bf16.msrb.mxu2 %v14552_v25 }
 0x72e   :  { %v10548_v27 = vpop.f32.mrf.mxu0  ;;  %v10261_v61 = vadd.f32 %v22031_v34, %v10248_v2  ;;  %v14614_v34 = vld [vmem:[%s21326_s5 + $0xe60] sm:$0xff] }
 0x730   :  { %v10274_v59 = vadd.f32 %v22032_v3, %v10261_v61  ;;  %v22040_v3 = vld [vmem:[#allocation42_spill] sm:$0xff] }
 0x731   :  { %10500 = vmatpush.bf16.msrb.mxu2 %v14551_v52 }
 0x732   :  { %v10287_v44 = vadd.f32 %v20194_v6, %v10274_v59  ;;  %v22034_v6 = vrot.slane %v18985_v29, 6  ;;  %v22036_v29 = vrot.slane %v19222_v0, 5  ;;  %v14616_v0 = vld [vmem:[%s21326_s5 + $0xe70] sm:$0xff] }
 0x733   :  { %v10587_v47 = vpop.f32.mrf.mxu3  ;;  %v10249_v15 = vpop.f32.mrf.mxu2 }
 0x734   :  { %v4817_v16 = vshrl.u32 %v22034_v6, 16  ;;  %v4822_v27 = vshrl.u32 %v22036_v29, 16  ;;  %v22038_v15 = vrot.slane %v19054_v35, 2  ;;  %v22043_v6 = vrot.slane %v21891_v40, 5 }
 0x735   :  { %10501 = vmatpush.bf16.msrb.mxu2 %v14550_v57  ;;  %v22033_v57 = vrot.slane %v18755_v46, 7  ;;  %v14617_v46 = vld [vmem:[%s21326_s5 + $0xe78] sm:$0xff] }
 0x736   :  { %v21095_v33 = vpop.f32.mrf.mxu1 }
 0x739   :  { %10502 = vmatpush.bf16.msrb.mxu2 %v14549_v32  ;;  %v4812_v32 = vshrl.u32 %v22033_v57, 16  ;;  %v22042_v57 = vrot.slane %v21935_v7, 7  ;;  %v22044_v7 = vrot.slane %v21937_v5, 6  ;;  %v14648_v5 = vld [vmem:[%s21326_s5 + $0xf70] sm:$0xff] }
 0x73d   :  { %10503 = vmatpush.bf16.msrb.mxu2 %v14548_v41  ;;  %v4810_v41 = vsel %vm3555_vm4, %v22035_v28, %v4809_v1  ;;  %v4923_v28 = vshrl.u32 %v22044_v7, 16 }
 0x73e   :  { %v10626_v13 = vpop.f32.mrf.mxu1  ;;  %v4814_v2 = vsel %vm3558_vm5, %v4812_v32, %v4810_v41  ;;  %v4918_v32 = vshrl.u32 %v22042_v57, 16  ;;  %v22045_v41 = vrot.slane %v21897_v11, 4  ;;  %v22047_v11 = vrot.slane %v17983_v36, 2  ;;  %v14645_v36 = vld [vmem:[%s21326_s5 + $0xf58] sm:$0xff] }
 0x741   :  { %10504 = vmatpush.bf16.msrb.mxu2 %v14547_v38  ;;  %v22037_v38 = vrot.slane %v18769_v10, 3  ;;  %v22039_v10 = vrot.slane %v19271_v21, 1  ;;  %v14613_v21 = vld [vmem:[%s21326_s5 + $0xe58] sm:$0xff] }
 0x743   :  { %v4815_v47 = vsel %vm3564_vm6, %v22037_v38, %v4814_v2  ;;  %v22046_v2 = vrot.slane %v21894_v4, 3 }
 0x744   :  { %v4819_v51 = vsel %vm3567_vm7, %v4817_v16, %v4815_v47  ;;  %v14647_v47 = vld [vmem:[%s21326_s5 + $0xf68] sm:$0xff] }
 0x745   :  { %10505 = vmatpush.bf16.msrb.mxu2 %v14546_v22 }
 0x748   :  { %10506 = vmatmul.bf16.vlgmr.msrb.gmra.mxu2 %v22030_v43  ;;  %v21108_v56 = vpop.f32.mrf.mxu0 }
 0x749   :  { %10550 = vmatpush.bf16.msra.mxu2 %v14585_v42  ;;  %v4820_v42 = vsel %vm3573_vm8, %v22038_v15, %v4819_v51  ;;  %v22048_v51 = vld [vmem:[#allocation57_spill] sm:$0xff] }
 0x74b   :  { %v21114_v25 = vpop.f32.mrf.mxu3 }
 0x74d   :  { %10551 = vmatpush.bf16.msra.mxu2 %v14584_v18  ;;  %v10299_v50 = vpop.f32.mrf.mxu2  ;;  %v4824_v18 = vsel %vm3576_vm9, %v4822_v27, %v4820_v42  ;;  %v14646_v42 = vld [vmem:[%s21326_s5 + $0xf60] sm:$0xff] }
 0x74e   :  { %v10300_v52 = vadd.f32 %v10299_v50, %v10287_v44  ;;  %v4825_v43 = vsel %vm3582_vm10, %v22039_v10, %v4824_v18  ;;  %v22041_v50 = vrot.slane %v21936_v39, 1  ;;  %v14610_v39 = vld [vmem:[%s21326_s5 + $0xe40] sm:$0xff] }
 0x750   :  { %v10600_v24 = vpop.f32.mrf.mxu0  ;;  %v10313_v13 = vadd.f32 %v20123_v8, %v10300_v52  ;;  %v14612_v8 = vld [vmem:[%s21326_s5 + $0xe50] sm:$0xff]  ;;  %v4908_v52 = vshrl.u32 %v22041_v50, 16  ;;  %v22050_v50 = vld [vmem:[#allocation77_spill] sm:$0xff] }
 0x751   :  { %10552 = vmatpush.bf16.msra.mxu2 %v14583_v62  ;;  %v14615_v62 = vld [vmem:[%s21326_s5 + $0xe68] sm:$0xff]  ;;  %v4913_v24 = vshrl.u32 %v21934_v55, 16  ;;  %v14649_v55 = vld [vmem:[%s21326_s5 + $0xf78] sm:$0xff] }
 0x753   :  { %v10639_v58 = vpop.f32.mrf.mxu3 }
 0x755   :  { %10553 = vmatpush.bf16.msra.mxu2 %v14582_v31  ;;  %v10301_v19 = vpop.f32.mrf.mxu2  ;;  %v10326_v31 = vadd.f32 %v20223_v60, %v10313_v13  ;;  %v14611_v60 = vld [vmem:[%s21326_s5 + $0xe48] sm:$0xff] }
 0x757   :  { %v10339_v59 = vadd.f32 %v22040_v3, %v10326_v31  ;;  %v14643_v31 = vld [vmem:[%s21326_s5 + $0xf48] sm:$0xff] }
 0x758   :  { %v21144_v22 = vpop.f32.mrf.mxu1 }
 0x759   :  { %10554 = vmatpush.bf16.msra.mxu2 %v14581_v48 }
 0x75d   :  { %10555 = vmatpush.bf16.msra.mxu2 %v14580_v37 }
 0x760   :  { %v10678_v35 = vpop.f32.mrf.mxu1 }
 0x761   :  { %10556 = vmatpush.bf16.msra.mxu2 %v14579_v54  ;;  %v4910_v54 = vsel %vm3549_vm3, %v4908_v52, 0  ;;  %v14644_v35 = vld [vmem:[%s21326_s5 + $0xf50] sm:$0xff]  ;;  %v14679_v52 = vld [vmem:[%s21326_s5 + $0x1068] sm:$0xff] }
 0x762   :  { %v4911_v16 = vsel %vm3555_vm4, %v22043_v6, %v4910_v54  ;;  %v14678_v54 = vld [vmem:[%s21326_s5 + $0x1060] sm:$0xff] }
 0x765   :  { %10557 = vmatpush.bf16.msra.mxu2 %v14578_v63  ;;  %v4915_v63 = vsel %vm3558_vm5, %v4913_v24, %v4911_v16 }
 0x766   :  { %v4916_v19 = vsel %vm3564_vm6, %v22045_v41, %v4915_v63 }
 0x767   :  { %v4920_v40 = vsel %vm3567_vm7, %v4918_v32, %v4916_v19  ;;  %v14677_v32 = vld [vmem:[%s21326_s5 + $0x1058] sm:$0xff]  ;;  %v14674_v19 = vld [vmem:[%s21326_s5 + $0x1040] sm:$0xff] }
 0x768   :  { %10558 = vmatmul.bf16.vlgmr.msra.gmra.mxu2 %v4825_v43  ;;  %v21164_v61 = vpop.f32.mrf.mxu0  ;;  %v4921_v29 = vsel %vm3573_vm8, %v22046_v2, %v4920_v40  ;;  %v14712_v2 = vld [vmem:[%s21326_s5 + $0x1170] sm:$0xff] }
 0x769   :  { %10602 = vmatpush.bf16.msrb.mxu2 %v14617_v46  ;;  %v4925_v27 = vsel %vm3576_vm9, %v4923_v28, %v4921_v29  ;;  %v14675_v28 = vld [vmem:[%s21326_s5 + $0x1048] sm:$0xff] }
 0x76a   :  { %v4926_v38 = vsel %vm3582_vm10, %v22047_v11, %v4925_v27  ;;  %v22053_v29 = vld [vmem:[#allocation39_spill] sm:$0xff]  ;;  %v14710_v11 = vld [vmem:[%s21326_s5 + $0x1160] sm:$0xff] }
 0x76b   :  { %v21170_v48 = vpop.f32.mrf.mxu3  ;;  %v14711_v27 = vld [vmem:[%s21326_s5 + $0x1168] sm:$0xff] }
 0x76d   :  { %10603 = vmatpush.bf16.msrb.mxu2 %v14616_v0  ;;  %v10351_v44 = vpop.f32.mrf.mxu2  ;;  %v22049_v0 = vld [vmem:[#allocation44_spill] sm:$0xff] }
 0x76e   :  { %v10352_v37 = vadd.f32 %v10351_v44, %v10339_v59  ;;  %v14642_v59 = vld [vmem:[%s21326_s5 + $0xf40] sm:$0xff] }
 0x770   :  { %v10652_v23 = vpop.f32.mrf.mxu0  ;;  %v10365_v15 = vadd.f32 %v22048_v51, %v10352_v37  ;;  %v14680_v37 = vld [vmem:[%s21326_s5 + $0x1070] sm:$0xff] }
 0x771   :  { %10604 = vmatpush.bf16.msrb.mxu2 %v14615_v62  ;;  %v14708_v51 = vld [vmem:[%s21326_s5 + $0x1150] sm:$0xff] }
 0x772   :  { %v10378_v10 = vadd.f32 %v22049_v0, %v10365_v15  ;;  %v22054_v0 = vld [vmem:[#allocation70_spill] sm:$0xff] }
 0x773   :  { %v10691_v1 = vpop.f32.mrf.mxu3 }
 0x774   :  { %v10391_v62 = vadd.f32 %v20567_v14, %v10378_v10  ;;  %v14681_v14 = vld [vmem:[%s21326_s5 + $0x1078] sm:$0xff]  ;;  %v22052_v1 = vld [vmem:[#allocation48_spill] sm:$0xff] }
 0x775   :  { %10605 = vmatpush.bf16.msrb.mxu2 %v14614_v34  ;;  %v10353_v58 = vpop.f32.mrf.mxu2 }
 0x776   :  { %v14676_v58 = vld [vmem:[%s21326_s5 + $0x1050] sm:$0xff] }
 0x778   :  { %v21200_v46 = vpop.f32.mrf.mxu1 }
 0x779   :  { %10606 = vmatpush.bf16.msrb.mxu2 %v14613_v21 }
 0x77d   :  { %10607 = vmatpush.bf16.msrb.mxu2 %v14612_v8 }
 0x780   :  { %v10730_v4 = vpop.f32.mrf.mxu1 }
 0x781   :  { %10608 = vmatpush.bf16.msrb.mxu2 %v14611_v60  ;;  %v22051_v60 = vld [vmem:[#allocation46_spill] sm:$0xff] }
 0x785   :  { %10609 = vmatpush.bf16.msrb.mxu2 %v14610_v39 }
 0x788   :  { %10610 = vmatmul.bf16.vlgmr.msrb.gmra.mxu2 %v4926_v38  ;;  %v14709_v38 = vld [vmem:[%s21326_s5 + $0x1158] sm:$0xff] }
 0x789   :  { %10654 = vmatpush.bf16.msra.mxu2 %v14649_v55  ;;  %v21220_v18 = vpop.f32.mrf.mxu0 }
 0x78b   :  { %v21226_v43 = vpop.f32.mrf.mxu3 }
 0x78d   :  { %10655 = vmatpush.bf16.msra.mxu2 %v14648_v5  ;;  %v10403_v13 = vpop.f32.mrf.mxu2 }
 0x78e   :  { %v10404_v34 = vadd.f32 %v10403_v13, %v10391_v62 }
 0x790   :  { %v10417_v24 = vadd.f32 %v22051_v60, %v10404_v34 }
 0x791   :  { %10656 = vmatpush.bf16.msra.mxu2 %v14647_v47  ;;  %v10704_v21 = vpop.f32.mrf.mxu0 }
 0x792   :  { %v10430_v39 = vadd.f32 %v22052_v1, %v10417_v24 }
 0x793   :  { %v10743_v3 = vpop.f32.mrf.mxu3 }
 0x794   :  { %v10443_v16 = vadd.f32 %v20749_v49, %v10430_v39  ;;  %v14713_v49 = vld [vmem:[%s21326_s5 + $0x1178] sm:$0xff] }
 0x795   :  { %10657 = vmatpush.bf16.msra.mxu2 %v14646_v42  ;;  %v10405_v8 = vpop.f32.mrf.mxu2  ;;  %v14707_v42 = vld [vmem:[%s21326_s5 + $0x1148] sm:$0xff] }
 0x798   :  { %v21241_v44 = vpop.f32.mrf.mxu1 }
 0x799   :  { %10658 = vmatpush.bf16.msra.mxu2 %v14645_v36  ;;  %v14706_v36 = vld [vmem:[%s21326_s5 + $0x1140] sm:$0xff] }
 0x79d   :  { %10659 = vmatpush.bf16.msra.mxu2 %v14644_v35 }
 0x7a0   :  { %v10782_v23 = vpop.f32.mrf.mxu1 }
 0x7a1   :  { %10660 = vmatpush.bf16.msra.mxu2 %v14643_v31 }
 0x7a5   :  { %10661 = vmatpush.bf16.msra.mxu2 %v14642_v59 }
 0x7a6   :  { %v21254_v57 = vpop.f32.mrf.mxu0 }
 0x7a8   :  { %10662 = vmatmul.bf16.vlgmr.msra.gmra.mxu2 %v22050_v50 }
 0x7a9   :  { %10706 = vmatpush.bf16.msrb.mxu2 %v14681_v14  ;;  %v21260_v6 = vpop.f32.mrf.mxu3 }
 0x7ab   :  { %v10455_v55 = vpop.f32.mrf.mxu2 }
 0x7ac   :  { %v10456_v63 = vadd.f32 %v10455_v55, %v10443_v16 }
 0x7ad   :  { %10707 = vmatpush.bf16.msrb.mxu2 %v14680_v37 }
 0x7ae   :  { %v10756_v7 = vpop.f32.mrf.mxu0  ;;  %v10469_v5 = vadd.f32 %v20674_v20, %v10456_v63 }
 0x7b0   :  { %v10482_v47 = vadd.f32 %v20775_v30, %v10469_v5 }
 0x7b1   :  { %10708 = vmatpush.bf16.msrb.mxu2 %v14679_v52  ;;  %v10795_v41 = vpop.f32.mrf.mxu3 }
 0x7b2   :  { %v10495_v4 = vadd.f32 %v20956_v17, %v10482_v47 }
 0x7b3   :  { %v10457_v40 = vpop.f32.mrf.mxu2 }
 0x7b5   :  { %10709 = vmatpush.bf16.msrb.mxu2 %v14678_v54 }
 0x7b9   :  { %10710 = vmatpush.bf16.msrb.mxu2 %v14677_v32 }
 0x7bd   :  { %10711 = vmatpush.bf16.msrb.mxu2 %v14676_v58 }
 0x7c1   :  { %10712 = vmatpush.bf16.msrb.mxu2 %v14675_v28 }
 0x7c5   :  { %10713 = vmatpush.bf16.msrb.mxu2 %v14674_v19 }
 0x7c8   :  { %10714 = vmatmul.bf16.vlgmr.msrb.gmra.mxu2 %v22053_v29 }
 0x7c9   :  { %10758 = vmatpush.bf16.msra.mxu2 %v14713_v49 }
 0x7cb   :  { %v10507_v20 = vpop.f32.mrf.mxu2 }
 0x7cc   :  { %v10508_v15 = vadd.f32 %v10507_v20, %v10495_v4 }
 0x7cd   :  { %10759 = vmatpush.bf16.msra.mxu2 %v14712_v2 }
 0x7ce   :  { %v10521_v17 = vadd.f32 %v20878_v9, %v10508_v15 }
 0x7d0   :  { %v10534_v10 = vadd.f32 %v20978_v45, %v10521_v17 }
 0x7d1   :  { %10760 = vmatpush.bf16.msra.mxu2 %v14711_v27 }
 0x7d2   :  { %v10547_v62 = vadd.f32 %v21074_v12, %v10534_v10 }
 0x7d3   :  { %v10509_v30 = vpop.f32.mrf.mxu2 }
 0x7d5   :  { %10761 = vmatpush.bf16.msra.mxu2 %v14710_v11 }
 0x7d9   :  { %10762 = vmatpush.bf16.msra.mxu2 %v14709_v38 }
 0x7dd   :  { %10763 = vmatpush.bf16.msra.mxu2 %v14708_v51 }
 0x7e1   :  { %10764 = vmatpush.bf16.msra.mxu2 %v14707_v42 }
 0x7e5   :  { %10765 = vmatpush.bf16.msra.mxu2 %v14706_v36 }
 0x7e8   :  { %10766 = vmatmul.bf16.vlgmr.msra.gmra.mxu2 %v22054_v0 }
 0x7eb   :  { %v10559_v35 = vpop.f32.mrf.mxu2 }
 0x7ec   :  { %v10560_v13 = vadd.f32 %v10559_v35, %v10547_v62 }
 0x7ee   :  { %v10573_v59 = vadd.f32 %v21045_v53, %v10560_v13 }
 0x7f0   :  { %v10586_v14 = vadd.f32 %v21080_v26, %v10573_v59 }
 0x7f2   :  { %v10599_v37 = vadd.f32 %v21108_v56, %v10586_v14 }
 0x7f3   :  { %v10561_v34 = vpop.f32.mrf.mxu2 }
 0x80b   :  { %v10611_v21 = vpop.f32.mrf.mxu2 }
 0x80c   :  { %v10612_v50 = vadd.f32 %v10611_v21, %v10599_v37 }
 0x80e   :  { %v10625_v9 = vadd.f32 %v21095_v33, %v10612_v50 }
 0x810   :  { %v10638_v45 = vadd.f32 %v21114_v25, %v10625_v9 }
 0x812   :  { %v10651_v12 = vadd.f32 %v21164_v61, %v10638_v45 }
 0x813   :  { %v10613_v31 = vpop.f32.mrf.mxu2 }
 0x82b   :  { %v10663_v3 = vpop.f32.mrf.mxu2 }
 0x82c   :  { %v10664_v23 = vadd.f32 %v10663_v3, %v10651_v12 }
 0x82e   :  { %v10677_v60 = vadd.f32 %v21144_v22, %v10664_v23 }
 0x830   :  { %v10690_v54 = vadd.f32 %v21170_v48, %v10677_v60 }
 0x832   :  { %v10703_v53 = vadd.f32 %v21220_v18, %v10690_v54 }
 0x833   :  { %v10665_v8 = vpop.f32.mrf.mxu2 }
 0x84b   :  { %v10715_v52 = vpop.f32.mrf.mxu2 }
 0x84c   :  { %v10716_v32 = vadd.f32 %v10715_v52, %v10703_v53 }
 0x84e   :  { %v10729_v26 = vadd.f32 %v21200_v46, %v10716_v32 }
 0x850   :  { %v10742_v56 = vadd.f32 %v21226_v43, %v10729_v26 }
 0x852   :  { %v10755_v33 = vadd.f32 %v21254_v57, %v10742_v56 }
 0x853   :  { %v10717_v24 = vpop.f32.mrf.mxu2 }
 0x86b   :  { %v10767_v1 = vpop.f32.mrf.mxu2 }
 0x86c   :  { %v10768_v25 = vadd.f32 %v10767_v1, %v10755_v33 }
 0x86e   :  { %v10781_v61 = vadd.f32 %v21241_v44, %v10768_v25 }
 0x870   :  { %v10794_v39 = vadd.f32 %v21260_v6, %v10781_v61 }
 0x872   :  { %10797 = vmax.xlane.f32.xlu0 %v10794_v39 }
 0x873   :  { %v10769_v22 = vpop.f32.mrf.mxu2 }
 0x8e5   :  { %v10798_v16 = vpop.xlane.xlu0 %10797 }
 0x8e6   :  { %v10799_v58 = vsub.f32 %v10794_v39, %v10798_v16 }
 0x8e8   :  { %v10800_v48 = vmul.f32 1.442695, %v10799_v58 }
 0x8ea   :  { %14731 = vpow2.f32 %v10800_v48 }
 0x8f0   :  { %v14732_v18 = vpop.eup %14731 }
 0x8f1   :  { %10802 = vadd.xlane.f32.xlu0 %v14732_v18 }
 0x964   :  { %v10803_v55 = vpop.xlane.xlu0 %10802 }
 0x965   :  { %14733 = vrcp.f32 %v10803_v55  ;;  %v10815_v57 = vand.u32 2147483648, %v10803_v55  ;;  %v10813_v28 = vand.u32 2147483647, %v10803_v55  ;;  %vm10809_vm12 = vweird.f32 %v10803_v55 }
 0x967   :  { %v10816_v6 = vor.u32 1.1754944e-38, %v10815_v57  ;;  %vm10814_vm14 = vcmp.eq.f32.partialorder %v10813_v28, 8.507059e+37 }
 0x96b   :  { %v14734_v46 = vpop.eup %14733 }
 0x96c   :  { %v10805_v43 = vmul.f32 %v14734_v46, %v10803_v55  ;;  %vm10810_vm11 = vweird.f32 %v14734_v46 }
 0x96d   :  { %vm10811_vm13 = vmor %vm10809_vm12, %vm10810_vm11 }
 0x96e   :  { %v10806_v63 = vsub.f32 1.0, %v10805_v43 }
 0x970   :  { %v10807_v7 = vmul.f32 %v14734_v46, %v10806_v63 }
 0x972   :  { %v10808_v44 = vadd.f32 %v14734_v46, %v10807_v7 }
 0x974   :  { %v10812_v41 = vsel %vm10811_vm13, %v14734_v46, %v10808_v44 }
 0x975   :  { %v10817_v19 = vsel %vm10814_vm14, %v10816_v6, %v10812_v41 }
 0x976   :  { %v10818_v40 = vmul.f32 %v14732_v18, %v10817_v19 }
 0x978   :  { %10819 = vst [vmem:[%s21328_s7] sm:$0xff] %v10818_v40 }

</bundles_post_ra>
